<compile_context>
chip_gen: v7x
topology: tpu7x:2x2x1
jax: 0.10.0
libtpu: 0.0.40
codegen_flags: <defaults>
</compile_context>

<pallas_src>
import jax
import jax.numpy as jnp
from jax.experimental import pallas as pl
from jax.experimental.pallas import tpu as pltpu


def _pick_tile(n, target=512):
    """Largest 'nice' tile <= target that divides n (falls back to n)."""
    for cand in (target, 512, 256, 128, 64, 32, 16, 8):
        if cand <= n and n % cand == 0:
            return cand
    return n


# ----------------------------- Pallas kernels ------------------------------

def _fused_1x1_kernel(x_ref, w_ref, b_ref, o0_ref, o1_ref, o2_ref):
    # One matmul for the three 1x1x1 convs (BN scale pre-folded into weights).
    y = jnp.dot(x_ref[...], w_ref[...], preferred_element_type=jnp.float32)
    y = jnp.maximum(y + b_ref[...], 0.0)
    c0 = o0_ref.shape[-1]
    c1 = o1_ref.shape[-1]
    o0_ref[...] = y[:, :c0].astype(o0_ref.dtype)
    o1_ref[...] = y[:, c0:c0 + c1].astype(o1_ref.dtype)
    o2_ref[...] = y[:, c0 + c1:].astype(o2_ref.dtype)


def _spatial_conv_kernel(x_ref, w_ref, b_ref, o_ref):
    # Conv3d kernel (1,3,3), stride 1, padding (0,1,1), folded BN + ReLU.
    # x_ref: (1, H+2, W+2, C) halo slab; w_ref: (9, C, Cout); b_ref: (1, Cout).
    _, hp2, wp2, c = x_ref.shape
    h_out, w_out = hp2 - 2, wp2 - 2
    cout = o_ref.shape[-1]
    x = x_ref[0]                                        # (H+2, W+2, C)
    acc = jnp.zeros((h_out * w_out, cout), jnp.float32)
    # One (H*W, C) x (C, Cout) matmul per filter tap (9 total).
    for kh in range(3):
        for kw in range(3):
            tap = x[kh:kh + h_out, kw:kw + w_out, :].reshape(h_out * w_out, c)
            acc = acc + jnp.dot(tap, w_ref[3 * kh + kw],
                                preferred_element_type=jnp.float32)
    y = jnp.maximum(acc + b_ref[...], 0.0)
    o_ref[...] = y.reshape(1, h_out, w_out, cout).astype(o_ref.dtype)


def _temporal_conv_kernel(x_ref, w_ref, b_ref, o_ref):
    # Conv3d kernel (3,1,1), stride 1, padding (1,0,0), folded BN + ReLU.
    # x_ref: (1, T+2, S, C) halo slab; w_ref: (3, C, Cout); b_ref: (1, Cout).
    _, tp2, s, c = x_ref.shape
    t_out = tp2 - 2
    cout = o_ref.shape[-1]
    x = x_ref[0]                                        # (T+2, S, C)
    acc = jnp.zeros((t_out * s, cout), jnp.float32)
    for kt in range(3):
        tap = x[kt:kt + t_out].reshape(t_out * s, c)    # contiguous collapse
        acc = acc + jnp.dot(tap, w_ref[kt], preferred_element_type=jnp.float32)
    y = jnp.maximum(acc + b_ref[...], 0.0)
    o_ref[...] = y.reshape(1, t_out, s, cout).astype(o_ref.dtype)


def _pool_conv_kernel(x_ref, w_ref, b_ref, o_ref):
    # MaxPool3d(3, stride 1, pad 1) fused with the following 1x1x1 conv+BN+ReLU.
    # x_ref: (1, T+2, H+2, W+2, C) (-inf padded); w_ref: (C, Cout); b_ref: (1, Cout).
    _, tp2, hp2, wp2, c = x_ref.shape
    t_out, h_out, w_out = tp2 - 2, hp2 - 2, wp2 - 2
    cout = o_ref.shape[-1]
    x = x_ref[0]                                        # (T+2, H+2, W+2, C)
    # Separable 3x3x3 max-pool: W, then H, then T (9 shifted maxes, VPU work).
    mw = jnp.maximum(jnp.maximum(x[:, :, 0:w_out], x[:, :, 1:w_out + 1]),
                     x[:, :, 2:w_out + 2])              # (T+2, H+2, W, C)
    mh = jnp.maximum(jnp.maximum(mw[:, 0:h_out], mw[:, 1:h_out + 1]),
                     mw[:, 2:h_out + 2])                # (T+2, H, W, C)
    mt = jnp.maximum(jnp.maximum(mh[0:t_out], mh[1:t_out + 1]),
                     mh[2:t_out + 2])                   # (T, H, W, C)
    pooled = mt.reshape(t_out * h_out * w_out, c)
    y = jnp.dot(pooled, w_ref[...], preferred_element_type=jnp.float32)
    y = jnp.maximum(y + b_ref[...], 0.0)
    o_ref[...] = y.reshape(1, t_out, h_out, w_out, cout).astype(o_ref.dtype)


def _gate_concat_kernel(b0_ref, b1_ref, b2_ref, b3_ref,
                        g0_ref, g1_ref, g2_ref, g3_ref, o_ref):
    # Apply per-(batch, channel) gates and write all branches into column
    # slices of one lane-dense concatenated output tile.
    off = 0
    for b_ref, g_ref in ((b0_ref, g0_ref), (b1_ref, g1_ref),
                         (b2_ref, g2_ref), (b3_ref, g3_ref)):
        c = b_ref.shape[-1]
        o_ref[0, :, off:off + c] = (b_ref[0] * g_ref[0]).astype(o_ref.dtype)
        off += c


# ------------------------------ wrappers ------------------------------------

def fused_1x1_convs(x2d, w_cat, b_cat, c0, c1, c2):
    m, k = x2d.shape
    ctot = w_cat.shape[1]
    tile_m = _pick_tile(m, 512)
    return pl.pallas_call(
        _fused_1x1_kernel,
        out_shape=(jax.ShapeDtypeStruct((m, c0), jnp.float32),
                   jax.ShapeDtypeStruct((m, c1), jnp.bfloat16),
                   jax.ShapeDtypeStruct((m, c2), jnp.bfloat16)),
        grid=(m // tile_m,),
        in_specs=[pl.BlockSpec((tile_m, k), lambda i: (i, 0)),
                  pl.BlockSpec((k, ctot), lambda i: (0, 0)),
                  pl.BlockSpec((1, ctot), lambda i: (0, 0))],
        out_specs=(pl.BlockSpec((tile_m, c0), lambda i: (i, 0)),
                   pl.BlockSpec((tile_m, c1), lambda i: (i, 0)),
                   pl.BlockSpec((tile_m, c2), lambda i: (i, 0))),
        compiler_params=pltpu.CompilerParams(dimension_semantics=("parallel",)),
    )(x2d, w_cat, b_cat.reshape(1, -1))


def spatial_conv_3x3(x5d, w9, bias):
    # x5d: (N, T, H, W, C) bf16; w9: (9, C, Cout) bf16; bias: (Cout,) f32.
    n, t, h, w, c = x5d.shape
    cout = w9.shape[-1]
    xp = jnp.pad(x5d, ((0, 0), (0, 0), (1, 1), (1, 1), (0, 0)))
    xp = xp.reshape(n * t, h + 2, w + 2, c)
    out = pl.pallas_call(
        _spatial_conv_kernel,
        out_shape=jax.ShapeDtypeStruct((n * t, h, w, cout), jnp.bfloat16),
        grid=(n * t,),
        in_specs=[pl.BlockSpec((1, h + 2, w + 2, c), lambda i: (i, 0, 0, 0)),
                  pl.BlockSpec((9, c, cout), lambda i: (0, 0, 0)),
                  pl.BlockSpec((1, cout), lambda i: (0, 0))],
        out_specs=pl.BlockSpec((1, h, w, cout), lambda i: (i, 0, 0, 0)),
        compiler_params=pltpu.CompilerParams(dimension_semantics=("parallel",)),
    )(xp, w9, bias.reshape(1, -1))
    return out.reshape(n, t, h, w, cout)


def temporal_conv_3(x5d, w3, bias):
    # x5d: (N, T, H, W, C) bf16; w3: (3, C, Cout) bf16; bias: (Cout,) f32.
    n, t, h, w, c = x5d.shape
    cout = w3.shape[-1]
    s = h * w
    xp = jnp.pad(x5d.reshape(n, t, s, c), ((0, 0), (1, 1), (0, 0), (0, 0)))
    return pl.pallas_call(
        _temporal_conv_kernel,
        out_shape=jax.ShapeDtypeStruct((n, t, s, cout), jnp.float32),
        grid=(n,),
        in_specs=[pl.BlockSpec((1, t + 2, s, c), lambda i: (i, 0, 0, 0)),
                  pl.BlockSpec((3, c, cout), lambda i: (0, 0, 0)),
                  pl.BlockSpec((1, cout), lambda i: (0, 0))],
        out_specs=pl.BlockSpec((1, t, s, cout), lambda i: (i, 0, 0, 0)),
        compiler_params=pltpu.CompilerParams(dimension_semantics=("parallel",)),
    )(xp, w3, bias.reshape(1, -1))


def maxpool3_conv1x1(x5d, w, bias):
    # x5d: (N, T, H, W, C) bf16; w: (C, Cout) bf16; bias: (Cout,) f32.
    n, t, h, w_sz, c = x5d.shape
    cout = w.shape[-1]
    xp = jnp.pad(x5d, ((0, 0), (1, 1), (1, 1), (1, 1), (0, 0)),
                 constant_values=-jnp.inf)
    return pl.pallas_call(
        _pool_conv_kernel,
        out_shape=jax.ShapeDtypeStruct((n, t, h, w_sz, cout), jnp.float32),
        grid=(n,),
        in_specs=[pl.BlockSpec((1, t + 2, h + 2, w_sz + 2, c),
                               lambda i: (i, 0, 0, 0, 0)),
                  pl.BlockSpec((c, cout), lambda i: (0, 0)),
                  pl.BlockSpec((1, cout), lambda i: (0, 0))],
        out_specs=pl.BlockSpec((1, t, h, w_sz, cout), lambda i: (i, 0, 0, 0, 0)),
        compiler_params=pltpu.CompilerParams(dimension_semantics=("parallel",)),
    )(xp, w, bias.reshape(1, -1))


def gate_concat(branches, gates, out_dim):
    n, s = branches[0].shape[0], branches[0].shape[1]
    tile_s = _pick_tile(s, 512)
    in_specs = [pl.BlockSpec((1, tile_s, b.shape[-1]), lambda i, j: (i, j, 0))
                for b in branches]
    in_specs += [pl.BlockSpec((1, 1, g.shape[-1]), lambda i, j: (i, 0, 0))
                 for g in gates]
    return pl.pallas_call(
        _gate_concat_kernel,
        out_shape=jax.ShapeDtypeStruct((n, s, out_dim), jnp.float32),
        grid=(n, s // tile_s),
        in_specs=in_specs,
        out_specs=pl.BlockSpec((1, tile_s, out_dim), lambda i, j: (i, j, 0)),
        compiler_params=pltpu.CompilerParams(
            dimension_semantics=("parallel", "parallel")),
    )(*branches, *gates)


# --------------------------- parameter setup --------------------------------

def init_params(key, input_dim, n00a, n10a, n10b, n20a, n20b, n30b):
    keys = iter(jax.random.split(key, 32))

    def fan_in_init(shape):
        fan_in = 1
        for d in shape[:-1]:
            fan_in *= d
        return jax.random.normal(next(keys), shape, jnp.float32) / jnp.sqrt(float(fan_in))

    def bn_fold(c, eps=1e-5):
        k1, k2, k3, k4 = jax.random.split(next(keys), 4)
        gamma = jax.random.uniform(k1, (c,), jnp.float32, 0.5, 1.5)
        beta = 0.1 * jax.random.normal(k2, (c,), jnp.float32)
        rmean = 0.1 * jax.random.normal(k3, (c,), jnp.float32)
        rvar = jax.random.uniform(k4, (c,), jnp.float32, 0.5, 1.5)
        scale = gamma / jnp.sqrt(rvar + eps)
        bias = beta - rmean * scale
        return scale, bias

    p = {}
    # Three 1x1x1 convs reading the block input: fold BN scale into weights,
    # concatenate along Cout so they run as one matmul.
    ws, bs = [], []
    for c in (n00a, n10a, n20a):
        w = fan_in_init((input_dim, c))
        s, b = bn_fold(c)
        ws.append(w * s[None, :])
        bs.append(b)
    p["w_1x1_cat"] = jnp.concatenate(ws, axis=1).astype(jnp.bfloat16)
    p["b_1x1_cat"] = jnp.concatenate(bs, axis=0)

    # Branch 1 separable conv: spatial (1,3,3) then temporal (3,1,1), BN folded.
    w = fan_in_init((3, 3, n10a, n10b)); s, b = bn_fold(n10b)
    p["b1b_ws"] = (w * s).reshape(9, n10a, n10b).astype(jnp.bfloat16)
    p["b1b_bs"] = b
    w = fan_in_init((3, n10b, n10b)); s, b = bn_fold(n10b)
    p["b1b_wt"] = (w * s).astype(jnp.bfloat16)
    p["b1b_bt"] = b

    # Branch 2 separable conv.
    w = fan_in_init((3, 3, n20a, n20b)); s, b = bn_fold(n20b)
    p["b2b_ws"] = (w * s).reshape(9, n20a, n20b).astype(jnp.bfloat16)
    p["b2b_bs"] = b
    w = fan_in_init((3, n20b, n20b)); s, b = bn_fold(n20b)
    p["b2b_wt"] = (w * s).astype(jnp.bfloat16)
    p["b2b_bt"] = b

    # Branch 3: 1x1x1 conv after the maxpool.
    w = fan_in_init((input_dim, n30b)); s, b = bn_fold(n30b)
    p["b3_w"] = (w * s[None, :]).astype(jnp.bfloat16)
    p["b3_b"] = b

    # SelfGating fc per branch (kept in f32; tiny, evaluated in plain JAX).
    for name, c in (("g0", n00a), ("g1", n10b), ("g2", n20b), ("g3", n30b)):
        p[name + "_w"] = fan_in_init((c, c))
        p[name + "_b"] = 0.1 * jax.random.normal(next(keys), (c,), jnp.float32)
    return p


def _make_gates(branches, params, gating):
    # TODO(synk): per-(N, C) means stay in plain JAX rather than being fused as
    # extra accumulator outputs of the producing kernels.
    gates = []
    for b, wname, bname in zip(branches,
                               ("g0_w", "g1_w", "g2_w", "g3_w"),
                               ("g0_b", "g1_b", "g2_b", "g3_b")):
        if gating:
            avg = jnp.mean(b, axis=1)                                   # (N, C)
            g = jax.nn.sigmoid(avg @ params[wname] + params[bname])     # (N, C)
        else:
            g = jnp.ones((b.shape[0], b.shape[-1]), jnp.float32)
        gates.append(g[:, None, :])                                     # (N, 1, C)
    return gates


# ------------------------------- forward ------------------------------------

def inception_block_forward(params, x_ncthw, gating=True):
    # TODO(synk): keeping the model NTHWC end-to-end would remove these two
    # full-tensor transposes.
    x = jnp.transpose(x_ncthw, (0, 2, 3, 4, 1)).astype(jnp.bfloat16)   # NTHWC
    n, t, h, w, c = x.shape
    s = t * h * w
    m = n * s

    c0 = params["g0_w"].shape[0]
    c1a = params["b1b_ws"].shape[1]
    c2a = params["b2b_ws"].shape[1]

    # Branches 0 / 1a / 2a: one fused BN-folded 1x1x1 conv (input read once).
    b0, b1a, b2a = fused_1x1_convs(x.reshape(m, c), params["w_1x1_cat"],
                                   params["b_1x1_cat"], c0, c1a, c2a)

    # Branch 1: separable 3x3x3 conv via halo kernels (no materialized im2col).
    b1 = spatial_conv_3x3(b1a.reshape(n, t, h, w, c1a),
                          params["b1b_ws"], params["b1b_bs"])
    b1 = temporal_conv_3(b1, params["b1b_wt"], params["b1b_bt"])        # (N,T,HW,c)

    # Branch 2: same structure.
    b2 = spatial_conv_3x3(b2a.reshape(n, t, h, w, c2a),
                          params["b2b_ws"], params["b2b_bs"])
    b2 = temporal_conv_3(b2, params["b2b_wt"], params["b2b_bt"])

    # Branch 3: fused 3x3x3 maxpool (stride 1, pad 1) + 1x1x1 conv + BN + ReLU.
    b3 = maxpool3_conv1x1(x, params["b3_w"], params["b3_b"])            # (N,T,H,W,c)

    branches = (b0.reshape(n, s, -1), b1.reshape(n, s, -1),
                b2.reshape(n, s, -1), b3.reshape(n, s, -1))
    gates = _make_gates(branches, params, gating)
    out_dim = sum(b.shape[-1] for b in branches)

    out = gate_concat(branches, gates, out_dim)                         # (N,S,out_dim)
    out = out.reshape(n, t, h, w, out_dim)
    return jnp.transpose(out, (0, 4, 1, 2, 3))                          # NCTHW


# --------------------------- pure-JAX reference ------------------------------

def reference_forward(params, x_ncthw, gating=True):
    """Pure-JAX reference with the same bf16 rounding points as the kernels."""
    f32 = jnp.float32
    x = jnp.transpose(x_ncthw, (0, 2, 3, 4, 1)).astype(jnp.bfloat16).astype(f32)
    n, t, h, w, c = x.shape

    def rnd(a):
        return a.astype(jnp.bfloat16).astype(f32)

    def conv1x1(inp, wmat, bias):
        return jax.nn.relu(jnp.einsum("nthwc,cd->nthwd", inp, wmat.astype(f32)) + bias)

    def spatial3x3(inp, w9, bias):
        xp = jnp.pad(inp, ((0, 0), (0, 0), (1, 1), (1, 1), (0, 0)))
        acc = 0.0
        for kh in range(3):
            for kw in range(3):
                acc = acc + jnp.einsum("nthwc,cd->nthwd",
                                       xp[:, :, kh:kh + h, kw:kw + w, :],
                                       w9[3 * kh + kw].astype(f32))
        return jax.nn.relu(acc + bias)

    def temporal3(inp, w3, bias):
        xp = jnp.pad(inp, ((0, 0), (1, 1), (0, 0), (0, 0), (0, 0)))
        acc = 0.0
        for kt in range(3):
            acc = acc + jnp.einsum("nthwc,cd->nthwd",
                                   xp[:, kt:kt + t], w3[kt].astype(f32))
        return jax.nn.relu(acc + bias)

    def maxpool3(inp):
        xp = jnp.pad(inp, ((0, 0), (1, 1), (1, 1), (1, 1), (0, 0)),
                     constant_values=-jnp.inf)
        out = jnp.full_like(inp, -jnp.inf)
        for kt in range(3):
            for kh in range(3):
                for kw in range(3):
                    out = jnp.maximum(out, xp[:, kt:kt + t, kh:kh + h, kw:kw + w, :])
        return out

    c0 = params["g0_w"].shape[0]
    c1a = params["b1b_ws"].shape[1]
    y = conv1x1(x, params["w_1x1_cat"], params["b_1x1_cat"])
    b0, b1a, b2a = y[..., :c0], rnd(y[..., c0:c0 + c1a]), rnd(y[..., c0 + c1a:])

    b1 = temporal3(rnd(spatial3x3(b1a, params["b1b_ws"], params["b1b_bs"])),
                   params["b1b_wt"], params["b1b_bt"])
    b2 = temporal3(rnd(spatial3x3(b2a, params["b2b_ws"], params["b2b_bs"])),
                   params["b2b_wt"], params["b2b_bt"])
    b3 = conv1x1(maxpool3(x), params["b3_w"], params["b3_b"])

    outs = []
    for b, wn, bn in zip((b0, b1, b2, b3),
                         ("g0_w", "g1_w", "g2_w", "g3_w"),
                         ("g0_b", "g1_b", "g2_b", "g3_b")):
        if gating:
            avg = jnp.mean(b, axis=(1, 2, 3))
            g = jax.nn.sigmoid(avg @ params[wn] + params[bn])
            b = b * g[:, None, None, None, :]
        outs.append(b)
    out = jnp.concatenate(outs, axis=-1)
    return jnp.transpose(out, (0, 4, 1, 2, 3))


# -------------------------------- main ---------------------------------------

if __name__ == "__main__":
    key = jax.random.PRNGKey(0)
    kx, kp = jax.random.split(key)

    N, Cin, T, H, W = 2, 4, 4, 8, 8
    dims = dict(input_dim=Cin, n00a=6, n10a=5, n10b=8, n20a=5, n20b=8, n30b=6)
    out_dim = dims["n00a"] + dims["n10b"] + dims["n20b"] + dims["n30b"]

    params = init_params(kp, **dims)
    x = jax.random.normal(kx, (N, Cin, T, H, W), jnp.float32)

    fwd = jax.jit(inception_block_forward, static_argnames=("gating",))
    out = jax.block_until_ready(fwd(params, x, gating=True))

    assert out.shape == (N, out_dim, T, H, W), out.shape
    assert bool(jnp.all(jnp.isfinite(out)))

    ref = reference_forward(params, x, gating=True)
    max_err = float(jnp.max(jnp.abs(out - ref)))
    assert max_err < 2e-2, f"max abs error vs reference: {max_err}"

    print("KERNEL_OK")
</pallas_src>

<mosaic_0001>
module attributes {stable_mosaic.version = 11 : i64} {
  func.func @_pool_conv_kernel(%arg0: i32, %arg1: memref<1x6x10x10x4xbf16, #tpu.memory_space<vmem>>, %arg2: memref<4x6xbf16, #tpu.memory_space<vmem>>, %arg3: memref<1x6xf32, #tpu.memory_space<vmem>>, %arg4: memref<1x4x8x8x6xf32, #tpu.memory_space<vmem>>) attributes {dimension_semantics = [#tpu.dimension_semantics<parallel>], iteration_bounds = array<i64: 2>, scalar_prefetch = 0 : i64, scratch_operands = 0 : i64, tpu.core_type = #tpu.core_type<tc>, window_params = [{transform_indices = @transform_0, window_bounds = array<i64: 1, 6, 10, 10, 4>}, {pipeline_mode = #tpu.pipeline_mode<synchronous>, transform_indices = @transform_1, window_bounds = array<i64: 4, 6>}, {pipeline_mode = #tpu.pipeline_mode<synchronous>, transform_indices = @transform_2, window_bounds = array<i64: 1, 6>}, {transform_indices = @transform_3, window_bounds = array<i64: 1, 4, 8, 8, 6>}]} {
    %c0 = arith.constant 0 : index
    %c0_0 = arith.constant 0 : index
    %c0_1 = arith.constant 0 : index
    %c0_2 = arith.constant 0 : index
    %c0_3 = arith.constant 0 : index
    %0 = vector.load %arg1[%c0, %c0_0, %c0_1, %c0_2, %c0_3] : memref<1x6x10x10x4xbf16, #tpu.memory_space<vmem>>, vector<1x6x10x10x4xbf16>
    %1 = vector.shape_cast %0 : vector<1x6x10x10x4xbf16> to vector<6x10x10x4xbf16>
    %2 = vector.extract_strided_slice %1 {offsets = [0, 0, 0, 0], sizes = [6, 10, 8, 4], strides = [1, 1, 1, 1]} : vector<6x10x10x4xbf16> to vector<6x10x8x4xbf16>
    %3 = vector.extract_strided_slice %1 {offsets = [0, 0, 1, 0], sizes = [6, 10, 8, 4], strides = [1, 1, 1, 1]} : vector<6x10x10x4xbf16> to vector<6x10x8x4xbf16>
    %4 = arith.maximumf %2, %3 : vector<6x10x8x4xbf16>
    %5 = vector.extract_strided_slice %1 {offsets = [0, 0, 2, 0], sizes = [6, 10, 8, 4], strides = [1, 1, 1, 1]} : vector<6x10x10x4xbf16> to vector<6x10x8x4xbf16>
    %6 = arith.maximumf %4, %5 : vector<6x10x8x4xbf16>
    %7 = vector.extract_strided_slice %6 {offsets = [0, 0, 0, 0], sizes = [6, 8, 8, 4], strides = [1, 1, 1, 1]} : vector<6x10x8x4xbf16> to vector<6x8x8x4xbf16>
    %8 = vector.extract_strided_slice %6 {offsets = [0, 1, 0, 0], sizes = [6, 8, 8, 4], strides = [1, 1, 1, 1]} : vector<6x10x8x4xbf16> to vector<6x8x8x4xbf16>
    %9 = arith.maximumf %7, %8 : vector<6x8x8x4xbf16>
    %10 = vector.extract_strided_slice %6 {offsets = [0, 2, 0, 0], sizes = [6, 8, 8, 4], strides = [1, 1, 1, 1]} : vector<6x10x8x4xbf16> to vector<6x8x8x4xbf16>
    %11 = arith.maximumf %9, %10 : vector<6x8x8x4xbf16>
    %12 = vector.extract_strided_slice %11 {offsets = [0, 0, 0, 0], sizes = [4, 8, 8, 4], strides = [1, 1, 1, 1]} : vector<6x8x8x4xbf16> to vector<4x8x8x4xbf16>
    %13 = vector.extract_strided_slice %11 {offsets = [1, 0, 0, 0], sizes = [4, 8, 8, 4], strides = [1, 1, 1, 1]} : vector<6x8x8x4xbf16> to vector<4x8x8x4xbf16>
    %14 = arith.maximumf %12, %13 : vector<4x8x8x4xbf16>
    %15 = vector.extract_strided_slice %11 {offsets = [2, 0, 0, 0], sizes = [4, 8, 8, 4], strides = [1, 1, 1, 1]} : vector<6x8x8x4xbf16> to vector<4x8x8x4xbf16>
    %16 = arith.maximumf %14, %15 : vector<4x8x8x4xbf16>
    %17 = vector.shape_cast %16 : vector<4x8x8x4xbf16> to vector<256x4xbf16>
    %c0_4 = arith.constant 0 : index
    %c0_5 = arith.constant 0 : index
    %18 = vector.load %arg2[%c0_4, %c0_5] : memref<4x6xbf16, #tpu.memory_space<vmem>>, vector<4x6xbf16>
    %cst = arith.constant dense<0.000000e+00> : vector<256x6xf32>
    %19 = tpu.matmul %17, %18, %cst {dimension_numbers = #tpu.dot_dimension_numbers<[1], [0], [0], [1], [0, 0, 1, 1], [], []>} : vector<256x4xbf16>, vector<4x6xbf16>, vector<256x6xf32> -> vector<256x6xf32>
    %c0_6 = arith.constant 0 : index
    %c0_7 = arith.constant 0 : index
    %20 = vector.load %arg3[%c0_6, %c0_7] : memref<1x6xf32, #tpu.memory_space<vmem>>, vector<1x6xf32>
    %21 = vector.broadcast %20 : vector<1x6xf32> to vector<256x6xf32>
    %22 = arith.addf %19, %21 : vector<256x6xf32>
    %cst_8 = arith.constant 0.000000e+00 : f32
    %23 = vector.broadcast %cst_8 : f32 to vector<256x6xf32>
    %24 = arith.maximumf %22, %23 : vector<256x6xf32>
    %25 = vector.shape_cast %24 : vector<256x6xf32> to vector<1x4x8x8x6xf32>
    %c0_9 = arith.constant 0 : index
    %c0_10 = arith.constant 0 : index
    %c0_11 = arith.constant 0 : index
    %c0_12 = arith.constant 0 : index
    %c0_13 = arith.constant 0 : index
    %26 = vector.load %arg4[%c0_9, %c0_10, %c0_11, %c0_12, %c0_13] : memref<1x4x8x8x6xf32, #tpu.memory_space<vmem>>, vector<1x4x8x8x6xf32>
    tpu.vector_store %arg4[%c0_9, %c0_10, %c0_11, %c0_12, %c0_13], %25 {strides = array<i32>} : memref<1x4x8x8x6xf32, #tpu.memory_space<vmem>>, vector<1x4x8x8x6xf32>,
    return
  }
  func.func @transform_0(%arg0: i32) -> (i32, i32, i32, i32, i32) {
    %c0_i32 = arith.constant 0 : i32
    %c0_i32_0 = arith.constant 0 : i32
    %c0_i32_1 = arith.constant 0 : i32
    %c0_i32_2 = arith.constant 0 : i32
    %c0_i32_3 = arith.constant 0 : i32
    return %arg0, %c0_i32, %c0_i32_0, %c0_i32_1, %c0_i32_2 : i32, i32, i32, i32, i32
  }
  func.func @transform_1(%arg0: i32) -> (i32, i32) {
    %c0_i32 = arith.constant 0 : i32
    %c0_i32_0 = arith.constant 0 : i32
    %c0_i32_1 = arith.constant 0 : i32
    return %c0_i32, %c0_i32_0 : i32, i32
  }
  func.func @transform_2(%arg0: i32) -> (i32, i32) {
    %c0_i32 = arith.constant 0 : i32
    %c0_i32_0 = arith.constant 0 : i32
    %c0_i32_1 = arith.constant 0 : i32
    return %c0_i32, %c0_i32_0 : i32, i32
  }
  func.func @transform_3(%arg0: i32) -> (i32, i32, i32, i32, i32) {
    %c0_i32 = arith.constant 0 : i32
    %c0_i32_0 = arith.constant 0 : i32
    %c0_i32_1 = arith.constant 0 : i32
    %c0_i32_2 = arith.constant 0 : i32
    %c0_i32_3 = arith.constant 0 : i32
    return %arg0, %c0_i32, %c0_i32_0, %c0_i32_1, %c0_i32_2 : i32, i32, i32, i32, i32
  }
}

module attributes {stable_mosaic.version = 11 : i64} {
  func.func @_fused_1x1_kernel(%arg0: i32, %arg1: memref<512x4xbf16, #tpu.memory_space<vmem>>, %arg2: memref<4x16xbf16, #tpu.memory_space<vmem>>, %arg3: memref<1x16xf32, #tpu.memory_space<vmem>>, %arg4: memref<512x6xf32, #tpu.memory_space<vmem>>, %arg5: memref<512x5xbf16, #tpu.memory_space<vmem>>, %arg6: memref<512x5xbf16, #tpu.memory_space<vmem>>) attributes {dimension_semantics = [#tpu.dimension_semantics<parallel>], iteration_bounds = array<i64: 1>, scalar_prefetch = 0 : i64, scratch_operands = 0 : i64, tpu.core_type = #tpu.core_type<tc>, window_params = [{transform_indices = @transform_0, window_bounds = array<i64: 512, 4>}, {pipeline_mode = #tpu.pipeline_mode<synchronous>, transform_indices = @transform_1, window_bounds = array<i64: 4, 16>}, {pipeline_mode = #tpu.pipeline_mode<synchronous>, transform_indices = @transform_2, window_bounds = array<i64: 1, 16>}, {transform_indices = @transform_3, window_bounds = array<i64: 512, 6>}, {transform_indices = @transform_4, window_bounds = array<i64: 512, 5>}, {transform_indices = @transform_5, window_bounds = array<i64: 512, 5>}]} {
    %c0 = arith.constant 0 : index
    %c0_0 = arith.constant 0 : index
    %0 = vector.load %arg1[%c0, %c0_0] : memref<512x4xbf16, #tpu.memory_space<vmem>>, vector<512x4xbf16>
    %c0_1 = arith.constant 0 : index
    %c0_2 = arith.constant 0 : index
    %1 = vector.load %arg2[%c0_1, %c0_2] : memref<4x16xbf16, #tpu.memory_space<vmem>>, vector<4x16xbf16>
    %cst = arith.constant dense<0.000000e+00> : vector<512x16xf32>
    %2 = tpu.matmul %0, %1, %cst {dimension_numbers = #tpu.dot_dimension_numbers<[1], [0], [0], [1], [0, 0, 1, 1], [], []>} : vector<512x4xbf16>, vector<4x16xbf16>, vector<512x16xf32> -> vector<512x16xf32>
    %c0_3 = arith.constant 0 : index
    %c0_4 = arith.constant 0 : index
    %3 = vector.load %arg3[%c0_3, %c0_4] : memref<1x16xf32, #tpu.memory_space<vmem>>, vector<1x16xf32>
    %4 = vector.broadcast %3 : vector<1x16xf32> to vector<512x16xf32>
    %5 = arith.addf %2, %4 : vector<512x16xf32>
    %cst_5 = arith.constant 0.000000e+00 : f32
    %6 = vector.broadcast %cst_5 : f32 to vector<512x16xf32>
    %7 = arith.maximumf %5, %6 : vector<512x16xf32>
    %8 = vector.extract_strided_slice %7 {offsets = [0, 0], sizes = [512, 6], strides = [1, 1]} : vector<512x16xf32> to vector<512x6xf32>
    %c0_6 = arith.constant 0 : index
    %c0_7 = arith.constant 0 : index
    %9 = vector.load %arg4[%c0_6, %c0_7] : memref<512x6xf32, #tpu.memory_space<vmem>>, vector<512x6xf32>
    tpu.vector_store %arg4[%c0_6, %c0_7], %8 {strides = array<i32>} : memref<512x6xf32, #tpu.memory_space<vmem>>, vector<512x6xf32>,
    %10 = vector.extract_strided_slice %7 {offsets = [0, 6], sizes = [512, 5], strides = [1, 1]} : vector<512x16xf32> to vector<512x5xf32>
    %11 = arith.truncf %10 : vector<512x5xf32> to vector<512x5xbf16>
    %c0_8 = arith.constant 0 : index
    %c0_9 = arith.constant 0 : index
    %12 = vector.load %arg5[%c0_8, %c0_9] : memref<512x5xbf16, #tpu.memory_space<vmem>>, vector<512x5xbf16>
    tpu.vector_store %arg5[%c0_8, %c0_9], %11 {strides = array<i32>} : memref<512x5xbf16, #tpu.memory_space<vmem>>, vector<512x5xbf16>,
    %13 = vector.extract_strided_slice %7 {offsets = [0, 11], sizes = [512, 5], strides = [1, 1]} : vector<512x16xf32> to vector<512x5xf32>
    %14 = arith.truncf %13 : vector<512x5xf32> to vector<512x5xbf16>
    %c0_10 = arith.constant 0 : index
    %c0_11 = arith.constant 0 : index
    %15 = vector.load %arg6[%c0_10, %c0_11] : memref<512x5xbf16, #tpu.memory_space<vmem>>, vector<512x5xbf16>
    tpu.vector_store %arg6[%c0_10, %c0_11], %14 {strides = array<i32>} : memref<512x5xbf16, #tpu.memory_space<vmem>>, vector<512x5xbf16>,
    return
  }
  func.func @transform_0(%arg0: i32) -> (i32, i32) {
    %c0_i32 = arith.constant 0 : i32
    %c0_i32_0 = arith.constant 0 : i32
    return %arg0, %c0_i32 : i32, i32
  }
  func.func @transform_1(%arg0: i32) -> (i32, i32) {
    %c0_i32 = arith.constant 0 : i32
    %c0_i32_0 = arith.constant 0 : i32
    %c0_i32_1 = arith.constant 0 : i32
    return %c0_i32, %c0_i32_0 : i32, i32
  }
  func.func @transform_2(%arg0: i32) -> (i32, i32) {
    %c0_i32 = arith.constant 0 : i32
    %c0_i32_0 = arith.constant 0 : i32
    %c0_i32_1 = arith.constant 0 : i32
    return %c0_i32, %c0_i32_0 : i32, i32
  }
  func.func @transform_3(%arg0: i32) -> (i32, i32) {
    %c0_i32 = arith.constant 0 : i32
    %c0_i32_0 = arith.constant 0 : i32
    return %arg0, %c0_i32 : i32, i32
  }
  func.func @transform_4(%arg0: i32) -> (i32, i32) {
    %c0_i32 = arith.constant 0 : i32
    %c0_i32_0 = arith.constant 0 : i32
    return %arg0, %c0_i32 : i32, i32
  }
  func.func @transform_5(%arg0: i32) -> (i32, i32) {
    %c0_i32 = arith.constant 0 : i32
    %c0_i32_0 = arith.constant 0 : i32
    return %arg0, %c0_i32 : i32, i32
  }
}

module attributes {stable_mosaic.version = 11 : i64} {
  func.func @_spatial_conv_kernel(%arg0: i32, %arg1: memref<1x10x10x5xbf16, #tpu.memory_space<vmem>>, %arg2: memref<9x5x8xbf16, #tpu.memory_space<vmem>>, %arg3: memref<1x8xf32, #tpu.memory_space<vmem>>, %arg4: memref<1x8x8x8xbf16, #tpu.memory_space<vmem>>) attributes {dimension_semantics = [#tpu.dimension_semantics<parallel>], iteration_bounds = array<i64: 8>, scalar_prefetch = 0 : i64, scratch_operands = 0 : i64, tpu.core_type = #tpu.core_type<tc>, window_params = [{transform_indices = @transform_0, window_bounds = array<i64: 1, 10, 10, 5>}, {pipeline_mode = #tpu.pipeline_mode<synchronous>, transform_indices = @transform_1, window_bounds = array<i64: 9, 5, 8>}, {pipeline_mode = #tpu.pipeline_mode<synchronous>, transform_indices = @transform_2, window_bounds = array<i64: 1, 8>}, {transform_indices = @transform_3, window_bounds = array<i64: 1, 8, 8, 8>}]} {
    %c0 = arith.constant 0 : index
    %c0_0 = arith.constant 0 : index
    %c0_1 = arith.constant 0 : index
    %c0_2 = arith.constant 0 : index
    %0 = vector.load %arg1[%c0, %c0_0, %c0_1, %c0_2] : memref<1x10x10x5xbf16, #tpu.memory_space<vmem>>, vector<1x10x10x5xbf16>
    %1 = vector.shape_cast %0 : vector<1x10x10x5xbf16> to vector<10x10x5xbf16>
    %cst = arith.constant 0.000000e+00 : f32
    %2 = vector.broadcast %cst : f32 to vector<64x8xf32>
    %3 = vector.extract_strided_slice %1 {offsets = [0, 0, 0], sizes = [8, 8, 5], strides = [1, 1, 1]} : vector<10x10x5xbf16> to vector<8x8x5xbf16>
    %4 = vector.shape_cast %3 : vector<8x8x5xbf16> to vector<64x5xbf16>
    %c0_3 = arith.constant 0 : index
    %c0_4 = arith.constant 0 : index
    %c0_5 = arith.constant 0 : index
    %5 = vector.load %arg2[%c0_3, %c0_4, %c0_5] : memref<9x5x8xbf16, #tpu.memory_space<vmem>>, vector<1x5x8xbf16>
    %6 = vector.shape_cast %5 : vector<1x5x8xbf16> to vector<5x8xbf16>
    %cst_6 = arith.constant dense<0.000000e+00> : vector<64x8xf32>
    %7 = tpu.matmul %4, %6, %cst_6 {dimension_numbers = #tpu.dot_dimension_numbers<[1], [0], [0], [1], [0, 0, 1, 1], [], []>} : vector<64x5xbf16>, vector<5x8xbf16>, vector<64x8xf32> -> vector<64x8xf32>
    %8 = arith.addf %2, %7 : vector<64x8xf32>
    %9 = vector.extract_strided_slice %1 {offsets = [0, 1, 0], sizes = [8, 8, 5], strides = [1, 1, 1]} : vector<10x10x5xbf16> to vector<8x8x5xbf16>
    %10 = vector.shape_cast %9 : vector<8x8x5xbf16> to vector<64x5xbf16>
    %c1 = arith.constant 1 : index
    %c0_7 = arith.constant 0 : index
    %c0_8 = arith.constant 0 : index
    %11 = vector.load %arg2[%c1, %c0_7, %c0_8] : memref<9x5x8xbf16, #tpu.memory_space<vmem>>, vector<1x5x8xbf16>
    %12 = vector.shape_cast %11 : vector<1x5x8xbf16> to vector<5x8xbf16>
    %cst_9 = arith.constant dense<0.000000e+00> : vector<64x8xf32>
    %13 = tpu.matmul %10, %12, %cst_9 {dimension_numbers = #tpu.dot_dimension_numbers<[1], [0], [0], [1], [0, 0, 1, 1], [], []>} : vector<64x5xbf16>, vector<5x8xbf16>, vector<64x8xf32> -> vector<64x8xf32>
    %14 = arith.addf %8, %13 : vector<64x8xf32>
    %15 = vector.extract_strided_slice %1 {offsets = [0, 2, 0], sizes = [8, 8, 5], strides = [1, 1, 1]} : vector<10x10x5xbf16> to vector<8x8x5xbf16>
    %16 = vector.shape_cast %15 : vector<8x8x5xbf16> to vector<64x5xbf16>
    %c2 = arith.constant 2 : index
    %c0_10 = arith.constant 0 : index
    %c0_11 = arith.constant 0 : index
    %17 = vector.load %arg2[%c2, %c0_10, %c0_11] : memref<9x5x8xbf16, #tpu.memory_space<vmem>>, vector<1x5x8xbf16>
    %18 = vector.shape_cast %17 : vector<1x5x8xbf16> to vector<5x8xbf16>
    %cst_12 = arith.constant dense<0.000000e+00> : vector<64x8xf32>
    %19 = tpu.matmul %16, %18, %cst_12 {dimension_numbers = #tpu.dot_dimension_numbers<[1], [0], [0], [1], [0, 0, 1, 1], [], []>} : vector<64x5xbf16>, vector<5x8xbf16>, vector<64x8xf32> -> vector<64x8xf32>
    %20 = arith.addf %14, %19 : vector<64x8xf32>
    %21 = vector.extract_strided_slice %1 {offsets = [1, 0, 0], sizes = [8, 8, 5], strides = [1, 1, 1]} : vector<10x10x5xbf16> to vector<8x8x5xbf16>
    %22 = vector.shape_cast %21 : vector<8x8x5xbf16> to vector<64x5xbf16>
    %c3 = arith.constant 3 : index
    %c0_13 = arith.constant 0 : index
    %c0_14 = arith.constant 0 : index
    %23 = vector.load %arg2[%c3, %c0_13, %c0_14] : memref<9x5x8xbf16, #tpu.memory_space<vmem>>, vector<1x5x8xbf16>
    %24 = vector.shape_cast %23 : vector<1x5x8xbf16> to vector<5x8xbf16>
    %cst_15 = arith.constant dense<0.000000e+00> : vector<64x8xf32>
    %25 = tpu.matmul %22, %24, %cst_15 {dimension_numbers = #tpu.dot_dimension_numbers<[1], [0], [0], [1], [0, 0, 1, 1], [], []>} : vector<64x5xbf16>, vector<5x8xbf16>, vector<64x8xf32> -> vector<64x8xf32>
    %26 = arith.addf %20, %25 : vector<64x8xf32>
    %27 = vector.extract_strided_slice %1 {offsets = [1, 1, 0], sizes = [8, 8, 5], strides = [1, 1, 1]} : vector<10x10x5xbf16> to vector<8x8x5xbf16>
    %28 = vector.shape_cast %27 : vector<8x8x5xbf16> to vector<64x5xbf16>
    %c4 = arith.constant 4 : index
    %c0_16 = arith.constant 0 : index
    %c0_17 = arith.constant 0 : index
    %29 = vector.load %arg2[%c4, %c0_16, %c0_17] : memref<9x5x8xbf16, #tpu.memory_space<vmem>>, vector<1x5x8xbf16>
    %30 = vector.shape_cast %29 : vector<1x5x8xbf16> to vector<5x8xbf16>
    %cst_18 = arith.constant dense<0.000000e+00> : vector<64x8xf32>
    %31 = tpu.matmul %28, %30, %cst_18 {dimension_numbers = #tpu.dot_dimension_numbers<[1], [0], [0], [1], [0, 0, 1, 1], [], []>} : vector<64x5xbf16>, vector<5x8xbf16>, vector<64x8xf32> -> vector<64x8xf32>
    %32 = arith.addf %26, %31 : vector<64x8xf32>
    %33 = vector.extract_strided_slice %1 {offsets = [1, 2, 0], sizes = [8, 8, 5], strides = [1, 1, 1]} : vector<10x10x5xbf16> to vector<8x8x5xbf16>
    %34 = vector.shape_cast %33 : vector<8x8x5xbf16> to vector<64x5xbf16>
    %c5 = arith.constant 5 : index
    %c0_19 = arith.constant 0 : index
    %c0_20 = arith.constant 0 : index
    %35 = vector.load %arg2[%c5, %c0_19, %c0_20] : memref<9x5x8xbf16, #tpu.memory_space<vmem>>, vector<1x5x8xbf16>
    %36 = vector.shape_cast %35 : vector<1x5x8xbf16> to vector<5x8xbf16>
    %cst_21 = arith.constant dense<0.000000e+00> : vector<64x8xf32>
    %37 = tpu.matmul %34, %36, %cst_21 {dimension_numbers = #tpu.dot_dimension_numbers<[1], [0], [0], [1], [0, 0, 1, 1], [], []>} : vector<64x5xbf16>, vector<5x8xbf16>, vector<64x8xf32> -> vector<64x8xf32>
    %38 = arith.addf %32, %37 : vector<64x8xf32>
    %39 = vector.extract_strided_slice %1 {offsets = [2, 0, 0], sizes = [8, 8, 5], strides = [1, 1, 1]} : vector<10x10x5xbf16> to vector<8x8x5xbf16>
    %40 = vector.shape_cast %39 : vector<8x8x5xbf16> to vector<64x5xbf16>
    %c6 = arith.constant 6 : index
    %c0_22 = arith.constant 0 : index
    %c0_23 = arith.constant 0 : index
    %41 = vector.load %arg2[%c6, %c0_22, %c0_23] : memref<9x5x8xbf16, #tpu.memory_space<vmem>>, vector<1x5x8xbf16>
    %42 = vector.shape_cast %41 : vector<1x5x8xbf16> to vector<5x8xbf16>
    %cst_24 = arith.constant dense<0.000000e+00> : vector<64x8xf32>
    %43 = tpu.matmul %40, %42, %cst_24 {dimension_numbers = #tpu.dot_dimension_numbers<[1], [0], [0], [1], [0, 0, 1, 1], [], []>} : vector<64x5xbf16>, vector<5x8xbf16>, vector<64x8xf32> -> vector<64x8xf32>
    %44 = arith.addf %38, %43 : vector<64x8xf32>
    %45 = vector.extract_strided_slice %1 {offsets = [2, 1, 0], sizes = [8, 8, 5], strides = [1, 1, 1]} : vector<10x10x5xbf16> to vector<8x8x5xbf16>
    %46 = vector.shape_cast %45 : vector<8x8x5xbf16> to vector<64x5xbf16>
    %c7 = arith.constant 7 : index
    %c0_25 = arith.constant 0 : index
    %c0_26 = arith.constant 0 : index
    %47 = vector.load %arg2[%c7, %c0_25, %c0_26] : memref<9x5x8xbf16, #tpu.memory_space<vmem>>, vector<1x5x8xbf16>
    %48 = vector.shape_cast %47 : vector<1x5x8xbf16> to vector<5x8xbf16>
    %cst_27 = arith.constant dense<0.000000e+00> : vector<64x8xf32>
    %49 = tpu.matmul %46, %48, %cst_27 {dimension_numbers = #tpu.dot_dimension_numbers<[1], [0], [0], [1], [0, 0, 1, 1], [], []>} : vector<64x5xbf16>, vector<5x8xbf16>, vector<64x8xf32> -> vector<64x8xf32>
    %50 = arith.addf %44, %49 : vector<64x8xf32>
    %51 = vector.extract_strided_slice %1 {offsets = [2, 2, 0], sizes = [8, 8, 5], strides = [1, 1, 1]} : vector<10x10x5xbf16> to vector<8x8x5xbf16>
    %52 = vector.shape_cast %51 : vector<8x8x5xbf16> to vector<64x5xbf16>
    %c8 = arith.constant 8 : index
    %c0_28 = arith.constant 0 : index
    %c0_29 = arith.constant 0 : index
    %53 = vector.load %arg2[%c8, %c0_28, %c0_29] : memref<9x5x8xbf16, #tpu.memory_space<vmem>>, vector<1x5x8xbf16>
    %54 = vector.shape_cast %53 : vector<1x5x8xbf16> to vector<5x8xbf16>
    %cst_30 = arith.constant dense<0.000000e+00> : vector<64x8xf32>
    %55 = tpu.matmul %52, %54, %cst_30 {dimension_numbers = #tpu.dot_dimension_numbers<[1], [0], [0], [1], [0, 0, 1, 1], [], []>} : vector<64x5xbf16>, vector<5x8xbf16>, vector<64x8xf32> -> vector<64x8xf32>
    %56 = arith.addf %50, %55 : vector<64x8xf32>
    %c0_31 = arith.constant 0 : index
    %c0_32 = arith.constant 0 : index
    %57 = vector.load %arg3[%c0_31, %c0_32] : memref<1x8xf32, #tpu.memory_space<vmem>>, vector<1x8xf32>
    %58 = vector.broadcast %57 : vector<1x8xf32> to vector<64x8xf32>
    %59 = arith.addf %56, %58 : vector<64x8xf32>
    %cst_33 = arith.constant 0.000000e+00 : f32
    %60 = vector.broadcast %cst_33 : f32 to vector<64x8xf32>
    %61 = arith.maximumf %59, %60 : vector<64x8xf32>
    %62 = vector.shape_cast %61 : vector<64x8xf32> to vector<1x8x8x8xf32>
    %63 = arith.truncf %62 : vector<1x8x8x8xf32> to vector<1x8x8x8xbf16>
    %c0_34 = arith.constant 0 : index
    %c0_35 = arith.constant 0 : index
    %c0_36 = arith.constant 0 : index
    %c0_37 = arith.constant 0 : index
    %64 = vector.load %arg4[%c0_34, %c0_35, %c0_36, %c0_37] : memref<1x8x8x8xbf16, #tpu.memory_space<vmem>>, vector<1x8x8x8xbf16>
    tpu.vector_store %arg4[%c0_34, %c0_35, %c0_36, %c0_37], %63 {strides = array<i32>} : memref<1x8x8x8xbf16, #tpu.memory_space<vmem>>, vector<1x8x8x8xbf16>,
    return
  }
  func.func @transform_0(%arg0: i32) -> (i32, i32, i32, i32) {
    %c0_i32 = arith.constant 0 : i32
    %c0_i32_0 = arith.constant 0 : i32
    %c0_i32_1 = arith.constant 0 : i32
    %c0_i32_2 = arith.constant 0 : i32
    return %arg0, %c0_i32, %c0_i32_0, %c0_i32_1 : i32, i32, i32, i32
  }
  func.func @transform_1(%arg0: i32) -> (i32, i32, i32) {
    %c0_i32 = arith.constant 0 : i32
    %c0_i32_0 = arith.constant 0 : i32
    %c0_i32_1 = arith.constant 0 : i32
    %c0_i32_2 = arith.constant 0 : i32
    return %c0_i32, %c0_i32_0, %c0_i32_1 : i32, i32, i32
  }
  func.func @transform_2(%arg0: i32) -> (i32, i32) {
    %c0_i32 = arith.constant 0 : i32
    %c0_i32_0 = arith.constant 0 : i32
    %c0_i32_1 = arith.constant 0 : i32
    return %c0_i32, %c0_i32_0 : i32, i32
  }
  func.func @transform_3(%arg0: i32) -> (i32, i32, i32, i32) {
    %c0_i32 = arith.constant 0 : i32
    %c0_i32_0 = arith.constant 0 : i32
    %c0_i32_1 = arith.constant 0 : i32
    %c0_i32_2 = arith.constant 0 : i32
    return %arg0, %c0_i32, %c0_i32_0, %c0_i32_1 : i32, i32, i32, i32
  }
}

module attributes {stable_mosaic.version = 11 : i64} {
  func.func @_temporal_conv_kernel(%arg0: i32, %arg1: memref<1x6x64x8xbf16, #tpu.memory_space<vmem>>, %arg2: memref<3x8x8xbf16, #tpu.memory_space<vmem>>, %arg3: memref<1x8xf32, #tpu.memory_space<vmem>>, %arg4: memref<1x4x64x8xf32, #tpu.memory_space<vmem>>) attributes {dimension_semantics = [#tpu.dimension_semantics<parallel>], iteration_bounds = array<i64: 2>, scalar_prefetch = 0 : i64, scratch_operands = 0 : i64, tpu.core_type = #tpu.core_type<tc>, window_params = [{transform_indices = @transform_0, window_bounds = array<i64: 1, 6, 64, 8>}, {pipeline_mode = #tpu.pipeline_mode<synchronous>, transform_indices = @transform_1, window_bounds = array<i64: 3, 8, 8>}, {pipeline_mode = #tpu.pipeline_mode<synchronous>, transform_indices = @transform_2, window_bounds = array<i64: 1, 8>}, {transform_indices = @transform_3, window_bounds = array<i64: 1, 4, 64, 8>}]} {
    %c0 = arith.constant 0 : index
    %c0_0 = arith.constant 0 : index
    %c0_1 = arith.constant 0 : index
    %c0_2 = arith.constant 0 : index
    %0 = vector.load %arg1[%c0, %c0_0, %c0_1, %c0_2] : memref<1x6x64x8xbf16, #tpu.memory_space<vmem>>, vector<1x6x64x8xbf16>
    %1 = vector.shape_cast %0 : vector<1x6x64x8xbf16> to vector<6x64x8xbf16>
    %cst = arith.constant 0.000000e+00 : f32
    %2 = vector.broadcast %cst : f32 to vector<256x8xf32>
    %3 = vector.extract_strided_slice %1 {offsets = [0, 0, 0], sizes = [4, 64, 8], strides = [1, 1, 1]} : vector<6x64x8xbf16> to vector<4x64x8xbf16>
    %4 = vector.shape_cast %3 : vector<4x64x8xbf16> to vector<256x8xbf16>
    %c0_3 = arith.constant 0 : index
    %c0_4 = arith.constant 0 : index
    %c0_5 = arith.constant 0 : index
    %5 = vector.load %arg2[%c0_3, %c0_4, %c0_5] : memref<3x8x8xbf16, #tpu.memory_space<vmem>>, vector<1x8x8xbf16>
    %6 = vector.shape_cast %5 : vector<1x8x8xbf16> to vector<8x8xbf16>
    %cst_6 = arith.constant dense<0.000000e+00> : vector<256x8xf32>
    %7 = tpu.matmul %4, %6, %cst_6 {dimension_numbers = #tpu.dot_dimension_numbers<[1], [0], [0], [1], [0, 0, 1, 1], [], []>} : vector<256x8xbf16>, vector<8x8xbf16>, vector<256x8xf32> -> vector<256x8xf32>
    %8 = arith.addf %2, %7 : vector<256x8xf32>
    %9 = vector.extract_strided_slice %1 {offsets = [1, 0, 0], sizes = [4, 64, 8], strides = [1, 1, 1]} : vector<6x64x8xbf16> to vector<4x64x8xbf16>
    %10 = vector.shape_cast %9 : vector<4x64x8xbf16> to vector<256x8xbf16>
    %c1 = arith.constant 1 : index
    %c0_7 = arith.constant 0 : index
    %c0_8 = arith.constant 0 : index
    %11 = vector.load %arg2[%c1, %c0_7, %c0_8] : memref<3x8x8xbf16, #tpu.memory_space<vmem>>, vector<1x8x8xbf16>
    %12 = vector.shape_cast %11 : vector<1x8x8xbf16> to vector<8x8xbf16>
    %cst_9 = arith.constant dense<0.000000e+00> : vector<256x8xf32>
    %13 = tpu.matmul %10, %12, %cst_9 {dimension_numbers = #tpu.dot_dimension_numbers<[1], [0], [0], [1], [0, 0, 1, 1], [], []>} : vector<256x8xbf16>, vector<8x8xbf16>, vector<256x8xf32> -> vector<256x8xf32>
    %14 = arith.addf %8, %13 : vector<256x8xf32>
    %15 = vector.extract_strided_slice %1 {offsets = [2, 0, 0], sizes = [4, 64, 8], strides = [1, 1, 1]} : vector<6x64x8xbf16> to vector<4x64x8xbf16>
    %16 = vector.shape_cast %15 : vector<4x64x8xbf16> to vector<256x8xbf16>
    %c2 = arith.constant 2 : index
    %c0_10 = arith.constant 0 : index
    %c0_11 = arith.constant 0 : index
    %17 = vector.load %arg2[%c2, %c0_10, %c0_11] : memref<3x8x8xbf16, #tpu.memory_space<vmem>>, vector<1x8x8xbf16>
    %18 = vector.shape_cast %17 : vector<1x8x8xbf16> to vector<8x8xbf16>
    %cst_12 = arith.constant dense<0.000000e+00> : vector<256x8xf32>
    %19 = tpu.matmul %16, %18, %cst_12 {dimension_numbers = #tpu.dot_dimension_numbers<[1], [0], [0], [1], [0, 0, 1, 1], [], []>} : vector<256x8xbf16>, vector<8x8xbf16>, vector<256x8xf32> -> vector<256x8xf32>
    %20 = arith.addf %14, %19 : vector<256x8xf32>
    %c0_13 = arith.constant 0 : index
    %c0_14 = arith.constant 0 : index
    %21 = vector.load %arg3[%c0_13, %c0_14] : memref<1x8xf32, #tpu.memory_space<vmem>>, vector<1x8xf32>
    %22 = vector.broadcast %21 : vector<1x8xf32> to vector<256x8xf32>
    %23 = arith.addf %20, %22 : vector<256x8xf32>
    %cst_15 = arith.constant 0.000000e+00 : f32
    %24 = vector.broadcast %cst_15 : f32 to vector<256x8xf32>
    %25 = arith.maximumf %23, %24 : vector<256x8xf32>
    %26 = vector.shape_cast %25 : vector<256x8xf32> to vector<1x4x64x8xf32>
    %c0_16 = arith.constant 0 : index
    %c0_17 = arith.constant 0 : index
    %c0_18 = arith.constant 0 : index
    %c0_19 = arith.constant 0 : index
    %27 = vector.load %arg4[%c0_16, %c0_17, %c0_18, %c0_19] : memref<1x4x64x8xf32, #tpu.memory_space<vmem>>, vector<1x4x64x8xf32>
    tpu.vector_store %arg4[%c0_16, %c0_17, %c0_18, %c0_19], %26 {strides = array<i32>} : memref<1x4x64x8xf32, #tpu.memory_space<vmem>>, vector<1x4x64x8xf32>,
    return
  }
  func.func @transform_0(%arg0: i32) -> (i32, i32, i32, i32) {
    %c0_i32 = arith.constant 0 : i32
    %c0_i32_0 = arith.constant 0 : i32
    %c0_i32_1 = arith.constant 0 : i32
    %c0_i32_2 = arith.constant 0 : i32
    return %arg0, %c0_i32, %c0_i32_0, %c0_i32_1 : i32, i32, i32, i32
  }
  func.func @transform_1(%arg0: i32) -> (i32, i32, i32) {
    %c0_i32 = arith.constant 0 : i32
    %c0_i32_0 = arith.constant 0 : i32
    %c0_i32_1 = arith.constant 0 : i32
    %c0_i32_2 = arith.constant 0 : i32
    return %c0_i32, %c0_i32_0, %c0_i32_1 : i32, i32, i32
  }
  func.func @transform_2(%arg0: i32) -> (i32, i32) {
    %c0_i32 = arith.constant 0 : i32
    %c0_i32_0 = arith.constant 0 : i32
    %c0_i32_1 = arith.constant 0 : i32
    return %c0_i32, %c0_i32_0 : i32, i32
  }
  func.func @transform_3(%arg0: i32) -> (i32, i32, i32, i32) {
    %c0_i32 = arith.constant 0 : i32
    %c0_i32_0 = arith.constant 0 : i32
    %c0_i32_1 = arith.constant 0 : i32
    %c0_i32_2 = arith.constant 0 : i32
    return %arg0, %c0_i32, %c0_i32_0, %c0_i32_1 : i32, i32, i32, i32
  }
}

module attributes {stable_mosaic.version = 11 : i64} {
  func.func @_gate_concat_kernel(%arg0: i32, %arg1: i32, %arg2: memref<1x256x6xf32, #tpu.memory_space<vmem>>, %arg3: memref<1x256x8xf32, #tpu.memory_space<vmem>>, %arg4: memref<1x256x8xf32, #tpu.memory_space<vmem>>, %arg5: memref<1x256x6xf32, #tpu.memory_space<vmem>>, %arg6: memref<1x1x6xf32, #tpu.memory_space<vmem>>, %arg7: memref<1x1x8xf32, #tpu.memory_space<vmem>>, %arg8: memref<1x1x8xf32, #tpu.memory_space<vmem>>, %arg9: memref<1x1x6xf32, #tpu.memory_space<vmem>>, %arg10: memref<1x256x28xf32, #tpu.memory_space<vmem>>) attributes {dimension_semantics = [#tpu.dimension_semantics<parallel>, #tpu.dimension_semantics<parallel>], iteration_bounds = array<i64: 2, 1>, scalar_prefetch = 0 : i64, scratch_operands = 0 : i64, tpu.core_type = #tpu.core_type<tc>, window_params = [{transform_indices = @transform_0, window_bounds = array<i64: 1, 256, 6>}, {transform_indices = @transform_1, window_bounds = array<i64: 1, 256, 8>}, {transform_indices = @transform_2, window_bounds = array<i64: 1, 256, 8>}, {transform_indices = @transform_3, window_bounds = array<i64: 1, 256, 6>}, {transform_indices = @transform_4, window_bounds = array<i64: 1, 1, 6>}, {transform_indices = @transform_5, window_bounds = array<i64: 1, 1, 8>}, {transform_indices = @transform_6, window_bounds = array<i64: 1, 1, 8>}, {transform_indices = @transform_7, window_bounds = array<i64: 1, 1, 6>}, {transform_indices = @transform_8, window_bounds = array<i64: 1, 256, 28>}]} {
    %c0 = arith.constant 0 : index
    %c0_0 = arith.constant 0 : index
    %c0_1 = arith.constant 0 : index
    %0 = vector.load %arg2[%c0, %c0_0, %c0_1] : memref<1x256x6xf32, #tpu.memory_space<vmem>>, vector<1x256x6xf32>
    %1 = vector.shape_cast %0 : vector<1x256x6xf32> to vector<256x6xf32>
    %c0_2 = arith.constant 0 : index
    %c0_3 = arith.constant 0 : index
    %c0_4 = arith.constant 0 : index
    %2 = vector.load %arg6[%c0_2, %c0_3, %c0_4] : memref<1x1x6xf32, #tpu.memory_space<vmem>>, vector<1x1x6xf32>
    %3 = vector.shape_cast %2 : vector<1x1x6xf32> to vector<1x6xf32>
    %4 = vector.broadcast %3 : vector<1x6xf32> to vector<256x6xf32>
    %5 = arith.mulf %1, %4 : vector<256x6xf32>
    %c0_5 = arith.constant 0 : index
    %c0_6 = arith.constant 0 : index
    %c0_7 = arith.constant 0 : index
    %6 = vector.load %arg10[%c0_5, %c0_6, %c0_7] : memref<1x256x28xf32, #tpu.memory_space<vmem>>, vector<1x256x6xf32>
    %7 = vector.shape_cast %6 : vector<1x256x6xf32> to vector<256x6xf32>
    %8 = vector.shape_cast %5 : vector<256x6xf32> to vector<1x256x6xf32>
    tpu.vector_store %arg10[%c0_5, %c0_6, %c0_7], %8 {strides = array<i32>} : memref<1x256x28xf32, #tpu.memory_space<vmem>>, vector<1x256x6xf32>,
    %c0_8 = arith.constant 0 : index
    %c0_9 = arith.constant 0 : index
    %c0_10 = arith.constant 0 : index
    %9 = vector.load %arg3[%c0_8, %c0_9, %c0_10] : memref<1x256x8xf32, #tpu.memory_space<vmem>>, vector<1x256x8xf32>
    %10 = vector.shape_cast %9 : vector<1x256x8xf32> to vector<256x8xf32>
    %c0_11 = arith.constant 0 : index
    %c0_12 = arith.constant 0 : index
    %c0_13 = arith.constant 0 : index
    %11 = vector.load %arg7[%c0_11, %c0_12, %c0_13] : memref<1x1x8xf32, #tpu.memory_space<vmem>>, vector<1x1x8xf32>
    %12 = vector.shape_cast %11 : vector<1x1x8xf32> to vector<1x8xf32>
    %13 = vector.broadcast %12 : vector<1x8xf32> to vector<256x8xf32>
    %14 = arith.mulf %10, %13 : vector<256x8xf32>
    %c0_14 = arith.constant 0 : index
    %c0_15 = arith.constant 0 : index
    %c6 = arith.constant 6 : index
    %15 = vector.load %arg10[%c0_14, %c0_15, %c6] : memref<1x256x28xf32, #tpu.memory_space<vmem>>, vector<1x256x8xf32>
    %16 = vector.shape_cast %15 : vector<1x256x8xf32> to vector<256x8xf32>
    %17 = vector.shape_cast %14 : vector<256x8xf32> to vector<1x256x8xf32>
    tpu.vector_store %arg10[%c0_14, %c0_15, %c6], %17 {strides = array<i32>} : memref<1x256x28xf32, #tpu.memory_space<vmem>>, vector<1x256x8xf32>,
    %c0_16 = arith.constant 0 : index
    %c0_17 = arith.constant 0 : index
    %c0_18 = arith.constant 0 : index
    %18 = vector.load %arg4[%c0_16, %c0_17, %c0_18] : memref<1x256x8xf32, #tpu.memory_space<vmem>>, vector<1x256x8xf32>
    %19 = vector.shape_cast %18 : vector<1x256x8xf32> to vector<256x8xf32>
    %c0_19 = arith.constant 0 : index
    %c0_20 = arith.constant 0 : index
    %c0_21 = arith.constant 0 : index
    %20 = vector.load %arg8[%c0_19, %c0_20, %c0_21] : memref<1x1x8xf32, #tpu.memory_space<vmem>>, vector<1x1x8xf32>
    %21 = vector.shape_cast %20 : vector<1x1x8xf32> to vector<1x8xf32>
    %22 = vector.broadcast %21 : vector<1x8xf32> to vector<256x8xf32>
    %23 = arith.mulf %19, %22 : vector<256x8xf32>
    %c0_22 = arith.constant 0 : index
    %c0_23 = arith.constant 0 : index
    %c14 = arith.constant 14 : index
    %24 = vector.load %arg10[%c0_22, %c0_23, %c14] : memref<1x256x28xf32, #tpu.memory_space<vmem>>, vector<1x256x8xf32>
    %25 = vector.shape_cast %24 : vector<1x256x8xf32> to vector<256x8xf32>
    %26 = vector.shape_cast %23 : vector<256x8xf32> to vector<1x256x8xf32>
    tpu.vector_store %arg10[%c0_22, %c0_23, %c14], %26 {strides = array<i32>} : memref<1x256x28xf32, #tpu.memory_space<vmem>>, vector<1x256x8xf32>,
    %c0_24 = arith.constant 0 : index
    %c0_25 = arith.constant 0 : index
    %c0_26 = arith.constant 0 : index
    %27 = vector.load %arg5[%c0_24, %c0_25, %c0_26] : memref<1x256x6xf32, #tpu.memory_space<vmem>>, vector<1x256x6xf32>
    %28 = vector.shape_cast %27 : vector<1x256x6xf32> to vector<256x6xf32>
    %c0_27 = arith.constant 0 : index
    %c0_28 = arith.constant 0 : index
    %c0_29 = arith.constant 0 : index
    %29 = vector.load %arg9[%c0_27, %c0_28, %c0_29] : memref<1x1x6xf32, #tpu.memory_space<vmem>>, vector<1x1x6xf32>
    %30 = vector.shape_cast %29 : vector<1x1x6xf32> to vector<1x6xf32>
    %31 = vector.broadcast %30 : vector<1x6xf32> to vector<256x6xf32>
    %32 = arith.mulf %28, %31 : vector<256x6xf32>
    %c0_30 = arith.constant 0 : index
    %c0_31 = arith.constant 0 : index
    %c22 = arith.constant 22 : index
    %33 = vector.load %arg10[%c0_30, %c0_31, %c22] : memref<1x256x28xf32, #tpu.memory_space<vmem>>, vector<1x256x6xf32>
    %34 = vector.shape_cast %33 : vector<1x256x6xf32> to vector<256x6xf32>
    %35 = vector.shape_cast %32 : vector<256x6xf32> to vector<1x256x6xf32>
    tpu.vector_store %arg10[%c0_30, %c0_31, %c22], %35 {strides = array<i32>} : memref<1x256x28xf32, #tpu.memory_space<vmem>>, vector<1x256x6xf32>,
    return
  }
  func.func @transform_0(%arg0: i32, %arg1: i32) -> (i32, i32, i32) {
    %c0_i32 = arith.constant 0 : i32
    %c0_i32_0 = arith.constant 0 : i32
    return %arg0, %arg1, %c0_i32 : i32, i32, i32
  }
  func.func @transform_1(%arg0: i32, %arg1: i32) -> (i32, i32, i32) {
    %c0_i32 = arith.constant 0 : i32
    %c0_i32_0 = arith.constant 0 : i32
    return %arg0, %arg1, %c0_i32 : i32, i32, i32
  }
  func.func @transform_2(%arg0: i32, %arg1: i32) -> (i32, i32, i32) {
    %c0_i32 = arith.constant 0 : i32
    %c0_i32_0 = arith.constant 0 : i32
    return %arg0, %arg1, %c0_i32 : i32, i32, i32
  }
  func.func @transform_3(%arg0: i32, %arg1: i32) -> (i32, i32, i32) {
    %c0_i32 = arith.constant 0 : i32
    %c0_i32_0 = arith.constant 0 : i32
    return %arg0, %arg1, %c0_i32 : i32, i32, i32
  }
  func.func @transform_4(%arg0: i32, %arg1: i32) -> (i32, i32, i32) {
    %c0_i32 = arith.constant 0 : i32
    %c0_i32_0 = arith.constant 0 : i32
    %c0_i32_1 = arith.constant 0 : i32
    return %arg0, %c0_i32, %c0_i32_0 : i32, i32, i32
  }
  func.func @transform_5(%arg0: i32, %arg1: i32) -> (i32, i32, i32) {
    %c0_i32 = arith.constant 0 : i32
    %c0_i32_0 = arith.constant 0 : i32
    %c0_i32_1 = arith.constant 0 : i32
    return %arg0, %c0_i32, %c0_i32_0 : i32, i32, i32
  }
  func.func @transform_6(%arg0: i32, %arg1: i32) -> (i32, i32, i32) {
    %c0_i32 = arith.constant 0 : i32
    %c0_i32_0 = arith.constant 0 : i32
    %c0_i32_1 = arith.constant 0 : i32
    return %arg0, %c0_i32, %c0_i32_0 : i32, i32, i32
  }
  func.func @transform_7(%arg0: i32, %arg1: i32) -> (i32, i32, i32) {
    %c0_i32 = arith.constant 0 : i32
    %c0_i32_0 = arith.constant 0 : i32
    %c0_i32_1 = arith.constant 0 : i32
    return %arg0, %c0_i32, %c0_i32_0 : i32, i32, i32
  }
  func.func @transform_8(%arg0: i32, %arg1: i32) -> (i32, i32, i32) {
    %c0_i32 = arith.constant 0 : i32
    %c0_i32_0 = arith.constant 0 : i32
    return %arg0, %arg1, %c0_i32 : i32, i32, i32
  }
}

</mosaic_0001>

<bundles_post_ra>
// kernel: inception_block_forward.8
= control target key start
LH: loop header
LB: loop body
LE: loop exit
PB: predicated region body
PF: predicated region fallthrough
CT: control target
= control target key end

     0   :  { %s1663_s12 = smov 0   ;;  %s2015_s0 = inlined_call_operand.vmem [shape: bf16[8,10,10,5], index: 0, kind: input, shape index: {}]   ;;  %s2016_s1 = inlined_call_operand.vmem [shape: bf16[9,5,8], index: 1, kind: input, shape index: {}]   ;;  %s2017_s2 = inlined_call_operand.vmem [shape: f32[1,8], index: 2, kind: input, shape index: {}]   ;;  %s2018_s3 = inlined_call_operand.vmem [shape: bf16[8,8,8,8], index: 3, kind: output, shape index: {}]  }
   0x1 LB: > { %s1321_s13 = sadd.s32 4294967295, %s1640_s12   ;;  %p1325_p0 = scmp.ge.s32.totalorder %s1640_s12, 1  ;;  %s1640_s12 = sphi %s1663_s12, %s13_s12  }
   0x2   : > { %p137_p1 = scmp.lt.s32.totalorder %s1640_s12, 9 }
   0x4   : > { %p138_p2 = pnand %p1325_p0, %p137_p1 }
   0x5   : > { %v1329_v0 = vld [vmem:[%s2016_s1 + $0x4] sm:$0x7] (!%p138_p2)  ;;  %vm335_vm0 = vcmask (!%p138_p2), 1041408   ;;  %vm336_vm1 = vcmask (!%p138_p2), 1042432   ;;  %v1642_v1 = vmov (!%p138_p2), 65535   ;;  %p161_p3 = scmp.lt.s32.totalorder (!%p138_p2), %s1321_s13, 7 }
   0x6   : > { %141 = sbr.rel (%p138_p2) target bundleno = 329 (0x149), region = 32  ;;  %v337_v2 = vsel (!%p138_p2), %vm335_vm0, 4294967295, %v1642_v1  ;;  %v1372_v3 = vld [vmem:[%s2016_s1 + $0x10] sm:$0x7] (!%p138_p2)  ;;  %v192_v5 = vld [vmem:[%s2016_s1] sm:$0x7] (!%p138_p2) }
   0x7   : > { %v1678_v4 = vsel (!%p138_p2), %vm336_vm1, %v337_v2, 0  ;;  %v1382_v9 = vld [vmem:[%s2016_s1 + $0x14] sm:$0x7] (!%p138_p2)  ;;  %vm193_vm2 = vsmask.f32 (!%p138_p2), 3328  ;;  %vm322_vm4 = vcmask (!%p138_p2), 39936  }
   0x8   : > { %v340_v6 = vand.u32 (!%p138_p2), %v1329_v0, %v1678_v4  ;;  %v1685_v7 = vand.u32 (!%p138_p2), %v1372_v3, %v1678_v4  ;;  %v1690_v8 = vand.u32 (!%p138_p2), %v1678_v4, %v192_v5  ;;  %v1696_v10 = vand.u32 (!%p138_p2), %v1382_v9, %v1678_v4  ;;  %v1391_v11 = vld [vmem:[%s2016_s1 + $0x18] sm:$0x7] (!%p138_p2)  ;;  %v1354_v12 = vld [vmem:[%s2016_s1 + $0x8] sm:$0x7] (!%p138_p2) }
   0x9   : > { %vm194_vm3 = vsmask.f32 (!%p138_p2), 7440  ;;  %v1746_v33 = vand.u32 (!%p138_p2), %v1391_v11, %v1678_v4  ;;  %v1749_v34 = vand.u32 (!%p138_p2), %v1354_v12, %v1678_v4  ;;  %vm516_vm6 = vcmask (!%p138_p2), 1046532  }
   0xa   : > { %1459 = vmatprep.subr.bf16.mxu1 (!%p138_p2), %v340_v6  ;;  %1499 = vmatprep.subr.bf16.mxu0 (!%p138_p2), %v1685_v7  ;;  %vm1755_vm5 = vmor (!%p138_p2), %vm193_vm2, %vm194_vm3  ;;  %vm1257_vm8 = vcmask (!%p138_p2), 60416  }
   0xb   : > { %1460 = vmatpush3.bf16.msra.mxu1 (!%p138_p2), %v340_v6  ;;  %1500 = vmatpush3.bf16.msra.mxu0 (!%p138_p2), %v1685_v7  ;;  %vm1821_vm7 = vmor (!%p138_p2), %vm336_vm1, %vm516_vm6 }
   0xc   : > { %1469 = vmatprep.subr.bf16.mxu1 (!%p138_p2), %v1690_v8  ;;  %1509 = vmatprep.subr.bf16.mxu0 (!%p138_p2), %v1696_v10 }
   0xd   : > { %s2024_s13 = smov (!%p161_p3, %s1321_s13), 7 }
   0xe   : > { %s1615_s22 = smul.u32 80, %s2024_s13  ;;  %s1413_s11 = sshll.u32 %s2024_s13, 5 }
   0xf   : > { %s1994_s16 = scalar_lea.vmem %s2018_s3, %s1413_s11 }
  0x10   : > { %s1704_s25 = scalar_lea.vmem %s2015_s0, %s1615_s22 }
  0x11   : > { %v1715_v13 = vld [vmem:[%s1704_s25] sm:$0xf]  ;;  %v1718_v14 = vld [vmem:[%s1704_s25 + $0x4] sm:$0x1]  ;;  %v1721_v15 = vld [vmem:[%s1704_s25 + $0x8] sm:$0xf] }
  0x12   : > { %v1724_v16 = vld [vmem:[%s1704_s25 + $0xc] sm:$0x1]  ;;  %v197_v17 = vshrl.u32 %v1715_v13, 16  ;;  %v200_v18 = vshll.u32 %v1715_v13, 16  ;;  %v206_v19 = vshll.u32 %v1718_v14, 16  ;;  %v211_v20 = vshrl.u32 %v1721_v15, 16 }
  0x13   : > { %v214_v21 = vshll.u32 %v1721_v15, 16  ;;  %v220_v22 = vshll.u32 %v1724_v16, 16  ;;  %v1733_v23 = vld [vmem:[%s1704_s25 + $0x10] sm:$0xf]  ;;  %v524_v27 = vrot.slane %v1724_v16, 5  ;;  %v1338_v16 = vcombine.low %v1715_v13, %v1721_v15 }
  0x14   : > { %v199_v24 = vrot.slane %v197_v17, 4  ;;  %v202_v25 = vrot.slane %v200_v18, 5  ;;  %v213_v26 = vrot.slane %v211_v20, 4  ;;  %v1737_v28 = vld [vmem:[%s1704_s25 + $0x14] sm:$0x1]  ;;  %v208_v29 = vrot.slane %v206_v19, 5 }
  0x15   : > { %v216_v30 = vrot.slane %v214_v21, 5  ;;  %v1740_v31 = vld [vmem:[%s1704_s25 + $0x18] sm:$0xf]  ;;  %v1743_v32 = vld [vmem:[%s1704_s25 + $0x1c] sm:$0x1]  ;;  %v222_v36 = vrot.slane %v220_v22, 5 }
  0x16   : > { %v203_v35 = vor.u32 %v202_v25, %v199_v24  ;;  %v225_v37 = vshrl.u32 %v1733_v23, 16  ;;  %v228_v38 = vshll.u32 %v1733_v23, 16  ;;  %v1760_v41 = vld [vmem:[%s1704_s25 + $0x20] sm:$0xf]  ;;  %v234_v42 = vshll.u32 %v1737_v28, 16 }
  0x17   : > { %v217_v40 = vor.u32 %v216_v30, %v213_v26  ;;  %v239_v43 = vshrl.u32 %v1740_v31, 16  ;;  %v242_v44 = vshll.u32 %v1740_v31, 16  ;;  %v1766_v46 = vld [vmem:[%s1704_s25 + $0x24] sm:$0x1]  ;;  %v248_v49 = vshll.u32 %v1743_v32, 16 }
  0x18   : > { %v204_v45 = vrot.slane %v203_v35, 4  ;;  %v227_v47 = vrot.slane %v225_v37, 4  ;;  %v230_v48 = vrot.slane %v228_v38, 5  ;;  %v236_v51 = vrot.slane %v234_v42, 5  ;;  %v1777_v62 = vld [vmem:[%s1704_s25 + $0x28] sm:$0xf] }
  0x19   : > { %v218_v50 = vrot.slane %v217_v40, 4  ;;  %v241_v52 = vrot.slane %v239_v43, 4  ;;  %v244_v53 = vrot.slane %v242_v44, 5  ;;  %v250_v56 = vrot.slane %v248_v49, 5  ;;  %v1781_v3 = vld [vmem:[%s1704_s25 + $0x2c] sm:$0x1] }
  0x1a   : > { %v209_v54 = vsel %vm1755_vm5, %v204_v45, %v208_v29  ;;  %v231_v55 = vor.u32 %v230_v48, %v227_v47  ;;  %v253_v57 = vshrl.u32 %v1760_v41, 16  ;;  %v256_v60 = vshll.u32 %v1760_v41, 16  ;;  %v1785_v12 = vld [vmem:[%s1704_s25 + $0x30] sm:$0xf]  ;;  %v1794_v21 = vld [vmem:[%s1704_s25 + $0x34] sm:$0x1] }
  0x1b   : > { %v223_v58 = vsel %vm1755_vm5, %v218_v50, %v222_v36  ;;  %v245_v59 = vor.u32 %v244_v53, %v241_v52  ;;  %v262_v61 = vshll.u32 %v1766_v46, 16  ;;  %v528_v2 = vrot.slane %v1737_v28, 5  ;;  %v1800_v28 = vld [vmem:[%s1704_s25 + $0x38] sm:$0xf]  ;;  %v1805_v36 = vld [vmem:[%s1704_s25 + $0x3c] sm:$0x1] }
  0x1c   : > { %v1330_v63 = vcombine.low %v209_v54, %v223_v58  ;;  %v232_v0 = vrot.slane %v231_v55, 4  ;;  %v255_v1 = vrot.slane %v253_v57, 4  ;;  %v258_v6 = vrot.slane %v256_v60, 5 }
  0x1d   : > { %v246_v5 = vrot.slane %v245_v59, 4  ;;  %v264_v9 = vrot.slane %v262_v61, 5  ;;  %v532_v11 = vrot.slane %v1743_v32, 5  ;;  %v536_v18 = vrot.slane %v1766_v46, 5  ;;  %v1397_v32 = vld [vmem:[%s2016_s1 + $0x1c] sm:$0x7] }
  0x1e   : > { %1461 = vmatprep.mubr.msk.bf16.mxu1 %vm322_vm4, %v1330_v63  ;;  %v237_v17 = vsel %vm1755_vm5, %v232_v0, %v236_v51  ;;  %v267_v19 = vshrl.u32 %v1777_v62, 16  ;;  %v270_v20 = vshll.u32 %v1777_v62, 16  ;;  %v259_v24 = vor.u32 %v258_v6, %v255_v1 }
  0x1f   : > { %v251_v22 = vsel %vm1755_vm5, %v246_v5, %v250_v56  ;;  %v1373_v25 = vcombine.low %v223_v58, %v237_v17  ;;  %v276_v26 = vshll.u32 %v1781_v3, 16  ;;  %v281_v37 = vshrl.u32 %v1785_v12, 16 }
  0x20   : > { %v1802_v29 = vcombine.low %v237_v17, %v251_v22  ;;  %v269_v30 = vrot.slane %v267_v19, 4  ;;  %v272_v35 = vrot.slane %v270_v20, 5  ;;  %v260_v38 = vrot.slane %v259_v24, 4 }
  0x21   : > { %1501 = vmatprep.mubr.msk.bf16.mxu0 %vm322_vm4, %v1373_v25  ;;  %v278_v40 = vrot.slane %v276_v26, 5  ;;  %v284_v42 = vshll.u32 %v1785_v12, 16  ;;  %v290_v43 = vshll.u32 %v1794_v21, 16  ;;  %v283_v45 = vrot.slane %v281_v37, 4  ;;  %v1882_v37 = vld [vmem:[%s1704_s25 + $0x40] sm:$0xf] }
  0x22   : > { %1462 = vmatmul.mubr.msk.bf16.vlgmr.msra.gmra.mrb[0].mxu1 %vm322_vm4, %v1802_v29  ;;  %v273_v44 = vor.u32 %v272_v35, %v269_v30  ;;  %v295_v47 = vshrl.u32 %v1800_v28, 16  ;;  %v298_v48 = vshll.u32 %v1800_v28, 16  ;;  %v265_v49 = vsel %vm1755_vm5, %v260_v38, %v264_v9  ;;  %v1885_v38 = vld [vmem:[%s1704_s25 + $0x44] sm:$0x1] }
  0x23   : > { %1470 = vmatpush3.bf16.msra.mxu1 %v1690_v8  ;;  %v286_v50 = vrot.slane %v284_v42, 5  ;;  %v292_v51 = vrot.slane %v290_v43, 5  ;;  %v304_v52 = vshll.u32 %v1805_v36, 16  ;;  %v1374_v54 = vcombine.low %v251_v22, %v265_v49 }
  0x24   : > { %v274_v55 = vrot.slane %v273_v44, 4  ;;  %v297_v56 = vrot.slane %v295_v47, 4  ;;  %v300_v57 = vrot.slane %v298_v48, 5  ;;  %1479 = vmatprep.subr.bf16.mxu1 %v1749_v34  ;;  %v1347_v8 = vrot.slane %v1721_v15, 9  ;;  %v1363_v44 = vld [vmem:[%s2016_s1 + $0xc] sm:$0x7] }
  0x25   : > { %v287_v58 = vor.u32 %v286_v50, %v283_v45  ;;  %v306_v59 = vrot.slane %v304_v52, 5  ;;  %v1348_v60 = vrot.slane %v1733_v23, 9  ;;  %1502 = vmatmul.mubr.msk.bf16.vlgmr.msra.gmra.mrb[0].mxu0 %vm322_vm4, %v1374_v54  ;;  %v1349_v0 = vrot.slane %v1740_v31, 9  ;;  %v190_v54 = vld [vmem:[%s1704_s25 + $0x48] sm:$0xf] }
  0x26   : > { %v1831_v61 = vsel %vm1755_vm5, %v274_v55, %v278_v40  ;;  %v301_v63 = vor.u32 %v300_v57, %v297_v56  ;;  %v1350_v1 = vrot.slane %v1760_v41, 9  ;;  %1510 = vmatpush3.bf16.msra.mxu0 %v1696_v10  ;;  %v525_v9 = vsel %vm1821_vm7, %v1347_v8, %v524_v27  ;;  %v191_v55 = vld [vmem:[%s1704_s25 + $0x4c] sm:$0x1] }
  0x27   : > { %v1837_v5 = vcombine.low %v265_v49, %v1831_v61  ;;  %v288_v6 = vrot.slane %v287_v58, 4  ;;  %v529_v17 = vsel %vm1821_vm7, %v1348_v60, %v528_v2  ;;  %1519 = vmatprep.subr.bf16.mxu0 %v1746_v33  ;;  %v1351_v27 = vrot.slane %v1777_v62, 9 }
  0x28   : > { %v302_v19 = vrot.slane %v301_v63, 4  ;;  %v1383_v20 = vcombine.low %v525_v9, %v529_v17  ;;  %v540_v22 = vrot.slane %v1781_v3, 5  ;;  %v1352_v24 = vrot.slane %v1785_v12, 9 }
  0x29   : > { %1465 = vmatprep.mubr.msk.bf16.mxu1 %vm322_vm4, %v1837_v5  ;;  %v1850_v10 = vsel %vm1755_vm5, %v288_v6, %v292_v51  ;;  %v544_v25 = vrot.slane %v1794_v21, 5  ;;  %v533_v30 = vsel %vm1821_vm7, %v1349_v0, %v532_v11  ;;  %v537_v35 = vsel %vm1821_vm7, %v1350_v1, %v536_v18 }
  0x2a   : > { %v1857_v2 = vsel %vm1755_vm5, %v302_v19, %v306_v59  ;;  %1511 = vmatprep.mubr.msk.bf16.mxu0 %vm322_vm4, %v1383_v20  ;;  %v541_v3 = vsel %vm1821_vm7, %v1351_v27, %v540_v22  ;;  %v1384_v46 = vcombine.low %v533_v30, %v537_v35  ;;  %v1353_v11 = vrot.slane %v1800_v28, 9 }
  0x2b   : > { %v1865_v26 = vcombine.low %v1850_v10, %v1857_v2  ;;  %v1879_v21 = vsel %vm1821_vm7, %v1352_v24, %v544_v25  ;;  %v548_v40 = vrot.slane %v1805_v36, 5  ;;  %v1381_v42 = vrot.slane %v1882_v37, 9 }
  0x2c   : > { %v1385_v18 = vcombine.low %v541_v3, %v1879_v21  ;;  %v860_v43 = vrot.slane %v1885_v38, 5  ;;  %v1063_v45 = vand.u32 %v1397_v32, %v1678_v4  ;;  %v1339_v47 = vcombine.low %v1733_v23, %v1740_v31 }
  0x2d   : > { %1466 = vmatmul.mubr.msk.bf16.gmra.mrb[4].mxu1 %vm322_vm4, %v1865_v26  ;;  %v1340_v48 = vcombine.low %v1760_v41, %v1777_v62  ;;  %v673_v36 = vand.u32 %v1363_v44, %v1678_v4  ;;  %v520_v49 = vrot.slane %v1718_v14, 5  ;;  %v549_v50 = vsel %vm1821_vm7, %v1353_v11, %v548_v40 }
  0x2e   : > { %1471 = vmatprep.mubr.msk.bf16.mxu1 %vm322_vm4, %v1338_v16  ;;  %v1915_v51 = vsel %vm1821_vm7, %v1381_v42, %v860_v43  ;;  %v1346_v52 = vrot.slane %v1715_v13, 9  ;;  %v1403_v56 = vrot.slane %v190_v54, 9  ;;  %v1141_v57 = vrot.slane %v191_v55, 5 }
  0x2f   : > { %v1386_v14 = vcombine.low %v549_v50, %v1915_v51  ;;  %v1341_v58 = vcombine.low %v1785_v12, %v1800_v28  ;;  %v1356_v8 = vcombine.low %v529_v17, %v533_v30  ;;  %v1357_v60 = vcombine.low %v537_v35, %v541_v3 }
  0x30   : > { %v521_v13 = vsel %vm1821_vm7, %v1346_v52, %v520_v49  ;;  %v1042_v63 = vshrl.u32 %v190_v54, 16  ;;  %v1045_v0 = vshll.u32 %v190_v54, 16  ;;  %v749_v1 = vshrl.u32 %v1882_v37, 16 }
  0x31   : > { %1512 = vmatmul.mubr.msk.bf16.vlgmr.msra.gmra.mrb[0].mxu0 %vm322_vm4, %v1384_v46  ;;  %v1355_v59 = vcombine.low %v521_v13, %v525_v9  ;;  %v752_v6 = vshll.u32 %v1882_v37, 16  ;;  %v1392_v9 = vcombine.low %v1882_v37, %v190_v54  ;;  %v1358_v16 = vcombine.low %v1879_v21, %v549_v50 }
  0x32   : > { %1520 = vmatpush3.bf16.msra.mxu0 %v1746_v33  ;;  %1515 = vmatprep.mubr.msk.bf16.mxu0 %vm322_vm4, %v1385_v18  ;;  %v1926_v33 = vsel %vm1821_vm7, %v1403_v56, %v1141_v57  ;;  %v1044_v19 = vrot.slane %v1042_v63, 4  ;;  %v1047_v20 = vrot.slane %v1045_v0, 5  ;;  %v1364_v27 = vcombine.low %v1721_v15, %v1733_v23 }
  0x33   : > { %1529 = vmatprep.subr.bf16.mxu0 %v1063_v45  ;;  %v754_v17 = vrot.slane %v752_v6, 5  ;;  %v758_v24 = vshll.u32 %v1885_v38, 16  ;;  %v1051_v30 = vshll.u32 %v191_v55, 16  ;;  %v1365_v46 = vcombine.low %v1740_v31, %v1760_v41 }
  0x34   : > { %v1048_v25 = vor.u32 %v1047_v20, %v1044_v19  ;;  %v1366_v15 = vcombine.low %v1777_v62, %v1785_v12  ;;  %v1367_v41 = vcombine.low %v1800_v28, %v1882_v37  ;;  %v1375_v62 = vcombine.low %v1831_v61, %v1850_v10 }
  0x35   : > { %1472 = vmatmul.mubr.msk.bf16.vlgmr.msra.gmra.mrb[0].mxu1 %vm322_vm4, %v1339_v47  ;;  %v760_v3 = vrot.slane %v758_v24, 5  ;;  %v1053_v32 = vrot.slane %v1051_v30, 5  ;;  %v1405_v39 = vcombine.low %v1915_v51, %v1926_v33 }
  0x36   : > { %1480 = vmatpush3.bf16.msra.mxu1 %v1749_v34  ;;  %1475 = vmatprep.mubr.msk.bf16.mxu1 %vm322_vm4, %v1340_v48  ;;  %v1404_v34 = vld [vmem:[%s2016_s1 + $0x20] sm:$0x7]  ;;  %v1049_v21 = vrot.slane %v1048_v25, 4 }
  0x37   : > { %1489 = vmatprep.subr.bf16.mxu1 %v673_v36  ;;  %v1151_v53 = vand.u32 %v1404_v34, %v1678_v4  ;;  %v751_v4 = vrot.slane %v749_v1, 4 }
  0x39   : > { %1516 = vmatmul.mubr.msk.bf16.gmra.mrb[4].mxu0 %vm322_vm4, %v1386_v14  ;;  %v755_v22 = vor.u32 %v754_v17, %v751_v4 }
  0x3a   : > { %1521 = vmatprep.mubr.msk.bf16.mxu0 %vm322_vm4, %v1339_v47 }
  0x3b   : > { %v756_v35 = vrot.slane %v755_v22, 4 }
  0x3d   : > { %1476 = vmatmul.mubr.msk.bf16.gmra.mrb[4].mxu1 %vm322_vm4, %v1341_v58  ;;  %v761_v23 = vsel %vm1755_vm5, %v756_v35, %v760_v3 }
  0x3e   : > { %1481 = vmatprep.mubr.msk.bf16.mxu1 %vm322_vm4, %v1355_v59 }
  0x41   : > { %1522 = vmatmul.mubr.msk.bf16.vlgmr.msra.gmra.mrb[0].mxu0 %vm322_vm4, %v1340_v48 }
  0x42   : > { %1530 = vmatpush3.bf16.msra.mxu0 %v1063_v45  ;;  %1525 = vmatprep.mubr.msk.bf16.mxu0 %vm322_vm4, %v1341_v58 }
  0x43   : > { %1539 = vmatprep.subr.bf16.mxu0 %v1151_v53 }
  0x45   : > { %1482 = vmatmul.mubr.msk.bf16.vlgmr.msra.gmra.mrb[0].mxu1 %vm322_vm4, %v1356_v8 }
  0x46   : > { %1490 = vmatpush3.bf16.msra.mxu1 %v673_v36  ;;  %1485 = vmatprep.mubr.msk.bf16.mxu1 %vm322_vm4, %v1357_v60 }
  0x47   : > { %1549 = vmatprep.subr.bf16.mxu1 %v1685_v7 }
  0x49   : > { %1526 = vmatmul.mubr.msk.bf16.gmra.mrb[4].mxu0 %vm322_vm4, %v1392_v9 }
  0x4a   : > { %1531 = vmatprep.mubr.msk.bf16.mxu0 %vm322_vm4, %v1802_v29  ;;  %v1054_v29 = vsel %vm1755_vm5, %v1049_v21, %v1053_v32 }
  0x4b   : > { %v1398_v31 = vcombine.low %v761_v23, %v1054_v29 }
  0x4d   : > { %1486 = vmatmul.mubr.msk.bf16.gmra.mrb[4].mxu1 %vm322_vm4, %v1358_v16 }
  0x4e   : > { %1491 = vmatprep.mubr.msk.bf16.mxu1 %vm322_vm4, %v1364_v27 }
  0x51   : > { %1532 = vmatmul.mubr.msk.bf16.vlgmr.msra.gmra.mrb[0].mxu0 %vm322_vm4, %v1837_v5 }
  0x52   : > { %1540 = vmatpush3.bf16.msra.mxu0 %v1151_v53  ;;  %1535 = vmatprep.mubr.msk.bf16.mxu0 %vm322_vm4, %v1865_v26  ;;  %v1410_v26 = vld [vmem:[%s2017_s2] ss:$0 sm:$0xff] }
  0x55   : > { %1492 = vmatmul.mubr.msk.bf16.vlgmr.msra.gmra.mrb[0].mxu1 %vm322_vm4, %v1365_v46 }
  0x56   : > { %1550 = vmatpush3.bf16.msra.mxu1 %v1685_v7  ;;  %1495 = vmatprep.mubr.msk.bf16.mxu1 %vm322_vm4, %v1366_v15  ;;  %v1376_v7 = vcombine.low %v1857_v2, %v761_v23 }
  0x59   : > { %1536 = vmatmul.mubr.msk.bf16.gmra.mrb[4].mxu0 %vm322_vm4, %v1398_v31 }
  0x5a   : > { %1541 = vmatprep.mubr.msk.bf16.mxu0 %vm322_vm4, %v1356_v8 }
  0x5d   : > { %1496 = vmatmul.mubr.msk.bf16.gmra.mrb[4].mxu1 %vm322_vm4, %v1367_v41 }
  0x5e   : > { %1505 = vmatprep.mubr.msk.bf16.mxu1 %vm322_vm4, %v1375_v62 }
  0x61   : > { %1542 = vmatmul.mubr.msk.bf16.vlgmr.msra.gmra.mrb[0].mxu0 %vm322_vm4, %v1357_v60 }
  0x62   : > { %1545 = vmatprep.mubr.msk.bf16.mxu0 %vm322_vm4, %v1358_v16 }
  0x69   : > { %1506 = vmatmul.mubr.msk.bf16.vlgmr.msra.gmra.mrb[4].mxu1 %vm322_vm4, %v1376_v7  ;;  %1546 = vmatmul.mubr.msk.bf16.gmra.mrb[4].mxu0 %vm322_vm4, %v1405_v39 }
 0x128   : > { %v1493_v12 = vpop.f32.mrb[0].mxu1 }
 0x129   : > { %v709_v28 = vpop.f32.mrb[1].mxu1 }
 0x12a   : > { %v1494_v61 = vpop.f32.mrb[2].mxu1 }
 0x12b   : > { %v712_v5 = vpop.f32.mrb[3].mxu1 }
 0x134   : > { %v1543_v10 = vpop.f32.mrb[0].mxu0 }
 0x135   : > { %v1551_v37 = vadd.f32 %v1543_v10, %v1493_v12  ;;  %v1187_v38 = vpop.f32.mrb[1].mxu0 }
 0x136   : > { %v1552_v11 = vadd.f32 %v1187_v38, %v709_v28  ;;  %v1544_v2 = vpop.f32.mrb[2].mxu0 }
 0x137   : > { %v1235_v18 = vadd.f32 %v1551_v37, %v1410_v26  ;;  %v1553_v40 = vadd.f32 %v1544_v2, %v1494_v61  ;;  %v1190_v42 = vpop.f32.mrb[3].mxu0 }
 0x138   : > { %v1233_v43 = vadd.f32 %v1552_v11, %v1410_v26  ;;  %v1554_v44 = vadd.f32 %v1190_v42, %v712_v5 }
 0x139   : > { %v1243_v45 = vmax.f32 %v1235_v18, 0.0  ;;  %v1236_v47 = vadd.f32 %v1553_v40, %v1410_v26 }
 0x13a   : > { %v1241_v48 = vmax.f32 %v1233_v43, 0.0  ;;  %v1234_v36 = vadd.f32 %v1554_v44, %v1410_v26 }
 0x13b   : > { %v1251_v49 = vpack.c.bf16 %v1243_v45, %v1243_v45  ;;  %v1244_v50 = vmax.f32 %v1236_v47, 0.0 }
 0x13c   : > { %v1507_v51 = vpop.f32.mrb[4].mxu1  ;;  %v1249_v52 = vpack.c.bf16 %v1241_v48, %v1241_v48  ;;  %v1242_v54 = vmax.f32 %v1234_v36, 0.0  ;;  %v1547_v55 = vpop.f32.mrb[4].mxu0 }
 0x13d   : > { %v834_v56 = vpop.f32.mrb[5].mxu1  ;;  %1260 = vst.msk [vmem:[%s1994_s16 + $0x8] sm:$0xf] %vm1257_vm8, %v1251_v49  ;;  %v1252_v57 = vpack.c.bf16 %v1244_v50, %v1244_v50  ;;  %v1555_v14 = vadd.f32 %v1547_v55, %v1507_v51  ;;  %v1203_v33 = vpop.f32.mrb[5].mxu0 }
 0x13e   : > { %v1508_v13 = vpop.f32.mrb[6].mxu1  ;;  %1258 = vst.msk [vmem:[%s1994_s16] sm:$0xf] %vm1257_vm8, %v1249_v52  ;;  %v1250_v58 = vpack.c.bf16 %v1242_v54, %v1242_v54  ;;  %v1556_v59 = vadd.f32 %v1203_v33, %v834_v56  ;;  %v1548_v34 = vpop.f32.mrb[6].mxu0 }
 0x13f   : > { %v837_v53 = vpop.f32.mrb[7].mxu1  ;;  %1261 = vst.msk [vmem:[%s1994_s16 + $0xc] sm:$0xf] %vm1257_vm8, %v1252_v57  ;;  %v1239_v8 = vadd.f32 %v1555_v14, %v1410_v26  ;;  %v1557_v60 = vadd.f32 %v1548_v34, %v1508_v13  ;;  %v1206_v63 = vpop.f32.mrb[7].mxu0 }
 0x140   : > { %1259 = vst.msk [vmem:[%s1994_s16 + $0x4] sm:$0xf] %vm1257_vm8, %v1250_v58  ;;  %v1237_v0 = vadd.f32 %v1556_v59, %v1410_v26  ;;  %v1558_v1 = vadd.f32 %v1206_v63, %v837_v53 }
 0x141   : > { %v1247_v6 = vmax.f32 %v1239_v8, 0.0  ;;  %v1240_v9 = vadd.f32 %v1557_v60, %v1410_v26 }
 0x142   : > { %v1245_v4 = vmax.f32 %v1237_v0, 0.0  ;;  %v1238_v17 = vadd.f32 %v1558_v1, %v1410_v26 }
 0x143   : > { %v1255_v19 = vpack.c.bf16 %v1247_v6, %v1247_v6  ;;  %v1248_v20 = vmax.f32 %v1240_v9, 0.0 }
 0x144   : > { %v1253_v16 = vpack.c.bf16 %v1245_v4, %v1245_v4  ;;  %v1246_v27 = vmax.f32 %v1238_v17, 0.0 }
 0x145   : > { %1264 = vst.msk [vmem:[%s1994_s16 + $0x18] sm:$0xf] %vm1257_vm8, %v1255_v19  ;;  %v1256_v22 = vpack.c.bf16 %v1248_v20, %v1248_v20 }
 0x146   : > { %1262 = vst.msk [vmem:[%s1994_s16 + $0x10] sm:$0xf] %vm1257_vm8, %v1253_v16  ;;  %v1254_v24 = vpack.c.bf16 %v1246_v27, %v1246_v27 }
 0x147   : > { %1265 = vst.msk [vmem:[%s1994_s16 + $0x1c] sm:$0xf] %vm1257_vm8, %v1256_v22 }
 0x148   : > { %1263 = vst.msk [vmem:[%s1994_s16 + $0x14] sm:$0xf] %vm1257_vm8, %v1254_v24 }
 0x149 PF: > { %s13_s12 = sadd.s32 1, %s1640_s12  }
 0x14a   : > { %p10_p4 = scmp.ge.s32.totalorder %s13_s12, 10  }
 0x14c   :  { %12 = sbr.rel (!%p10_p4) target bundleno = 1 (0x1), region = 70 }

// kernel: inception_block_forward.7
= control target key start
LH: loop header
LB: loop body
LE: loop exit
PB: predicated region body
PF: predicated region fallthrough
CT: control target
= control target key end

     0   :  { %vm347_vm0 = vcmask 1041408   ;;  %vm250_vm1 = vcmask 31744   ;;  %vm704_vm2 = vcmask 48128   ;;  %s1816_s16 = smov 122   ;;  %s1817_s23 = smov 117   ;;  %vm1153_vm3 = vcmask 35840   ;;  %s3244_s1 = inlined_call_operand.vmem [shape: bf16[4,16], index: 1, kind: input, shape index: {}]   ;;  %s3245_s0 = inlined_call_operand.vmem [shape: bf16[512,4], index: 0, kind: input, shape index: {}]   ;;  %s3246_s2 = inlined_call_operand.vmem [shape: f32[1,16], index: 2, kind: input, shape index: {}]   ;;  %s3247_s3 = inlined_call_operand.vmem [shape: f32[512,6], index: 3, kind: output, shape index: {0}]   ;;  %s3248_s4 = inlined_call_operand.vmem [shape: bf16[512,5], index: 4, kind: output, shape index: {1}]   ;;  %s3249_s5 = inlined_call_operand.vmem [shape: bf16[512,5], index: 5, kind: output, shape index: {2}]  }
   0x1   :  { %v82_v0 = vld [vmem:[%s3244_s1] sm:$0x3]  ;;  %v1786_v4 = vld [vmem:[%s3245_s0 + $0x8] sm:$0xff]   ;;  %v1788_v6 = vld [vmem:[%s3245_s0 + $0x10] sm:$0xff]  }
   0x2   :  { %1780 = vmatprep.subr.msk.bf16.mxu0 %vm347_vm0, %v82_v0  ;;  %1781 = vmatprep.subr.msk.bf16.mxu1 %vm347_vm0, %v82_v0  ;;  %v349_v1 = vsel %vm347_vm0, %v82_v0, 0  ;;  %v1784_v2 = vld [vmem:[%s3245_s0] sm:$0xff]   ;;  %v1787_v5 = vld [vmem:[%s3245_s0 + $0x88] sm:$0xff]   ;;  %v1790_v7 = vld [vmem:[%s3245_s0 + $0x90] sm:$0xff]  }
   0x3   :  { %1713 = vmatpush3.bf16.msra.mxu0 %v349_v1  ;;  %1779 = vmatpush3.bf16.msra.mxu1 %v349_v1  ;;  %v1785_v3 = vld [vmem:[%s3245_s0 + $0x80] sm:$0xff]   ;;  %v1789_v8 = vld [vmem:[%s3245_s0 + $0x18] sm:$0xff]   ;;  %v1793_v12 = vld [vmem:[%s3245_s0 + $0x28] sm:$0xff]  }
   0x4   :  { %1714 = vmatprep.mubr.msk.bf16.mxu0 %vm250_vm1, %v1784_v2  ;;  %1746 = vmatprep.mubr.msk.bf16.mxu1 %vm250_vm1, %v1785_v3  ;;  %v1791_v9 = vld [vmem:[%s3245_s0 + $0x98] sm:$0xff]   ;;  %v1792_v10 = vld [vmem:[%s3245_s0 + $0x20] sm:$0xff]   ;;  %v1795_v13 = vld [vmem:[%s3245_s0 + $0xa8] sm:$0xff]  }
   0x5   :  { %v1794_v11 = vld [vmem:[%s3245_s0 + $0xa0] sm:$0xff]   ;;  %v1796_v14 = vld [vmem:[%s3245_s0 + $0x30] sm:$0xff]   ;;  %v1797_v16 = vld [vmem:[%s3245_s0 + $0x38] sm:$0xff]  }
   0x6   :  { %1715 = vmatmul.mubr.msk.bf16.vlgmr.msra.gmra.mrb[0].mxu0 %vm250_vm1, %v1786_v4  ;;  %1747 = vmatmul.mubr.msk.bf16.vlgmr.msra.gmra.mrb[0].mxu1 %vm250_vm1, %v1787_v5  ;;  %v1798_v15 = vld [vmem:[%s3245_s0 + $0xb0] sm:$0xff]   ;;  %v1799_v17 = vld [vmem:[%s3245_s0 + $0xb8] sm:$0xff]   ;;  %v1800_v18 = vld [vmem:[%s3245_s0 + $0x40] sm:$0xff]  }
   0x7   :  { %1718 = vmatprep.mubr.msk.bf16.mxu0 %vm250_vm1, %v1788_v6  ;;  %1750 = vmatprep.mubr.msk.bf16.mxu1 %vm250_vm1, %v1790_v7  ;;  %v1802_v19 = vld [vmem:[%s3245_s0 + $0xc0] sm:$0xff]   ;;  %v1801_v20 = vld [vmem:[%s3245_s0 + $0x48] sm:$0xff]   ;;  %v1804_v22 = vld [vmem:[%s3245_s0 + $0x50] sm:$0xff]  }
   0x8   :  { %v1803_v21 = vld [vmem:[%s3245_s0 + $0xc8] sm:$0xff]   ;;  %v1806_v23 = vld [vmem:[%s3245_s0 + $0xd0] sm:$0xff]   ;;  %v1805_v24 = vld [vmem:[%s3245_s0 + $0x58] sm:$0xff]  }
   0x9   :  { %v1807_v25 = vld [vmem:[%s3245_s0 + $0xd8] sm:$0xff]   ;;  %v1808_v26 = vld [vmem:[%s3245_s0 + $0x60] sm:$0xff]   ;;  %v1809_v28 = vld [vmem:[%s3245_s0 + $0x68] sm:$0xff]  }
   0xa   :  { %v1810_v27 = vld [vmem:[%s3245_s0 + $0xe0] sm:$0xff]   ;;  %v1811_v29 = vld [vmem:[%s3245_s0 + $0xe8] sm:$0xff]   ;;  %v1812_v30 = vld [vmem:[%s3245_s0 + $0x70] sm:$0xff]  }
   0xb   :  { %v1813_v31 = vld [vmem:[%s3245_s0 + $0x78] sm:$0xff]   ;;  %v1814_v32 = vld [vmem:[%s3245_s0 + $0xf0] sm:$0xff]   ;;  %v1982_v34 = vld [vmem:[%s3246_s2] ss:$0 sm:$0xff] }
   0xc   :  { %v1815_v33 = vld [vmem:[%s3245_s0 + $0xf8] sm:$0xff]  }
   0xe   :  { %1719 = vmatmul.mubr.msk.bf16.gmra.mrb[4].mxu0 %vm250_vm1, %v1789_v8  ;;  %1751 = vmatmul.mubr.msk.bf16.gmra.mrb[4].mxu1 %vm250_vm1, %v1791_v9 }
   0xf   :  { %1722 = vmatprep.mubr.msk.bf16.mxu0 %vm250_vm1, %v1792_v10  ;;  %1754 = vmatprep.mubr.msk.bf16.mxu1 %vm250_vm1, %v1794_v11 }
  0x16   :  { %1723 = vmatmul.mubr.msk.bf16.gmra.mrb[8].mxu0 %vm250_vm1, %v1793_v12  ;;  %1755 = vmatmul.mubr.msk.bf16.gmra.mrb[8].mxu1 %vm250_vm1, %v1795_v13 }
  0x17   :  { %1726 = vmatprep.mubr.msk.bf16.mxu0 %vm250_vm1, %v1796_v14  ;;  %1758 = vmatprep.mubr.msk.bf16.mxu1 %vm250_vm1, %v1798_v15 }
  0x1e   :  { %1727 = vmatmul.mubr.msk.bf16.gmra.mrb[12].mxu0 %vm250_vm1, %v1797_v16  ;;  %1759 = vmatmul.mubr.msk.bf16.gmra.mrb[12].mxu1 %vm250_vm1, %v1799_v17 }
  0x1f   :  { %1730 = vmatprep.mubr.msk.bf16.mxu0 %vm250_vm1, %v1800_v18  ;;  %1762 = vmatprep.mubr.msk.bf16.mxu1 %vm250_vm1, %v1802_v19 }
  0x26   :  { %1731 = vmatmul.mubr.msk.bf16.gmra.mrb[16].mxu0 %vm250_vm1, %v1801_v20  ;;  %1763 = vmatmul.mubr.msk.bf16.gmra.mrb[16].mxu1 %vm250_vm1, %v1803_v21 }
  0x27   :  { %1734 = vmatprep.mubr.msk.bf16.mxu0 %vm250_vm1, %v1804_v22  ;;  %1766 = vmatprep.mubr.msk.bf16.mxu1 %vm250_vm1, %v1806_v23 }
  0x2e   :  { %1735 = vmatmul.mubr.msk.bf16.gmra.mrb[20].mxu0 %vm250_vm1, %v1805_v24  ;;  %1767 = vmatmul.mubr.msk.bf16.gmra.mrb[20].mxu1 %vm250_vm1, %v1807_v25 }
  0x2f   :  { %1738 = vmatprep.mubr.msk.bf16.mxu0 %vm250_vm1, %v1808_v26  ;;  %1770 = vmatprep.mubr.msk.bf16.mxu1 %vm250_vm1, %v1810_v27 }
  0x36   :  { %1739 = vmatmul.mubr.msk.bf16.gmra.mrb[24].mxu0 %vm250_vm1, %v1809_v28  ;;  %1771 = vmatmul.mubr.msk.bf16.gmra.mrb[24].mxu1 %vm250_vm1, %v1811_v29 }
  0x37   :  { %1742 = vmatprep.mubr.msk.bf16.mxu0 %vm250_vm1, %v1812_v30  ;;  %1774 = vmatprep.mubr.msk.bf16.mxu1 %vm250_vm1, %v1814_v32 }
  0x3e   :  { %1743 = vmatmul.mubr.msk.bf16.gmra.mrb[28].mxu0 %vm250_vm1, %v1813_v31  ;;  %1775 = vmatmul.mubr.msk.bf16.gmra.mrb[28].mxu1 %vm250_vm1, %v1815_v33 }
  0xd9   :  { %v1716_v35 = vpop.f32.mrb[0].mxu0  ;;  %v1748_v37 = vpop.f32.mrb[0].mxu1 }
  0xda   :  { %v394_v36 = vadd.f32 %v1716_v35, %v1982_v34  ;;  %v385_v38 = vpop.f32.mrb[1].mxu0  ;;  %v522_v39 = vadd.f32 %v1748_v37, %v1982_v34  ;;  %v513_v41 = vpop.f32.mrb[1].mxu1 }
  0xdb   :  { %v386_v40 = vadd.f32 %v1982_v34, %v385_v38  ;;  %v1717_v42 = vpop.f32.mrb[2].mxu0  ;;  %v514_v44 = vadd.f32 %v1982_v34, %v513_v41  ;;  %v1749_v46 = vpop.f32.mrb[2].mxu1 }
  0xdc   :  { %v642_v43 = vmax.f32 %v394_v36, 0.0  ;;  %v397_v45 = vadd.f32 %v1717_v42, %v1982_v34  ;;  %v388_v47 = vpop.f32.mrb[3].mxu0  ;;  %v674_v48 = vmax.f32 %v522_v39, 0.0  ;;  %v525_v50 = vadd.f32 %v1749_v46, %v1982_v34  ;;  %v516_v52 = vpop.f32.mrb[3].mxu1 }
  0xdd   :  { %v1989_v49 = vmax.f32 %v386_v40, 0.0  ;;  %v389_v51 = vadd.f32 %v1982_v34, %v388_v47  ;;  %v1997_v53 = vmax.f32 %v514_v44, 0.0  ;;  %v517_v55 = vadd.f32 %v1982_v34, %v516_v52 }
  0xde   :  { %707 = vst.msk [vmem:[%s3247_s3 + $0x10] sm:$0xff] %vm704_vm2, %v642_v43  ;;  %v643_v54 = vmax.f32 %v397_v45, 0.0  ;;  %v1617_v56 = vpack.c.bf16 %v642_v43, %v642_v43  ;;  %739 = vst.msk [vmem:[%s3247_s3 + $0x110] sm:$0xff] %vm704_vm2, %v674_v48  ;;  %v675_v57 = vmax.f32 %v525_v50, 0.0  ;;  %v1649_v59 = vpack.c.bf16 %v674_v48, %v674_v48 }
  0xdf   :  { %705 = vst.msk [vmem:[%s3247_s3] sm:$0xff] %vm704_vm2, %v1989_v49  ;;  %v2009_v58 = vmax.f32 %v389_v51, 0.0  ;;  %737 = vst.msk [vmem:[%s3247_s3 + $0x100] sm:$0xff] %vm704_vm2, %v1997_v53  ;;  %v2020_v60 = vmax.f32 %v517_v55, 0.0  ;;  %v1615_v27 = vpack.c.bf16 %v1989_v49, %v1989_v49  ;;  %v1647_v46 = vpack.c.bf16 %v1997_v53, %v1997_v53 }
  0xe0   :  { %708 = vst.msk [vmem:[%s3247_s3 + $0x18] sm:$0xff] %vm704_vm2, %v643_v54  ;;  %965 = vrot.lane.b32.xlu1 %v1617_v56, %s1816_s16  ;;  %740 = vst.msk [vmem:[%s3247_s3 + $0x118] sm:$0xff] %vm704_vm2, %v675_v57  ;;  %1029 = vrot.lane.b32.xlu0 %v1649_v59, %s1816_s16  ;;  %v1618_v62 = vpack.c.bf16 %v643_v54, %v643_v54  ;;  %v1650_v16 = vpack.c.bf16 %v675_v57, %v675_v57 }
  0xe1   :  { %706 = vst.msk [vmem:[%s3247_s3 + $0x8] sm:$0xff] %vm704_vm2, %v2009_v58  ;;  %v1720_v61 = vpop.f32.mrb[4].mxu0  ;;  %738 = vst.msk [vmem:[%s3247_s3 + $0x108] sm:$0xff] %vm704_vm2, %v2020_v60  ;;  %v1752_v1 = vpop.f32.mrb[4].mxu1  ;;  %v1648_v51 = vpack.c.bf16 %v2020_v60, %v2020_v60 }
  0xe2   :  { %v410_v63 = vadd.f32 %v1720_v61, %v1982_v34  ;;  %v401_v0 = vpop.f32.mrb[5].mxu0  ;;  %v538_v4 = vadd.f32 %v1752_v1, %v1982_v34  ;;  %v529_v5 = vpop.f32.mrb[5].mxu1 }
  0xe3   :  { %v402_v2 = vadd.f32 %v1982_v34, %v401_v0  ;;  %v1721_v3 = vpop.f32.mrb[6].mxu0  ;;  %v530_v9 = vadd.f32 %v1982_v34, %v529_v5  ;;  %v1753_v10 = vpop.f32.mrb[6].mxu1 }
  0xe4   :  { %967 = vrot.lane.b32.xlu1 %v1618_v62, %s1816_s16  ;;  %v2042_v6 = vmax.f32 %v410_v63, 0.0  ;;  %v413_v7 = vadd.f32 %v1721_v3, %v1982_v34  ;;  %v404_v8 = vpop.f32.mrb[7].mxu0  ;;  %1222 = vrot.lane.b32.xlu0 %v1617_v56, %s1817_s23  ;;  %v2050_v13 = vmax.f32 %v538_v4, 0.0  ;;  %v541_v14 = vadd.f32 %v1753_v10, %v1982_v34  ;;  %v532_v15 = vpop.f32.mrb[7].mxu1 }
  0xe5   :  { %v2047_v11 = vmax.f32 %v402_v2, 0.0  ;;  %v405_v12 = vadd.f32 %v1982_v34, %v404_v8  ;;  %v2060_v18 = vmax.f32 %v530_v9, 0.0  ;;  %v533_v19 = vadd.f32 %v1982_v34, %v532_v15 }
  0xe6   :  { %711 = vst.msk [vmem:[%s3247_s3 + $0x30] sm:$0xff] %vm704_vm2, %v2042_v6  ;;  %v2058_v17 = vmax.f32 %v413_v7, 0.0  ;;  %743 = vst.msk [vmem:[%s3247_s3 + $0x130] sm:$0xff] %vm704_vm2, %v2050_v13  ;;  %v2075_v21 = vmax.f32 %v541_v14, 0.0  ;;  %v1616_v7 = vpack.c.bf16 %v2009_v58, %v2009_v58 }
  0xe7   :  { %709 = vst.msk [vmem:[%s3247_s3 + $0x20] sm:$0xff] %vm704_vm2, %v2047_v11  ;;  %v2068_v20 = vmax.f32 %v405_v12, 0.0  ;;  %741 = vst.msk [vmem:[%s3247_s3 + $0x120] sm:$0xff] %vm704_vm2, %v2060_v18  ;;  %v2088_v22 = vmax.f32 %v533_v19, 0.0 }
  0xe8   :  { %1031 = vrot.lane.b32.xlu1 %v1650_v16, %s1816_s16  ;;  %712 = vst.msk [vmem:[%s3247_s3 + $0x38] sm:$0xff] %vm704_vm2, %v2058_v17  ;;  %1286 = vrot.lane.b32.xlu0 %v1649_v59, %s1817_s23  ;;  %744 = vst.msk [vmem:[%s3247_s3 + $0x138] sm:$0xff] %vm704_vm2, %v2075_v21 }
  0xe9   :  { %710 = vst.msk [vmem:[%s3247_s3 + $0x28] sm:$0xff] %vm704_vm2, %v2068_v20  ;;  %v1724_v23 = vpop.f32.mrb[8].mxu0  ;;  %742 = vst.msk [vmem:[%s3247_s3 + $0x128] sm:$0xff] %vm704_vm2, %v2088_v22  ;;  %v1756_v26 = vpop.f32.mrb[8].mxu1 }
  0xea   :  { %v426_v24 = vadd.f32 %v1724_v23, %v1982_v34  ;;  %v417_v25 = vpop.f32.mrb[9].mxu0  ;;  %v554_v30 = vadd.f32 %v1756_v26, %v1982_v34  ;;  %v545_v31 = vpop.f32.mrb[9].mxu1 }
  0xeb   :  { %v418_v28 = vadd.f32 %v1982_v34, %v417_v25  ;;  %v1725_v29 = vpop.f32.mrb[10].mxu0  ;;  %v546_v36 = vadd.f32 %v1982_v34, %v545_v31  ;;  %v1757_v37 = vpop.f32.mrb[10].mxu1 }
  0xec   :  { %1224 = vrot.lane.b32.xlu1 %v1618_v62, %s1817_s23  ;;  %v2112_v32 = vmax.f32 %v426_v24, 0.0  ;;  %v429_v33 = vadd.f32 %v1725_v29, %v1982_v34  ;;  %v420_v35 = vpop.f32.mrb[11].mxu0  ;;  %961 = vrot.lane.b32.xlu0 %v1615_v27, %s1816_s16  ;;  %v2120_v40 = vmax.f32 %v554_v30, 0.0  ;;  %v557_v41 = vadd.f32 %v1757_v37, %v1982_v34  ;;  %v548_v42 = vpop.f32.mrb[11].mxu1 }
  0xed   :  { %v2117_v38 = vmax.f32 %v418_v28, 0.0  ;;  %v421_v39 = vadd.f32 %v1982_v34, %v420_v35  ;;  %v2130_v44 = vmax.f32 %v546_v36, 0.0  ;;  %v549_v45 = vadd.f32 %v1982_v34, %v548_v42 }
  0xee   :  { %715 = vst.msk [vmem:[%s3247_s3 + $0x50] sm:$0xff] %vm704_vm2, %v2112_v32  ;;  %v2128_v43 = vmax.f32 %v429_v33, 0.0  ;;  %747 = vst.msk [vmem:[%s3247_s3 + $0x150] sm:$0xff] %vm704_vm2, %v2120_v40  ;;  %v2147_v48 = vmax.f32 %v557_v41, 0.0  ;;  %v1622_v42 = vpack.c.bf16 %v2058_v17, %v2058_v17 }
  0xef   :  { %713 = vst.msk [vmem:[%s3247_s3 + $0x40] sm:$0xff] %vm704_vm2, %v2117_v38  ;;  %v2140_v47 = vmax.f32 %v421_v39, 0.0  ;;  %745 = vst.msk [vmem:[%s3247_s3 + $0x140] sm:$0xff] %vm704_vm2, %v2130_v44  ;;  %v2160_v49 = vmax.f32 %v549_v45, 0.0 }
  0xf0   :  { %1288 = vrot.lane.b32.xlu1 %v1650_v16, %s1817_s23  ;;  %716 = vst.msk [vmem:[%s3247_s3 + $0x58] sm:$0xff] %vm704_vm2, %v2128_v43  ;;  %1025 = vrot.lane.b32.xlu0 %v1647_v46, %s1816_s16  ;;  %748 = vst.msk [vmem:[%s3247_s3 + $0x158] sm:$0xff] %vm704_vm2, %v2147_v48 }
  0xf1   :  { %714 = vst.msk [vmem:[%s3247_s3 + $0x48] sm:$0xff] %vm704_vm2, %v2140_v47  ;;  %v1728_v50 = vpop.f32.mrb[12].mxu0  ;;  %746 = vst.msk [vmem:[%s3247_s3 + $0x148] sm:$0xff] %vm704_vm2, %v2160_v49  ;;  %v1760_v54 = vpop.f32.mrb[12].mxu1 }
  0xf2   :  { %v442_v52 = vadd.f32 %v1728_v50, %v1982_v34  ;;  %v433_v53 = vpop.f32.mrb[13].mxu0  ;;  %v570_v57 = vadd.f32 %v1760_v54, %v1982_v34  ;;  %v561_v59 = vpop.f32.mrb[13].mxu1  ;;  %v1654_v54 = vpack.c.bf16 %v2075_v21, %v2075_v21 }
  0xf3   :  { %v434_v55 = vadd.f32 %v1982_v34, %v433_v53  ;;  %v1729_v56 = vpop.f32.mrb[14].mxu0  ;;  %v562_v63 = vadd.f32 %v1982_v34, %v561_v59  ;;  %v1761_v0 = vpop.f32.mrb[14].mxu1  ;;  %v1653_v59 = vpack.c.bf16 %v2050_v13, %v2050_v13 }
  0xf4   :  { %1027 = vrot.lane.b32.xlu1 %v1648_v51, %s1816_s16  ;;  %v2184_v61 = vmax.f32 %v442_v52, 0.0  ;;  %v445_v60 = vadd.f32 %v1729_v56, %v1982_v34  ;;  %v436_v62 = vpop.f32.mrb[15].mxu0  ;;  %1218 = vrot.lane.b32.xlu0 %v1615_v27, %s1817_s23  ;;  %v2192_v3 = vmax.f32 %v570_v57, 0.0  ;;  %v573_v4 = vadd.f32 %v1761_v0, %v1982_v34  ;;  %v564_v5 = vpop.f32.mrb[15].mxu1 }
  0xf5   :  { %v2189_v1 = vmax.f32 %v434_v55, 0.0  ;;  %v437_v2 = vadd.f32 %v1982_v34, %v436_v62  ;;  %v2204_v9 = vmax.f32 %v562_v63, 0.0  ;;  %v565_v10 = vadd.f32 %v1982_v34, %v564_v5 }
  0xf6   :  { %719 = vst.msk [vmem:[%s3247_s3 + $0x70] sm:$0xff] %vm704_vm2, %v2184_v61  ;;  %v2202_v8 = vmax.f32 %v445_v60, 0.0  ;;  %751 = vst.msk [vmem:[%s3247_s3 + $0x170] sm:$0xff] %vm704_vm2, %v2192_v3  ;;  %v2219_v58 = vmax.f32 %v573_v4, 0.0 }
  0xf7   :  { %717 = vst.msk [vmem:[%s3247_s3 + $0x60] sm:$0xff] %vm704_vm2, %v2189_v1  ;;  %v2212_v12 = vmax.f32 %v437_v2, 0.0  ;;  %749 = vst.msk [vmem:[%s3247_s3 + $0x160] sm:$0xff] %vm704_vm2, %v2204_v9  ;;  %v2232_v14 = vmax.f32 %v565_v10, 0.0 }
  0xf8   :  { %1220 = vrot.lane.b32.xlu1 %v1616_v7, %s1817_s23  ;;  %720 = vst.msk [vmem:[%s3247_s3 + $0x78] sm:$0xff] %vm704_vm2, %v2202_v8  ;;  %1282 = vrot.lane.b32.xlu0 %v1647_v46, %s1817_s23  ;;  %752 = vst.msk [vmem:[%s3247_s3 + $0x178] sm:$0xff] %vm704_vm2, %v2219_v58 }
  0xf9   :  { %718 = vst.msk [vmem:[%s3247_s3 + $0x68] sm:$0xff] %vm704_vm2, %v2212_v12  ;;  %v1732_v15 = vpop.f32.mrb[16].mxu0  ;;  %750 = vst.msk [vmem:[%s3247_s3 + $0x168] sm:$0xff] %vm704_vm2, %v2232_v14  ;;  %v1764_v23 = vpop.f32.mrb[16].mxu1 }
  0xfa   :  { %v458_v16 = vadd.f32 %v1732_v15, %v1982_v34  ;;  %v449_v19 = vpop.f32.mrb[17].mxu0  ;;  %v586_v26 = vadd.f32 %v1764_v23, %v1982_v34  ;;  %v577_v27 = vpop.f32.mrb[17].mxu1 }
  0xfb   :  { %v450_v24 = vadd.f32 %v1982_v34, %v449_v19  ;;  %v1733_v25 = vpop.f32.mrb[18].mxu0  ;;  %v578_v31 = vadd.f32 %v1982_v34, %v577_v27  ;;  %v1765_v33 = vpop.f32.mrb[18].mxu1 }
  0xfc   :  { %1284 = vrot.lane.b32.xlu1 %v1648_v51, %s1817_s23  ;;  %v2254_v28 = vmax.f32 %v458_v16, 0.0  ;;  %v461_v29 = vadd.f32 %v1733_v25, %v1982_v34  ;;  %v452_v30 = vpop.f32.mrb[19].mxu0  ;;  %963 = vrot.lane.b32.xlu0 %v1616_v7, %s1816_s16  ;;  %v2262_v37 = vmax.f32 %v586_v26, 0.0  ;;  %v589_v39 = vadd.f32 %v1765_v33, %v1982_v34  ;;  %v580_v41 = vpop.f32.mrb[19].mxu1 }
  0xfd   :  { %v2259_v35 = vmax.f32 %v450_v24, 0.0  ;;  %v453_v36 = vadd.f32 %v1982_v34, %v452_v30  ;;  %v2274_v46 = vmax.f32 %v578_v31, 0.0  ;;  %v581_v50 = vadd.f32 %v1982_v34, %v580_v41 }
  0xfe   :  { %723 = vst.msk [vmem:[%s3247_s3 + $0x90] sm:$0xff] %vm704_vm2, %v2254_v28  ;;  %v2272_v45 = vmax.f32 %v461_v29, 0.0  ;;  %v1621_v51 = vpack.c.bf16 %v2042_v6, %v2042_v6  ;;  %755 = vst.msk [vmem:[%s3247_s3 + $0x190] sm:$0xff] %vm704_vm2, %v2262_v37  ;;  %v2291_v52 = vmax.f32 %v589_v39, 0.0  ;;  %v1620_v30 = vpack.c.bf16 %v2068_v20, %v2068_v20 }
  0xff   :  { %721 = vst.msk [vmem:[%s3247_s3 + $0x80] sm:$0xff] %vm704_vm2, %v2259_v35  ;;  %v2284_v17 = vmax.f32 %v453_v36, 0.0  ;;  %753 = vst.msk [vmem:[%s3247_s3 + $0x180] sm:$0xff] %vm704_vm2, %v2274_v46  ;;  %v2304_v6 = vmax.f32 %v581_v50, 0.0  ;;  %v1619_v31 = vpack.c.bf16 %v2047_v11, %v2047_v11  ;;  %v1652_v33 = vpack.c.bf16 %v2088_v22, %v2088_v22 }
 0x100   :  { %975 = vrot.lane.b32.xlu1 %v1622_v42, %s1816_s16  ;;  %724 = vst.msk [vmem:[%s3247_s3 + $0x98] sm:$0xff] %vm704_vm2, %v2272_v45  ;;  %973 = vrot.lane.b32.xlu0 %v1621_v51, %s1816_s16  ;;  %756 = vst.msk [vmem:[%s3247_s3 + $0x198] sm:$0xff] %vm704_vm2, %v2291_v52  ;;  %v1651_v36 = vpack.c.bf16 %v2060_v18, %v2060_v18 }
 0x101   :  { %722 = vst.msk [vmem:[%s3247_s3 + $0x88] sm:$0xff] %vm704_vm2, %v2284_v17  ;;  %v1736_v53 = vpop.f32.mrb[20].mxu0  ;;  %754 = vst.msk [vmem:[%s3247_s3 + $0x188] sm:$0xff] %vm704_vm2, %v2304_v6  ;;  %v1768_v57 = vpop.f32.mrb[20].mxu1 }
 0x102   :  { %v474_v55 = vadd.f32 %v1736_v53, %v1982_v34  ;;  %v465_v56 = vpop.f32.mrb[21].mxu0  ;;  %v602_v63 = vadd.f32 %v1768_v57, %v1982_v34  ;;  %v593_v0 = vpop.f32.mrb[21].mxu1 }
 0x103   :  { %v466_v60 = vadd.f32 %v1982_v34, %v465_v56  ;;  %v1737_v62 = vpop.f32.mrb[22].mxu0  ;;  %v594_v5 = vadd.f32 %v1982_v34, %v593_v0  ;;  %v1769_v7 = vpop.f32.mrb[22].mxu1 }
 0x104   :  { %1039 = vrot.lane.b32.xlu1 %v1654_v54, %s1816_s16  ;;  %v2330_v21 = vmax.f32 %v474_v55, 0.0  ;;  %v477_v2 = vadd.f32 %v1737_v62, %v1982_v34  ;;  %v468_v4 = vpop.f32.mrb[23].mxu0  ;;  %1037 = vrot.lane.b32.xlu0 %v1653_v59, %s1816_s16  ;;  %v2338_v15 = vmax.f32 %v602_v63, 0.0  ;;  %v605_v16 = vadd.f32 %v1769_v7, %v1982_v34  ;;  %v596_v19 = vpop.f32.mrb[23].mxu1 }
 0x105   :  { %v2335_v10 = vmax.f32 %v466_v60, 0.0  ;;  %v469_v13 = vadd.f32 %v1982_v34, %v468_v4  ;;  %v2348_v24 = vmax.f32 %v594_v5, 0.0  ;;  %v597_v25 = vadd.f32 %v1982_v34, %v596_v19 }
 0x106   :  { %727 = vst.msk [vmem:[%s3247_s3 + $0xb0] sm:$0xff] %vm704_vm2, %v2330_v21  ;;  %v2346_v23 = vmax.f32 %v477_v2, 0.0  ;;  %759 = vst.msk [vmem:[%s3247_s3 + $0x1b0] sm:$0xff] %vm704_vm2, %v2338_v15  ;;  %v2363_v27 = vmax.f32 %v605_v16, 0.0  ;;  %v1625_v16 = vpack.c.bf16 %v2112_v32, %v2112_v32  ;;  %v1658_v32 = vpack.c.bf16 %v2147_v48, %v2147_v48 }
 0x107   :  { %725 = vst.msk [vmem:[%s3247_s3 + $0xa0] sm:$0xff] %vm704_vm2, %v2335_v10  ;;  %v2356_v26 = vmax.f32 %v469_v13, 0.0  ;;  %757 = vst.msk [vmem:[%s3247_s3 + $0x1a0] sm:$0xff] %vm704_vm2, %v2348_v24  ;;  %v2376_v29 = vmax.f32 %v597_v25, 0.0  ;;  %v1626_v13 = vpack.c.bf16 %v2128_v43, %v2128_v43  ;;  %v1657_v43 = vpack.c.bf16 %v2120_v40, %v2120_v40 }
 0x108   :  { %1232 = vrot.lane.b32.xlu1 %v1622_v42, %s1817_s23  ;;  %728 = vst.msk [vmem:[%s3247_s3 + $0xb8] sm:$0xff] %vm704_vm2, %v2346_v23  ;;  %1230 = vrot.lane.b32.xlu0 %v1621_v51, %s1817_s23  ;;  %760 = vst.msk [vmem:[%s3247_s3 + $0x1b8] sm:$0xff] %vm704_vm2, %v2363_v27  ;;  %v1624_v25 = vpack.c.bf16 %v2140_v47, %v2140_v47  ;;  %v1623_v48 = vpack.c.bf16 %v2117_v38, %v2117_v38 }
 0x109   :  { %726 = vst.msk [vmem:[%s3247_s3 + $0xa8] sm:$0xff] %vm704_vm2, %v2356_v26  ;;  %758 = vst.msk [vmem:[%s3247_s3 + $0x1a8] sm:$0xff] %vm704_vm2, %v2376_v29  ;;  %v1740_v39 = vpop.f32.mrb[24].mxu0  ;;  %v1772_v53 = vpop.f32.mrb[24].mxu1  ;;  %v1656_v40 = vpack.c.bf16 %v2160_v49, %v2160_v49 }
 0x10a   :  { %v490_v20 = vadd.f32 %v1740_v39, %v1982_v34  ;;  %v481_v41 = vpop.f32.mrb[25].mxu0  ;;  %v618_v56 = vadd.f32 %v1772_v53, %v1982_v34  ;;  %v609_v57 = vpop.f32.mrb[25].mxu1 }
 0x10b   :  { %v482_v11 = vadd.f32 %v1982_v34, %v481_v41  ;;  %v1741_v42 = vpop.f32.mrb[26].mxu0  ;;  %v1773_v60 = vpop.f32.mrb[26].mxu1 }
 0x10c   :  { %1296 = vrot.lane.b32.xlu1 %v1654_v54, %s1817_s23  ;;  %1294 = vrot.lane.b32.xlu0 %v1653_v59, %s1817_s23  ;;  %v2410_v50 = vmax.f32 %v490_v20, 0.0  ;;  %v493_v51 = vadd.f32 %v1741_v42, %v1982_v34  ;;  %v484_v18 = vpop.f32.mrb[27].mxu0  ;;  %v610_v59 = vadd.f32 %v1982_v34, %v609_v57  ;;  %v2439_v63 = vmax.f32 %v618_v56, 0.0  ;;  %v612_v4 = vpop.f32.mrb[27].mxu1 }
 0x10d   :  { %v2414_v22 = vmax.f32 %v482_v11, 0.0  ;;  %v485_v55 = vadd.f32 %v1982_v34, %v484_v18  ;;  %v621_v0 = vadd.f32 %v1773_v60, %v1982_v34  ;;  %v613_v7 = vadd.f32 %v1982_v34, %v612_v4 }
 0x10e   :  { %731 = vst.msk [vmem:[%s3247_s3 + $0xd0] sm:$0xff] %vm704_vm2, %v2410_v50  ;;  %v2422_v54 = vmax.f32 %v493_v51, 0.0  ;;  %v2443_v2 = vmax.f32 %v610_v59, 0.0  ;;  %763 = vst.msk [vmem:[%s3247_s3 + $0x1d0] sm:$0xff] %vm704_vm2, %v2439_v63 }
 0x10f   :  { %729 = vst.msk [vmem:[%s3247_s3 + $0xc0] sm:$0xff] %vm704_vm2, %v2414_v22  ;;  %v2437_v62 = vmax.f32 %v485_v55, 0.0  ;;  %v2456_v5 = vmax.f32 %v621_v0, 0.0  ;;  %v2473_v19 = vmax.f32 %v613_v7, 0.0  ;;  %v1630_v7 = vpack.c.bf16 %v2202_v8, %v2202_v8 }
 0x110   :  { %971 = vrot.lane.b32.xlu1 %v1620_v30, %s1816_s16  ;;  %969 = vrot.lane.b32.xlu0 %v1619_v31, %s1816_s16  ;;  %732 = vst.msk [vmem:[%s3247_s3 + $0xd8] sm:$0xff] %vm704_vm2, %v2422_v54  ;;  %761 = vst.msk [vmem:[%s3247_s3 + $0x1c0] sm:$0xff] %vm704_vm2, %v2443_v2  ;;  %v1661_v8 = vpack.c.bf16 %v2192_v3, %v2192_v3  ;;  %v1660_v3 = vpack.c.bf16 %v2232_v14, %v2232_v14 }
 0x111   :  { %730 = vst.msk [vmem:[%s3247_s3 + $0xc8] sm:$0xff] %vm704_vm2, %v2437_v62  ;;  %764 = vst.msk [vmem:[%s3247_s3 + $0x1d8] sm:$0xff] %vm704_vm2, %v2456_v5  ;;  %v1776_v11 = vpop.f32.mrb[28].mxu1 }
 0x112   :  { %762 = vst.msk [vmem:[%s3247_s3 + $0x1c8] sm:$0xff] %vm704_vm2, %v2473_v19  ;;  %v634_v51 = vadd.f32 %v1776_v11, %v1982_v34  ;;  %v625_v18 = vpop.f32.mrb[29].mxu1  ;;  %v1631_v11 = vpack.c.bf16 %v2259_v35, %v2259_v35  ;;  %v1663_v35 = vpack.c.bf16 %v2274_v46, %v2274_v46 }
 0x113   :  { %v626_v55 = vadd.f32 %v1982_v34, %v625_v18  ;;  %v1777_v56 = vpop.f32.mrb[30].mxu1 }
 0x114   :  { %1035 = vrot.lane.b32.xlu1 %v1652_v33, %s1816_s16  ;;  %1033 = vrot.lane.b32.xlu0 %v1651_v36, %s1816_s16  ;;  %v2536_v57 = vmax.f32 %v634_v51, 0.0  ;;  %v637_v59 = vadd.f32 %v1777_v56, %v1982_v34  ;;  %v628_v60 = vpop.f32.mrb[31].mxu1 }
 0x115   :  { %v2545_v0 = vmax.f32 %v626_v55, 0.0  ;;  %v629_v4 = vadd.f32 %v1982_v34, %v628_v60  ;;  %v1638_v60 = vpack.c.bf16 %v2346_v23, %v2346_v23  ;;  %v1670_v23 = vpack.c.bf16 %v2363_v27, %v2363_v27 }
 0x116   :  { %767 = vst.msk [vmem:[%s3247_s3 + $0x1f0] sm:$0xff] %vm704_vm2, %v2536_v57 }
 0x117   :  { %765 = vst.msk [vmem:[%s3247_s3 + $0x1e0] sm:$0xff] %vm704_vm2, %v2545_v0 }
 0x118   :  { %1228 = vrot.lane.b32.xlu1 %v1620_v30, %s1817_s23  ;;  %1226 = vrot.lane.b32.xlu0 %v1619_v31, %s1817_s23  ;;  %v1655_v30 = vpack.c.bf16 %v2130_v44, %v2130_v44  ;;  %v1744_v31 = vpop.f32.mrb[28].mxu0 }
 0x119   :  { %v506_v47 = vadd.f32 %v1744_v31, %v1982_v34  ;;  %v1633_v31 = vpack.c.bf16 %v2254_v28, %v2254_v28  ;;  %v1665_v28 = vpack.c.bf16 %v2262_v37, %v2262_v37 }
 0x11b   :  { %v2507_v39 = vmax.f32 %v506_v47, 0.0 }
 0x11c   :  { %1292 = vrot.lane.b32.xlu1 %v1652_v33, %s1817_s23  ;;  %1290 = vrot.lane.b32.xlu0 %v1651_v36, %s1817_s23  ;;  %v497_v33 = vpop.f32.mrb[29].mxu0 }
 0x11d   :  { %v498_v38 = vadd.f32 %v1982_v34, %v497_v33  ;;  %v1745_v36 = vpop.f32.mrb[30].mxu0  ;;  %735 = vst.msk [vmem:[%s3247_s3 + $0xf0] sm:$0xff] %vm704_vm2, %v2507_v39 }
 0x11e   :  { %v509_v49 = vadd.f32 %v1745_v36, %v1982_v34  ;;  %v500_v20 = vpop.f32.mrb[31].mxu0 }
 0x11f   :  { %v2511_v44 = vmax.f32 %v498_v38, 0.0  ;;  %v501_v41 = vadd.f32 %v1982_v34, %v500_v20  ;;  %v2564_v34 = vmax.f32 %v629_v4, 0.0  ;;  %v1632_v20 = vpack.c.bf16 %v2284_v17, %v2284_v17 }
 0x120   :  { %983 = vrot.lane.b32.xlu1 %v1626_v13, %s1816_s16  ;;  %981 = vrot.lane.b32.xlu0 %v1625_v16, %s1816_s16  ;;  %v2519_v42 = vmax.f32 %v509_v49, 0.0  ;;  %v1664_v17 = vpack.c.bf16 %v2304_v6, %v2304_v6 }
 0x121   :  { %733 = vst.msk [vmem:[%s3247_s3 + $0xe0] sm:$0xff] %vm704_vm2, %v2511_v44  ;;  %v2527_v53 = vmax.f32 %v501_v41, 0.0  ;;  %766 = vst.msk [vmem:[%s3247_s3 + $0x1e8] sm:$0xff] %vm704_vm2, %v2564_v34 }
 0x122   :  { %736 = vst.msk [vmem:[%s3247_s3 + $0xf8] sm:$0xff] %vm704_vm2, %v2519_v42 }
 0x123   :  { %734 = vst.msk [vmem:[%s3247_s3 + $0xe8] sm:$0xff] %vm704_vm2, %v2527_v53 }
 0x124   :  { %1047 = vrot.lane.b32.xlu1 %v1658_v32, %s1816_s16  ;;  %1045 = vrot.lane.b32.xlu0 %v1657_v43, %s1816_s16 }
 0x128   :  { %1240 = vrot.lane.b32.xlu1 %v1626_v13, %s1817_s23  ;;  %1238 = vrot.lane.b32.xlu0 %v1625_v16, %s1817_s23  ;;  %v2555_v13 = vmax.f32 %v637_v59, 0.0  ;;  %v1629_v16 = vpack.c.bf16 %v2184_v61, %v2184_v61  ;;  %v1662_v61 = vpack.c.bf16 %v2219_v58, %v2219_v58  ;;  %v1627_v58 = vpack.c.bf16 %v2189_v1, %v2189_v1 }
 0x12a   :  { %768 = vst.msk [vmem:[%s3247_s3 + $0x1f8] sm:$0xff] %vm704_vm2, %v2555_v13 }
 0x12c   :  { %1304 = vrot.lane.b32.xlu1 %v1658_v32, %s1817_s23  ;;  %1302 = vrot.lane.b32.xlu0 %v1657_v43, %s1817_s23  ;;  %v1628_v32 = vpack.c.bf16 %v2212_v12, %v2212_v12 }
 0x130   :  { %979 = vrot.lane.b32.xlu1 %v1624_v25, %s1816_s16  ;;  %977 = vrot.lane.b32.xlu0 %v1623_v48, %s1816_s16 }
 0x134   :  { %1043 = vrot.lane.b32.xlu1 %v1656_v40, %s1816_s16  ;;  %1041 = vrot.lane.b32.xlu0 %v1655_v30, %s1816_s16 }
 0x138   :  { %1236 = vrot.lane.b32.xlu1 %v1624_v25, %s1817_s23  ;;  %1234 = vrot.lane.b32.xlu0 %v1623_v48, %s1817_s23  ;;  %v1659_v25 = vpack.c.bf16 %v2204_v9, %v2204_v9 }
 0x13c   :  { %1300 = vrot.lane.b32.xlu1 %v1656_v40, %s1817_s23  ;;  %1298 = vrot.lane.b32.xlu0 %v1655_v30, %s1817_s23  ;;  %v1634_v40 = vpack.c.bf16 %v2272_v45, %v2272_v45  ;;  %v1666_v45 = vpack.c.bf16 %v2291_v52, %v2291_v52 }
 0x140   :  { %991 = vrot.lane.b32.xlu1 %v1630_v7, %s1816_s16  ;;  %989 = vrot.lane.b32.xlu0 %v1629_v16, %s1816_s16 }
 0x144   :  { %1055 = vrot.lane.b32.xlu1 %v1662_v61, %s1816_s16  ;;  %1053 = vrot.lane.b32.xlu0 %v1661_v8, %s1816_s16 }
 0x148   :  { %1248 = vrot.lane.b32.xlu1 %v1630_v7, %s1817_s23  ;;  %1246 = vrot.lane.b32.xlu0 %v1629_v16, %s1817_s23  ;;  %v1637_v7 = vpack.c.bf16 %v2330_v21, %v2330_v21  ;;  %v1669_v21 = vpack.c.bf16 %v2338_v15, %v2338_v15 }
 0x14c   :  { %1312 = vrot.lane.b32.xlu1 %v1662_v61, %s1817_s23  ;;  %1310 = vrot.lane.b32.xlu0 %v1661_v8, %s1817_s23 }
 0x150   :  { %987 = vrot.lane.b32.xlu1 %v1628_v32, %s1816_s16  ;;  %985 = vrot.lane.b32.xlu0 %v1627_v58, %s1816_s16 }
 0x152   :  { %v966_v43 = vpop.permute.xlu1 %965  ;;  %v1030_v48 = vpop.permute.xlu0 %1029 }
 0x153   :  { %1156 = vst.msk [vmem:[%s3248_s4 + $0x8] sm:$0xf] %vm1153_vm3, %v966_v43  ;;  %1188 = vst.msk [vmem:[%s3248_s4 + $0x88] sm:$0xf] %vm1153_vm3, %v1030_v48 }
 0x154   :  { %1051 = vrot.lane.b32.xlu1 %v1660_v3, %s1816_s16  ;;  %1049 = vrot.lane.b32.xlu0 %v1659_v25, %s1816_s16 }
 0x156   :  { %v968_v1 = vpop.permute.xlu1 %967  ;;  %v1223_v12 = vpop.permute.xlu0 %1222 }
 0x157   :  { %1157 = vst.msk [vmem:[%s3248_s4 + $0xc] sm:$0xf] %vm1153_vm3, %v968_v1  ;;  %1412 = vst.msk [vmem:[%s3249_s5 + $0x8] sm:$0xf] %vm1153_vm3, %v1223_v12 }
 0x158   :  { %1244 = vrot.lane.b32.xlu1 %v1628_v32, %s1817_s23  ;;  %1242 = vrot.lane.b32.xlu0 %v1627_v58, %s1817_s23 }
 0x15a   :  { %v1032_v9 = vpop.permute.xlu1 %1031  ;;  %v1287_v14 = vpop.permute.xlu0 %1286 }
 0x15b   :  { %1189 = vst.msk [vmem:[%s3248_s4 + $0x8c] sm:$0xf] %vm1153_vm3, %v1032_v9  ;;  %1444 = vst.msk [vmem:[%s3249_s5 + $0x88] sm:$0xf] %vm1153_vm3, %v1287_v14 }
 0x15c   :  { %1308 = vrot.lane.b32.xlu1 %v1660_v3, %s1817_s23  ;;  %1306 = vrot.lane.b32.xlu0 %v1659_v25, %s1817_s23  ;;  %v1636_v3 = vpack.c.bf16 %v2356_v26, %v2356_v26  ;;  %v1635_v25 = vpack.c.bf16 %v2335_v10, %v2335_v10  ;;  %v1668_v26 = vpack.c.bf16 %v2376_v29, %v2376_v29 }
 0x15d   :  { %v1667_v10 = vpack.c.bf16 %v2348_v24, %v2348_v24 }
 0x15e   :  { %v1225_v30 = vpop.permute.xlu1 %1224  ;;  %v962_v47 = vpop.permute.xlu0 %961 }
 0x15f   :  { %1413 = vst.msk [vmem:[%s3249_s5 + $0xc] sm:$0xf] %vm1153_vm3, %v1225_v30  ;;  %1154 = vst.msk [vmem:[%s3248_s4] sm:$0xf] %vm1153_vm3, %v962_v47 }
 0x160   :  { %999 = vrot.lane.b32.xlu1 %v1634_v40, %s1816_s16  ;;  %997 = vrot.lane.b32.xlu0 %v1633_v31, %s1816_s16 }
 0x162   :  { %v1289_v33 = vpop.permute.xlu1 %1288  ;;  %v1026_v38 = vpop.permute.xlu0 %1025 }
 0x163   :  { %1445 = vst.msk [vmem:[%s3249_s5 + $0x8c] sm:$0xf] %vm1153_vm3, %v1289_v33  ;;  %1186 = vst.msk [vmem:[%s3248_s4 + $0x80] sm:$0xf] %vm1153_vm3, %v1026_v38 }
 0x164   :  { %1063 = vrot.lane.b32.xlu1 %v1666_v45, %s1816_s16  ;;  %1061 = vrot.lane.b32.xlu0 %v1665_v28, %s1816_s16 }
 0x166   :  { %v1028_v52 = vpop.permute.xlu1 %1027  ;;  %v1219_v37 = vpop.permute.xlu0 %1218 }
 0x167   :  { %1187 = vst.msk [vmem:[%s3248_s4 + $0x84] sm:$0xf] %vm1153_vm3, %v1028_v52  ;;  %1410 = vst.msk [vmem:[%s3249_s5] sm:$0xf] %vm1153_vm3, %v1219_v37  ;;  %v1640_v52 = vpack.c.bf16 %v2437_v62, %v2437_v62  ;;  %v1672_v62 = vpack.c.bf16 %v2473_v19, %v2473_v19 }
 0x168   :  { %1256 = vrot.lane.b32.xlu1 %v1634_v40, %s1817_s23  ;;  %1254 = vrot.lane.b32.xlu0 %v1633_v31, %s1817_s23  ;;  %v1642_v40 = vpack.c.bf16 %v2422_v54, %v2422_v54  ;;  %v1641_v31 = vpack.c.bf16 %v2410_v50, %v2410_v50  ;;  %v1674_v54 = vpack.c.bf16 %v2456_v5, %v2456_v5 }
 0x169   :  { %v1673_v50 = vpack.c.bf16 %v2439_v63, %v2439_v63 }
 0x16a   :  { %v1221_v36 = vpop.permute.xlu1 %1220  ;;  %v1283_v49 = vpop.permute.xlu0 %1282 }
 0x16b   :  { %1411 = vst.msk [vmem:[%s3249_s5 + $0x4] sm:$0xf] %vm1153_vm3, %v1221_v36  ;;  %1442 = vst.msk [vmem:[%s3249_s5 + $0x80] sm:$0xf] %vm1153_vm3, %v1283_v49  ;;  %v1639_v36 = vpack.c.bf16 %v2414_v22, %v2414_v22  ;;  %v1671_v22 = vpack.c.bf16 %v2443_v2, %v2443_v2 }
 0x16c   :  { %1320 = vrot.lane.b32.xlu1 %v1666_v45, %s1817_s23  ;;  %1318 = vrot.lane.b32.xlu0 %v1665_v28, %s1817_s23 }
 0x16e   :  { %v1285_v41 = vpop.permute.xlu1 %1284  ;;  %v964_v51 = vpop.permute.xlu0 %963 }
 0x16f   :  { %1443 = vst.msk [vmem:[%s3249_s5 + $0x84] sm:$0xf] %vm1153_vm3, %v1285_v41  ;;  %1155 = vst.msk [vmem:[%s3248_s4 + $0x4] sm:$0xf] %vm1153_vm3, %v964_v51 }
 0x170   :  { %995 = vrot.lane.b32.xlu1 %v1632_v20, %s1816_s16  ;;  %993 = vrot.lane.b32.xlu0 %v1631_v11, %s1816_s16 }
 0x172   :  { %v976_v18 = vpop.permute.xlu1 %975  ;;  %v974_v55 = vpop.permute.xlu0 %973 }
 0x173   :  { %1161 = vst.msk [vmem:[%s3248_s4 + $0x1c] sm:$0xf] %vm1153_vm3, %v976_v18  ;;  %1160 = vst.msk [vmem:[%s3248_s4 + $0x18] sm:$0xf] %vm1153_vm3, %v974_v55 }
 0x174   :  { %1059 = vrot.lane.b32.xlu1 %v1664_v17, %s1816_s16  ;;  %1057 = vrot.lane.b32.xlu0 %v1663_v35, %s1816_s16 }
 0x176   :  { %v1040_v6 = vpop.permute.xlu1 %1039  ;;  %v1038_v46 = vpop.permute.xlu0 %1037 }
 0x177   :  { %1193 = vst.msk [vmem:[%s3248_s4 + $0x9c] sm:$0xf] %vm1153_vm3, %v1040_v6  ;;  %1192 = vst.msk [vmem:[%s3248_s4 + $0x98] sm:$0xf] %vm1153_vm3, %v1038_v46 }
 0x178   :  { %1252 = vrot.lane.b32.xlu1 %v1632_v20, %s1817_s23  ;;  %1250 = vrot.lane.b32.xlu0 %v1631_v11, %s1817_s23 }
 0x17a   :  { %v1233_v56 = vpop.permute.xlu1 %1232  ;;  %v1231_v59 = vpop.permute.xlu0 %1230 }
 0x17b   :  { %1417 = vst.msk [vmem:[%s3249_s5 + $0x1c] sm:$0xf] %vm1153_vm3, %v1233_v56  ;;  %1416 = vst.msk [vmem:[%s3249_s5 + $0x18] sm:$0xf] %vm1153_vm3, %v1231_v59  ;;  %v1644_v56 = vpack.c.bf16 %v2527_v53, %v2527_v53  ;;  %v1676_v53 = vpack.c.bf16 %v2564_v34, %v2564_v34 }
 0x17c   :  { %1316 = vrot.lane.b32.xlu1 %v1664_v17, %s1817_s23  ;;  %1314 = vrot.lane.b32.xlu0 %v1663_v35, %s1817_s23  ;;  %v1646_v17 = vpack.c.bf16 %v2519_v42, %v2519_v42  ;;  %v1645_v35 = vpack.c.bf16 %v2507_v39, %v2507_v39  ;;  %v1678_v42 = vpack.c.bf16 %v2555_v13, %v2555_v13 }
 0x17d   :  { %v1677_v39 = vpack.c.bf16 %v2536_v57, %v2536_v57 }
 0x17e   :  { %v1297_v4 = vpop.permute.xlu1 %1296  ;;  %v1295_v16 = vpop.permute.xlu0 %1294 }
 0x17f   :  { %1449 = vst.msk [vmem:[%s3249_s5 + $0x9c] sm:$0xf] %vm1153_vm3, %v1297_v4  ;;  %1448 = vst.msk [vmem:[%s3249_s5 + $0x98] sm:$0xf] %vm1153_vm3, %v1295_v16 }
 0x180   :  { %1007 = vrot.lane.b32.xlu1 %v1638_v60, %s1816_s16  ;;  %1005 = vrot.lane.b32.xlu0 %v1637_v7, %s1816_s16 }
 0x182   :  { %v972_v61 = vpop.permute.xlu1 %971  ;;  %v970_v8 = vpop.permute.xlu0 %969 }
 0x183   :  { %1159 = vst.msk [vmem:[%s3248_s4 + $0x14] sm:$0xf] %vm1153_vm3, %v972_v61  ;;  %1158 = vst.msk [vmem:[%s3248_s4 + $0x10] sm:$0xf] %vm1153_vm3, %v970_v8 }
 0x184   :  { %1071 = vrot.lane.b32.xlu1 %v1670_v23, %s1816_s16  ;;  %1069 = vrot.lane.b32.xlu0 %v1669_v21, %s1816_s16 }
 0x186   :  { %v1036_v27 = vpop.permute.xlu1 %1035  ;;  %v1034_v15 = vpop.permute.xlu0 %1033 }
 0x187   :  { %1191 = vst.msk [vmem:[%s3248_s4 + $0x94] sm:$0xf] %vm1153_vm3, %v1036_v27  ;;  %1190 = vst.msk [vmem:[%s3248_s4 + $0x90] sm:$0xf] %vm1153_vm3, %v1034_v15 }
 0x188   :  { %1264 = vrot.lane.b32.xlu1 %v1638_v60, %s1817_s23  ;;  %1262 = vrot.lane.b32.xlu0 %v1637_v7, %s1817_s23  ;;  %v1643_v60 = vpack.c.bf16 %v2511_v44, %v2511_v44  ;;  %v1675_v44 = vpack.c.bf16 %v2545_v0, %v2545_v0 }
 0x18a   :  { %v1229_v32 = vpop.permute.xlu1 %1228  ;;  %v1227_v58 = vpop.permute.xlu0 %1226 }
 0x18b   :  { %1415 = vst.msk [vmem:[%s3249_s5 + $0x14] sm:$0xf] %vm1153_vm3, %v1229_v32  ;;  %1414 = vst.msk [vmem:[%s3249_s5 + $0x10] sm:$0xf] %vm1153_vm3, %v1227_v58 }
 0x18c   :  { %1328 = vrot.lane.b32.xlu1 %v1670_v23, %s1817_s23  ;;  %1326 = vrot.lane.b32.xlu0 %v1669_v21, %s1817_s23 }
 0x18e   :  { %v1293_v43 = vpop.permute.xlu1 %1292  ;;  %v1291_v48 = vpop.permute.xlu0 %1290 }
 0x18f   :  { %1447 = vst.msk [vmem:[%s3249_s5 + $0x94] sm:$0xf] %vm1153_vm3, %v1293_v43  ;;  %1446 = vst.msk [vmem:[%s3249_s5 + $0x90] sm:$0xf] %vm1153_vm3, %v1291_v48 }
 0x190   :  { %1003 = vrot.lane.b32.xlu1 %v1636_v3, %s1816_s16  ;;  %1001 = vrot.lane.b32.xlu0 %v1635_v25, %s1816_s16 }
 0x192   :  { %v984_v1 = vpop.permute.xlu1 %983  ;;  %v982_v12 = vpop.permute.xlu0 %981 }
 0x193   :  { %1165 = vst.msk [vmem:[%s3248_s4 + $0x2c] sm:$0xf] %vm1153_vm3, %v984_v1  ;;  %1164 = vst.msk [vmem:[%s3248_s4 + $0x28] sm:$0xf] %vm1153_vm3, %v982_v12 }
 0x194   :  { %1067 = vrot.lane.b32.xlu1 %v1668_v26, %s1816_s16  ;;  %1065 = vrot.lane.b32.xlu0 %v1667_v10, %s1816_s16 }
 0x196   :  { %v1048_v29 = vpop.permute.xlu1 %1047  ;;  %v1046_v24 = vpop.permute.xlu0 %1045 }
 0x197   :  { %1197 = vst.msk [vmem:[%s3248_s4 + $0xac] sm:$0xf] %vm1153_vm3, %v1048_v29  ;;  %1196 = vst.msk [vmem:[%s3248_s4 + $0xa8] sm:$0xf] %vm1153_vm3, %v1046_v24 }
 0x198   :  { %1260 = vrot.lane.b32.xlu1 %v1636_v3, %s1817_s23  ;;  %1258 = vrot.lane.b32.xlu0 %v1635_v25, %s1817_s23 }
 0x19a   :  { %v1241_v9 = vpop.permute.xlu1 %1240  ;;  %v1239_v14 = vpop.permute.xlu0 %1238 }
 0x19b   :  { %1421 = vst.msk [vmem:[%s3249_s5 + $0x2c] sm:$0xf] %vm1153_vm3, %v1241_v9  ;;  %1420 = vst.msk [vmem:[%s3249_s5 + $0x28] sm:$0xf] %vm1153_vm3, %v1239_v14 }
 0x19c   :  { %1324 = vrot.lane.b32.xlu1 %v1668_v26, %s1817_s23  ;;  %1322 = vrot.lane.b32.xlu0 %v1667_v10, %s1817_s23 }
 0x19e   :  { %v1305_v30 = vpop.permute.xlu1 %1304  ;;  %v1303_v47 = vpop.permute.xlu0 %1302 }
 0x19f   :  { %1453 = vst.msk [vmem:[%s3249_s5 + $0xac] sm:$0xf] %vm1153_vm3, %v1305_v30  ;;  %1452 = vst.msk [vmem:[%s3249_s5 + $0xa8] sm:$0xf] %vm1153_vm3, %v1303_v47 }
 0x1a0   :  { %1015 = vrot.lane.b32.xlu1 %v1642_v40, %s1816_s16  ;;  %1013 = vrot.lane.b32.xlu0 %v1641_v31, %s1816_s16 }
 0x1a2   :  { %v980_v45 = vpop.permute.xlu1 %979  ;;  %v978_v33 = vpop.permute.xlu0 %977 }
 0x1a3   :  { %1163 = vst.msk [vmem:[%s3248_s4 + $0x24] sm:$0xf] %vm1153_vm3, %v980_v45  ;;  %1162 = vst.msk [vmem:[%s3248_s4 + $0x20] sm:$0xf] %vm1153_vm3, %v978_v33 }
 0x1a4   :  { %1079 = vrot.lane.b32.xlu1 %v1674_v54, %s1816_s16  ;;  %1077 = vrot.lane.b32.xlu0 %v1673_v50, %s1816_s16 }
 0x1a6   :  { %v1044_v5 = vpop.permute.xlu1 %1043  ;;  %v1042_v63 = vpop.permute.xlu0 %1041 }
 0x1a7   :  { %1195 = vst.msk [vmem:[%s3248_s4 + $0xa4] sm:$0xf] %vm1153_vm3, %v1044_v5  ;;  %1194 = vst.msk [vmem:[%s3248_s4 + $0xa0] sm:$0xf] %vm1153_vm3, %v1042_v63 }
 0x1a8   :  { %1272 = vrot.lane.b32.xlu1 %v1642_v40, %s1817_s23  ;;  %1270 = vrot.lane.b32.xlu0 %v1641_v31, %s1817_s23 }
 0x1aa   :  { %v1237_v28 = vpop.permute.xlu1 %1236  ;;  %v1235_v38 = vpop.permute.xlu0 %1234 }
 0x1ab   :  { %1419 = vst.msk [vmem:[%s3249_s5 + $0x24] sm:$0xf] %vm1153_vm3, %v1237_v28  ;;  %1418 = vst.msk [vmem:[%s3249_s5 + $0x20] sm:$0xf] %vm1153_vm3, %v1235_v38 }
 0x1ac   :  { %1336 = vrot.lane.b32.xlu1 %v1674_v54, %s1817_s23  ;;  %1334 = vrot.lane.b32.xlu0 %v1673_v50, %s1817_s23 }
 0x1ae   :  { %v1301_v37 = vpop.permute.xlu1 %1300  ;;  %v1299_v49 = vpop.permute.xlu0 %1298 }
 0x1af   :  { %1451 = vst.msk [vmem:[%s3249_s5 + $0xa4] sm:$0xf] %vm1153_vm3, %v1301_v37  ;;  %1450 = vst.msk [vmem:[%s3249_s5 + $0xa0] sm:$0xf] %vm1153_vm3, %v1299_v49 }
 0x1b0   :  { %1011 = vrot.lane.b32.xlu1 %v1640_v52, %s1816_s16  ;;  %1009 = vrot.lane.b32.xlu0 %v1639_v36, %s1816_s16 }
 0x1b2   :  { %v992_v20 = vpop.permute.xlu1 %991  ;;  %v990_v41 = vpop.permute.xlu0 %989 }
 0x1b3   :  { %1169 = vst.msk [vmem:[%s3248_s4 + $0x3c] sm:$0xf] %vm1153_vm3, %v992_v20  ;;  %1168 = vst.msk [vmem:[%s3248_s4 + $0x38] sm:$0xf] %vm1153_vm3, %v990_v41 }
 0x1b4   :  { %1075 = vrot.lane.b32.xlu1 %v1672_v62, %s1816_s16  ;;  %1073 = vrot.lane.b32.xlu0 %v1671_v22, %s1816_s16 }
 0x1b6   :  { %v1056_v19 = vpop.permute.xlu1 %1055  ;;  %v1054_v2 = vpop.permute.xlu0 %1053 }
 0x1b7   :  { %1201 = vst.msk [vmem:[%s3248_s4 + $0xbc] sm:$0xf] %vm1153_vm3, %v1056_v19  ;;  %1200 = vst.msk [vmem:[%s3248_s4 + $0xb8] sm:$0xf] %vm1153_vm3, %v1054_v2 }
 0x1b8   :  { %1268 = vrot.lane.b32.xlu1 %v1640_v52, %s1817_s23  ;;  %1266 = vrot.lane.b32.xlu0 %v1639_v36, %s1817_s23 }
 0x1ba   :  { %v1249_v11 = vpop.permute.xlu1 %1248  ;;  %v1247_v51 = vpop.permute.xlu0 %1246 }
 0x1bb   :  { %1425 = vst.msk [vmem:[%s3249_s5 + $0x3c] sm:$0xf] %vm1153_vm3, %v1249_v11  ;;  %1424 = vst.msk [vmem:[%s3249_s5 + $0x38] sm:$0xf] %vm1153_vm3, %v1247_v51 }
 0x1bc   :  { %1332 = vrot.lane.b32.xlu1 %v1672_v62, %s1817_s23  ;;  %1330 = vrot.lane.b32.xlu0 %v1671_v22, %s1817_s23 }
 0x1be   :  { %v1313_v18 = vpop.permute.xlu1 %1312  ;;  %v1311_v55 = vpop.permute.xlu0 %1310 }
 0x1bf   :  { %1457 = vst.msk [vmem:[%s3249_s5 + $0xbc] sm:$0xf] %vm1153_vm3, %v1313_v18  ;;  %1456 = vst.msk [vmem:[%s3249_s5 + $0xb8] sm:$0xf] %vm1153_vm3, %v1311_v55 }
 0x1c0   :  { %1023 = vrot.lane.b32.xlu1 %v1646_v17, %s1816_s16  ;;  %1021 = vrot.lane.b32.xlu0 %v1645_v35, %s1816_s16 }
 0x1c2   :  { %v988_v6 = vpop.permute.xlu1 %987  ;;  %v986_v46 = vpop.permute.xlu0 %985 }
 0x1c3   :  { %1167 = vst.msk [vmem:[%s3248_s4 + $0x34] sm:$0xf] %vm1153_vm3, %v988_v6  ;;  %1166 = vst.msk [vmem:[%s3248_s4 + $0x30] sm:$0xf] %vm1153_vm3, %v986_v46 }
 0x1c4   :  { %1087 = vrot.lane.b32.xlu1 %v1678_v42, %s1816_s16  ;;  %1085 = vrot.lane.b32.xlu0 %v1677_v39, %s1816_s16 }
 0x1c6   :  { %v1052_v13 = vpop.permute.xlu1 %1051  ;;  %v1050_v57 = vpop.permute.xlu0 %1049 }
 0x1c7   :  { %1199 = vst.msk [vmem:[%s3248_s4 + $0xb4] sm:$0xf] %vm1153_vm3, %v1052_v13  ;;  %1198 = vst.msk [vmem:[%s3248_s4 + $0xb0] sm:$0xf] %vm1153_vm3, %v1050_v57 }
 0x1c8   :  { %1280 = vrot.lane.b32.xlu1 %v1646_v17, %s1817_s23  ;;  %1278 = vrot.lane.b32.xlu0 %v1645_v35, %s1817_s23 }
 0x1ca   :  { %v1245_v59 = vpop.permute.xlu1 %1244  ;;  %v1243_v4 = vpop.permute.xlu0 %1242 }
 0x1cb   :  { %1423 = vst.msk [vmem:[%s3249_s5 + $0x34] sm:$0xf] %vm1153_vm3, %v1245_v59  ;;  %1422 = vst.msk [vmem:[%s3249_s5 + $0x30] sm:$0xf] %vm1153_vm3, %v1243_v4 }
 0x1cc   :  { %1019 = vrot.lane.b32.xlu1 %v1644_v56, %s1816_s16  ;;  %1017 = vrot.lane.b32.xlu0 %v1643_v60, %s1816_s16 }
 0x1ce   :  { %v1309_v7 = vpop.permute.xlu1 %1308  ;;  %v1307_v16 = vpop.permute.xlu0 %1306 }
 0x1cf   :  { %1455 = vst.msk [vmem:[%s3249_s5 + $0xb4] sm:$0xf] %vm1153_vm3, %v1309_v7  ;;  %1454 = vst.msk [vmem:[%s3249_s5 + $0xb0] sm:$0xf] %vm1153_vm3, %v1307_v16 }
 0x1d0   :  { %1083 = vrot.lane.b32.xlu1 %v1676_v53, %s1816_s16  ;;  %1081 = vrot.lane.b32.xlu0 %v1675_v44, %s1816_s16 }
 0x1d2   :  { %v1000_v34 = vpop.permute.xlu1 %999  ;;  %v998_v0 = vpop.permute.xlu0 %997 }
 0x1d3   :  { %1173 = vst.msk [vmem:[%s3248_s4 + $0x4c] sm:$0xf] %vm1153_vm3, %v1000_v34  ;;  %1172 = vst.msk [vmem:[%s3248_s4 + $0x48] sm:$0xf] %vm1153_vm3, %v998_v0 }
 0x1d4   :  { %1276 = vrot.lane.b32.xlu1 %v1644_v56, %s1817_s23  ;;  %1274 = vrot.lane.b32.xlu0 %v1643_v60, %s1817_s23 }
 0x1d6   :  { %v1064_v23 = vpop.permute.xlu1 %1063  ;;  %v1062_v61 = vpop.permute.xlu0 %1061 }
 0x1d7   :  { %1205 = vst.msk [vmem:[%s3248_s4 + $0xcc] sm:$0xf] %vm1153_vm3, %v1064_v23  ;;  %1204 = vst.msk [vmem:[%s3248_s4 + $0xc8] sm:$0xf] %vm1153_vm3, %v1062_v61 }
 0x1d8   :  { %1340 = vrot.lane.b32.xlu1 %v1676_v53, %s1817_s23  ;;  %1338 = vrot.lane.b32.xlu0 %v1675_v44, %s1817_s23 }
 0x1da   :  { %v1257_v21 = vpop.permute.xlu1 %1256  ;;  %v1255_v8 = vpop.permute.xlu0 %1254 }
 0x1db   :  { %1429 = vst.msk [vmem:[%s3249_s5 + $0x4c] sm:$0xf] %vm1153_vm3, %v1257_v21  ;;  %1428 = vst.msk [vmem:[%s3249_s5 + $0x48] sm:$0xf] %vm1153_vm3, %v1255_v8 }
 0x1dc   :  { %1344 = vrot.lane.b32.xlu1 %v1678_v42, %s1817_s23  ;;  %1342 = vrot.lane.b32.xlu0 %v1677_v39, %s1817_s23 }
 0x1de   :  { %v1321_v27 = vpop.permute.xlu1 %1320  ;;  %v1319_v15 = vpop.permute.xlu0 %1318 }
 0x1df   :  { %1461 = vst.msk [vmem:[%s3249_s5 + $0xcc] sm:$0xf] %vm1153_vm3, %v1321_v27  ;;  %1460 = vst.msk [vmem:[%s3249_s5 + $0xc8] sm:$0xf] %vm1153_vm3, %v1319_v15 }
 0x1e2   :  { %v996_v32 = vpop.permute.xlu1 %995  ;;  %v994_v58 = vpop.permute.xlu0 %993 }
 0x1e3   :  { %1171 = vst.msk [vmem:[%s3248_s4 + $0x44] sm:$0xf] %vm1153_vm3, %v996_v32  ;;  %1170 = vst.msk [vmem:[%s3248_s4 + $0x40] sm:$0xf] %vm1153_vm3, %v994_v58 }
 0x1e6   :  { %v1060_v3 = vpop.permute.xlu1 %1059  ;;  %v1058_v43 = vpop.permute.xlu0 %1057 }
 0x1e7   :  { %1203 = vst.msk [vmem:[%s3248_s4 + $0xc4] sm:$0xf] %vm1153_vm3, %v1060_v3  ;;  %1202 = vst.msk [vmem:[%s3248_s4 + $0xc0] sm:$0xf] %vm1153_vm3, %v1058_v43 }
 0x1ea   :  { %v1253_v25 = vpop.permute.xlu1 %1252  ;;  %v1251_v48 = vpop.permute.xlu0 %1250 }
 0x1eb   :  { %1427 = vst.msk [vmem:[%s3249_s5 + $0x44] sm:$0xf] %vm1153_vm3, %v1253_v25  ;;  %1426 = vst.msk [vmem:[%s3249_s5 + $0x40] sm:$0xf] %vm1153_vm3, %v1251_v48 }
 0x1ee   :  { %v1317_v26 = vpop.permute.xlu1 %1316  ;;  %v1315_v1 = vpop.permute.xlu0 %1314 }
 0x1ef   :  { %1459 = vst.msk [vmem:[%s3249_s5 + $0xc4] sm:$0xf] %vm1153_vm3, %v1317_v26  ;;  %1458 = vst.msk [vmem:[%s3249_s5 + $0xc0] sm:$0xf] %vm1153_vm3, %v1315_v1 }
 0x1f2   :  { %v1008_v10 = vpop.permute.xlu1 %1007  ;;  %v1006_v12 = vpop.permute.xlu0 %1005 }
 0x1f3   :  { %1177 = vst.msk [vmem:[%s3248_s4 + $0x5c] sm:$0xf] %vm1153_vm3, %v1008_v10  ;;  %1176 = vst.msk [vmem:[%s3248_s4 + $0x58] sm:$0xf] %vm1153_vm3, %v1006_v12 }
 0x1f6   :  { %v1072_v29 = vpop.permute.xlu1 %1071  ;;  %v1070_v24 = vpop.permute.xlu0 %1069 }
 0x1f7   :  { %1209 = vst.msk [vmem:[%s3248_s4 + $0xdc] sm:$0xf] %vm1153_vm3, %v1072_v29  ;;  %1208 = vst.msk [vmem:[%s3248_s4 + $0xd8] sm:$0xf] %vm1153_vm3, %v1070_v24 }
 0x1fa   :  { %v1265_v9 = vpop.permute.xlu1 %1264  ;;  %v1263_v14 = vpop.permute.xlu0 %1262 }
 0x1fb   :  { %1433 = vst.msk [vmem:[%s3249_s5 + $0x5c] sm:$0xf] %vm1153_vm3, %v1265_v9  ;;  %1432 = vst.msk [vmem:[%s3249_s5 + $0x58] sm:$0xf] %vm1153_vm3, %v1263_v14 }
 0x1fe   :  { %v1329_v40 = vpop.permute.xlu1 %1328  ;;  %v1327_v30 = vpop.permute.xlu0 %1326 }
 0x1ff   :  { %1465 = vst.msk [vmem:[%s3249_s5 + $0xdc] sm:$0xf] %vm1153_vm3, %v1329_v40  ;;  %1464 = vst.msk [vmem:[%s3249_s5 + $0xd8] sm:$0xf] %vm1153_vm3, %v1327_v30 }
 0x202   :  { %v1004_v31 = vpop.permute.xlu1 %1003  ;;  %v1002_v47 = vpop.permute.xlu0 %1001 }
 0x203   :  { %1175 = vst.msk [vmem:[%s3248_s4 + $0x54] sm:$0xf] %vm1153_vm3, %v1004_v31  ;;  %1174 = vst.msk [vmem:[%s3248_s4 + $0x50] sm:$0xf] %vm1153_vm3, %v1002_v47 }
 0x206   :  { %v1068_v54 = vpop.permute.xlu1 %1067  ;;  %v1066_v45 = vpop.permute.xlu0 %1065 }
 0x207   :  { %1207 = vst.msk [vmem:[%s3248_s4 + $0xd4] sm:$0xf] %vm1153_vm3, %v1068_v54  ;;  %1206 = vst.msk [vmem:[%s3248_s4 + $0xd0] sm:$0xf] %vm1153_vm3, %v1066_v45 }
 0x20a   :  { %v1261_v50 = vpop.permute.xlu1 %1260  ;;  %v1259_v33 = vpop.permute.xlu0 %1258 }
 0x20b   :  { %1431 = vst.msk [vmem:[%s3249_s5 + $0x54] sm:$0xf] %vm1153_vm3, %v1261_v50  ;;  %1430 = vst.msk [vmem:[%s3249_s5 + $0x50] sm:$0xf] %vm1153_vm3, %v1259_v33 }
 0x20e   :  { %v1325_v5 = vpop.permute.xlu1 %1324  ;;  %v1323_v63 = vpop.permute.xlu0 %1322 }
 0x20f   :  { %1463 = vst.msk [vmem:[%s3249_s5 + $0xd4] sm:$0xf] %vm1153_vm3, %v1325_v5  ;;  %1462 = vst.msk [vmem:[%s3249_s5 + $0xd0] sm:$0xf] %vm1153_vm3, %v1323_v63 }
 0x212   :  { %v1016_v28 = vpop.permute.xlu1 %1015  ;;  %v1014_v38 = vpop.permute.xlu0 %1013 }
 0x213   :  { %1181 = vst.msk [vmem:[%s3248_s4 + $0x6c] sm:$0xf] %vm1153_vm3, %v1016_v28  ;;  %1180 = vst.msk [vmem:[%s3248_s4 + $0x68] sm:$0xf] %vm1153_vm3, %v1014_v38 }
 0x216   :  { %v1080_v52 = vpop.permute.xlu1 %1079  ;;  %v1078_v37 = vpop.permute.xlu0 %1077 }
 0x217   :  { %1213 = vst.msk [vmem:[%s3248_s4 + $0xec] sm:$0xf] %vm1153_vm3, %v1080_v52  ;;  %1212 = vst.msk [vmem:[%s3248_s4 + $0xe8] sm:$0xf] %vm1153_vm3, %v1078_v37 }
 0x21a   :  { %v1273_v36 = vpop.permute.xlu1 %1272  ;;  %v1271_v49 = vpop.permute.xlu0 %1270 }
 0x21b   :  { %1437 = vst.msk [vmem:[%s3249_s5 + $0x6c] sm:$0xf] %vm1153_vm3, %v1273_v36  ;;  %1436 = vst.msk [vmem:[%s3249_s5 + $0x68] sm:$0xf] %vm1153_vm3, %v1271_v49 }
 0x21e   :  { %v1337_v62 = vpop.permute.xlu1 %1336  ;;  %v1335_v20 = vpop.permute.xlu0 %1334 }
 0x21f   :  { %1469 = vst.msk [vmem:[%s3249_s5 + $0xec] sm:$0xf] %vm1153_vm3, %v1337_v62  ;;  %1468 = vst.msk [vmem:[%s3249_s5 + $0xe8] sm:$0xf] %vm1153_vm3, %v1335_v20 }
 0x222   :  { %v1012_v22 = vpop.permute.xlu1 %1011  ;;  %v1010_v41 = vpop.permute.xlu0 %1009 }
 0x223   :  { %1179 = vst.msk [vmem:[%s3248_s4 + $0x64] sm:$0xf] %vm1153_vm3, %v1012_v22  ;;  %1178 = vst.msk [vmem:[%s3248_s4 + $0x60] sm:$0xf] %vm1153_vm3, %v1010_v41 }
 0x226   :  { %v1076_v19 = vpop.permute.xlu1 %1075  ;;  %v1074_v2 = vpop.permute.xlu0 %1073 }
 0x227   :  { %1211 = vst.msk [vmem:[%s3248_s4 + $0xe4] sm:$0xf] %vm1153_vm3, %v1076_v19  ;;  %1210 = vst.msk [vmem:[%s3248_s4 + $0xe0] sm:$0xf] %vm1153_vm3, %v1074_v2 }
 0x22a   :  { %v1269_v11 = vpop.permute.xlu1 %1268  ;;  %v1267_v51 = vpop.permute.xlu0 %1266 }
 0x22b   :  { %1435 = vst.msk [vmem:[%s3249_s5 + $0x64] sm:$0xf] %vm1153_vm3, %v1269_v11  ;;  %1434 = vst.msk [vmem:[%s3249_s5 + $0x60] sm:$0xf] %vm1153_vm3, %v1267_v51 }
 0x22e   :  { %v1333_v17 = vpop.permute.xlu1 %1332  ;;  %v1331_v18 = vpop.permute.xlu0 %1330 }
 0x22f   :  { %1467 = vst.msk [vmem:[%s3249_s5 + $0xe4] sm:$0xf] %vm1153_vm3, %v1333_v17  ;;  %1466 = vst.msk [vmem:[%s3249_s5 + $0xe0] sm:$0xf] %vm1153_vm3, %v1331_v18 }
 0x232   :  { %v1024_v35 = vpop.permute.xlu1 %1023  ;;  %v1022_v55 = vpop.permute.xlu0 %1021 }
 0x233   :  { %1185 = vst.msk [vmem:[%s3248_s4 + $0x7c] sm:$0xf] %vm1153_vm3, %v1024_v35  ;;  %1184 = vst.msk [vmem:[%s3248_s4 + $0x78] sm:$0xf] %vm1153_vm3, %v1022_v55 }
 0x236   :  { %v1088_v42 = vpop.permute.xlu1 %1087  ;;  %v1086_v6 = vpop.permute.xlu0 %1085 }
 0x237   :  { %1217 = vst.msk [vmem:[%s3248_s4 + $0xfc] sm:$0xf] %vm1153_vm3, %v1088_v42  ;;  %1216 = vst.msk [vmem:[%s3248_s4 + $0xf8] sm:$0xf] %vm1153_vm3, %v1086_v6 }
 0x23a   :  { %v1281_v39 = vpop.permute.xlu1 %1280  ;;  %v1279_v46 = vpop.permute.xlu0 %1278 }
 0x23b   :  { %1441 = vst.msk [vmem:[%s3249_s5 + $0x7c] sm:$0xf] %vm1153_vm3, %v1281_v39  ;;  %1440 = vst.msk [vmem:[%s3249_s5 + $0x78] sm:$0xf] %vm1153_vm3, %v1279_v46 }
 0x23e   :  { %v1020_v13 = vpop.permute.xlu1 %1019  ;;  %v1018_v57 = vpop.permute.xlu0 %1017 }
 0x23f   :  { %1183 = vst.msk [vmem:[%s3248_s4 + $0x74] sm:$0xf] %vm1153_vm3, %v1020_v13  ;;  %1182 = vst.msk [vmem:[%s3248_s4 + $0x70] sm:$0xf] %vm1153_vm3, %v1018_v57 }
 0x242   :  { %v1084_v56 = vpop.permute.xlu1 %1083  ;;  %v1082_v59 = vpop.permute.xlu0 %1081 }
 0x243   :  { %1215 = vst.msk [vmem:[%s3248_s4 + $0xf4] sm:$0xf] %vm1153_vm3, %v1084_v56  ;;  %1214 = vst.msk [vmem:[%s3248_s4 + $0xf0] sm:$0xf] %vm1153_vm3, %v1082_v59 }
 0x246   :  { %v1277_v60 = vpop.permute.xlu1 %1276  ;;  %v1275_v4 = vpop.permute.xlu0 %1274 }
 0x247   :  { %1439 = vst.msk [vmem:[%s3249_s5 + $0x74] sm:$0xf] %vm1153_vm3, %v1277_v60  ;;  %1438 = vst.msk [vmem:[%s3249_s5 + $0x70] sm:$0xf] %vm1153_vm3, %v1275_v4 }
 0x24a   :  { %v1341_v53 = vpop.permute.xlu1 %1340  ;;  %v1339_v7 = vpop.permute.xlu0 %1338 }
 0x24b   :  { %1471 = vst.msk [vmem:[%s3249_s5 + $0xf4] sm:$0xf] %vm1153_vm3, %v1341_v53  ;;  %1470 = vst.msk [vmem:[%s3249_s5 + $0xf0] sm:$0xf] %vm1153_vm3, %v1339_v7 }
 0x24e   :  { %v1345_v44 = vpop.permute.xlu1 %1344  ;;  %v1343_v16 = vpop.permute.xlu0 %1342 }
 0x24f   :  { %1473 = vst.msk [vmem:[%s3249_s5 + $0xfc] sm:$0xf] %vm1153_vm3, %v1345_v44  ;;  %1472 = vst.msk [vmem:[%s3249_s5 + $0xf8] sm:$0xf] %vm1153_vm3, %v1343_v16 }

// kernel: inception_block_forward.9
= control target key start
LH: loop header
LB: loop body
LE: loop exit
PB: predicated region body
PF: predicated region fallthrough
CT: control target
= control target key end

     0   :  { %s1471_s12 = smov 0   ;;  %s1697_s0 = inlined_call_operand.vmem [shape: bf16[2,6,64,8], index: 0, kind: input, shape index: {}]   ;;  %s1698_s1 = inlined_call_operand.vmem [shape: bf16[3,8,8], index: 1, kind: input, shape index: {}]   ;;  %s1699_s2 = inlined_call_operand.vmem [shape: f32[1,8], index: 2, kind: input, shape index: {}]   ;;  %s1700_s3 = inlined_call_operand.vmem [shape: f32[2,4,64,8], index: 3, kind: output, shape index: {}]  }
   0x1 LB: > { %s1101_s13 = sadd.s32 4294967295, %s1449_s12   ;;  %p1105_p0 = scmp.ge.s32.totalorder %s1449_s12, 1  ;;  %s1449_s12 = sphi %s1471_s12, %s13_s12  }
   0x2   : > { %p137_p1 = scmp.lt.s32.totalorder %s1449_s12, 3 }
   0x4   : > { %p138_p2 = pnand %p1105_p0, %p137_p1 }
   0x5   : > { %v1109_v0 = vld [vmem:[%s1698_s1 + $0x4] sm:$0xf] (!%p138_p2)  ;;  %vm352_vm0 = vcmask (!%p138_p2), 1043456   ;;  %v220_v1 = vld [vmem:[%s1698_s1] sm:$0xf] (!%p138_p2)  ;;  %p161_p3 = scmp.lt.s32.totalorder (!%p138_p2), %s1101_s13, 1 }
   0x6   : > { %141 = sbr.rel (%p138_p2) target bundleno = 330 (0x14a), region = 32  ;;  %1406 = vmatprep.subr.msk.bf16.mxu1 (!%p138_p2), %vm352_vm0, %v1109_v0  ;;  %1407 = vmatprep.subr.msk.bf16.mxu0 (!%p138_p2), %vm352_vm0, %v220_v1  ;;  %v354_v2 = vsel (!%p138_p2), %vm352_vm0, %v1109_v0, 0  ;;  %v550_v3 = vsel (!%p138_p2), %vm352_vm0, %v220_v1, 0  ;;  %v1162_v4 = vld [vmem:[%s1698_s1 + $0x8] sm:$0xf] (!%p138_p2)  ;;  %vm303_vm1 = vcmask (!%p138_p2), 64512  }
   0x7   : > { %1239 = vmatpush3.bf16.msra.mxu1 (!%p138_p2), %v354_v2  ;;  %1273 = vmatpush3.bf16.msra.mxu0 (!%p138_p2), %v550_v3  ;;  %v748_v9 = vsel (!%p138_p2), %vm352_vm0, %v1162_v4, 0  ;;  %v1586_v47 = vld [vmem:[%s1699_s2] ss:$0 sm:$0xff] (!%p138_p2) }
   0x8   : > { %1408 = vmatprep.subr.msk.bf16.mxu1 (!%p138_p2), %vm352_vm0, %v220_v1  ;;  %1409 = vmatprep.subr.msk.bf16.mxu0 (!%p138_p2), %vm352_vm0, %v1162_v4 }
   0xd   : > { %s1702_s13 = smov (!%p161_p3, %s1101_s13), 1 }
   0xe   : > { %s1410_s20 = smul.u32 192, %s1702_s13  ;;  %s1186_s26 = sshll.u32 %s1702_s13, 8 }
   0xf   : > { %s1593_s29 = scalar_lea.vmem %s1700_s3, %s1186_s26 }
  0x10   : > { %s1500_s23 = scalar_lea.vmem %s1697_s0, %s1410_s20 }
  0x11   : > { %v1419_v5 = vld [vmem:[%s1500_s23 + $0x20] sm:$0xff]   ;;  %v1421_v7 = vld [vmem:[%s1500_s23 + $0x28] sm:$0xff]   ;;  %v1423_v10 = vld [vmem:[%s1500_s23 + $0x30] sm:$0xff]  }
  0x12   : > { %v1420_v6 = vld [vmem:[%s1500_s23] sm:$0xff]   ;;  %1240 = vmatprep.mubr.msk.bf16.mxu1 %vm303_vm1, %v1419_v5  ;;  %v1422_v8 = vld [vmem:[%s1500_s23 + $0x8] sm:$0xff]   ;;  %v1424_v11 = vld [vmem:[%s1500_s23 + $0x10] sm:$0xff]  }
  0x13   : > { %1274 = vmatprep.mubr.msk.bf16.mxu0 %vm303_vm1, %v1420_v6  ;;  %1241 = vmatmul.mubr.msk.bf16.vlgmr.msra.gmra.mrb[0].mxu1 %vm303_vm1, %v1421_v7  ;;  %v1425_v12 = vld [vmem:[%s1500_s23 + $0x38] sm:$0xff]   ;;  %v1427_v14 = vld [vmem:[%s1500_s23 + $0x40] sm:$0xff]   ;;  %v1428_v15 = vld [vmem:[%s1500_s23 + $0x48] sm:$0xff]  }
  0x14   : > { %1341 = vmatpush3.bf16.msra.mxu1 %v550_v3  ;;  %1275 = vmatmul.mubr.msk.bf16.vlgmr.msra.gmra.mrb[0].mxu0 %vm303_vm1, %v1422_v8  ;;  %v1426_v13 = vld [vmem:[%s1500_s23 + $0x18] sm:$0xff]   ;;  %v1429_v16 = vld [vmem:[%s1500_s23 + $0x50] sm:$0xff]   ;;  %v1431_v18 = vld [vmem:[%s1500_s23 + $0x60] sm:$0xff]  }
  0x15   : > { %1307 = vmatpush3.bf16.msra.mxu0 %v748_v9  ;;  %1244 = vmatprep.mubr.msk.bf16.mxu1 %vm303_vm1, %v1423_v10  ;;  %v1430_v17 = vld [vmem:[%s1500_s23 + $0x58] sm:$0xff]   ;;  %v1432_v19 = vld [vmem:[%s1500_s23 + $0x68] sm:$0xff]   ;;  %v1433_v20 = vld [vmem:[%s1500_s23 + $0x70] sm:$0xff]  }
  0x16   : > { %1278 = vmatprep.mubr.msk.bf16.mxu0 %vm303_vm1, %v1424_v11  ;;  %v1434_v21 = vld [vmem:[%s1500_s23 + $0x78] sm:$0xff]   ;;  %v1435_v22 = vld [vmem:[%s1500_s23 + $0x80] sm:$0xff]   ;;  %v1436_v23 = vld [vmem:[%s1500_s23 + $0x88] sm:$0xff]  }
  0x17   : > { %v1437_v24 = vld [vmem:[%s1500_s23 + $0x90] sm:$0xff]   ;;  %v1438_v25 = vld [vmem:[%s1500_s23 + $0x98] sm:$0xff]   ;;  %v1439_v26 = vld [vmem:[%s1500_s23 + $0xa0] sm:$0xff]  }
  0x18   : > { %v1440_v27 = vld [vmem:[%s1500_s23 + $0xa8] sm:$0xff]   ;;  %v1441_v28 = vld [vmem:[%s1500_s23 + $0xb0] sm:$0xff]   ;;  %v1442_v29 = vld [vmem:[%s1500_s23 + $0xb8] sm:$0xff]  }
  0x1b   : > { %1245 = vmatmul.mubr.msk.bf16.gmra.mrb[4].mxu1 %vm303_vm1, %v1425_v12 }
  0x1c   : > { %1279 = vmatmul.mubr.msk.bf16.gmra.mrb[4].mxu0 %vm303_vm1, %v1426_v13  ;;  %1248 = vmatprep.mubr.msk.bf16.mxu1 %vm303_vm1, %v1427_v14 }
  0x1d   : > { %1282 = vmatprep.mubr.msk.bf16.mxu0 %vm303_vm1, %v1419_v5 }
  0x23   : > { %1249 = vmatmul.mubr.msk.bf16.gmra.mrb[8].mxu1 %vm303_vm1, %v1428_v15 }
  0x24   : > { %1283 = vmatmul.mubr.msk.bf16.gmra.mrb[8].mxu0 %vm303_vm1, %v1421_v7  ;;  %1252 = vmatprep.mubr.msk.bf16.mxu1 %vm303_vm1, %v1429_v16 }
  0x25   : > { %1286 = vmatprep.mubr.msk.bf16.mxu0 %vm303_vm1, %v1423_v10 }
  0x2b   : > { %1253 = vmatmul.mubr.msk.bf16.gmra.mrb[12].mxu1 %vm303_vm1, %v1430_v17 }
  0x2c   : > { %1287 = vmatmul.mubr.msk.bf16.gmra.mrb[12].mxu0 %vm303_vm1, %v1425_v12  ;;  %1256 = vmatprep.mubr.msk.bf16.mxu1 %vm303_vm1, %v1431_v18 }
  0x2d   : > { %1308 = vmatprep.mubr.msk.bf16.mxu0 %vm303_vm1, %v1427_v14 }
  0x33   : > { %1257 = vmatmul.mubr.msk.bf16.gmra.mrb[16].mxu1 %vm303_vm1, %v1432_v19 }
  0x34   : > { %1309 = vmatmul.mubr.msk.bf16.vlgmr.msra.gmra.mrb[0].mxu0 %vm303_vm1, %v1428_v15  ;;  %1260 = vmatprep.mubr.msk.bf16.mxu1 %vm303_vm1, %v1433_v20 }
  0x35   : > { %1312 = vmatprep.mubr.msk.bf16.mxu0 %vm303_vm1, %v1429_v16 }
  0x3b   : > { %1261 = vmatmul.mubr.msk.bf16.gmra.mrb[20].mxu1 %vm303_vm1, %v1434_v21 }
  0x3c   : > { %1313 = vmatmul.mubr.msk.bf16.gmra.mrb[4].mxu0 %vm303_vm1, %v1430_v17  ;;  %1264 = vmatprep.mubr.msk.bf16.mxu1 %vm303_vm1, %v1435_v22 }
  0x3d   : > { %1316 = vmatprep.mubr.msk.bf16.mxu0 %vm303_vm1, %v1431_v18 }
  0x43   : > { %1265 = vmatmul.mubr.msk.bf16.gmra.mrb[24].mxu1 %vm303_vm1, %v1436_v23 }
  0x44   : > { %1317 = vmatmul.mubr.msk.bf16.gmra.mrb[8].mxu0 %vm303_vm1, %v1432_v19  ;;  %1268 = vmatprep.mubr.msk.bf16.mxu1 %vm303_vm1, %v1437_v24 }
  0x45   : > { %1320 = vmatprep.mubr.msk.bf16.mxu0 %vm303_vm1, %v1433_v20 }
  0x4b   : > { %1269 = vmatmul.mubr.msk.bf16.gmra.mrb[28].mxu1 %vm303_vm1, %v1438_v25 }
  0x4c   : > { %1321 = vmatmul.mubr.msk.bf16.gmra.mrb[12].mxu0 %vm303_vm1, %v1434_v21  ;;  %1290 = vmatprep.mubr.msk.bf16.mxu1 %vm303_vm1, %v1427_v14 }
  0x4d   : > { %1324 = vmatprep.mubr.msk.bf16.mxu0 %vm303_vm1, %v1435_v22 }
  0x53   : > { %1291 = vmatmul.mubr.msk.bf16.vlgmr.msra.gmra.mrb[16].mxu1 %vm303_vm1, %v1428_v15 }
  0x54   : > { %1325 = vmatmul.mubr.msk.bf16.gmra.mrb[16].mxu0 %vm303_vm1, %v1436_v23  ;;  %1294 = vmatprep.mubr.msk.bf16.mxu1 %vm303_vm1, %v1429_v16 }
  0x55   : > { %1328 = vmatprep.mubr.msk.bf16.mxu0 %vm303_vm1, %v1437_v24 }
  0x5b   : > { %1295 = vmatmul.mubr.msk.bf16.gmra.mrb[20].mxu1 %vm303_vm1, %v1430_v17 }
  0x5c   : > { %1329 = vmatmul.mubr.msk.bf16.gmra.mrb[20].mxu0 %vm303_vm1, %v1438_v25  ;;  %1298 = vmatprep.mubr.msk.bf16.mxu1 %vm303_vm1, %v1431_v18 }
  0x5d   : > { %1332 = vmatprep.mubr.msk.bf16.mxu0 %vm303_vm1, %v1439_v26 }
  0x63   : > { %1299 = vmatmul.mubr.msk.bf16.gmra.mrb[24].mxu1 %vm303_vm1, %v1432_v19 }
  0x64   : > { %1333 = vmatmul.mubr.msk.bf16.gmra.mrb[24].mxu0 %vm303_vm1, %v1440_v27  ;;  %1302 = vmatprep.mubr.msk.bf16.mxu1 %vm303_vm1, %v1433_v20 }
  0x65   : > { %1336 = vmatprep.mubr.msk.bf16.mxu0 %vm303_vm1, %v1441_v28 }
  0x6b   : > { %1303 = vmatmul.mubr.msk.bf16.gmra.mrb[28].mxu1 %vm303_vm1, %v1434_v21 }
  0x6c   : > { %1337 = vmatmul.mubr.msk.bf16.gmra.mrb[28].mxu0 %vm303_vm1, %v1442_v29 }
  0xe6   : > { %v1242_v30 = vpop.f32.mrb[0].mxu1 }
  0xe7   : > { %v390_v31 = vpop.f32.mrb[1].mxu1 }
  0xe8   : > { %v1243_v32 = vpop.f32.mrb[2].mxu1 }
  0xe9   : > { %v393_v33 = vpop.f32.mrb[3].mxu1 }
  0xee   : > { %v1246_v34 = vpop.f32.mrb[4].mxu1 }
  0xef   : > { %v406_v35 = vpop.f32.mrb[5].mxu1 }
  0xf0   : > { %v1247_v36 = vpop.f32.mrb[6].mxu1 }
  0xf1   : > { %v409_v37 = vpop.f32.mrb[7].mxu1 }
  0xf6   : > { %v1250_v38 = vpop.f32.mrb[8].mxu1 }
  0xf7   : > { %v422_v39 = vpop.f32.mrb[9].mxu1 }
  0xf8   : > { %v1251_v40 = vpop.f32.mrb[10].mxu1 }
  0xf9   : > { %v425_v41 = vpop.f32.mrb[11].mxu1 }
  0xfe   : > { %v1575_v42 = vpop.f32.mrb[12].mxu1 }
  0xff   : > { %v1577_v43 = vpop.f32.mrb[13].mxu1 }
 0x100   : > { %v1579_v44 = vpop.f32.mrb[14].mxu1 }
 0x101   : > { %v1581_v45 = vpop.f32.mrb[15].mxu1 }
 0x107   : > { %v1310_v46 = vpop.f32.mrb[0].mxu0 }
 0x108   : > { %v1342_v48 = vadd.f32 %v1310_v46, %v1242_v30  ;;  %v784_v49 = vpop.f32.mrb[1].mxu0 }
 0x109   : > { %v1343_v50 = vadd.f32 %v784_v49, %v390_v31  ;;  %v1311_v51 = vpop.f32.mrb[2].mxu0 }
 0x10a   : > { %v952_v52 = vadd.f32 %v1342_v48, %v1586_v47  ;;  %v1344_v53 = vadd.f32 %v1311_v51, %v1243_v32  ;;  %v787_v54 = vpop.f32.mrb[3].mxu0 }
 0x10b   : > { %v950_v55 = vadd.f32 %v1343_v50, %v1586_v47  ;;  %v1345_v56 = vadd.f32 %v787_v54, %v393_v33 }
 0x10c   : > { %v984_v57 = vmax.f32 %v952_v52, 0.0  ;;  %v953_v58 = vadd.f32 %v1344_v53, %v1586_v47 }
 0x10d   : > { %v982_v59 = vmax.f32 %v950_v55, 0.0  ;;  %v951_v60 = vadd.f32 %v1345_v56, %v1586_v47 }
 0x10e   : > { %1016 = vst.msk [vmem:[%s1593_s29 + $0x10] sm:$0xff] %vm303_vm1, %v984_v57  ;;  %v985_v61 = vmax.f32 %v953_v58, 0.0 }
 0x10f   : > { %1014 = vst.msk [vmem:[%s1593_s29] sm:$0xff] %vm303_vm1, %v982_v59  ;;  %v983_v62 = vmax.f32 %v951_v60, 0.0  ;;  %v1314_v63 = vpop.f32.mrb[4].mxu0 }
 0x110   : > { %1017 = vst.msk [vmem:[%s1593_s29 + $0x18] sm:$0xff] %vm303_vm1, %v985_v61  ;;  %v1346_v0 = vadd.f32 %v1314_v63, %v1246_v34  ;;  %v800_v1 = vpop.f32.mrb[5].mxu0 }
 0x111   : > { %1015 = vst.msk [vmem:[%s1593_s29 + $0x8] sm:$0xff] %vm303_vm1, %v983_v62  ;;  %v1347_v2 = vadd.f32 %v800_v1, %v406_v35  ;;  %v1315_v3 = vpop.f32.mrb[6].mxu0 }
 0x112   : > { %v956_v4 = vadd.f32 %v1346_v0, %v1586_v47  ;;  %v1348_v5 = vadd.f32 %v1315_v3, %v1247_v36  ;;  %v803_v6 = vpop.f32.mrb[7].mxu0 }
 0x113   : > { %v954_v7 = vadd.f32 %v1347_v2, %v1586_v47  ;;  %v1349_v8 = vadd.f32 %v803_v6, %v409_v37 }
 0x114   : > { %v988_v9 = vmax.f32 %v956_v4, 0.0  ;;  %v957_v10 = vadd.f32 %v1348_v5, %v1586_v47 }
 0x115   : > { %v986_v11 = vmax.f32 %v954_v7, 0.0  ;;  %v955_v12 = vadd.f32 %v1349_v8, %v1586_v47 }
 0x116   : > { %1020 = vst.msk [vmem:[%s1593_s29 + $0x30] sm:$0xff] %vm303_vm1, %v988_v9  ;;  %v989_v13 = vmax.f32 %v957_v10, 0.0 }
 0x117   : > { %1018 = vst.msk [vmem:[%s1593_s29 + $0x20] sm:$0xff] %vm303_vm1, %v986_v11  ;;  %v987_v14 = vmax.f32 %v955_v12, 0.0  ;;  %v1318_v15 = vpop.f32.mrb[8].mxu0 }
 0x118   : > { %1021 = vst.msk [vmem:[%s1593_s29 + $0x38] sm:$0xff] %vm303_vm1, %v989_v13  ;;  %v1350_v16 = vadd.f32 %v1318_v15, %v1250_v38  ;;  %v816_v17 = vpop.f32.mrb[9].mxu0 }
 0x119   : > { %1019 = vst.msk [vmem:[%s1593_s29 + $0x28] sm:$0xff] %vm303_vm1, %v987_v14  ;;  %v1351_v18 = vadd.f32 %v816_v17, %v422_v39  ;;  %v1319_v19 = vpop.f32.mrb[10].mxu0 }
 0x11a   : > { %v960_v20 = vadd.f32 %v1350_v16, %v1586_v47  ;;  %v1352_v21 = vadd.f32 %v1319_v19, %v1251_v40  ;;  %v819_v22 = vpop.f32.mrb[11].mxu0 }
 0x11b   : > { %v958_v23 = vadd.f32 %v1351_v18, %v1586_v47  ;;  %v1353_v24 = vadd.f32 %v819_v22, %v425_v41 }
 0x11c   : > { %v992_v25 = vmax.f32 %v960_v20, 0.0  ;;  %v961_v26 = vadd.f32 %v1352_v21, %v1586_v47 }
 0x11d   : > { %v990_v27 = vmax.f32 %v958_v23, 0.0  ;;  %v959_v28 = vadd.f32 %v1353_v24, %v1586_v47 }
 0x11e   : > { %1024 = vst.msk [vmem:[%s1593_s29 + $0x50] sm:$0xff] %vm303_vm1, %v992_v25  ;;  %v993_v29 = vmax.f32 %v961_v26, 0.0 }
 0x11f   : > { %1022 = vst.msk [vmem:[%s1593_s29 + $0x40] sm:$0xff] %vm303_vm1, %v990_v27  ;;  %v991_v30 = vmax.f32 %v959_v28, 0.0  ;;  %v1322_v31 = vpop.f32.mrb[12].mxu0 }
 0x120   : > { %1025 = vst.msk [vmem:[%s1593_s29 + $0x58] sm:$0xff] %vm303_vm1, %v993_v29  ;;  %v1354_v32 = vadd.f32 %v1322_v31, %v1575_v42  ;;  %v832_v33 = vpop.f32.mrb[13].mxu0 }
 0x121   : > { %1023 = vst.msk [vmem:[%s1593_s29 + $0x48] sm:$0xff] %vm303_vm1, %v991_v30  ;;  %v1355_v34 = vadd.f32 %v832_v33, %v1577_v43  ;;  %v1323_v35 = vpop.f32.mrb[14].mxu0 }
 0x122   : > { %v964_v36 = vadd.f32 %v1354_v32, %v1586_v47  ;;  %v1356_v37 = vadd.f32 %v1323_v35, %v1579_v44  ;;  %v835_v38 = vpop.f32.mrb[15].mxu0 }
 0x123   : > { %v962_v39 = vadd.f32 %v1355_v34, %v1586_v47  ;;  %v1357_v40 = vadd.f32 %v835_v38, %v1581_v45 }
 0x124   : > { %v996_v41 = vmax.f32 %v964_v36, 0.0  ;;  %v965_v42 = vadd.f32 %v1356_v37, %v1586_v47 }
 0x125   : > { %v994_v46 = vmax.f32 %v962_v39, 0.0  ;;  %v963_v48 = vadd.f32 %v1357_v40, %v1586_v47 }
 0x126   : > { %1028 = vst.msk [vmem:[%s1593_s29 + $0x70] sm:$0xff] %vm303_vm1, %v996_v41  ;;  %v997_v43 = vmax.f32 %v965_v42, 0.0  ;;  %v1292_v49 = vpop.f32.mrb[16].mxu1 }
 0x127   : > { %1026 = vst.msk [vmem:[%s1593_s29 + $0x60] sm:$0xff] %vm303_vm1, %v994_v46  ;;  %v995_v50 = vmax.f32 %v963_v48, 0.0  ;;  %v1326_v44 = vpop.f32.mrb[16].mxu0  ;;  %v650_v51 = vpop.f32.mrb[17].mxu1 }
 0x128   : > { %1029 = vst.msk [vmem:[%s1593_s29 + $0x78] sm:$0xff] %vm303_vm1, %v997_v43  ;;  %v1358_v52 = vadd.f32 %v1326_v44, %v1292_v49  ;;  %v848_v45 = vpop.f32.mrb[17].mxu0  ;;  %v1293_v53 = vpop.f32.mrb[18].mxu1 }
 0x129   : > { %1027 = vst.msk [vmem:[%s1593_s29 + $0x68] sm:$0xff] %vm303_vm1, %v995_v50  ;;  %v1359_v54 = vadd.f32 %v848_v45, %v650_v51  ;;  %v1327_v55 = vpop.f32.mrb[18].mxu0  ;;  %v653_v56 = vpop.f32.mrb[19].mxu1 }
 0x12a   : > { %v968_v57 = vadd.f32 %v1358_v52, %v1586_v47  ;;  %v1360_v58 = vadd.f32 %v1327_v55, %v1293_v53  ;;  %v851_v59 = vpop.f32.mrb[19].mxu0 }
 0x12b   : > { %v966_v60 = vadd.f32 %v1359_v54, %v1586_v47  ;;  %v1361_v61 = vadd.f32 %v851_v59, %v653_v56 }
 0x12c   : > { %v1000_v62 = vmax.f32 %v968_v57, 0.0  ;;  %v969_v63 = vadd.f32 %v1360_v58, %v1586_v47 }
 0x12d   : > { %v998_v0 = vmax.f32 %v966_v60, 0.0  ;;  %v967_v1 = vadd.f32 %v1361_v61, %v1586_v47 }
 0x12e   : > { %1032 = vst.msk [vmem:[%s1593_s29 + $0x90] sm:$0xff] %vm303_vm1, %v1000_v62  ;;  %v1001_v2 = vmax.f32 %v969_v63, 0.0  ;;  %v1296_v3 = vpop.f32.mrb[20].mxu1 }
 0x12f   : > { %1030 = vst.msk [vmem:[%s1593_s29 + $0x80] sm:$0xff] %vm303_vm1, %v998_v0  ;;  %v999_v4 = vmax.f32 %v967_v1, 0.0  ;;  %v1330_v5 = vpop.f32.mrb[20].mxu0  ;;  %v666_v6 = vpop.f32.mrb[21].mxu1 }
 0x130   : > { %1033 = vst.msk [vmem:[%s1593_s29 + $0x98] sm:$0xff] %vm303_vm1, %v1001_v2  ;;  %v1362_v7 = vadd.f32 %v1330_v5, %v1296_v3  ;;  %v864_v8 = vpop.f32.mrb[21].mxu0  ;;  %v1297_v9 = vpop.f32.mrb[22].mxu1 }
 0x131   : > { %1031 = vst.msk [vmem:[%s1593_s29 + $0x88] sm:$0xff] %vm303_vm1, %v999_v4  ;;  %v1363_v10 = vadd.f32 %v864_v8, %v666_v6  ;;  %v1331_v11 = vpop.f32.mrb[22].mxu0  ;;  %v669_v12 = vpop.f32.mrb[23].mxu1 }
 0x132   : > { %v972_v13 = vadd.f32 %v1362_v7, %v1586_v47  ;;  %v1364_v14 = vadd.f32 %v1331_v11, %v1297_v9  ;;  %v867_v15 = vpop.f32.mrb[23].mxu0 }
 0x133   : > { %v970_v16 = vadd.f32 %v1363_v10, %v1586_v47  ;;  %v1365_v17 = vadd.f32 %v867_v15, %v669_v12 }
 0x134   : > { %v1004_v18 = vmax.f32 %v972_v13, 0.0  ;;  %v973_v19 = vadd.f32 %v1364_v14, %v1586_v47 }
 0x135   : > { %v1002_v20 = vmax.f32 %v970_v16, 0.0  ;;  %v971_v21 = vadd.f32 %v1365_v17, %v1586_v47 }
 0x136   : > { %1036 = vst.msk [vmem:[%s1593_s29 + $0xb0] sm:$0xff] %vm303_vm1, %v1004_v18  ;;  %v1005_v22 = vmax.f32 %v973_v19, 0.0  ;;  %v1300_v23 = vpop.f32.mrb[24].mxu1 }
 0x137   : > { %1034 = vst.msk [vmem:[%s1593_s29 + $0xa0] sm:$0xff] %vm303_vm1, %v1002_v20  ;;  %v1003_v24 = vmax.f32 %v971_v21, 0.0  ;;  %v1334_v25 = vpop.f32.mrb[24].mxu0  ;;  %v682_v26 = vpop.f32.mrb[25].mxu1 }
 0x138   : > { %1037 = vst.msk [vmem:[%s1593_s29 + $0xb8] sm:$0xff] %vm303_vm1, %v1005_v22  ;;  %v1366_v27 = vadd.f32 %v1334_v25, %v1300_v23  ;;  %v880_v28 = vpop.f32.mrb[25].mxu0  ;;  %v1301_v29 = vpop.f32.mrb[26].mxu1 }
 0x139   : > { %1035 = vst.msk [vmem:[%s1593_s29 + $0xa8] sm:$0xff] %vm303_vm1, %v1003_v24  ;;  %v1367_v30 = vadd.f32 %v880_v28, %v682_v26  ;;  %v1335_v31 = vpop.f32.mrb[26].mxu0  ;;  %v685_v32 = vpop.f32.mrb[27].mxu1 }
 0x13a   : > { %v976_v33 = vadd.f32 %v1366_v27, %v1586_v47  ;;  %v1368_v34 = vadd.f32 %v1335_v31, %v1301_v29  ;;  %v883_v35 = vpop.f32.mrb[27].mxu0 }
 0x13b   : > { %v974_v36 = vadd.f32 %v1367_v30, %v1586_v47  ;;  %v1369_v37 = vadd.f32 %v883_v35, %v685_v32 }
 0x13c   : > { %v1008_v38 = vmax.f32 %v976_v33, 0.0  ;;  %v977_v39 = vadd.f32 %v1368_v34, %v1586_v47 }
 0x13d   : > { %v1006_v40 = vmax.f32 %v974_v36, 0.0  ;;  %v975_v41 = vadd.f32 %v1369_v37, %v1586_v47 }
 0x13e   : > { %1040 = vst.msk [vmem:[%s1593_s29 + $0xd0] sm:$0xff] %vm303_vm1, %v1008_v38  ;;  %v1009_v42 = vmax.f32 %v977_v39, 0.0  ;;  %v1304_v46 = vpop.f32.mrb[28].mxu1 }
 0x13f   : > { %1038 = vst.msk [vmem:[%s1593_s29 + $0xc0] sm:$0xff] %vm303_vm1, %v1006_v40  ;;  %v1007_v48 = vmax.f32 %v975_v41, 0.0  ;;  %v1338_v43 = vpop.f32.mrb[28].mxu0  ;;  %v698_v49 = vpop.f32.mrb[29].mxu1 }
 0x140   : > { %1041 = vst.msk [vmem:[%s1593_s29 + $0xd8] sm:$0xff] %vm303_vm1, %v1009_v42  ;;  %v1370_v50 = vadd.f32 %v1338_v43, %v1304_v46  ;;  %v896_v44 = vpop.f32.mrb[29].mxu0  ;;  %v1305_v51 = vpop.f32.mrb[30].mxu1 }
 0x141   : > { %1039 = vst.msk [vmem:[%s1593_s29 + $0xc8] sm:$0xff] %vm303_vm1, %v1007_v48  ;;  %v1371_v52 = vadd.f32 %v896_v44, %v698_v49  ;;  %v1339_v45 = vpop.f32.mrb[30].mxu0  ;;  %v701_v53 = vpop.f32.mrb[31].mxu1 }
 0x142   : > { %v980_v54 = vadd.f32 %v1370_v50, %v1586_v47  ;;  %v1372_v55 = vadd.f32 %v1339_v45, %v1305_v51  ;;  %v899_v56 = vpop.f32.mrb[31].mxu0 }
 0x143   : > { %v978_v57 = vadd.f32 %v1371_v52, %v1586_v47  ;;  %v1373_v58 = vadd.f32 %v899_v56, %v701_v53 }
 0x144   : > { %v1012_v59 = vmax.f32 %v980_v54, 0.0  ;;  %v981_v60 = vadd.f32 %v1372_v55, %v1586_v47 }
 0x145   : > { %v1010_v61 = vmax.f32 %v978_v57, 0.0  ;;  %v979_v62 = vadd.f32 %v1373_v58, %v1586_v47 }
 0x146   : > { %1044 = vst.msk [vmem:[%s1593_s29 + $0xf0] sm:$0xff] %vm303_vm1, %v1012_v59  ;;  %v1013_v63 = vmax.f32 %v981_v60, 0.0 }
 0x147   : > { %1042 = vst.msk [vmem:[%s1593_s29 + $0xe0] sm:$0xff] %vm303_vm1, %v1010_v61  ;;  %v1011_v0 = vmax.f32 %v979_v62, 0.0 }
 0x148   : > { %1045 = vst.msk [vmem:[%s1593_s29 + $0xf8] sm:$0xff] %vm303_vm1, %v1013_v63 }
 0x149   : > { %1043 = vst.msk [vmem:[%s1593_s29 + $0xe8] sm:$0xff] %vm303_vm1, %v1011_v0 }
 0x14a PF: > { %s13_s12 = sadd.s32 1, %s1449_s12  }
 0x14b   : > { %p10_p4 = scmp.ge.s32.totalorder %s13_s12, 4  }
 0x14d   :  { %12 = sbr.rel (!%p10_p4) target bundleno = 1 (0x1), region = 64 }

// kernel: inception_block_forward.12
= control target key start
LH: loop header
LB: loop body
LE: loop exit
PB: predicated region body
PF: predicated region fallthrough
CT: control target
= control target key end

     0   :  { %s2516_s12 = smov 0   ;;  %s3828_s0 = inlined_call_operand.vmem [shape: bf16[2,6,10,10,4], index: 0, kind: input, shape index: {}]   ;;  %s3829_s1 = inlined_call_operand.vmem [shape: bf16[4,6], index: 1, kind: input, shape index: {}]   ;;  %s3830_s2 = inlined_call_operand.vmem [shape: f32[1,6], index: 2, kind: input, shape index: {}]   ;;  %s3831_s3 = inlined_call_operand.vmem [shape: f32[2,4,8,8,6], index: 3, kind: output, shape index: {}]  }
   0x1 LB: > { %s2320_s13 = sadd.s32 4294967295, %s2494_s12   ;;  %p2324_p0 = scmp.ge.s32.totalorder %s2494_s12, 1  ;;  %s2494_s12 = sphi %s2516_s12, %s13_s12  }
   0x2   : > { %p137_p1 = scmp.lt.s32.totalorder %s2494_s12, 3 }
   0x4   : > { %p138_p2 = pnand %p2324_p0, %p137_p1 }
   0x6   : > { %141 = sbr.rel (%p138_p2) target bundleno = 505 (0x1f9), region = 32 }
   0xd   : > { %v1898_v0 = vld [vmem:[%s3829_s1] sm:$0x3]  ;;  %vm2035_vm0 = vcmask 1041408   ;;  %p161_p3 = scmp.lt.s32.totalorder %s2320_s13, 1  ;;  %vm292_vm1 = vsmask.f32 3328 }
   0xe   : > { %2477 = vmatprep.subr.msk.bf16.mxu0 %vm2035_vm0, %v1898_v0  ;;  %2478 = vmatprep.subr.msk.bf16.mxu1 %vm2035_vm0, %v1898_v0  ;;  %v2037_v1 = vsel %vm2035_vm0, %v1898_v0, 0  ;;  %vm293_vm2 = vsmask.f32 7440  ;;  %vm1375_vm4 = vcmask 1042432   ;;  %vm1376_vm5 = vcmask 1046532  }
   0xf   : > { %2442 = vmatpush3.bf16.msra.mxu0 %v2037_v1  ;;  %2476 = vmatpush3.bf16.msra.mxu1 %v2037_v1  ;;  %s3876_s13 = smov (!%p161_p3, %s2320_s13), 1  ;;  %vm2582_vm3 = vmor %vm292_vm1, %vm293_vm2  ;;  %vm1986_vm7 = vcmask 31744   ;;  %v3721_v32 = vld [vmem:[%s3830_s2] ss:$0 sm:$0xff]  ;;  %vm2232_vm8 = vcmask 48128  }
  0x10   : > { %s2479_s16 = smul.u32 480, %s3876_s13  ;;  %vm2737_vm6 = vmor %vm1375_vm4, %vm1376_vm5  ;;  %s2423_s22 = sshll.u32 %s3876_s13, 8 }
  0x11   : > { %s3728_s25 = scalar_lea.vmem %s3831_s3, %s2423_s22 }
  0x12   : > { %s2533_s19 = scalar_lea.vmem %s3828_s0, %s2479_s16 }
  0x13   : > { %v2536_v2 = vld [vmem:[%s2533_s19] sm:$0xf]  ;;  %v2539_v3 = vld [vmem:[%s2533_s19 + $0x4] sm:$0x1]  ;;  %v2542_v4 = vld [vmem:[%s2533_s19 + $0x8] sm:$0xf] }
  0x14   : > { %v2545_v5 = vld [vmem:[%s2533_s19 + $0xc] sm:$0x1]  ;;  %v2548_v6 = vld [vmem:[%s2533_s19 + $0x10] sm:$0xf]  ;;  %v2551_v7 = vld [vmem:[%s2533_s19 + $0x14] sm:$0x1] }
  0x15   : > { %v2554_v8 = vld [vmem:[%s2533_s19 + $0x18] sm:$0xf]  ;;  %v296_v9 = vshrl.u32 %v2536_v2, 16  ;;  %v299_v10 = vshll.u32 %v2536_v2, 16  ;;  %v305_v11 = vshll.u32 %v2539_v3, 16  ;;  %v310_v12 = vshrl.u32 %v2542_v4, 16 }
  0x16   : > { %v2561_v13 = vld [vmem:[%s2533_s19 + $0x1c] sm:$0x1]  ;;  %v313_v14 = vshll.u32 %v2542_v4, 16  ;;  %v319_v15 = vshll.u32 %v2545_v5, 16  ;;  %v324_v16 = vshrl.u32 %v2548_v6, 16  ;;  %v327_v17 = vshll.u32 %v2548_v6, 16 }
  0x17   : > { %v2568_v18 = vld [vmem:[%s2533_s19 + $0x50] sm:$0xf]  ;;  %v298_v19 = vrot.slane %v296_v9, 4  ;;  %v301_v20 = vrot.slane %v299_v10, 5  ;;  %v2570_v21 = vrot.slane %v305_v11, 5  ;;  %v312_v22 = vrot.slane %v310_v12, 4 }
  0x18   : > { %v315_v23 = vrot.slane %v313_v14, 5  ;;  %v2572_v24 = vrot.slane %v319_v15, 5  ;;  %v326_v25 = vrot.slane %v324_v16, 4  ;;  %v329_v26 = vrot.slane %v327_v17, 5  ;;  %v2578_v31 = vld [vmem:[%s2533_s19 + $0x54] sm:$0x1] }
  0x19   : > { %v302_v27 = vor.u32 %v301_v20, %v298_v19  ;;  %v333_v28 = vshll.u32 %v2551_v7, 16  ;;  %v338_v29 = vshrl.u32 %v2554_v8, 16  ;;  %v341_v30 = vshll.u32 %v2554_v8, 16  ;;  %v2589_v37 = vld [vmem:[%s2533_s19 + $0x58] sm:$0xf] }
  0x1a   : > { %v316_v33 = vor.u32 %v315_v23, %v312_v22  ;;  %v330_v34 = vor.u32 %v329_v26, %v326_v25  ;;  %v347_v35 = vshll.u32 %v2561_v13, 16  ;;  %v436_v36 = vshrl.u32 %v2568_v18, 16  ;;  %v2596_v42 = vld [vmem:[%s2533_s19 + $0x5c] sm:$0x1]  ;;  %v2605_v47 = vld [vmem:[%s2533_s19 + $0x60] sm:$0xf] }
  0x1b   : > { %v2591_v38 = vrot.slane %v302_v27, 4  ;;  %v2593_v39 = vrot.slane %v333_v28, 5  ;;  %v340_v40 = vrot.slane %v338_v29, 4  ;;  %v343_v41 = vrot.slane %v341_v30, 5  ;;  %v2614_v52 = vld [vmem:[%s2533_s19 + $0x64] sm:$0x1] }
  0x1c   : > { %v2598_v43 = vrot.slane %v316_v33, 4  ;;  %v2600_v44 = vrot.slane %v330_v34, 4  ;;  %v2602_v45 = vrot.slane %v347_v35, 5  ;;  %v438_v46 = vrot.slane %v436_v36, 4  ;;  %v2627_v57 = vld [vmem:[%s2533_s19 + $0x68] sm:$0xf] }
  0x1d   : > { %v308_v48 = vsel %vm2582_vm3, %v2591_v38, %v2570_v21  ;;  %v344_v49 = vor.u32 %v343_v41, %v340_v40  ;;  %v439_v50 = vshll.u32 %v2568_v18, 16  ;;  %v445_v51 = vshll.u32 %v2578_v31, 16  ;;  %v2635_v62 = vld [vmem:[%s2533_s19 + $0x6c] sm:$0x1]  ;;  %v2640_v10 = vld [vmem:[%s2533_s19 + $0xa0] sm:$0xf] }
  0x1e   : > { %v322_v53 = vsel %vm2582_vm3, %v2598_v43, %v2572_v24  ;;  %v336_v54 = vsel %vm2582_vm3, %v2600_v44, %v2593_v39  ;;  %v450_v55 = vshrl.u32 %v2589_v37, 16  ;;  %v453_v56 = vshll.u32 %v2589_v37, 16  ;;  %v2650_v16 = vld [vmem:[%s2533_s19 + $0xa4] sm:$0x1]  ;;  %v2654_v23 = vld [vmem:[%s2533_s19 + $0xa8] sm:$0xf] }
  0x1f   : > { %v2629_v58 = vrot.slane %v344_v49, 4  ;;  %v441_v59 = vrot.slane %v439_v50, 5  ;;  %v2631_v60 = vrot.slane %v445_v51, 5  ;;  %v459_v61 = vshll.u32 %v2596_v42, 16  ;;  %v2659_v29 = vld [vmem:[%s2533_s19 + $0xac] sm:$0x1] }
  0x20   : > { %v452_v63 = vrot.slane %v450_v55, 4  ;;  %v455_v0 = vrot.slane %v453_v56, 5  ;;  %v464_v1 = vshrl.u32 %v2605_v47, 16  ;;  %v467_v9 = vshll.u32 %v2605_v47, 16  ;;  %v2663_v36 = vld [vmem:[%s2533_s19 + $0xb0] sm:$0xf] }
  0x21   : > { %v350_v11 = vsel %vm2582_vm3, %v2629_v58, %v2602_v45  ;;  %v442_v12 = vor.u32 %v441_v59, %v438_v46  ;;  %v2646_v14 = vrot.slane %v459_v61, 5  ;;  %v473_v15 = vshll.u32 %v2614_v52, 16  ;;  %v2674_v59 = vld [vmem:[%s2533_s19 + $0xb4] sm:$0x1] }
  0x22   : > { %v456_v17 = vor.u32 %v455_v0, %v452_v63  ;;  %v466_v19 = vrot.slane %v464_v1, 4  ;;  %v469_v20 = vrot.slane %v467_v9, 5  ;;  %v478_v22 = vshrl.u32 %v2627_v57, 16  ;;  %v2679_v1 = vld [vmem:[%s2533_s19 + $0xb8] sm:$0xf] }
  0x23   : > { %v443_v25 = vrot.slane %v442_v12, 4  ;;  %v475_v26 = vrot.slane %v473_v15, 5  ;;  %v481_v27 = vshll.u32 %v2627_v57, 16  ;;  %v487_v28 = vshll.u32 %v2635_v62, 16 }
  0x24   : > { %v457_v30 = vrot.slane %v456_v17, 4  ;;  %v470_v33 = vor.u32 %v469_v20, %v466_v19  ;;  %v480_v34 = vrot.slane %v478_v22, 4  ;;  %v576_v35 = vshrl.u32 %v2640_v10, 16  ;;  %v2686_v17 = vld [vmem:[%s2533_s19 + $0xbc] sm:$0x1] }
  0x25   : > { %v448_v40 = vsel %vm2582_vm3, %v443_v25, %v2631_v60  ;;  %v483_v41 = vrot.slane %v481_v27, 5  ;;  %v489_v46 = vrot.slane %v487_v28, 5  ;;  %v579_v49 = vshll.u32 %v2640_v10, 16 }
  0x26   : > { %v462_v50 = vsel %vm2582_vm3, %v457_v30, %v2646_v14  ;;  %v471_v51 = vrot.slane %v470_v33, 4  ;;  %v578_v55 = vrot.slane %v576_v35, 4  ;;  %v585_v56 = vshll.u32 %v2650_v16, 16 }
  0x27   : > { %v484_v61 = vor.u32 %v483_v41, %v480_v34  ;;  %v581_v63 = vrot.slane %v579_v49, 5  ;;  %v590_v60 = vshrl.u32 %v2654_v23, 16  ;;  %v593_v0 = vshll.u32 %v2654_v23, 16 }
  0x28   : > { %v476_v9 = vsel %vm2582_vm3, %v471_v51, %v475_v26  ;;  %v587_v12 = vrot.slane %v585_v56, 5  ;;  %v599_v14 = vshll.u32 %v2659_v29, 16  ;;  %v604_v15 = vshrl.u32 %v2663_v36, 16 }
  0x29   : > { %v485_v19 = vrot.slane %v484_v61, 4  ;;  %v582_v20 = vor.u32 %v581_v63, %v578_v55  ;;  %v592_v22 = vrot.slane %v590_v60, 4  ;;  %v595_v25 = vrot.slane %v593_v0, 5 }
  0x2a   : > { %v601_v27 = vrot.slane %v599_v14, 5  ;;  %v606_v28 = vrot.slane %v604_v15, 4  ;;  %v607_v30 = vshll.u32 %v2663_v36, 16  ;;  %v613_v33 = vshll.u32 %v2674_v59, 16 }
  0x2b   : > { %v490_v26 = vsel %vm2582_vm3, %v485_v19, %v489_v46  ;;  %v583_v34 = vrot.slane %v582_v20, 4  ;;  %v596_v35 = vor.u32 %v595_v25, %v592_v22  ;;  %v618_v41 = vshrl.u32 %v2679_v1, 16 }
  0x2c   : > { %v609_v49 = vrot.slane %v607_v30, 5  ;;  %v615_v51 = vrot.slane %v613_v33, 5  ;;  %v621_v56 = vshll.u32 %v2679_v1, 16  ;;  %v627_v55 = vshll.u32 %v2686_v17, 16 }
  0x2d   : > { %v588_v61 = vsel %vm2582_vm3, %v583_v34, %v587_v12  ;;  %v597_v63 = vrot.slane %v596_v35, 4  ;;  %v620_v60 = vrot.slane %v618_v41, 4  ;;  %v2703_v46 = vmax.bf16 %v308_v48, %v2536_v2 }
  0x2e   : > { %v610_v0 = vor.u32 %v609_v49, %v606_v28  ;;  %v623_v14 = vrot.slane %v621_v56, 5  ;;  %v629_v15 = vrot.slane %v627_v55, 5  ;;  %v1196_v12 = vmax.bf16 %v322_v53, %v2542_v4 }
  0x2f   : > { %v602_v19 = vsel %vm2582_vm3, %v597_v63, %v601_v27  ;;  %v1197_v21 = vmax.bf16 %v336_v54, %v2548_v6  ;;  %v1198_v38 = vmax.bf16 %v350_v11, %v2554_v8  ;;  %v2726_v24 = vmax.bf16 %v448_v40, %v2568_v18 }
  0x30   : > { %v611_v43 = vrot.slane %v610_v0, 4  ;;  %v624_v48 = vor.u32 %v623_v14, %v620_v60  ;;  %v1206_v53 = vmax.bf16 %v462_v50, %v2589_v37  ;;  %v1207_v20 = vmax.bf16 %v476_v9, %v2605_v47 }
  0x31   : > { %v1208_v22 = vmax.bf16 %v490_v26, %v2627_v57  ;;  %v2732_v39 = vmax.bf16 %v588_v61, %v2640_v10  ;;  %v1216_v44 = vmax.bf16 %v602_v19, %v2654_v23  ;;  %v2328_v54 = vrot.slane %v2536_v2, 9 }
  0x32   : > { %v616_v58 = vsel %vm2582_vm3, %v611_v43, %v615_v51  ;;  %v625_v11 = vrot.slane %v624_v48, 4  ;;  %v1380_v40 = vrot.slane %v2539_v3, 5  ;;  %v2329_v50 = vrot.slane %v2542_v4, 9 }
  0x33   : > { %v1217_v9 = vmax.bf16 %v616_v58, %v2663_v36  ;;  %v1384_v25 = vrot.slane %v2545_v5, 5  ;;  %v2330_v27 = vrot.slane %v2548_v6, 9  ;;  %v1388_v28 = vrot.slane %v2551_v7, 5 }
  0x34   : > { %v630_v30 = vsel %vm2582_vm3, %v625_v11, %v629_v15  ;;  %v1381_v2 = vsel %vm2737_vm6, %v2328_v54, %v1380_v40  ;;  %v2331_v33 = vrot.slane %v2554_v8, 9  ;;  %v1392_v3 = vrot.slane %v2561_v13, 5  ;;  %v2817_v54 = vld [vmem:[%s2533_s19 + $0xf4] sm:$0x1] }
  0x35   : > { %v1218_v4 = vmax.bf16 %v630_v30, %v2679_v1  ;;  %v1385_v26 = vsel %vm2737_vm6, %v2329_v50, %v1384_v25  ;;  %v1389_v5 = vsel %vm2737_vm6, %v2330_v27, %v1388_v28  ;;  %v2338_v6 = vrot.slane %v2568_v18, 9 }
  0x36   : > { %v1393_v7 = vsel %vm2737_vm6, %v2331_v33, %v1392_v3  ;;  %v1420_v34 = vrot.slane %v2578_v31, 5  ;;  %v2339_v35 = vrot.slane %v2589_v37, 9  ;;  %v1424_v8 = vrot.slane %v2596_v42, 5  ;;  %v2841_v3 = vld [vmem:[%s2533_s19 + $0xfc] sm:$0x1] }
  0x37   : > { %v2340_v13 = vrot.slane %v2605_v47, 9  ;;  %v1428_v41 = vrot.slane %v2614_v52, 5  ;;  %v2341_v49 = vrot.slane %v2627_v57, 9  ;;  %v1432_v51 = vrot.slane %v2635_v62, 5 }
  0x38   : > { %v1421_v18 = vsel %vm2737_vm6, %v2338_v6, %v1420_v34  ;;  %v1425_v56 = vsel %vm2737_vm6, %v2339_v35, %v1424_v8  ;;  %v2348_v31 = vrot.slane %v2640_v10, 9  ;;  %v1460_v37 = vrot.slane %v2650_v16, 5  ;;  %v2853_v34 = vld [vmem:[%s2533_s19 + $0x104] sm:$0x1]  ;;  %v2856_v35 = vld [vmem:[%s2533_s19 + $0x108] sm:$0xf] }
  0x39   : > { %v1429_v42 = vsel %vm2737_vm6, %v2340_v13, %v1428_v41  ;;  %v1433_v47 = vsel %vm2737_vm6, %v2341_v49, %v1432_v51  ;;  %v2349_v52 = vrot.slane %v2654_v23, 9  ;;  %v1464_v57 = vrot.slane %v2659_v29, 5 }
  0x3a   : > { %v1461_v62 = vsel %vm2737_vm6, %v2348_v31, %v1460_v37  ;;  %v2350_v55 = vrot.slane %v2663_v36, 9  ;;  %v1468_v10 = vrot.slane %v2674_v59, 5  ;;  %v2351_v16 = vrot.slane %v2679_v1, 9 }
  0x3b   : > { %v1465_v61 = vsel %vm2737_vm6, %v2349_v52, %v1464_v57  ;;  %v1472_v63 = vrot.slane %v2686_v17, 5  ;;  %v1678_v60 = vmax.bf16 %v1381_v2, %v2703_v46  ;;  %v1679_v23 = vmax.bf16 %v1385_v26, %v1196_v12  ;;  %v2806_v46 = vld [vmem:[%s2533_s19 + $0xf0] sm:$0xf]  ;;  %v2871_v57 = vld [vmem:[%s2533_s19 + $0x140] sm:$0xf] }
  0x3c   : > { %v1469_v29 = vsel %vm2737_vm6, %v2350_v55, %v1468_v10  ;;  %v2794_v0 = vmax.bf16 %v1389_v5, %v1197_v21  ;;  %v2796_v14 = vmax.bf16 %v1393_v7, %v1198_v38  ;;  %v1688_v36 = vmax.bf16 %v1421_v18, %v2726_v24 }
  0x3d   : > { %v1473_v59 = vsel %vm2737_vm6, %v2351_v16, %v1472_v63  ;;  %v1689_v1 = vmax.bf16 %v1425_v56, %v1206_v53  ;;  %v2801_v15 = vmax.bf16 %v1429_v42, %v1207_v20  ;;  %v2803_v17 = vmax.bf16 %v1433_v47, %v1208_v22  ;;  %v2864_v56 = vld [vmem:[%s2533_s19 + $0x10c] sm:$0x1]  ;;  %v2877_v16 = vld [vmem:[%s2533_s19 + $0x144] sm:$0x1] }
  0x3e   : > { %v1698_v12 = vmax.bf16 %v1461_v62, %v2732_v39  ;;  %v1699_v19 = vmax.bf16 %v1465_v61, %v1216_v44  ;;  %v2809_v21 = vmax.bf16 %v1469_v29, %v1217_v9  ;;  %v2811_v38 = vmax.bf16 %v1473_v59, %v1218_v4  ;;  %v2820_v39 = vld [vmem:[%s2533_s19 + $0xf8] sm:$0xf]  ;;  %v2844_v4 = vld [vmem:[%s2533_s19 + $0x100] sm:$0xf]  ;;  %v2880_v61 = vld [vmem:[%s2533_s19 + $0x148] sm:$0xf] }
  0x3f   : > { %v1738_v24 = vmax.bf16 %v1679_v23, %v1678_v60  ;;  %v1739_v43 = vmax.bf16 %v2794_v0, %v1679_v23  ;;  %v1746_v48 = vmax.bf16 %v1689_v1, %v1688_v36  ;;  %v1747_v53 = vmax.bf16 %v2801_v15, %v1689_v1 }
  0x40   : > { %v1754_v20 = vmax.bf16 %v1699_v19, %v1698_v12  ;;  %v1755_v22 = vmax.bf16 %v2809_v21, %v1699_v19  ;;  %v716_v44 = vshrl.u32 %v2806_v46, 16  ;;  %v719_v58 = vshll.u32 %v2806_v46, 16  ;;  %v2889_v19 = vld [vmem:[%s2533_s19 + $0x14c] sm:$0x1] }
  0x41   : > { %v1786_v11 = vmax.bf16 %v1738_v24, %v2794_v0  ;;  %v1787_v40 = vmax.bf16 %v1739_v43, %v2796_v14  ;;  %v2827_v50 = vmax.bf16 %v1746_v48, %v2801_v15  ;;  %v2830_v9 = vmax.bf16 %v1747_v53, %v2803_v17 }
  0x42   : > { %v2833_v25 = vmax.bf16 %v1754_v20, %v2809_v21  ;;  %v2836_v27 = vmax.bf16 %v1755_v22, %v2811_v38  ;;  %v718_v28 = vrot.slane %v716_v44, 4  ;;  %v721_v30 = vrot.slane %v719_v58, 5  ;;  %v2895_v20 = vld [vmem:[%s2533_s19 + $0x150] sm:$0xf] }
  0x43   : > { %v1834_v2 = vmax.bf16 %v2827_v50, %v1786_v11  ;;  %v1835_v33 = vmax.bf16 %v2830_v9, %v1787_v40  ;;  %v725_v26 = vshll.u32 %v2817_v54, 16  ;;  %v730_v5 = vshrl.u32 %v2820_v39, 16  ;;  %v2900_v40 = vld [vmem:[%s2533_s19 + $0x154] sm:$0x1] }
  0x44   : > { %v722_v8 = vor.u32 %v721_v30, %v718_v28  ;;  %v733_v13 = vshll.u32 %v2820_v39, 16  ;;  %v739_v42 = vshll.u32 %v2841_v3, 16  ;;  %v744_v47 = vshrl.u32 %v2844_v4, 16 }
  0x45   : > { %v1866_v41 = vmax.bf16 %v1834_v2, %v2833_v25  ;;  %v1867_v49 = vmax.bf16 %v1835_v33, %v2836_v27  ;;  %v2861_v51 = vrot.slane %v725_v26, 5  ;;  %v732_v18 = vrot.slane %v730_v5, 4 }
  0x46   : > { %v2866_v31 = vrot.slane %v722_v8, 4  ;;  %v735_v37 = vrot.slane %v733_v13, 5  ;;  %v747_v62 = vshll.u32 %v2844_v4, 16  ;;  %v753_v55 = vshll.u32 %v2853_v34, 16 }
  0x47   : > { %v2389_v52 = vcombine.low %v1866_v41, %v1867_v49  ;;  %v758_v10 = vshrl.u32 %v2856_v35, 16  ;;  %v741_v23 = vrot.slane %v739_v42, 5  ;;  %v746_v29 = vrot.slane %v744_v47, 4  ;;  %v2905_v41 = vld [vmem:[%s2533_s19 + $0x158] sm:$0xf] }
  0x48   : > { %v728_v63 = vsel %vm2582_vm3, %v2866_v31, %v2861_v51  ;;  %v736_v60 = vor.u32 %v735_v37, %v732_v18  ;;  %v749_v36 = vrot.slane %v747_v62, 5  ;;  %v755_v59 = vrot.slane %v753_v55, 5  ;;  %v2911_v37 = vld [vmem:[%s2533_s19 + $0x15c] sm:$0x1] }
  0x49   : > { %2443 = vmatprep.mubr.msk.bf16.mxu0 %vm1986_vm7, %v2389_v52  ;;  %v760_v1 = vrot.slane %v758_v10, 4  ;;  %v761_v12 = vshll.u32 %v2856_v35, 16  ;;  %v767_v43 = vshll.u32 %v2864_v56, 16  ;;  %v856_v48 = vshrl.u32 %v2871_v57, 16 }
  0x4a   : > { %v737_v24 = vrot.slane %v736_v60, 4  ;;  %v859_v53 = vshll.u32 %v2871_v57, 16  ;;  %v750_v22 = vor.u32 %v749_v36, %v746_v29  ;;  %v865_v58 = vshll.u32 %v2877_v16, 16 }
  0x4b   : > { %v763_v44 = vrot.slane %v761_v12, 5  ;;  %v870_v11 = vshrl.u32 %v2880_v61, 16  ;;  %v769_v30 = vrot.slane %v767_v43, 5  ;;  %v858_v2 = vrot.slane %v856_v48, 4 }
  0x4c   : > { %v742_v28 = vsel %vm2582_vm3, %v737_v24, %v741_v23  ;;  %v861_v33 = vrot.slane %v859_v53, 5  ;;  %v751_v26 = vrot.slane %v750_v22, 4  ;;  %v867_v8 = vrot.slane %v865_v58, 5 }
  0x4d   : > { %v764_v5 = vor.u32 %v763_v44, %v760_v1  ;;  %v872_v13 = vrot.slane %v870_v11, 4  ;;  %v873_v51 = vshll.u32 %v2880_v61, 16  ;;  %v879_v18 = vshll.u32 %v2889_v19, 16 }
  0x4e   : > { %v862_v49 = vor.u32 %v861_v33, %v858_v2  ;;  %v884_v31 = vshrl.u32 %v2895_v20, 16  ;;  %v756_v42 = vsel %vm2582_vm3, %v751_v26, %v755_v59  ;;  %v887_v52 = vshll.u32 %v2895_v20, 16 }
  0x4f   : > { %v765_v47 = vrot.slane %v764_v5, 4  ;;  %v893_v62 = vshll.u32 %v2900_v40, 16  ;;  %v875_v10 = vrot.slane %v873_v51, 5  ;;  %v881_v60 = vrot.slane %v879_v18, 5 }
  0x50   : > { %v863_v55 = vrot.slane %v862_v49, 4  ;;  %v886_v23 = vrot.slane %v884_v31, 4  ;;  %v889_v36 = vrot.slane %v887_v52, 5  ;;  %v898_v12 = vshrl.u32 %v2905_v41, 16 }
  0x51   : > { %v770_v29 = vsel %vm2582_vm3, %v765_v47, %v769_v30  ;;  %v895_v1 = vrot.slane %v893_v62, 5  ;;  %v876_v59 = vor.u32 %v875_v10, %v872_v13  ;;  %v901_v43 = vshll.u32 %v2905_v41, 16 }
  0x52   : > { %v868_v24 = vsel %vm2582_vm3, %v863_v55, %v867_v8  ;;  %v907_v48 = vshll.u32 %v2911_v37, 16  ;;  %v890_v53 = vor.u32 %v889_v36, %v886_v23  ;;  %v900_v22 = vrot.slane %v898_v12, 4 }
  0x53   : > { %v1225_v44 = vmax.bf16 %v728_v63, %v2806_v46  ;;  %v1226_v58 = vmax.bf16 %v742_v28, %v2820_v39  ;;  %v877_v11 = vrot.slane %v876_v59, 4  ;;  %v903_v30 = vrot.slane %v901_v43, 5 }
  0x54   : > { %v909_v2 = vrot.slane %v907_v48, 5  ;;  %v1227_v33 = vmax.bf16 %v756_v42, %v2844_v4  ;;  %v891_v26 = vrot.slane %v890_v53, 4  ;;  %v1228_v5 = vmax.bf16 %v770_v29, %v2856_v35  ;;  %v2972_v48 = vld [vmem:[%s2533_s19 + $0x24] sm:$0x1]  ;;  %v2981_v53 = vld [vmem:[%s2533_s19 + $0x28] sm:$0xf] }
  0x55   : > { %v1235_v8 = vmax.bf16 %v868_v24, %v2871_v57  ;;  %v2358_v13 = vrot.slane %v2806_v46, 9  ;;  %v882_v49 = vsel %vm2582_vm3, %v877_v11, %v881_v60  ;;  %v904_v51 = vor.u32 %v903_v30, %v900_v22 }
  0x56   : > { %v1500_v63 = vrot.slane %v2817_v54, 5  ;;  %v2359_v28 = vrot.slane %v2820_v39, 9  ;;  %v896_v18 = vsel %vm2582_vm3, %v891_v26, %v895_v1  ;;  %v1236_v31 = vmax.bf16 %v882_v49, %v2880_v61  ;;  %v2996_v49 = vld [vmem:[%s2533_s19 + $0x2c] sm:$0x1] }
  0x57   : > { %v1504_v42 = vrot.slane %v2841_v3, 5  ;;  %v2360_v47 = vrot.slane %v2844_v4, 9  ;;  %v905_v52 = vrot.slane %v904_v51, 4  ;;  %v1237_v46 = vmax.bf16 %v896_v18, %v2895_v20 }
  0x58   : > { %v1501_v62 = vsel %vm2737_vm6, %v2358_v13, %v1500_v63  ;;  %v1508_v55 = vrot.slane %v2853_v34, 5  ;;  %v2361_v39 = vrot.slane %v2856_v35, 9  ;;  %v1512_v10 = vrot.slane %v2864_v56, 5 }
  0x59   : > { %v1505_v54 = vsel %vm2737_vm6, %v2359_v28, %v1504_v42  ;;  %v2368_v60 = vrot.slane %v2871_v57, 9  ;;  %v910_v3 = vsel %vm2582_vm3, %v905_v52, %v909_v2  ;;  %v1540_v23 = vrot.slane %v2877_v16, 5  ;;  %v3003_v28 = vld [vmem:[%s2533_s19 + $0x70] sm:$0xf] }
  0x5a   : > { %v1509_v4 = vsel %vm2737_vm6, %v2360_v47, %v1508_v55  ;;  %v2369_v34 = vrot.slane %v2880_v61, 9  ;;  %v1238_v29 = vmax.bf16 %v910_v3, %v2905_v41  ;;  %v1513_v35 = vsel %vm2737_vm6, %v2361_v39, %v1512_v10  ;;  %v3019_v39 = vld [vmem:[%s2533_s19 + $0x78] sm:$0xf] }
  0x5b   : > { %v1544_v56 = vrot.slane %v2889_v19, 5  ;;  %v2370_v57 = vrot.slane %v2895_v20, 9  ;;  %v1541_v36 = vsel %vm2737_vm6, %v2368_v60, %v1540_v23  ;;  %v1548_v1 = vrot.slane %v2900_v40, 5  ;;  %v2969_v19 = vld [vmem:[%s2533_s19 + $0x20] sm:$0xf] }
  0x5c   : > { %v2371_v12 = vrot.slane %v2905_v41, 9  ;;  %v1552_v16 = vrot.slane %v2911_v37, 5  ;;  %v1708_v24 = vmax.bf16 %v1501_v62, %v1225_v44  ;;  %v1709_v59 = vmax.bf16 %v1505_v54, %v1226_v58  ;;  %v3016_v54 = vld [vmem:[%s2533_s19 + $0x74] sm:$0x1] }
  0x5d   : > { %v1545_v61 = vsel %vm2737_vm6, %v2369_v34, %v1544_v56  ;;  %v2966_v43 = vmax.bf16 %v1509_v4, %v1227_v33  ;;  %v1549_v20 = vsel %vm2737_vm6, %v2370_v57, %v1548_v1  ;;  %v2978_v41 = vmax.bf16 %v1513_v35, %v1228_v5  ;;  %v3031_v56 = vld [vmem:[%s2533_s19 + $0x7c] sm:$0x1] }
  0x5e   : > { %v1553_v40 = vsel %vm2737_vm6, %v2371_v12, %v1552_v16  ;;  %v1718_v37 = vmax.bf16 %v1541_v36, %v1235_v8  ;;  %v1719_v22 = vmax.bf16 %v1545_v61, %v1236_v31  ;;  %v2983_v44 = vmax.bf16 %v1549_v20, %v1237_v46  ;;  %v3034_v12 = vld [vmem:[%s2533_s19 + $0xc0] sm:$0xf] }
  0x5f   : > { %v2985_v58 = vmax.bf16 %v1553_v40, %v1238_v29  ;;  %v1762_v11 = vmax.bf16 %v1709_v59, %v1708_v24  ;;  %v1763_v30 = vmax.bf16 %v2966_v43, %v1709_v59  ;;  %v352_v2 = vshrl.u32 %v2969_v19, 16  ;;  %v3040_v40 = vld [vmem:[%s2533_s19 + $0xc4] sm:$0x1] }
  0x60   : > { %v355_v33 = vshll.u32 %v2969_v19, 16  ;;  %v361_v26 = vshll.u32 %v2972_v48, 16  ;;  %v1770_v5 = vmax.bf16 %v1719_v22, %v1718_v37  ;;  %v1771_v8 = vmax.bf16 %v2983_v44, %v1719_v22  ;;  %v3043_v37 = vld [vmem:[%s2533_s19 + $0xc8] sm:$0xf] }
  0x61   : > { %v2993_v13 = vmax.bf16 %v1762_v11, %v2966_v43  ;;  %v366_v51 = vshrl.u32 %v2981_v53, 16  ;;  %v3000_v63 = vmax.bf16 %v1763_v30, %v2978_v41  ;;  %v354_v18 = vrot.slane %v352_v2, 4 }
  0x62   : > { %v357_v31 = vrot.slane %v355_v33, 5  ;;  %v363_v42 = vrot.slane %v361_v26, 5  ;;  %v3006_v47 = vmax.bf16 %v1770_v5, %v2983_v44  ;;  %v3009_v52 = vmax.bf16 %v1771_v8, %v2985_v58 }
  0x63   : > { %v1850_v46 = vmax.bf16 %v2993_v13, %v2833_v25  ;;  %v368_v62 = vrot.slane %v366_v51, 4  ;;  %v1851_v55 = vmax.bf16 %v3000_v63, %v2836_v27  ;;  %v369_v60 = vshll.u32 %v2981_v53, 16 }
  0x64   : > { %3849 = vst [vmem:[#allocation2_spill] sm:$0xff] %v3009_v52  ;;  %v358_v10 = vor.u32 %v357_v31, %v354_v18  ;;  %v375_v3 = vshll.u32 %v2996_v49, 16  ;;  %v492_v29 = vshrl.u32 %v3003_v28, 16  ;;  %v495_v61 = vshll.u32 %v3003_v28, 16 }
  0x65   : > { %v1882_v34 = vmax.bf16 %v1850_v46, %v3006_v47  ;;  %v1883_v35 = vmax.bf16 %v1851_v55, %v3009_v52  ;;  %v371_v36 = vrot.slane %v369_v60, 5  ;;  %v501_v24 = vshll.u32 %v3016_v54, 16  ;;  %v223_v46 = vld [vmem:[%s2533_s19 + $0xcc] sm:$0x1] }
  0x66   : > { %v359_v57 = vrot.slane %v358_v10, 4  ;;  %v377_v1 = vrot.slane %v375_v3, 5  ;;  %v494_v16 = vrot.slane %v492_v29, 4  ;;  %v506_v59 = vshrl.u32 %v3019_v39, 16 }
  0x67   : > { %v2397_v20 = vcombine.low %v1882_v34, %v1883_v35  ;;  %v372_v11 = vor.u32 %v371_v36, %v368_v62  ;;  %v509_v30 = vshll.u32 %v3019_v39, 16  ;;  %v497_v2 = vrot.slane %v495_v61, 5 }
  0x68   : > { %v364_v22 = vsel %vm2582_vm3, %v359_v57, %v363_v42  ;;  %v503_v33 = vrot.slane %v501_v24, 5  ;;  %v508_v26 = vrot.slane %v506_v59, 4  ;;  %v515_v5 = vshll.u32 %v3031_v56, 16 }
  0x69   : > { %2459 = vmatprep.mubr.msk.bf16.mxu1 %vm1986_vm7, %v2397_v20  ;;  %v373_v8 = vrot.slane %v372_v11, 4  ;;  %v511_v51 = vrot.slane %v509_v30, 5  ;;  %v632_v18 = vshrl.u32 %v3034_v12, 16  ;;  %v635_v31 = vshll.u32 %v3034_v12, 16 }
  0x6a   : > { %v498_v55 = vor.u32 %v497_v2, %v494_v16  ;;  %v517_v10 = vrot.slane %v515_v5, 5  ;;  %v641_v42 = vshll.u32 %v3040_v40, 16  ;;  %v646_v62 = vshrl.u32 %v3043_v37, 16 }
  0x6b   : > { %v378_v60 = vsel %vm2582_vm3, %v373_v8, %v377_v1  ;;  %v512_v3 = vor.u32 %v511_v51, %v508_v26  ;;  %v634_v34 = vrot.slane %v632_v18, 4  ;;  %v637_v29 = vrot.slane %v635_v31, 5 }
  0x6c   : > { %v499_v35 = vrot.slane %v498_v55, 4  ;;  %v643_v57 = vrot.slane %v641_v42, 5  ;;  %v648_v36 = vrot.slane %v646_v62, 4  ;;  %v649_v61 = vshll.u32 %v3043_v37, 16 }
  0x6d   : > { %v513_v24 = vrot.slane %v512_v3, 4  ;;  %v638_v59 = vor.u32 %v637_v29, %v634_v34  ;;  %v655_v20 = vshll.u32 %v223_v46, 16  ;;  %v1199_v16 = vmax.bf16 %v364_v22, %v2969_v19 }
  0x6e   : > { %v504_v11 = vsel %vm2582_vm3, %v499_v35, %v503_v33  ;;  %v651_v30 = vrot.slane %v649_v61, 5  ;;  %v1200_v2 = vmax.bf16 %v378_v60, %v2981_v53  ;;  %v2332_v1 = vrot.slane %v2969_v19, 9 }
  0x6f   : > { %v518_v26 = vsel %vm2582_vm3, %v513_v24, %v517_v10  ;;  %v639_v5 = vrot.slane %v638_v59, 4  ;;  %v657_v8 = vrot.slane %v655_v20, 5  ;;  %v1209_v51 = vmax.bf16 %v504_v11, %v3003_v28 }
  0x70   : > { %v652_v18 = vor.u32 %v651_v30, %v648_v36  ;;  %v1210_v31 = vmax.bf16 %v518_v26, %v3019_v39  ;;  %v1396_v22 = vrot.slane %v2972_v48, 5  ;;  %v2333_v55 = vrot.slane %v2981_v53, 9  ;;  %v241_v26 = vld [vmem:[%s2533_s19 + $0x114] sm:$0x1] }
  0x71   : > { %v644_v33 = vsel %vm2582_vm3, %v639_v5, %v643_v57  ;;  %v1400_v42 = vrot.slane %v2996_v49, 5  ;;  %v2342_v19 = vrot.slane %v3003_v28, 9  ;;  %v1436_v10 = vrot.slane %v3016_v54, 5  ;;  %v3122_v5 = vld [vmem:[%s2533_s19 + $0x118] sm:$0xf] }
  0x72   : > { %v653_v62 = vrot.slane %v652_v18, 4  ;;  %v1219_v60 = vmax.bf16 %v644_v33, %v3034_v12  ;;  %v1397_v3 = vsel %vm2737_vm6, %v2332_v1, %v1396_v22  ;;  %v2343_v48 = vrot.slane %v3019_v39, 9  ;;  %v3141_v22 = vld [vmem:[%s2533_s19 + $0x160] sm:$0xf] }
  0x73   : > { %v1401_v53 = vsel %vm2737_vm6, %v2333_v55, %v1400_v42  ;;  %v1437_v34 = vsel %vm2737_vm6, %v2342_v19, %v1436_v10  ;;  %v1440_v49 = vrot.slane %v3031_v56, 5  ;;  %v2352_v28 = vrot.slane %v3034_v12, 9  ;;  %v3096_v12 = vld [vmem:[%s2533_s19 + $0x110] sm:$0xf] }
  0x74   : > { %v658_v54 = vsel %vm2582_vm3, %v653_v62, %v657_v8  ;;  %v1476_v29 = vrot.slane %v3040_v40, 5  ;;  %v2353_v35 = vrot.slane %v3043_v37, 9  ;;  %v1480_v57 = vrot.slane %v223_v46, 5 }
  0x75   : > { %v1220_v39 = vmax.bf16 %v658_v54, %v3043_v37  ;;  %v1441_v36 = vsel %vm2737_vm6, %v2343_v48, %v1440_v49  ;;  %v3091_v61 = vmax.bf16 %v1397_v3, %v1199_v16  ;;  %v3093_v56 = vmax.bf16 %v1401_v53, %v1200_v2  ;;  %v262_v53 = vld [vmem:[%s2533_s19 + $0x168] sm:$0xf] }
  0x76   : > { %v1477_v24 = vsel %vm2737_vm6, %v2352_v28, %v1476_v29  ;;  %v1481_v40 = vsel %vm2737_vm6, %v2353_v35, %v1480_v57  ;;  %v3102_v46 = vmax.bf16 %v1437_v34, %v1209_v51  ;;  %v3104_v37 = vmax.bf16 %v1441_v36, %v1210_v31  ;;  %v263_v57 = vld [vmem:[%s2533_s19 + $0x16c] sm:$0x1] }
  0x77   : > { %v3106_v59 = vmax.bf16 %v1477_v24, %v1219_v60  ;;  %v3108_v20 = vmax.bf16 %v1481_v40, %v1220_v39  ;;  %v1740_v16 = vmax.bf16 %v2796_v14, %v2794_v0  ;;  %v1741_v11 = vmax.bf16 %v3091_v61, %v2796_v14  ;;  %v261_v60 = vld [vmem:[%s2533_s19 + $0x164] sm:$0x1] }
  0x78   : > { %v1748_v30 = vmax.bf16 %v2803_v17, %v2801_v15  ;;  %v1749_v2 = vmax.bf16 %v3102_v46, %v2803_v17  ;;  %v1756_v1 = vmax.bf16 %v2811_v38, %v2809_v21  ;;  %v772_v8 = vshrl.u32 %v3096_v12, 16  ;;  %v243_v15 = vld [vmem:[%s2533_s19 + $0x11c] sm:$0x1] }
  0x79   : > { %v1757_v0 = vmax.bf16 %v3106_v59, %v2811_v38  ;;  %v1788_v14 = vmax.bf16 %v1740_v16, %v3091_v61  ;;  %v1789_v51 = vmax.bf16 %v1741_v11, %v3093_v56  ;;  %v775_v17 = vshll.u32 %v3096_v12, 16 }
  0x7a   : > { %v3132_v18 = vmax.bf16 %v1748_v30, %v3102_v46  ;;  %v3135_v21 = vmax.bf16 %v1749_v2, %v3104_v37  ;;  %v3138_v31 = vmax.bf16 %v1756_v1, %v3106_v59  ;;  %v774_v38 = vrot.slane %v772_v8, 4 }
  0x7b   : > { %v3144_v55 = vmax.bf16 %v1757_v0, %v3108_v20  ;;  %v777_v33 = vrot.slane %v775_v17, 5  ;;  %v781_v42 = vshll.u32 %v241_v26, 16  ;;  %v786_v19 = vshrl.u32 %v3122_v5, 16 }
  0x7c   : > { %v1836_v10 = vmax.bf16 %v3132_v18, %v1788_v14  ;;  %v1837_v62 = vmax.bf16 %v3135_v21, %v1789_v51  ;;  %v789_v3 = vshll.u32 %v3122_v5, 16  ;;  %v795_v48 = vshll.u32 %v243_v15, 16 }
  0x7d   : > { %v778_v34 = vor.u32 %v777_v33, %v774_v38  ;;  %v783_v49 = vrot.slane %v781_v42, 5  ;;  %v788_v28 = vrot.slane %v786_v19, 4  ;;  %v912_v54 = vshrl.u32 %v3141_v22, 16 }
  0x7e   : > { %v1868_v29 = vmax.bf16 %v1836_v10, %v3138_v31  ;;  %v1869_v35 = vmax.bf16 %v1837_v62, %v3144_v55  ;;  %v791_v39 = vrot.slane %v789_v3, 5  ;;  %v797_v36 = vrot.slane %v795_v48, 5 }
  0x7f   : > { %v779_v24 = vrot.slane %v778_v34, 4  ;;  %v914_v40 = vrot.slane %v912_v54, 4  ;;  %v915_v16 = vshll.u32 %v3141_v22, 16  ;;  %v921_v11 = vshll.u32 %v261_v60, 16 }
  0x80   : > { %v2390_v30 = vcombine.low %v1868_v29, %v1869_v35  ;;  %v792_v2 = vor.u32 %v791_v39, %v788_v28  ;;  %v926_v1 = vshrl.u32 %v262_v53, 16  ;;  %v929_v8 = vshll.u32 %v262_v53, 16 }
  0x81   : > { %v784_v0 = vsel %vm2582_vm3, %v779_v24, %v783_v49  ;;  %v917_v14 = vrot.slane %v915_v16, 5  ;;  %v923_v51 = vrot.slane %v921_v11, 5  ;;  %v935_v17 = vshll.u32 %v263_v57, 16 }
  0x82   : > { %2444 = vmatmul.mubr.msk.bf16.vlgmr.msra.gmra.mrb[0].mxu0 %vm1986_vm7, %v2390_v30  ;;  %v793_v38 = vrot.slane %v792_v2, 4  ;;  %v928_v33 = vrot.slane %v926_v1, 4  ;;  %v931_v42 = vrot.slane %v929_v8, 5  ;;  %v1229_v19 = vmax.bf16 %v784_v0, %v3096_v12  ;;  %v3178_v30 = vld [vmem:[%s2533_s19 + $0x30] sm:$0xf] }
  0x83   : > { %v918_v10 = vor.u32 %v917_v14, %v914_v40  ;;  %v937_v62 = vrot.slane %v935_v17, 5  ;;  %v2362_v3 = vrot.slane %v3096_v12, 9  ;;  %v1516_v48 = vrot.slane %v241_v26, 5  ;;  %v3188_v0 = vld [vmem:[%s2533_s19 + $0x34] sm:$0x1] }
  0x84   : > { %v798_v34 = vsel %vm2582_vm3, %v793_v38, %v797_v36  ;;  %v932_v49 = vor.u32 %v931_v42, %v928_v33  ;;  %v2363_v28 = vrot.slane %v3122_v5, 9  ;;  %v1520_v54 = vrot.slane %v243_v15, 5 }
  0x85   : > { %v919_v29 = vrot.slane %v918_v10, 4  ;;  %v1230_v35 = vmax.bf16 %v798_v34, %v3122_v5  ;;  %v1517_v39 = vsel %vm2737_vm6, %v2362_v3, %v1516_v48  ;;  %v2372_v24 = vrot.slane %v3141_v22, 9  ;;  %v3212_v10 = vld [vmem:[%s2533_s19 + $0x3c] sm:$0x1]  ;;  %v3224_v34 = vld [vmem:[%s2533_s19 + $0x80] sm:$0xf] }
  0x86   : > { %v933_v12 = vrot.slane %v932_v49, 4  ;;  %v1521_v26 = vsel %vm2737_vm6, %v2363_v28, %v1520_v54  ;;  %v1556_v36 = vrot.slane %v261_v60, 5  ;;  %v2373_v40 = vrot.slane %v262_v53, 9  ;;  %v3227_v49 = vld [vmem:[%s2533_s19 + $0x84] sm:$0x1] }
  0x87   : > { %v924_v16 = vsel %vm2582_vm3, %v919_v29, %v923_v51  ;;  %v1560_v15 = vrot.slane %v263_v57, 5  ;;  %v3173_v11 = vmax.bf16 %v1517_v39, %v1229_v19  ;;  %v3175_v5 = vmax.bf16 %v1521_v26, %v1230_v35  ;;  %v3191_v57 = vld [vmem:[%s2533_s19 + $0x38] sm:$0xf]  ;;  %v3232_v29 = vld [vmem:[%s2533_s19 + $0x88] sm:$0xf] }
  0x88   : > { %v938_v2 = vsel %vm2582_vm3, %v933_v12, %v937_v62  ;;  %v1239_v1 = vmax.bf16 %v924_v16, %v3141_v22  ;;  %v1557_v60 = vsel %vm2737_vm6, %v2372_v24, %v1556_v36  ;;  %v1764_v8 = vmax.bf16 %v2978_v41, %v2966_v43 }
  0x89   : > { %v1240_v14 = vmax.bf16 %v938_v2, %v262_v53  ;;  %v1561_v51 = vsel %vm2737_vm6, %v2373_v40, %v1560_v15  ;;  %v1765_v17 = vmax.bf16 %v3173_v11, %v2978_v41  ;;  %v1772_v22 = vmax.bf16 %v2985_v58, %v2983_v44  ;;  %v3241_v40 = vld [vmem:[%s2533_s19 + $0x8c] sm:$0x1] }
  0x8a   : > { %v3199_v38 = vmax.bf16 %v1557_v60, %v1239_v1  ;;  %v3202_v43 = vmax.bf16 %v1764_v8, %v3173_v11  ;;  %v380_v33 = vshrl.u32 %v3178_v30, 16  ;;  %v383_v53 = vshll.u32 %v3178_v30, 16  ;;  %v3248_v8 = vld [vmem:[%s2533_s19 + $0xd0] sm:$0xf] }
  0x8b   : > { %v3206_v42 = vmax.bf16 %v1561_v51, %v1240_v14  ;;  %v3209_v19 = vmax.bf16 %v1765_v17, %v3175_v5  ;;  %v389_v41 = vshll.u32 %v3188_v0, 16  ;;  %v394_v44 = vshrl.u32 %v3191_v57, 16 }
  0x8c   : > { %v1773_v62 = vmax.bf16 %v3199_v38, %v2985_v58  ;;  %v3219_v3 = vmax.bf16 %v1772_v22, %v3199_v38  ;;  %v1852_v48 = vmax.bf16 %v3202_v43, %v3138_v31  ;;  %v382_v28 = vrot.slane %v380_v33, 4  ;;  %v3252_v22 = vld [vmem:[%s2533_s19 + $0xd4] sm:$0x1] }
  0x8d   : > { %v1853_v54 = vmax.bf16 %v3209_v19, %v3144_v55  ;;  %v385_v35 = vrot.slane %v383_v53, 5  ;;  %v391_v39 = vrot.slane %v389_v41, 5  ;;  %v396_v58 = vrot.slane %v394_v44, 4 }
  0x8e   : > { %3850 = vst [vmem:[#allocation3_spill] sm:$0xff] %v3219_v3  ;;  %v3235_v24 = vmax.bf16 %v1773_v62, %v3206_v42  ;;  %v1884_v12 = vmax.bf16 %v1852_v48, %v3219_v3  ;;  %v397_v26 = vshll.u32 %v3191_v57, 16  ;;  %v403_v36 = vshll.u32 %v3212_v10, 16  ;;  %v3255_v48 = vld [vmem:[%s2533_s19 + $0xd8] sm:$0xf] }
  0x8f   : > { %v386_v16 = vor.u32 %v385_v35, %v382_v28  ;;  %v520_v15 = vshrl.u32 %v3224_v34, 16  ;;  %v523_v2 = vshll.u32 %v3224_v34, 16  ;;  %v529_v1 = vshll.u32 %v3227_v49, 16 }
  0x90   : > { %3851 = vst [vmem:[#allocation4_spill] sm:$0xff] %v3235_v24  ;;  %v1885_v60 = vmax.bf16 %v1853_v54, %v3235_v24  ;;  %v399_v14 = vrot.slane %v397_v26, 5  ;;  %v405_v51 = vrot.slane %v403_v36, 5  ;;  %v534_v17 = vshrl.u32 %v3232_v29, 16 }
  0x91   : > { %v387_v33 = vrot.slane %v386_v16, 4  ;;  %v522_v53 = vrot.slane %v520_v15, 4  ;;  %v525_v41 = vrot.slane %v523_v2, 5  ;;  %v531_v44 = vrot.slane %v529_v1, 5  ;;  %v227_v16 = vld [vmem:[%s2533_s19 + $0xdc] sm:$0x1] }
  0x92   : > { %v2398_v62 = vcombine.low %v1884_v12, %v1885_v60  ;;  %v400_v28 = vor.u32 %v399_v14, %v396_v58  ;;  %v536_v35 = vrot.slane %v534_v17, 4  ;;  %v537_v54 = vshll.u32 %v3232_v29, 16 }
  0x93   : > { %v392_v26 = vsel %vm2582_vm3, %v387_v33, %v391_v39  ;;  %v526_v36 = vor.u32 %v525_v41, %v522_v53  ;;  %v543_v23 = vshll.u32 %v3241_v40, 16  ;;  %v660_v4 = vshrl.u32 %v3248_v8, 16 }
  0x94   : > { %2460 = vmatmul.mubr.msk.bf16.vlgmr.msra.gmra.mrb[0].mxu1 %vm1986_vm7, %v2398_v62  ;;  %v401_v15 = vrot.slane %v400_v28, 4  ;;  %v539_v2 = vrot.slane %v537_v54, 5  ;;  %v663_v12 = vshll.u32 %v3248_v8, 16  ;;  %v669_v58 = vshll.u32 %v3252_v22, 16 }
  0x95   : > { %v527_v1 = vrot.slane %v526_v36, 4  ;;  %v545_v60 = vrot.slane %v543_v23, 5  ;;  %v662_v14 = vrot.slane %v660_v4, 4  ;;  %v674_v17 = vshrl.u32 %v3255_v48, 16 }
  0x96   : > { %v406_v39 = vsel %vm2582_vm3, %v401_v15, %v405_v51  ;;  %v540_v33 = vor.u32 %v539_v2, %v536_v35  ;;  %v665_v53 = vrot.slane %v663_v12, 5  ;;  %v671_v41 = vrot.slane %v669_v58, 5 }
  0x97   : > { %v532_v62 = vsel %vm2582_vm3, %v527_v1, %v531_v44  ;;  %v676_v28 = vrot.slane %v674_v17, 4  ;;  %v677_v54 = vshll.u32 %v3255_v48, 16  ;;  %v683_v7 = vshll.u32 %v227_v16, 16 }
  0x98   : > { %v541_v6 = vrot.slane %v540_v33, 4  ;;  %v666_v24 = vor.u32 %v665_v53, %v662_v14  ;;  %v1201_v23 = vmax.bf16 %v392_v26, %v3178_v30  ;;  %v1202_v4 = vmax.bf16 %v406_v39, %v3191_v57 }
  0x99   : > { %v679_v36 = vrot.slane %v677_v54, 5  ;;  %v685_v3 = vrot.slane %v683_v7, 5  ;;  %v1211_v51 = vmax.bf16 %v532_v62, %v3224_v34  ;;  %v2334_v35 = vrot.slane %v3178_v30, 9 }
  0x9a   : > { %v546_v15 = vsel %vm2582_vm3, %v541_v6, %v545_v60  ;;  %v667_v44 = vrot.slane %v666_v24, 4  ;;  %v1404_v2 = vrot.slane %v3188_v0, 5  ;;  %v2335_v12 = vrot.slane %v3191_v57, 9 }
  0x9b   : > { %v680_v58 = vor.u32 %v679_v36, %v676_v28  ;;  %v1212_v1 = vmax.bf16 %v546_v15, %v3232_v29  ;;  %v1408_v26 = vrot.slane %v3212_v10, 5  ;;  %v2344_v14 = vrot.slane %v3224_v34, 9  ;;  %v3312_v28 = vld [vmem:[%s2533_s19 + $0x120] sm:$0xf] }
  0x9c   : > { %v672_v7 = vsel %vm2582_vm3, %v667_v44, %v671_v41  ;;  %v1405_v30 = vsel %vm2737_vm6, %v2334_v35, %v1404_v2  ;;  %v1444_v6 = vrot.slane %v3227_v49, 5  ;;  %v2345_v24 = vrot.slane %v3232_v29, 9  ;;  %v3331_v35 = vld [vmem:[%s2533_s19 + $0x124] sm:$0x1]  ;;  %v246_v2 = vld [vmem:[%s2533_s19 + $0x128] sm:$0xf] }
  0x9d   : > { %v681_v0 = vrot.slane %v680_v58, 4  ;;  %v1221_v57 = vmax.bf16 %v672_v7, %v3248_v8  ;;  %v1409_v60 = vsel %vm2737_vm6, %v2335_v12, %v1408_v26  ;;  %v1448_v10 = vrot.slane %v3241_v40, 5  ;;  %v247_v58 = vld [vmem:[%s2533_s19 + $0x12c] sm:$0x1] }
  0x9e   : > { %v1445_v34 = vsel %vm2737_vm6, %v2344_v14, %v1444_v6  ;;  %v2354_v17 = vrot.slane %v3248_v8, 9  ;;  %v1484_v39 = vrot.slane %v3252_v22, 5  ;;  %v2355_v49 = vrot.slane %v3255_v48, 9 }
  0x9f   : > { %v686_v29 = vsel %vm2582_vm3, %v681_v0, %v685_v3  ;;  %v1449_v33 = vsel %vm2737_vm6, %v2345_v24, %v1448_v10  ;;  %v1488_v53 = vrot.slane %v227_v16, 5  ;;  %v3302_v41 = vmax.bf16 %v1405_v30, %v1201_v23  ;;  %v265_v24 = vld [vmem:[%s2533_s19 + $0x174] sm:$0x1] }
  0xa0   : > { %v1222_v40 = vmax.bf16 %v686_v29, %v3255_v48  ;;  %v1485_v62 = vsel %vm2737_vm6, %v2354_v17, %v1484_v39  ;;  %v3307_v8 = vmax.bf16 %v1409_v60, %v1202_v4  ;;  %v3309_v22 = vmax.bf16 %v1445_v34, %v1211_v51  ;;  %v266_v60 = vld [vmem:[%s2533_s19 + $0x178] sm:$0xf] }
  0xa1   : > { %v1489_v3 = vsel %vm2737_vm6, %v2355_v49, %v1488_v53  ;;  %v3316_v54 = vmax.bf16 %v1449_v33, %v1212_v1  ;;  %v3318_v16 = vmax.bf16 %v1485_v62, %v1221_v57  ;;  %v1742_v48 = vmax.bf16 %v3093_v56, %v3091_v61  ;;  %v267_v33 = vld [vmem:[%s2533_s19 + $0x17c] sm:$0x1] }
  0xa2   : > { %v3322_v23 = vmax.bf16 %v1489_v3, %v1222_v40  ;;  %v1743_v4 = vmax.bf16 %v3302_v41, %v3093_v56  ;;  %v1750_v36 = vmax.bf16 %v3104_v37, %v3102_v46  ;;  %v1751_v51 = vmax.bf16 %v3309_v22, %v3104_v37 }
  0xa3   : > { %v1758_v15 = vmax.bf16 %v3108_v20, %v3106_v59  ;;  %v1759_v44 = vmax.bf16 %v3318_v16, %v3108_v20  ;;  %v1790_v61 = vmax.bf16 %v1742_v48, %v3302_v41  ;;  %v800_v56 = vshrl.u32 %v3312_v28, 16  ;;  %v264_v59 = vld [vmem:[%s2533_s19 + $0x170] sm:$0xf] }
  0xa4   : > { %v1791_v46 = vmax.bf16 %v1743_v4, %v3307_v8  ;;  %v3342_v12 = vmax.bf16 %v1750_v36, %v3309_v22  ;;  %v3345_v37 = vmax.bf16 %v1751_v51, %v3316_v54  ;;  %v803_v1 = vshll.u32 %v3312_v28, 16 }
  0xa5   : > { %v3351_v20 = vmax.bf16 %v1758_v15, %v3318_v16  ;;  %v3354_v26 = vmax.bf16 %v1759_v44, %v3322_v23  ;;  %v802_v14 = vrot.slane %v800_v56, 4  ;;  %v809_v7 = vshll.u32 %v3331_v35, 16 }
  0xa6   : > { %3852 = vst [vmem:[#allocation5_spill] sm:$0xff] %v3342_v12  ;;  %3853 = vst [vmem:[#allocation6_spill] sm:$0xff] %v3345_v37  ;;  %v1838_v30 = vmax.bf16 %v3342_v12, %v1790_v61  ;;  %v1839_v6 = vmax.bf16 %v3345_v37, %v1791_v46  ;;  %v805_v0 = vrot.slane %v803_v1, 5  ;;  %v814_v57 = vshrl.u32 %v246_v2, 16 }
  0xa7   : > { %3854 = vst [vmem:[#allocation7_spill] sm:$0xff] %v3351_v20  ;;  %3855 = vst [vmem:[#allocation8_spill] sm:$0xff] %v3354_v26  ;;  %v811_v10 = vrot.slane %v809_v7, 5  ;;  %v817_v34 = vshll.u32 %v246_v2, 16  ;;  %v823_v17 = vshll.u32 %v247_v58, 16  ;;  %v940_v39 = vshrl.u32 %v264_v59, 16 }
  0xa8   : > { %v1870_v49 = vmax.bf16 %v1838_v30, %v3351_v20  ;;  %v1871_v29 = vmax.bf16 %v1839_v6, %v3354_v26  ;;  %v806_v53 = vor.u32 %v805_v0, %v802_v14  ;;  %v816_v40 = vrot.slane %v814_v57, 4 }
  0xa9   : > { %v819_v62 = vrot.slane %v817_v34, 5  ;;  %v825_v3 = vrot.slane %v823_v17, 5  ;;  %v942_v48 = vrot.slane %v940_v39, 4  ;;  %v943_v4 = vshll.u32 %v264_v59, 16 }
  0xaa   : > { %v2391_v36 = vcombine.low %v1870_v49, %v1871_v29  ;;  %v807_v51 = vrot.slane %v806_v53, 4  ;;  %v949_v15 = vshll.u32 %v265_v24, 16  ;;  %v954_v44 = vshrl.u32 %v266_v60, 16 }
  0xab   : > { %v820_v61 = vor.u32 %v819_v62, %v816_v40  ;;  %v945_v56 = vrot.slane %v943_v4, 5  ;;  %v957_v46 = vshll.u32 %v266_v60, 16  ;;  %v963_v1 = vshll.u32 %v267_v33, 16 }
  0xac   : > { %2447 = vmatprep.mubr.msk.bf16.mxu0 %vm1986_vm7, %v2391_v36  ;;  %v812_v7 = vsel %vm2582_vm3, %v807_v51, %v811_v10  ;;  %v951_v30 = vrot.slane %v949_v15, 5  ;;  %v956_v14 = vrot.slane %v954_v44, 4  ;;  %v2364_v6 = vrot.slane %v3312_v28, 9 }
  0xad   : > { %v821_v0 = vrot.slane %v820_v61, 4  ;;  %v946_v57 = vor.u32 %v945_v56, %v942_v48  ;;  %v959_v34 = vrot.slane %v957_v46, 5  ;;  %v965_v17 = vrot.slane %v963_v1, 5  ;;  %v3388_v1 = vld [vmem:[%s2533_s19 + $0x44] sm:$0x1] }
  0xae   : > { %v1231_v39 = vmax.bf16 %v812_v7, %v3312_v28  ;;  %v1524_v49 = vrot.slane %v3331_v35, 5  ;;  %v2365_v29 = vrot.slane %v246_v2, 9  ;;  %v1528_v53 = vrot.slane %v247_v58, 5  ;;  %v3391_v7 = vld [vmem:[%s2533_s19 + $0x48] sm:$0xf] }
  0xaf   : > { %v826_v40 = vsel %vm2582_vm3, %v821_v0, %v825_v3  ;;  %v947_v62 = vrot.slane %v946_v57, 4  ;;  %v960_v10 = vor.u32 %v959_v34, %v956_v14  ;;  %v2374_v4 = vrot.slane %v264_v59, 9  ;;  %v3379_v3 = vld [vmem:[%s2533_s19 + $0x40] sm:$0xf] }
  0xb0   : > { %v1232_v36 = vmax.bf16 %v826_v40, %v246_v2  ;;  %v1525_v48 = vsel %vm2737_vm6, %v2364_v6, %v1524_v49  ;;  %v1529_v28 = vsel %vm2737_vm6, %v2365_v29, %v1528_v53  ;;  %v1564_v51 = vrot.slane %v265_v24, 5  ;;  %v3423_v29 = vld [vmem:[%s2533_s19 + $0x4c] sm:$0x1]  ;;  %v3426_v53 = vld [vmem:[%s2533_s19 + $0x90] sm:$0xf] }
  0xb1   : > { %v952_v35 = vsel %vm2582_vm3, %v947_v62, %v951_v30  ;;  %v961_v58 = vrot.slane %v960_v10, 4  ;;  %v2375_v15 = vrot.slane %v266_v60, 9  ;;  %v1568_v44 = vrot.slane %v267_v33, 5  ;;  %v3431_v62 = vld [vmem:[%s2533_s19 + $0x94] sm:$0x1] }
  0xb2   : > { %v1241_v61 = vmax.bf16 %v952_v35, %v264_v59  ;;  %v1565_v56 = vsel %vm2737_vm6, %v2374_v4, %v1564_v51  ;;  %v3383_v2 = vmax.bf16 %v1525_v48, %v1231_v39  ;;  %v3385_v46 = vmax.bf16 %v1529_v28, %v1232_v36  ;;  %v3439_v28 = vld [vmem:[%s2533_s19 + $0x98] sm:$0xf] }
  0xb3   : > { %v966_v24 = vsel %vm2582_vm3, %v961_v58, %v965_v17  ;;  %v1569_v33 = vsel %vm2737_vm6, %v2375_v15, %v1568_v44  ;;  %v1766_v59 = vmax.bf16 %v3175_v5, %v3173_v11  ;;  %v1774_v30 = vmax.bf16 %v3206_v42, %v3199_v38 }
  0xb4   : > { %v1242_v14 = vmax.bf16 %v966_v24, %v266_v60  ;;  %v3401_v6 = vmax.bf16 %v1565_v56, %v1241_v61  ;;  %v1767_v0 = vmax.bf16 %v3383_v2, %v3175_v5  ;;  %v408_v57 = vshrl.u32 %v3379_v3, 16  ;;  %v3447_v24 = vld [vmem:[%s2533_s19 + $0x9c] sm:$0x1] }
  0xb5   : > { %v3407_v34 = vmax.bf16 %v1766_v59, %v3383_v2  ;;  %v411_v17 = vshll.u32 %v3379_v3, 16  ;;  %v417_v11 = vshll.u32 %v3388_v1, 16  ;;  %v422_v39 = vshrl.u32 %v3391_v7, 16 }
  0xb6   : > { %v3412_v38 = vmax.bf16 %v1569_v33, %v1242_v14  ;;  %v1775_v60 = vmax.bf16 %v3401_v6, %v3206_v42  ;;  %v3417_v49 = vmax.bf16 %v1767_v0, %v3385_v46  ;;  %v3420_v5 = vmax.bf16 %v1774_v30, %v3401_v6  ;;  %v3452_v14 = vld [vmem:[%s2533_s19 + $0xe0] sm:$0xf] }
  0xb7   : > { %3856 = vst [vmem:[#allocation9_spill] sm:$0xff] %v3407_v34  ;;  %v1854_v40 = vmax.bf16 %v3407_v34, %v3351_v20  ;;  %v410_v10 = vrot.slane %v408_v57, 4  ;;  %v413_v4 = vrot.slane %v411_v17, 5  ;;  %v419_v42 = vrot.slane %v417_v11, 5 }
  0xb8   : > { %3857 = vst [vmem:[#allocation10_spill] sm:$0xff] %v3417_v49  ;;  %3858 = vst [vmem:[#allocation11_spill] sm:$0xff] %v3420_v5  ;;  %v3434_v36 = vmax.bf16 %v1775_v60, %v3412_v38  ;;  %v1855_v48 = vmax.bf16 %v3417_v49, %v3354_v26  ;;  %v424_v51 = vrot.slane %v422_v39, 4  ;;  %v425_v35 = vshll.u32 %v3391_v7, 16  ;;  %v3456_v60 = vld [vmem:[%s2533_s19 + $0xe4] sm:$0x1] }
  0xb9   : > { %v1886_v58 = vmax.bf16 %v1854_v40, %v3420_v5  ;;  %v414_v15 = vor.u32 %v413_v4, %v410_v10  ;;  %v431_v44 = vshll.u32 %v3423_v29, 16  ;;  %v548_v61 = vshrl.u32 %v3426_v53, 16  ;;  %v3459_v40 = vld [vmem:[%s2533_s19 + $0xe8] sm:$0xf]  ;;  %v231_v49 = vld [vmem:[%s2533_s19 + $0xec] sm:$0x1] }
  0xba   : > { %3859 = vst [vmem:[#allocation12_spill] sm:$0xff] %v3434_v36  ;;  %v1887_v56 = vmax.bf16 %v1855_v48, %v3434_v36  ;;  %v427_v33 = vrot.slane %v425_v35, 5  ;;  %v551_v59 = vshll.u32 %v3426_v53, 16  ;;  %v557_v30 = vshll.u32 %v3431_v62, 16 }
  0xbb   : > { %v415_v0 = vrot.slane %v414_v15, 4  ;;  %v433_v57 = vrot.slane %v431_v44, 5  ;;  %v550_v17 = vrot.slane %v548_v61, 4  ;;  %v562_v11 = vshrl.u32 %v3439_v28, 16 }
  0xbc   : > { %v2399_v39 = vcombine.low %v1886_v58, %v1887_v56  ;;  %v428_v10 = vor.u32 %v427_v33, %v424_v51  ;;  %v553_v4 = vrot.slane %v551_v59, 5  ;;  %v559_v48 = vrot.slane %v557_v30, 5 }
  0xbd   : > { %v420_v35 = vsel %vm2582_vm3, %v415_v0, %v419_v42  ;;  %v564_v36 = vrot.slane %v562_v11, 4  ;;  %v565_v5 = vshll.u32 %v3439_v28, 16  ;;  %v571_v15 = vshll.u32 %v3447_v24, 16 }
  0xbe   : > { %2463 = vmatprep.mubr.msk.bf16.mxu1 %vm1986_vm7, %v2399_v39  ;;  %v429_v44 = vrot.slane %v428_v10, 4  ;;  %v554_v61 = vor.u32 %v553_v4, %v550_v17  ;;  %v688_v58 = vshrl.u32 %v3452_v14, 16  ;;  %v691_v56 = vshll.u32 %v3452_v14, 16 }
  0xbf   : > { %v567_v51 = vrot.slane %v565_v5, 5  ;;  %v573_v33 = vrot.slane %v571_v15, 5  ;;  %v697_v59 = vshll.u32 %v3456_v60, 16  ;;  %v702_v42 = vshrl.u32 %v3459_v40, 16 }
  0xc0   : > { %v434_v30 = vsel %vm2582_vm3, %v429_v44, %v433_v57  ;;  %v555_v0 = vrot.slane %v554_v61, 4  ;;  %v690_v11 = vrot.slane %v688_v58, 4  ;;  %v693_v34 = vrot.slane %v691_v56, 5 }
  0xc1   : > { %v568_v39 = vor.u32 %v567_v51, %v564_v36  ;;  %v699_v10 = vrot.slane %v697_v59, 5  ;;  %v704_v17 = vrot.slane %v702_v42, 4  ;;  %v705_v4 = vshll.u32 %v3459_v40, 16 }
  0xc2   : > { %v560_v26 = vsel %vm2582_vm3, %v555_v0, %v559_v48  ;;  %v694_v5 = vor.u32 %v693_v34, %v690_v11  ;;  %v711_v15 = vshll.u32 %v231_v49, 16  ;;  %v1203_v37 = vmax.bf16 %v420_v35, %v3379_v3 }
  0xc3   : > { %v569_v20 = vrot.slane %v568_v39, 4  ;;  %v707_v12 = vrot.slane %v705_v4, 5  ;;  %v1204_v52 = vmax.bf16 %v434_v30, %v3391_v7  ;;  %v1213_v57 = vmax.bf16 %v560_v26, %v3426_v53 }
  0xc4   : > { %v695_v44 = vrot.slane %v694_v5, 4  ;;  %v713_v61 = vrot.slane %v711_v15, 5  ;;  %v2336_v36 = vrot.slane %v3379_v3, 9  ;;  %v1412_v58 = vrot.slane %v3388_v1, 5 }
  0xc5   : > { %v574_v56 = vsel %vm2582_vm3, %v569_v20, %v573_v33  ;;  %v708_v48 = vor.u32 %v707_v12, %v704_v17  ;;  %v2337_v34 = vrot.slane %v3391_v7, 9  ;;  %v1416_v35 = vrot.slane %v3423_v29, 5 }
  0xc6   : > { %v700_v51 = vsel %vm2582_vm3, %v695_v44, %v699_v10  ;;  %v1214_v59 = vmax.bf16 %v574_v56, %v3439_v28  ;;  %v1413_v26 = vsel %vm2737_vm6, %v2336_v36, %v1412_v58  ;;  %v2346_v3 = vrot.slane %v3426_v53, 9  ;;  %v3524_v58 = vld [vmem:[%s2533_s19 + $0x138] sm:$0xf] }
  0xc7   : > { %v709_v42 = vrot.slane %v708_v48, 4  ;;  %v1223_v1 = vmax.bf16 %v700_v51, %v3452_v14  ;;  %v1417_v12 = vsel %vm2737_vm6, %v2337_v34, %v1416_v35  ;;  %v1452_v20 = vrot.slane %v3431_v62, 5  ;;  %v251_v34 = vld [vmem:[%s2533_s19 + $0x13c] sm:$0x1] }
  0xc8   : > { %v2347_v7 = vrot.slane %v3439_v28, 9  ;;  %v1456_v29 = vrot.slane %v3447_v24, 5  ;;  %v2356_v33 = vrot.slane %v3452_v14, 9  ;;  %v1492_v30 = vrot.slane %v3456_v60, 5  ;;  %v3510_v14 = vld [vmem:[%s2533_s19 + $0x130] sm:$0xf] }
  0xc9   : > { %v714_v53 = vsel %vm2582_vm3, %v709_v42, %v713_v61  ;;  %v1453_v0 = vsel %vm2737_vm6, %v2346_v3, %v1452_v20  ;;  %v2357_v11 = vrot.slane %v3459_v40, 9  ;;  %v1496_v39 = vrot.slane %v231_v49, 5 }
  0xca   : > { %v1224_v10 = vmax.bf16 %v714_v53, %v3459_v40  ;;  %v1457_v62 = vsel %vm2737_vm6, %v2347_v7, %v1456_v29  ;;  %v1493_v28 = vsel %vm2737_vm6, %v2356_v33, %v1492_v30  ;;  %v1686_v24 = vmax.bf16 %v1413_v26, %v1203_v37  ;;  %v270_v29 = vld [vmem:[%s2533_s19 + $0x188] sm:$0xf] }
  0xcb   : > { %v1497_v60 = vsel %vm2737_vm6, %v2357_v11, %v1496_v39  ;;  %v1687_v17 = vmax.bf16 %v1417_v12, %v1204_v52  ;;  %v1696_v4 = vmax.bf16 %v1453_v0, %v1213_v57  ;;  %v1697_v49 = vmax.bf16 %v1457_v62, %v1214_v59  ;;  %v249_v52 = vld [vmem:[%s2533_s19 + $0x134] sm:$0x1]  ;;  %v269_v12 = vld [vmem:[%s2533_s19 + $0x184] sm:$0x1] }
  0xcc   : > { %v1706_v5 = vmax.bf16 %v1493_v28, %v1223_v1  ;;  %v1707_v40 = vmax.bf16 %v1497_v60, %v1224_v10  ;;  %v1744_v15 = vmax.bf16 %v3307_v8, %v3302_v41  ;;  %v1745_v44 = vmax.bf16 %v1686_v24, %v3307_v8  ;;  %v271_v10 = vld [vmem:[%s2533_s19 + $0x18c] sm:$0x1] }
  0xcd   : > { %v1752_v37 = vmax.bf16 %v3316_v54, %v3309_v22  ;;  %v1753_v61 = vmax.bf16 %v1696_v4, %v3316_v54  ;;  %v1760_v36 = vmax.bf16 %v3322_v23, %v3318_v16  ;;  %v828_v57 = vshrl.u32 %v3510_v14, 16  ;;  %v268_v16 = vld [vmem:[%s2533_s19 + $0x180] sm:$0xf] }
  0xce   : > { %v1761_v56 = vmax.bf16 %v1706_v5, %v3322_v23  ;;  %v1792_v41 = vmax.bf16 %v1744_v15, %v1686_v24  ;;  %v1793_v48 = vmax.bf16 %v1745_v44, %v1687_v17  ;;  %v831_v8 = vshll.u32 %v3510_v14, 16 }
  0xcf   : > { %v3530_v22 = vmax.bf16 %v1752_v37, %v1696_v4  ;;  %v3532_v54 = vmax.bf16 %v1753_v61, %v1697_v49  ;;  %v3534_v35 = vmax.bf16 %v1760_v36, %v1706_v5  ;;  %v830_v51 = vrot.slane %v828_v57, 4 }
  0xd0   : > { %v3537_v59 = vmax.bf16 %v1761_v56, %v1707_v40  ;;  %v833_v26 = vrot.slane %v831_v8, 5  ;;  %v837_v23 = vshll.u32 %v249_v52, 16  ;;  %v842_v3 = vshrl.u32 %v3524_v58, 16 }
  0xd1   : > { %v1840_v42 = vmax.bf16 %v3530_v22, %v1792_v41  ;;  %v1841_v1 = vmax.bf16 %v3532_v54, %v1793_v48  ;;  %v845_v20 = vshll.u32 %v3524_v58, 16  ;;  %v851_v7 = vshll.u32 %v251_v34, 16 }
  0xd2   : > { %v834_v33 = vor.u32 %v833_v26, %v830_v51  ;;  %v839_v30 = vrot.slane %v837_v23, 5  ;;  %v844_v53 = vrot.slane %v842_v3, 4  ;;  %v968_v0 = vshrl.u32 %v268_v16, 16 }
  0xd3   : > { %v1872_v11 = vmax.bf16 %v1840_v42, %v3534_v35  ;;  %v1873_v39 = vmax.bf16 %v1841_v1, %v3537_v59  ;;  %v847_v62 = vrot.slane %v845_v20, 5  ;;  %v853_v28 = vrot.slane %v851_v7, 5 }
  0xd4   : > { %v835_v24 = vrot.slane %v834_v33, 4  ;;  %v970_v60 = vrot.slane %v968_v0, 4  ;;  %v971_v17 = vshll.u32 %v268_v16, 16  ;;  %v977_v4 = vshll.u32 %v269_v12, 16 }
  0xd5   : > { %v2392_v49 = vcombine.low %v1872_v11, %v1873_v39  ;;  %v848_v5 = vor.u32 %v847_v62, %v844_v53  ;;  %v982_v40 = vshrl.u32 %v270_v29, 16  ;;  %v985_v15 = vshll.u32 %v270_v29, 16 }
  0xd6   : > { %v840_v44 = vsel %vm2582_vm3, %v835_v24, %v839_v30  ;;  %v973_v37 = vrot.slane %v971_v17, 5  ;;  %v979_v61 = vrot.slane %v977_v4, 5  ;;  %v991_v36 = vshll.u32 %v271_v10, 16 }
  0xd7   : > { %2448 = vmatmul.mubr.msk.bf16.gmra.mrb[4].mxu0 %vm1986_vm7, %v2392_v49  ;;  %v849_v57 = vrot.slane %v848_v5, 4  ;;  %v984_v56 = vrot.slane %v982_v40, 4  ;;  %v987_v41 = vrot.slane %v985_v15, 5  ;;  %v1233_v48 = vmax.bf16 %v840_v44, %v3510_v14 }
  0xd8   : > { %v974_v8 = vor.u32 %v973_v37, %v970_v60  ;;  %v993_v51 = vrot.slane %v991_v36, 5  ;;  %v2366_v26 = vrot.slane %v3510_v14, 9  ;;  %v1532_v23 = vrot.slane %v249_v52, 5  ;;  %v273_v37 = vld [vmem:[%s2533_s19 + $0x194] sm:$0x1] }
  0xd9   : > { %v854_v3 = vsel %vm2582_vm3, %v849_v57, %v853_v28  ;;  %v988_v42 = vor.u32 %v987_v41, %v984_v56  ;;  %v2367_v1 = vrot.slane %v3524_v58, 9  ;;  %v1536_v20 = vrot.slane %v251_v34, 5  ;;  %v274_v36 = vld [vmem:[%s2533_s19 + $0x198] sm:$0xf]  ;;  %v276_v41 = vld [vmem:[%s2533_s19 + $0x1a0] sm:$0xf] }
  0xda   : > { %v975_v7 = vrot.slane %v974_v8, 4  ;;  %v1234_v33 = vmax.bf16 %v854_v3, %v3524_v58  ;;  %v1533_v30 = vsel %vm2737_vm6, %v2366_v26, %v1532_v23  ;;  %v2376_v53 = vrot.slane %v268_v16, 9  ;;  %v277_v3 = vld [vmem:[%s2533_s19 + $0x1a4] sm:$0x1] }
  0xdb   : > { %v989_v0 = vrot.slane %v988_v42, 4  ;;  %v1537_v14 = vsel %vm2737_vm6, %v2367_v1, %v1536_v20  ;;  %v1572_v52 = vrot.slane %v269_v12, 5  ;;  %v2377_v11 = vrot.slane %v270_v29, 9  ;;  %v3570_v12 = vld [vmem:[%s2533_s19 + $0x190] sm:$0xf] }
  0xdc   : > { %v980_v39 = vsel %vm2582_vm3, %v975_v7, %v979_v61  ;;  %v1576_v62 = vrot.slane %v271_v10, 5  ;;  %v1716_v34 = vmax.bf16 %v1533_v30, %v1233_v48  ;;  %v1717_v28 = vmax.bf16 %v1537_v14, %v1234_v33  ;;  %v278_v20 = vld [vmem:[%s2533_s19 + $0x1a8] sm:$0xf]  ;;  %v279_v14 = vld [vmem:[%s2533_s19 + $0x1ac] sm:$0x1] }
  0xdd   : > { %v994_v58 = vsel %vm2582_vm3, %v989_v0, %v993_v51  ;;  %v1243_v24 = vmax.bf16 %v980_v39, %v268_v16  ;;  %v1573_v60 = vsel %vm2737_vm6, %v2376_v53, %v1572_v52  ;;  %v1768_v17 = vmax.bf16 %v3385_v46, %v3383_v2 }
  0xde   : > { %v1244_v4 = vmax.bf16 %v994_v58, %v270_v29  ;;  %v1577_v10 = vsel %vm2737_vm6, %v2377_v11, %v1576_v62  ;;  %v1769_v49 = vmax.bf16 %v1716_v34, %v3385_v46  ;;  %v1776_v5 = vmax.bf16 %v3412_v38, %v3401_v6 }
  0xdf   : > { %v1726_v16 = vmax.bf16 %v1573_v60, %v1243_v24  ;;  %v3577_v40 = vmax.bf16 %v1768_v17, %v1716_v34  ;;  %v3860_v2 = vmax.bf16 %v2833_v25, %v2827_v50  ;;  %v3861_v29 = vmax.bf16 %v2836_v27, %v2830_v9  ;;  %v275_v27 = vld [vmem:[%s2533_s19 + $0x19c] sm:$0x1] }
  0xe0   : > { %v1727_v46 = vmax.bf16 %v1577_v10, %v1244_v4  ;;  %v3588_v61 = vmax.bf16 %v1769_v49, %v1717_v28  ;;  %v996_v6 = vshrl.u32 %v3570_v12, 16  ;;  %v999_v57 = vshll.u32 %v3570_v12, 16 }
  0xe1   : > { %v1874_v15 = vmax.bf16 %v3860_v2, %v2993_v13  ;;  %v1875_v44 = vmax.bf16 %v3861_v29, %v3000_v63  ;;  %v1777_v56 = vmax.bf16 %v1726_v16, %v3412_v38  ;;  %v3594_v50 = vmax.bf16 %v1776_v5, %v1726_v16 }
  0xe2   : > { %v1856_v25 = vmax.bf16 %v3577_v40, %v3534_v35  ;;  %v1857_v48 = vmax.bf16 %v3588_v61, %v3537_v59  ;;  %v998_v8 = vrot.slane %v996_v6, 4  ;;  %v1001_v51 = vrot.slane %v999_v57, 5 }
  0xe3   : > { %v2393_v9 = vcombine.low %v1874_v15, %v1875_v44  ;;  %v1005_v26 = vshll.u32 %v273_v37, 16  ;;  %v3602_v23 = vmax.bf16 %v1777_v56, %v1727_v46  ;;  %v1010_v42 = vshrl.u32 %v274_v36, 16 }
  0xe4   : > { %v1888_v38 = vmax.bf16 %v1856_v25, %v3594_v50  ;;  %v1013_v1 = vshll.u32 %v274_v36, 16  ;;  %v1002_v7 = vor.u32 %v1001_v51, %v998_v8  ;;  %v1019_v30 = vshll.u32 %v275_v27, 16 }
  0xe5   : > { %2451 = vmatprep.mubr.msk.bf16.mxu0 %vm1986_vm7, %v2393_v9  ;;  %v1007_v33 = vrot.slane %v1005_v26, 5  ;;  %v1024_v53 = vshrl.u32 %v276_v41, 16  ;;  %v1889_v0 = vmax.bf16 %v1857_v48, %v3602_v23  ;;  %v1012_v52 = vrot.slane %v1010_v42, 4 }
  0xe6   : > { %v1015_v11 = vrot.slane %v1013_v1, 5  ;;  %v1027_v39 = vshll.u32 %v276_v41, 16  ;;  %v1003_v62 = vrot.slane %v1002_v7, 4  ;;  %v1021_v34 = vrot.slane %v1019_v30, 5 }
  0xe7   : > { %v1026_v28 = vrot.slane %v1024_v53, 4  ;;  %v1033_v58 = vshll.u32 %v277_v3, 16  ;;  %v2400_v24 = vcombine.low %v1888_v38, %v1889_v0  ;;  %v1038_v4 = vshrl.u32 %v278_v20, 16 }
  0xe8   : > { %v1016_v60 = vor.u32 %v1015_v11, %v1012_v52  ;;  %v1029_v17 = vrot.slane %v1027_v39, 5  ;;  %v1008_v10 = vsel %vm2582_vm3, %v1003_v62, %v1007_v33  ;;  %v1041_v5 = vshll.u32 %v278_v20, 16  ;;  %v280_v33 = vld [vmem:[%s2533_s19 + $0x1b0] sm:$0xf]  ;;  %v281_v62 = vld [vmem:[%s2533_s19 + $0x1b4] sm:$0x1] }
  0xe9   : > { %v1035_v49 = vrot.slane %v1033_v58, 5  ;;  %v1047_v16 = vshll.u32 %v279_v14, 16  ;;  %2464 = vmatmul.mubr.msk.bf16.gmra.mrb[4].mxu1 %vm1986_vm7, %v2400_v24  ;;  %v1040_v29 = vrot.slane %v1038_v4, 4  ;;  %v1245_v44 = vmax.bf16 %v1008_v10, %v3570_v12 }
  0xea   : > { %v1017_v2 = vrot.slane %v1016_v60, 4  ;;  %v1030_v15 = vor.u32 %v1029_v17, %v1026_v28  ;;  %v1043_v46 = vrot.slane %v1041_v5, 5  ;;  %v2378_v57 = vrot.slane %v3570_v12, 9 }
  0xeb   : > { %v1049_v6 = vrot.slane %v1047_v16, 5  ;;  %v1580_v56 = vrot.slane %v273_v37, 5  ;;  %v2379_v48 = vrot.slane %v274_v36, 9  ;;  %v1584_v8 = vrot.slane %v275_v27, 5 }
  0xec   : > { %v1022_v25 = vsel %vm2582_vm3, %v1017_v2, %v1021_v34  ;;  %v1031_v9 = vrot.slane %v1030_v15, 4  ;;  %v1044_v51 = vor.u32 %v1043_v46, %v1040_v29  ;;  %v2380_v42 = vrot.slane %v276_v41, 9  ;;  %v282_v34 = vld [vmem:[%s2533_s19 + $0x1b8] sm:$0xf] }
  0xed   : > { %v1246_v26 = vmax.bf16 %v1022_v25, %v274_v36  ;;  %v1581_v38 = vsel %vm2737_vm6, %v2378_v57, %v1580_v56  ;;  %v1585_v12 = vsel %vm2737_vm6, %v2379_v48, %v1584_v8  ;;  %v1588_v37 = vrot.slane %v277_v3, 5 }
  0xee   : > { %v1036_v1 = vsel %vm2582_vm3, %v1031_v9, %v1035_v49  ;;  %v2381_v7 = vrot.slane %v278_v20, 9  ;;  %v1045_v30 = vrot.slane %v1044_v51, 4  ;;  %v1592_v27 = vrot.slane %v279_v14, 5  ;;  %v3863_v51 = vld [vmem:[#allocation2_spill] sm:$0xff] }
  0xef   : > { %v1247_v53 = vmax.bf16 %v1036_v1, %v276_v41  ;;  %v1728_v36 = vmax.bf16 %v1581_v38, %v1245_v44  ;;  %v1589_v0 = vsel %vm2737_vm6, %v2380_v42, %v1588_v37  ;;  %v1729_v52 = vmax.bf16 %v1585_v12, %v1246_v26 }
  0xf0   : > { %v1844_v11 = vmax.bf16 %v3138_v31, %v3132_v18  ;;  %v1845_v39 = vmax.bf16 %v3144_v55, %v3135_v21  ;;  %v1050_v3 = vsel %vm2582_vm3, %v1045_v30, %v1049_v6  ;;  %v1593_v41 = vsel %vm2737_vm6, %v2381_v7, %v1592_v27  ;;  %v283_v31 = vld [vmem:[%s2533_s19 + $0x1bc] sm:$0x1]  ;;  %v3865_v30 = vld [vmem:[#allocation3_spill] sm:$0xff]  ;;  %v285_v27 = vld [vmem:[%s2533_s19 + $0x1c4] sm:$0x1] }
  0xf1   : > { %v3635_v14 = vmax.bf16 %v1589_v0, %v1247_v53  ;;  %v1052_v28 = vshrl.u32 %v280_v33, 16  ;;  %v1248_v58 = vmax.bf16 %v1050_v3, %v278_v20  ;;  %v1778_v24 = vmax.bf16 %v1729_v52, %v1728_v36  ;;  %v3866_v0 = vld [vmem:[#allocation4_spill] sm:$0xff]  ;;  %v286_v3 = vld [vmem:[%s2533_s19 + $0x1c8] sm:$0xf] }
  0xf2   : > { %v1876_v60 = vmax.bf16 %v1844_v11, %v3202_v43  ;;  %v1877_v18 = vmax.bf16 %v1845_v39, %v3209_v19  ;;  %v1055_v17 = vshll.u32 %v280_v33, 16  ;;  %v1061_v4 = vshll.u32 %v281_v62, 16  ;;  %v3867_v11 = vld [vmem:[#allocation5_spill] sm:$0xff]  ;;  %v3868_v39 = vld [vmem:[#allocation7_spill] sm:$0xff] }
  0xf3   : > { %v1779_v21 = vmax.bf16 %v3635_v14, %v1729_v52  ;;  %v1054_v55 = vrot.slane %v1052_v28, 4  ;;  %v3642_v10 = vmax.bf16 %v1593_v41, %v1248_v58  ;;  %v1826_v49 = vmax.bf16 %v1778_v24, %v3635_v14  ;;  %v3869_v28 = vld [vmem:[#allocation6_spill] sm:$0xff]  ;;  %v3870_v58 = vld [vmem:[#allocation8_spill] sm:$0xff] }
  0xf4   : > { %v2394_v5 = vcombine.low %v1876_v60, %v1877_v18  ;;  %v1066_v16 = vshrl.u32 %v282_v34, 16  ;;  %v1057_v2 = vrot.slane %v1055_v17, 5  ;;  %v1063_v15 = vrot.slane %v1061_v4, 5  ;;  %v3871_v18 = vld [vmem:[#allocation9_spill] sm:$0xff]  ;;  %v3872_v4 = vld [vmem:[#allocation10_spill] sm:$0xff] }
  0xf5   : > { %v1069_v20 = vshll.u32 %v282_v34, 16  ;;  %v1075_v29 = vshll.u32 %v283_v31, 16  ;;  %v1827_v44 = vmax.bf16 %v1779_v21, %v3642_v10  ;;  %v3862_v46 = vmax.bf16 %v3006_v47, %v2993_v13  ;;  %v284_v47 = vld [vmem:[%s2533_s19 + $0x1c0] sm:$0xf]  ;;  %v287_v21 = vld [vmem:[%s2533_s19 + $0x1cc] sm:$0x1] }
  0xf6   : > { %2452 = vmatmul.mubr.msk.bf16.gmra.mrb[8].mxu0 %vm1986_vm7, %v2394_v5  ;;  %v1068_v57 = vrot.slane %v1066_v16, 4  ;;  %v2382_v56 = vrot.slane %v280_v33, 9  ;;  %v1058_v25 = vor.u32 %v1057_v2, %v1054_v55  ;;  %v1596_v8 = vrot.slane %v281_v62, 5 }
  0xf7   : > { %v1890_v6 = vmax.bf16 %v3862_v46, %v1826_v49  ;;  %v1071_v9 = vrot.slane %v1069_v20, 5  ;;  %v1077_v48 = vrot.slane %v1075_v29, 5  ;;  %v3864_v26 = vmax.bf16 %v3863_v51, %v3000_v63 }
  0xf8   : > { %v2383_v42 = vrot.slane %v282_v34, 9  ;;  %v1600_v1 = vrot.slane %v283_v31, 5  ;;  %v1780_v13 = vmax.bf16 %v3642_v10, %v3635_v14  ;;  %v1059_v12 = vrot.slane %v1058_v25, 4 }
  0xf9   : > { %v1891_v38 = vmax.bf16 %v3864_v26, %v1827_v44  ;;  %v1072_v37 = vor.u32 %v1071_v9, %v1068_v57  ;;  %v1597_v7 = vsel %vm2737_vm6, %v2382_v56, %v1596_v8  ;;  %v1860_v53 = vmax.bf16 %v3865_v30, %v3202_v43 }
  0xfa   : > { %v1601_v63 = vsel %vm2737_vm6, %v2383_v42, %v1600_v1  ;;  %v1861_v52 = vmax.bf16 %v3866_v0, %v3209_v19  ;;  %v1846_v62 = vmax.bf16 %v3868_v39, %v3867_v11  ;;  %v1064_v41 = vsel %vm2582_vm3, %v1059_v12, %v1063_v15  ;;  %v289_v11 = vld [vmem:[%s2533_s19 + $0x1d4] sm:$0x1] }
  0xfb   : > { %v2401_v36 = vcombine.low %v1890_v6, %v1891_v38  ;;  %v1073_v14 = vrot.slane %v1072_v37, 4  ;;  %v1847_v24 = vmax.bf16 %v3870_v58, %v3869_v28  ;;  %v1080_v43 = vshrl.u32 %v284_v47, 16  ;;  %v290_v58 = vld [vmem:[%s2533_s19 + $0x1d8] sm:$0xf] }
  0xfc   : > { %v1249_v60 = vmax.bf16 %v1064_v41, %v280_v33  ;;  %v1878_v31 = vmax.bf16 %v1846_v62, %v3871_v18  ;;  %v1083_v55 = vshll.u32 %v284_v47, 16  ;;  %v1089_v19 = vshll.u32 %v285_v27, 16 }
  0xfd   : > { %2467 = vmatprep.mubr.msk.bf16.mxu1 %vm1986_vm7, %v2401_v36  ;;  %v1078_v17 = vsel %vm2582_vm3, %v1073_v14, %v1077_v48  ;;  %v1879_v49 = vmax.bf16 %v1847_v24, %v3872_v4  ;;  %v1082_v5 = vrot.slane %v1080_v43, 4  ;;  %v1094_v16 = vshrl.u32 %v286_v3, 16 }
  0xfe   : > { %v1250_v2 = vmax.bf16 %v1078_v17, %v282_v34  ;;  %v1732_v15 = vmax.bf16 %v1597_v7, %v1249_v60  ;;  %v1085_v20 = vrot.slane %v1083_v55, 5  ;;  %v1091_v29 = vrot.slane %v1089_v19, 5 }
  0xff   : > { %v2395_v44 = vcombine.low %v1878_v31, %v1879_v49  ;;  %v1096_v46 = vrot.slane %v1094_v16, 4  ;;  %v1097_v6 = vshll.u32 %v286_v3, 16  ;;  %v1103_v33 = vshll.u32 %v287_v21, 16 }
 0x100   : > { %v1733_v57 = vmax.bf16 %v1601_v63, %v1250_v2  ;;  %v1781_v56 = vmax.bf16 %v1732_v15, %v3642_v10  ;;  %v1828_v25 = vmax.bf16 %v1780_v13, %v1732_v15  ;;  %v1086_v9 = vor.u32 %v1085_v20, %v1082_v5  ;;  %v288_v13 = vld [vmem:[%s2533_s19 + $0x1d0] sm:$0xf]  ;;  %v3873_v63 = vld [vmem:[#allocation11_spill] sm:$0xff] }
 0x101   : > { %2455 = vmatprep.mubr.msk.bf16.mxu0 %vm1986_vm7, %v2395_v44  ;;  %v1099_v48 = vrot.slane %v1097_v6, 5  ;;  %v1105_v8 = vrot.slane %v1103_v33, 5  ;;  %v2384_v51 = vrot.slane %v284_v47, 9  ;;  %v1604_v34 = vrot.slane %v285_v27, 5  ;;  %v3874_v27 = vld [vmem:[#allocation12_spill] sm:$0xff] }
 0x102   : > { %v1829_v26 = vmax.bf16 %v1781_v56, %v1733_v57  ;;  %v1892_v38 = vmax.bf16 %v1860_v53, %v1828_v25  ;;  %v1087_v42 = vrot.slane %v1086_v9, 4  ;;  %v2385_v1 = vrot.slane %v286_v3, 9 }
 0x103   : > { %v1100_v12 = vor.u32 %v1099_v48, %v1096_v46  ;;  %v1605_v37 = vsel %vm2737_vm6, %v2384_v51, %v1604_v34  ;;  %v1608_v10 = vrot.slane %v287_v21, 5  ;;  %v1782_v7 = vmax.bf16 %v1733_v57, %v1732_v15 }
 0x104   : > { %v1893_v30 = vmax.bf16 %v1861_v52, %v1829_v26  ;;  %v1092_v36 = vsel %vm2582_vm3, %v1087_v42, %v1091_v29  ;;  %v1862_v0 = vmax.bf16 %v3873_v63, %v3871_v18  ;;  %v1863_v53 = vmax.bf16 %v3874_v27, %v3872_v4 }
 0x105   : > { %v1101_v39 = vrot.slane %v1100_v12, 4  ;;  %v1251_v62 = vmax.bf16 %v1092_v36, %v284_v47  ;;  %v1609_v41 = vsel %vm2737_vm6, %v2385_v1, %v1608_v10  ;;  %v1848_v14 = vmax.bf16 %v3534_v35, %v3530_v22  ;;  %v291_v22 = vld [vmem:[%s2533_s19 + $0x1dc] sm:$0x1] }
 0x106   : > { %v2402_v52 = vcombine.low %v1892_v38, %v1893_v30  ;;  %v1849_v28 = vmax.bf16 %v3537_v59, %v3532_v54  ;;  %v1108_v24 = vshrl.u32 %v288_v13, 16  ;;  %v1111_v43 = vshll.u32 %v288_v13, 16 }
 0x107   : > { %v1106_v60 = vsel %vm2582_vm3, %v1101_v39, %v1105_v8  ;;  %v1734_v18 = vmax.bf16 %v1605_v37, %v1251_v62  ;;  %v1880_v31 = vmax.bf16 %v1848_v14, %v3577_v40  ;;  %v1117_v47 = vshll.u32 %v289_v11, 16 }
 0x108   : > { %2468 = vmatmul.mubr.msk.bf16.gmra.mrb[8].mxu1 %vm1986_vm7, %v2402_v52  ;;  %v1252_v21 = vmax.bf16 %v1106_v60, %v286_v3  ;;  %v1881_v55 = vmax.bf16 %v1849_v28, %v3588_v61  ;;  %v1110_v35 = vrot.slane %v1108_v24, 4  ;;  %v1113_v19 = vrot.slane %v1111_v43, 5 }
 0x109   : > { %v1783_v17 = vmax.bf16 %v1734_v18, %v1733_v57  ;;  %v1830_v54 = vmax.bf16 %v1782_v7, %v1734_v18  ;;  %v1119_v59 = vrot.slane %v1117_v47, 5  ;;  %v1122_v4 = vshrl.u32 %v290_v58, 16 }
 0x10a   : > { %v1735_v49 = vmax.bf16 %v1609_v41, %v1252_v21  ;;  %v2396_v5 = vcombine.low %v1880_v31, %v1881_v55  ;;  %v1114_v16 = vor.u32 %v1113_v19, %v1110_v35  ;;  %v1125_v2 = vshll.u32 %v290_v58, 16 }
 0x10b   : > { %v1894_v15 = vmax.bf16 %v1862_v0, %v1830_v54  ;;  %v1124_v20 = vrot.slane %v1122_v4, 4  ;;  %v1131_v29 = vshll.u32 %v291_v22, 16  ;;  %v2386_v44 = vrot.slane %v288_v13, 9 }
 0x10c   : > { %v1831_v46 = vmax.bf16 %v1783_v17, %v1735_v49  ;;  %2456 = vmatmul.mubr.msk.bf16.gmra.mrb[12].mxu0 %vm1986_vm7, %v2396_v5  ;;  %v1115_v3 = vrot.slane %v1114_v16, 4  ;;  %v1127_v6 = vrot.slane %v1125_v2, 5  ;;  %v1612_v33 = vrot.slane %v289_v11, 5 }
 0x10d   : > { %v1133_v56 = vrot.slane %v1131_v29, 5  ;;  %v2387_v25 = vrot.slane %v290_v58, 9  ;;  %v1616_v57 = vrot.slane %v291_v22, 5  ;;  %v1784_v26 = vmax.bf16 %v1735_v49, %v1734_v18 }
 0x10e   : > { %v1895_v9 = vmax.bf16 %v1863_v53, %v1831_v46  ;;  %v1120_v48 = vsel %vm2582_vm3, %v1115_v3, %v1119_v59  ;;  %v1128_v8 = vor.u32 %v1127_v6, %v1124_v20  ;;  %v1613_v51 = vsel %vm2737_vm6, %v2386_v44, %v1612_v33 }
 0x10f   : > { %v1253_v34 = vmax.bf16 %v1120_v48, %v288_v13  ;;  %v1617_v37 = vsel %vm2737_vm6, %v2387_v25, %v1616_v57  ;;  %v1864_v36 = vmax.bf16 %v3594_v50, %v3577_v40  ;;  %v1865_v63 = vmax.bf16 %v3602_v23, %v3588_v61 }
 0x110   : > { %v2403_v38 = vcombine.low %v1894_v15, %v1895_v9  ;;  %v1129_v42 = vrot.slane %v1128_v8, 4 }
 0x111   : > { %v1736_v1 = vmax.bf16 %v1613_v51, %v1253_v34 }
 0x112   : > { %2471 = vmatprep.mubr.msk.bf16.mxu1 %vm1986_vm7, %v2403_v38  ;;  %v1134_v12 = vsel %vm2582_vm3, %v1129_v42, %v1133_v56 }
 0x113   : > { %v1254_v10 = vmax.bf16 %v1134_v12, %v290_v58  ;;  %v1785_v7 = vmax.bf16 %v1736_v1, %v1735_v49  ;;  %v1832_v30 = vmax.bf16 %v1784_v26, %v1736_v1 }
 0x115   : > { %v1737_v13 = vmax.bf16 %v1617_v37, %v1254_v10  ;;  %v1896_v27 = vmax.bf16 %v1864_v36, %v1832_v30 }
 0x117   : > { %v1833_v0 = vmax.bf16 %v1785_v7, %v1737_v13 }
 0x119   : > { %v1897_v53 = vmax.bf16 %v1865_v63, %v1833_v0 }
 0x11b   : > { %v2404_v11 = vcombine.low %v1896_v27, %v1897_v53 }
 0x11d   : > { %2472 = vmatmul.mubr.msk.bf16.gmra.mrb[12].mxu1 %vm1986_vm7, %v2404_v11 }
 0x155   : > { %v2445_v45 = vpop.f32.mrb[0].mxu0 }
 0x156   : > { %v2082_v39 = vadd.f32 %v2445_v45, %v3721_v32  ;;  %v2073_v40 = vpop.f32.mrb[1].mxu0 }
 0x157   : > { %v2074_v61 = vadd.f32 %v3721_v32, %v2073_v40  ;;  %v2446_v50 = vpop.f32.mrb[2].mxu0 }
 0x158   : > { %v2202_v23 = vmax.f32 %v2082_v39, 0.0  ;;  %v2085_v62 = vadd.f32 %v2446_v50, %v3721_v32  ;;  %v2076_v41 = vpop.f32.mrb[3].mxu0 }
 0x159   : > { %v2200_v14 = vmax.f32 %v2074_v61, 0.0  ;;  %v2077_v52 = vadd.f32 %v3721_v32, %v2076_v41 }
 0x15a   : > { %2235 = vst.msk [vmem:[%s3728_s25 + $0x10] sm:$0xff] %vm2232_vm8, %v2202_v23  ;;  %v2203_v28 = vmax.f32 %v2085_v62, 0.0 }
 0x15b   : > { %2233 = vst.msk [vmem:[%s3728_s25] sm:$0xff] %vm2232_vm8, %v2200_v14  ;;  %v2201_v58 = vmax.f32 %v2077_v52, 0.0 }
 0x15c   : > { %2236 = vst.msk [vmem:[%s3728_s25 + $0x18] sm:$0xff] %vm2232_vm8, %v2203_v28 }
 0x15d   : > { %2234 = vst.msk [vmem:[%s3728_s25 + $0x8] sm:$0xff] %vm2232_vm8, %v2201_v58 }
 0x167   : > { %v2461_v24 = vpop.f32.mrb[0].mxu1 }
 0x168   : > { %v2146_v43 = vadd.f32 %v2461_v24, %v3721_v32  ;;  %v2137_v60 = vpop.f32.mrb[1].mxu1 }
 0x169   : > { %v2138_v18 = vadd.f32 %v3721_v32, %v2137_v60  ;;  %v2462_v31 = vpop.f32.mrb[2].mxu1 }
 0x16a   : > { %v2218_v47 = vmax.f32 %v2146_v43, 0.0  ;;  %v2149_v21 = vadd.f32 %v2462_v31, %v3721_v32  ;;  %v2140_v55 = vpop.f32.mrb[3].mxu1 }
 0x16b   : > { %v2216_v22 = vmax.f32 %v2138_v18, 0.0  ;;  %v2141_v35 = vadd.f32 %v3721_v32, %v2140_v55 }
 0x16c   : > { %2251 = vst.msk [vmem:[%s3728_s25 + $0x90] sm:$0xff] %vm2232_vm8, %v2218_v47  ;;  %v2219_v19 = vmax.f32 %v2149_v21, 0.0 }
 0x16d   : > { %2249 = vst.msk [vmem:[%s3728_s25 + $0x80] sm:$0xff] %vm2232_vm8, %v2216_v22  ;;  %v2217_v17 = vmax.f32 %v2141_v35, 0.0 }
 0x16e   : > { %2252 = vst.msk [vmem:[%s3728_s25 + $0x98] sm:$0xff] %vm2232_vm8, %v2219_v19 }
 0x16f   : > { %2250 = vst.msk [vmem:[%s3728_s25 + $0x88] sm:$0xff] %vm2232_vm8, %v2217_v17 }
 0x1aa   : > { %v2449_v54 = vpop.f32.mrb[4].mxu0 }
 0x1ab   : > { %v2098_v59 = vadd.f32 %v2449_v54, %v3721_v32  ;;  %v2089_v4 = vpop.f32.mrb[5].mxu0 }
 0x1ac   : > { %v2090_v49 = vadd.f32 %v3721_v32, %v2089_v4  ;;  %v2450_v5 = vpop.f32.mrb[6].mxu0 }
 0x1ad   : > { %v2206_v16 = vmax.f32 %v2098_v59, 0.0  ;;  %v2101_v2 = vadd.f32 %v2450_v5, %v3721_v32  ;;  %v2092_v15 = vpop.f32.mrb[7].mxu0 }
 0x1ae   : > { %v2204_v20 = vmax.f32 %v2090_v49, 0.0  ;;  %v2093_v29 = vadd.f32 %v3721_v32, %v2092_v15 }
 0x1af   : > { %2239 = vst.msk [vmem:[%s3728_s25 + $0x30] sm:$0xff] %vm2232_vm8, %v2206_v16  ;;  %v2207_v44 = vmax.f32 %v2101_v2, 0.0 }
 0x1b0   : > { %2237 = vst.msk [vmem:[%s3728_s25 + $0x20] sm:$0xff] %vm2232_vm8, %v2204_v20  ;;  %v2205_v46 = vmax.f32 %v2093_v29, 0.0 }
 0x1b1   : > { %2240 = vst.msk [vmem:[%s3728_s25 + $0x38] sm:$0xff] %vm2232_vm8, %v2207_v44 }
 0x1b2   : > { %2238 = vst.msk [vmem:[%s3728_s25 + $0x28] sm:$0xff] %vm2232_vm8, %v2205_v46 }
 0x1bc   : > { %v2465_v3 = vpop.f32.mrb[4].mxu1 }
 0x1bd   : > { %v2162_v6 = vadd.f32 %v2465_v3, %v3721_v32  ;;  %v2153_v33 = vpop.f32.mrb[5].mxu1 }
 0x1be   : > { %v2154_v56 = vadd.f32 %v3721_v32, %v2153_v33  ;;  %v2466_v25 = vpop.f32.mrb[6].mxu1 }
 0x1bf   : > { %v2222_v57 = vmax.f32 %v2162_v6, 0.0  ;;  %v2165_v9 = vadd.f32 %v2466_v25, %v3721_v32  ;;  %v2156_v48 = vpop.f32.mrb[7].mxu1 }
 0x1c0   : > { %v2220_v8 = vmax.f32 %v2154_v56, 0.0  ;;  %v2157_v51 = vadd.f32 %v3721_v32, %v2156_v48 }
 0x1c1   : > { %2255 = vst.msk [vmem:[%s3728_s25 + $0xb0] sm:$0xff] %vm2232_vm8, %v2222_v57  ;;  %v2223_v34 = vmax.f32 %v2165_v9, 0.0 }
 0x1c2   : > { %2253 = vst.msk [vmem:[%s3728_s25 + $0xa0] sm:$0xff] %vm2232_vm8, %v2220_v8  ;;  %v2221_v26 = vmax.f32 %v2157_v51, 0.0 }
 0x1c3   : > { %2256 = vst.msk [vmem:[%s3728_s25 + $0xb8] sm:$0xff] %vm2232_vm8, %v2223_v34 }
 0x1c4   : > { %2254 = vst.msk [vmem:[%s3728_s25 + $0xa8] sm:$0xff] %vm2232_vm8, %v2221_v26 }
 0x1c9   : > { %v2453_v38 = vpop.f32.mrb[8].mxu0 }
 0x1ca   : > { %v2114_v42 = vadd.f32 %v2453_v38, %v3721_v32  ;;  %v2105_v1 = vpop.f32.mrb[9].mxu0 }
 0x1cb   : > { %v2106_v12 = vadd.f32 %v3721_v32, %v2105_v1  ;;  %v2454_v37 = vpop.f32.mrb[10].mxu0 }
 0x1cc   : > { %v2210_v10 = vmax.f32 %v2114_v42, 0.0  ;;  %v2117_v7 = vadd.f32 %v2454_v37, %v3721_v32  ;;  %v2108_v30 = vpop.f32.mrb[11].mxu0 }
 0x1cd   : > { %v2208_v36 = vmax.f32 %v2106_v12, 0.0  ;;  %v2109_v13 = vadd.f32 %v3721_v32, %v2108_v30 }
 0x1ce   : > { %2243 = vst.msk [vmem:[%s3728_s25 + $0x50] sm:$0xff] %vm2232_vm8, %v2210_v10  ;;  %v2211_v63 = vmax.f32 %v2117_v7, 0.0 }
 0x1cf   : > { %2241 = vst.msk [vmem:[%s3728_s25 + $0x40] sm:$0xff] %vm2232_vm8, %v2208_v36  ;;  %v2209_v0 = vmax.f32 %v2109_v13, 0.0 }
 0x1d0   : > { %2244 = vst.msk [vmem:[%s3728_s25 + $0x58] sm:$0xff] %vm2232_vm8, %v2211_v63 }
 0x1d1   : > { %2242 = vst.msk [vmem:[%s3728_s25 + $0x48] sm:$0xff] %vm2232_vm8, %v2209_v0 }
 0x1db   : > { %v2469_v27 = vpop.f32.mrb[8].mxu1 }
 0x1dc   : > { %v2178_v53 = vadd.f32 %v2469_v27, %v3721_v32  ;;  %v2169_v11 = vpop.f32.mrb[9].mxu1 }
 0x1dd   : > { %v2170_v45 = vadd.f32 %v3721_v32, %v2169_v11  ;;  %v2470_v39 = vpop.f32.mrb[10].mxu1 }
 0x1de   : > { %v2226_v40 = vmax.f32 %v2178_v53, 0.0  ;;  %v2181_v61 = vadd.f32 %v2470_v39, %v3721_v32  ;;  %v2172_v50 = vpop.f32.mrb[11].mxu1 }
 0x1df   : > { %v2224_v23 = vmax.f32 %v2170_v45, 0.0  ;;  %v2173_v62 = vadd.f32 %v3721_v32, %v2172_v50  ;;  %v2457_v41 = vpop.f32.mrb[12].mxu0 }
 0x1e0   : > { %2259 = vst.msk [vmem:[%s3728_s25 + $0xd0] sm:$0xff] %vm2232_vm8, %v2226_v40  ;;  %v2227_v14 = vmax.f32 %v2181_v61, 0.0  ;;  %v2130_v52 = vadd.f32 %v2457_v41, %v3721_v32  ;;  %v2121_v28 = vpop.f32.mrb[13].mxu0 }
 0x1e1   : > { %2257 = vst.msk [vmem:[%s3728_s25 + $0xc0] sm:$0xff] %vm2232_vm8, %v2224_v23  ;;  %v2225_v58 = vmax.f32 %v2173_v62, 0.0  ;;  %v2122_v24 = vadd.f32 %v3721_v32, %v2121_v28  ;;  %v2458_v43 = vpop.f32.mrb[14].mxu0 }
 0x1e2   : > { %2260 = vst.msk [vmem:[%s3728_s25 + $0xd8] sm:$0xff] %vm2232_vm8, %v2227_v14  ;;  %v2214_v60 = vmax.f32 %v2130_v52, 0.0  ;;  %v2133_v18 = vadd.f32 %v2458_v43, %v3721_v32  ;;  %v2124_v31 = vpop.f32.mrb[15].mxu0 }
 0x1e3   : > { %2258 = vst.msk [vmem:[%s3728_s25 + $0xc8] sm:$0xff] %vm2232_vm8, %v2225_v58  ;;  %v2212_v47 = vmax.f32 %v2122_v24, 0.0  ;;  %v2125_v21 = vadd.f32 %v3721_v32, %v2124_v31 }
 0x1e4   : > { %2247 = vst.msk [vmem:[%s3728_s25 + $0x70] sm:$0xff] %vm2232_vm8, %v2214_v60  ;;  %v2215_v55 = vmax.f32 %v2133_v18, 0.0 }
 0x1e5   : > { %2245 = vst.msk [vmem:[%s3728_s25 + $0x60] sm:$0xff] %vm2232_vm8, %v2212_v47  ;;  %v2213_v22 = vmax.f32 %v2125_v21, 0.0 }
 0x1e6   : > { %2248 = vst.msk [vmem:[%s3728_s25 + $0x78] sm:$0xff] %vm2232_vm8, %v2215_v55 }
 0x1e7   : > { %2246 = vst.msk [vmem:[%s3728_s25 + $0x68] sm:$0xff] %vm2232_vm8, %v2213_v22 }
 0x1f0   : > { %v2473_v35 = vpop.f32.mrb[12].mxu1 }
 0x1f1   : > { %v2194_v19 = vadd.f32 %v2473_v35, %v3721_v32  ;;  %v2185_v17 = vpop.f32.mrb[13].mxu1 }
 0x1f2   : > { %v2186_v54 = vadd.f32 %v3721_v32, %v2185_v17  ;;  %v2474_v59 = vpop.f32.mrb[14].mxu1 }
 0x1f3   : > { %v2230_v4 = vmax.f32 %v2194_v19, 0.0  ;;  %v2197_v49 = vadd.f32 %v2474_v59, %v3721_v32  ;;  %v2188_v5 = vpop.f32.mrb[15].mxu1 }
 0x1f4   : > { %v2228_v16 = vmax.f32 %v2186_v54, 0.0  ;;  %v2189_v2 = vadd.f32 %v3721_v32, %v2188_v5 }
 0x1f5   : > { %2263 = vst.msk [vmem:[%s3728_s25 + $0xf0] sm:$0xff] %vm2232_vm8, %v2230_v4  ;;  %v2231_v15 = vmax.f32 %v2197_v49, 0.0 }
 0x1f6   : > { %2261 = vst.msk [vmem:[%s3728_s25 + $0xe0] sm:$0xff] %vm2232_vm8, %v2228_v16  ;;  %v2229_v20 = vmax.f32 %v2189_v2, 0.0 }
 0x1f7   : > { %2264 = vst.msk [vmem:[%s3728_s25 + $0xf8] sm:$0xff] %vm2232_vm8, %v2231_v15 }
 0x1f8   : > { %2262 = vst.msk [vmem:[%s3728_s25 + $0xe8] sm:$0xff] %vm2232_vm8, %v2229_v20 }
 0x1f9 PF: > { %s13_s12 = sadd.s32 1, %s2494_s12  }
 0x1fa   : > { %p10_p4 = scmp.ge.s32.totalorder %s13_s12, 4  }
 0x1fc   :  { %12 = sbr.rel (!%p10_p4) target bundleno = 1 (0x1), region = 62 }

// kernel: inception_block_forward.13
= control target key start
LH: loop header
LB: loop body
LE: loop exit
PB: predicated region body
PF: predicated region fallthrough
CT: control target
= control target key end

     0   :  { %13 = vsyncpa [#allocation3], 0  ;;  %s2683_s0 = inlined_call_operand.vmem [shape: f32[2,256,6], index: 0, kind: input, shape index: {}]   ;;  %s2684_s1 = inlined_call_operand.vmem [shape: f32[2,256,8], index: 1, kind: input, shape index: {}]   ;;  %s2685_s2 = inlined_call_operand.vmem [shape: f32[2,256,8], index: 2, kind: input, shape index: {}]   ;;  %s2686_s3 = inlined_call_operand.vmem [shape: f32[2,256,6], index: 3, kind: input, shape index: {}]   ;;  %s2687_s4 = inlined_call_operand.vmem [shape: f32[2,1,6], index: 4, kind: input, shape index: {}]   ;;  %s2688_s5 = inlined_call_operand.vmem [shape: f32[2,1,8], index: 5, kind: input, shape index: {}]   ;;  %s2689_s6 = inlined_call_operand.vmem [shape: f32[2,1,8], index: 6, kind: input, shape index: {}]   ;;  %s2690_s7 = inlined_call_operand.vmem [shape: f32[2,1,6], index: 7, kind: input, shape index: {}]   ;;  %s2691_s8 = inlined_call_operand.hbm [shape: f32[2,256,28], index: 8, kind: output, shape index: {}]  }
   0x1   :  { %15 = vsyncpa [#allocation3 + $0x1], 0  ;;  %s1703_s27 = smov 0   ;;  %s1705_s28 = smov 0  }
   0x2   :  { %s1707_s29 = smov 0   ;;  %s1709_s30 = smov 0  }
   0x3   :  { %s1711_s9 = smov 0   ;;  %s1713_s10 = smov 0  }
   0x4 LB: > { %s1484_s11 = sadd.s32 4294967295, %s1650_s10   ;;  %s1485_s12 = sadd.s32 4294967294, %s1650_s10   ;;  %s1650_s10 = sphi %s1713_s10, %s21_s10   ;;  %s1646_s9 = sphi %s1711_s9, %s2722_s9   ;;  %s1642_s30 = sphi %s1709_s30, %s2721_s30   ;;  %s1638_s29 = sphi %s1707_s29, %s2720_s29   ;;  %s1634_s28 = sphi %s1705_s28, %s2719_s28   ;;  %s1630_s27 = sphi %s1703_s27, %s2718_s27  }
   0x5   : > { %s33_s13 = sadd.s32 1, %s1646_s9  ;;  %s258_s14 = sadd.s32 1, %s1638_s29 }
   0x6   : > { %p35_p0 = scmp.ge.s32.totalorder %s33_s13, 2  ;;  %p268_p1 = scmp.ne.s32.totalorder %s1638_s29, %s1634_s28 }
   0x7   : > { %p269_p2 = scmp.eq.s32.totalorder %s1484_s11, 1  ;;  %p274_p3 = scmp.ne.s32.totalorder %s1634_s28, %s1630_s27 }
   0x8   : > { %s2724_s13 = smov (%p35_p0, %s33_s13), 0  ;;  %p275_p5 = scmp.eq.s32.totalorder %s1485_s12, 1 }
   0x9   : > { %p1743_p4 = por %p269_p2, %p268_p1  ;;  %s253_s16 = ssub.s32 %s1646_s9, %s2724_s13 }
   0xa   : > { %p1488_p6 = scmp.ge.s32.totalorder %s1650_s10, 1  ;;  %p256_p7 = scmp.eq.s32.totalorder %s253_s16, 0 }
   0xb   : > { %p1750_p8 = por %p275_p5, %p274_p3  ;;  %p369_p9 = scmp.lt.s32.totalorder %s1650_s10, 3 }
   0xc   : > { %s1756_s18 = scalar_select %p256_p7, %s1638_s29, %s258_s14  }
   0xd   : > { %p370_p10 = pnand %p1488_p6, %p369_p9 }
   0xf   : > { %373 = sbr.rel (%p370_p10) target bundleno = 350 (0x15e), region = 52 }
  0x16   : > { %p447_p11 = scmp.lt.s32.totalorder %s1642_s30, 1  ;;  %s1652_s11 = smov 6   ;;  %vm570_vm0 = vcmask 48128   ;;  %vm802_vm1 = vcmask 113712   ;;  %vm1034_vm2 = vcmask 179312   ;;  %vm1266_vm3 = vcmask 228528  }
  0x17   : > { %s443_s14 = sand.u32 1, %s1634_s28   ;;  %s1655_s21 = smov [#allocation2]  }
  0x18   : > { %s1760_s19 = scalar_select %p447_p11, %s1642_s30, 1 }
  0x1a   : > { %s1763_s20 = sshll.u32 %s1760_s19, 8  ;;  %s491_s26 = scalar_lea.vmem %s2688_s5, %s1760_s19 }
  0x1b   : > { %s1769_s23 = scalar_lea.vmem %s2684_s1, %s1763_s20  ;;  %v1776_v1 = vld [vmem:[%s491_s26] ss:$0 sm:$0xff]  ;;  %s1799_s16 = scalar_lea.vmem %s2685_s2, %s1763_s20 }
  0x1c   : > { %v605_v0 = vld [vmem:[%s1769_s23 + $0x10] sm:$0xff]  ;;  %v603_v2 = vld [vmem:[%s1769_s23] sm:$0xff]  ;;  %v606_v5 = vld [vmem:[%s1769_s23 + $0x18] sm:$0xff]  ;;  %s494_s24 = scalar_lea.vmem %s2689_s6, %s1760_s19  ;;  %s488_s12 = scalar_lea.vmem %s2687_s4, %s1760_s19 }
  0x1d   : > { %v644_v3 = vmul.f32 %v1776_v1, %v605_v0  ;;  %v642_v4 = vmul.f32 %v1776_v1, %v603_v2  ;;  %v604_v6 = vld [vmem:[%s1769_s23 + $0x8] sm:$0xff]  ;;  %v645_v7 = vmul.f32 %v1776_v1, %v606_v5  ;;  %v607_v10 = vld [vmem:[%s1769_s23 + $0x20] sm:$0xff]  ;;  %v610_v13 = vld [vmem:[%s1769_s23 + $0x38] sm:$0xff]  ;;  %s1893_s26 = scalar_lea.vmem %s2683_s0, %s1763_s20  ;;  %s497_s22 = scalar_lea.vmem %s2690_s7, %s1760_s19 }
  0x1e   : > { %v643_v8 = vmul.f32 %v1776_v1, %v604_v6  ;;  %v608_v9 = vld [vmem:[%s1769_s23 + $0x28] sm:$0xff]  ;;  %v646_v12 = vmul.f32 %v1776_v1, %v607_v10  ;;  %v609_v14 = vld [vmem:[%s1769_s23 + $0x30] sm:$0xff]  ;;  %v649_v16 = vmul.f32 %v1776_v1, %v610_v13  ;;  %v611_v18 = vld [vmem:[%s1769_s23 + $0x40] sm:$0xff]  ;;  %s1653_s19 = smov 14  }
  0x1f   : > { %710 = vrot.lane.b32.xlu1 %v644_v3, %s1652_s11  ;;  %706 = vrot.lane.b32.xlu0 %v642_v4, %s1652_s11  ;;  %v647_v11 = vmul.f32 %v1776_v1, %v608_v9  ;;  %v612_v15 = vld [vmem:[%s1769_s23 + $0x48] sm:$0xff]  ;;  %v648_v17 = vmul.f32 %v1776_v1, %v609_v14  ;;  %v614_v19 = vld [vmem:[%s1769_s23 + $0x58] sm:$0xff]  ;;  %v650_v30 = vmul.f32 %v1776_v1, %v611_v18 }
  0x20   : > { %v836_v20 = vld [vmem:[%s1799_s16 + $0x8] sm:$0xff]  ;;  %v1813_v21 = vld [vmem:[%s494_s24] ss:$0 sm:$0xff]  ;;  %v651_v23 = vmul.f32 %v1776_v1, %v612_v15  ;;  %v613_v24 = vld [vmem:[%s1769_s23 + $0x50] sm:$0xff]  ;;  %v653_v48 = vmul.f32 %v1776_v1, %v614_v19  ;;  %s1975_s24 = scalar_lea.vmem %s2686_s3, %s1763_s20 }
  0x21   : > { %v835_v22 = vld [vmem:[%s1799_s16] sm:$0xff]  ;;  %v1819_v25 = vmul.f32 %v1813_v21, %v836_v20  ;;  %v838_v27 = vld [vmem:[%s1799_s16 + $0x18] sm:$0xff]  ;;  %v837_v28 = vld [vmem:[%s1799_s16 + $0x10] sm:$0xff]  ;;  %v652_v57 = vmul.f32 %v1776_v1, %v613_v24 }
  0x22   : > { %v1822_v26 = vmul.f32 %v1813_v21, %v835_v22  ;;  %v840_v29 = vld [vmem:[%s1799_s16 + $0x28] sm:$0xff]  ;;  %v1833_v31 = vmul.f32 %v1813_v21, %v838_v27  ;;  %v1836_v32 = vmul.f32 %v1813_v21, %v837_v28  ;;  %v839_v34 = vld [vmem:[%s1799_s16 + $0x20] sm:$0xff]  ;;  %v842_v35 = vld [vmem:[%s1799_s16 + $0x38] sm:$0xff] }
  0x23   : > { %712 = vrot.lane.b32.xlu1 %v645_v7, %s1652_s11  ;;  %708 = vrot.lane.b32.xlu0 %v643_v8, %s1652_s11  ;;  %v1839_v33 = vmul.f32 %v1813_v21, %v840_v29  ;;  %v841_v36 = vld [vmem:[%s1799_s16 + $0x30] sm:$0xff]  ;;  %v1847_v37 = vmul.f32 %v1813_v21, %v839_v34  ;;  %v1850_v38 = vmul.f32 %v1813_v21, %v842_v35  ;;  %v844_v40 = vld [vmem:[%s1799_s16 + $0x48] sm:$0xff] }
  0x24   : > { %v1853_v39 = vmul.f32 %v1813_v21, %v841_v36  ;;  %v843_v41 = vld [vmem:[%s1799_s16 + $0x40] sm:$0xff]  ;;  %v616_v42 = vld [vmem:[%s1769_s23 + $0x68] sm:$0xff]  ;;  %v1860_v43 = vmul.f32 %v1813_v21, %v844_v40  ;;  %v846_v45 = vld [vmem:[%s1799_s16 + $0x58] sm:$0xff] }
  0x25   : > { %v1863_v44 = vmul.f32 %v1813_v21, %v843_v41  ;;  %v845_v46 = vld [vmem:[%s1799_s16 + $0x50] sm:$0xff]  ;;  %v848_v47 = vld [vmem:[%s1799_s16 + $0x68] sm:$0xff]  ;;  %v615_v49 = vld [vmem:[%s1769_s23 + $0x60] sm:$0xff]  ;;  %v1871_v50 = vmul.f32 %v1813_v21, %v846_v45 }
  0x26   : > { %v1874_v51 = vmul.f32 %v1813_v21, %v845_v46  ;;  %v1877_v52 = vmul.f32 %v1813_v21, %v848_v47  ;;  %v847_v53 = vld [vmem:[%s1799_s16 + $0x60] sm:$0xff]  ;;  %v850_v54 = vld [vmem:[%s1799_s16 + $0x78] sm:$0xff]  ;;  %v849_v55 = vld [vmem:[%s1799_s16 + $0x70] sm:$0xff]  ;;  %v654_v19 = vmul.f32 %v1776_v1, %v615_v49 }
  0x27   : > { %716 = vrot.lane.b32.xlu1 %v647_v11, %s1652_s11  ;;  %714 = vrot.lane.b32.xlu0 %v646_v12, %s1652_s11  ;;  %v1887_v56 = vld [vmem:[%s488_s12] ss:$0 sm:$0xff]  ;;  %v1897_v58 = vmul.f32 %v1813_v21, %v847_v53  ;;  %v1900_v59 = vmul.f32 %v1813_v21, %v850_v54  ;;  %v1903_v60 = vmul.f32 %v1813_v21, %v849_v55  ;;  %v852_v61 = vld [vmem:[%s1799_s16 + $0x88] sm:$0xff]  ;;  %s1910_s12 = sshll.u32 %s443_s14, 8 }
  0x28   : > { %v851_v62 = vld [vmem:[%s1799_s16 + $0x80] sm:$0xff]  ;;  %v854_v63 = vld [vmem:[%s1799_s16 + $0x98] sm:$0xff]  ;;  %v1915_v0 = vmul.f32 %v1813_v21, %v852_v61  ;;  %v853_v4 = vld [vmem:[%s1799_s16 + $0x90] sm:$0xff]  ;;  %v655_v11 = vmul.f32 %v1776_v1, %v616_v42  ;;  %s1979_s25 = scalar_lea.vmem [#allocation2], %s1910_s12 }
  0x29   : > { %v1918_v2 = vmul.f32 %v1813_v21, %v851_v62  ;;  %v1921_v3 = vmul.f32 %v1813_v21, %v854_v63  ;;  %v856_v5 = vld [vmem:[%s1799_s16 + $0xa8] sm:$0xff]  ;;  %v1926_v6 = vmul.f32 %v1813_v21, %v853_v4  ;;  %v855_v8 = vld [vmem:[%s1799_s16 + $0xa0] sm:$0xff]  ;;  %v858_v9 = vld [vmem:[%s1799_s16 + $0xb8] sm:$0xff] }
  0x2a   : > { %v1929_v7 = vmul.f32 %v1813_v21, %v856_v5  ;;  %v857_v10 = vld [vmem:[%s1799_s16 + $0xb0] sm:$0xff]  ;;  %v618_v12 = vld [vmem:[%s1769_s23 + $0x78] sm:$0xff]  ;;  %v1937_v13 = vmul.f32 %v1813_v21, %v855_v8  ;;  %v1940_v14 = vmul.f32 %v1813_v21, %v858_v9  ;;  %v499_v27 = vld [vmem:[%s1893_s26] sm:$0xff] }
  0x2b   : > { %720 = vrot.lane.b32.xlu1 %v649_v16, %s1652_s11  ;;  %718 = vrot.lane.b32.xlu0 %v648_v17, %s1652_s11  ;;  %v1943_v15 = vmul.f32 %v1813_v21, %v857_v10  ;;  %v860_v16 = vld [vmem:[%s1799_s16 + $0xc8] sm:$0xff]  ;;  %v859_v17 = vld [vmem:[%s1799_s16 + $0xc0] sm:$0xff]  ;;  %v657_v63 = vmul.f32 %v1776_v1, %v618_v12 }
  0x2c   : > { %v501_v18 = vld [vmem:[%s1893_s26 + $0x10] sm:$0xff]  ;;  %v1951_v22 = vmul.f32 %v1813_v21, %v860_v16  ;;  %v862_v28 = vld [vmem:[%s1799_s16 + $0xd8] sm:$0xff]  ;;  %v500_v40 = vld [vmem:[%s1893_s26 + $0x8] sm:$0xff] }
  0x2d   : > { %v617_v20 = vld [vmem:[%s1769_s23 + $0x70] sm:$0xff]  ;;  %v540_v24 = vmul.f32 %v1887_v56, %v501_v18  ;;  %v1964_v34 = vmul.f32 %v1813_v21, %v862_v28  ;;  %v502_v36 = vld [vmem:[%s1893_s26 + $0x18] sm:$0xff]  ;;  %v620_v41 = vld [vmem:[%s1769_s23 + $0x88] sm:$0xff]  ;;  %v539_v45 = vmul.f32 %v1887_v56, %v500_v40 }
  0x2e   : > { %v861_v29 = vld [vmem:[%s1799_s16 + $0xd0] sm:$0xff]  ;;  %v541_v42 = vmul.f32 %v1887_v56, %v502_v36  ;;  %v864_v46 = vld [vmem:[%s1799_s16 + $0xe8] sm:$0xff]  ;;  %v863_v47 = vld [vmem:[%s1799_s16 + $0xe0] sm:$0xff]  ;;  %v656_v16 = vmul.f32 %v1776_v1, %v617_v20 }
  0x2f   : > { %724 = vrot.lane.b32.xlu1 %v651_v23, %s1652_s11  ;;  %722 = vrot.lane.b32.xlu0 %v650_v30, %s1652_s11  ;;  %v1954_v23 = vmul.f32 %v1813_v21, %v859_v17  ;;  %v538_v30 = vmul.f32 %v1887_v56, %v499_v27  ;;  %v1967_v35 = vmul.f32 %v1813_v21, %v861_v29  ;;  %v619_v49 = vld [vmem:[%s1769_s23 + $0x80] sm:$0xff]  ;;  %v866_v61 = vld [vmem:[%s1799_s16 + $0xf8] sm:$0xff] }
  0x30   : > { %573 = vst.msk [vmem:[%s1979_s25 + $0x10] sm:$0xff] %vm570_vm0, %v540_v24  ;;  %v1996_v53 = vmul.f32 %v1813_v21, %v864_v46  ;;  %v1999_v54 = vmul.f32 %v1813_v21, %v863_v47  ;;  %v865_v62 = vld [vmem:[%s1799_s16 + $0xf0] sm:$0xff]  ;;  %574 = vst.msk [vmem:[%s1979_s25 + $0x18] sm:$0xff] %vm570_vm0, %v541_v42  ;;  %v2012_v5 = vmul.f32 %v1813_v21, %v866_v61  ;;  %v506_v9 = vld [vmem:[%s1893_s26 + $0x38] sm:$0xff]  ;;  %s1315_s16 = sshll.u32 %s1979_s25, 4  ;;  %s2629_s16 = int_to_ptr.vmem [resolvable:$true] %s1315_s16 }
  0x31   : > { %571 = vst.msk [vmem:[%s1979_s25] sm:$0xff] %vm570_vm0, %v538_v30  ;;  %572 = vst.msk [vmem:[%s1979_s25 + $0x8] sm:$0xff] %vm570_vm0, %v539_v45  ;;  %v2015_v8 = vmul.f32 %v1813_v21, %v865_v62  ;;  %v505_v10 = vld [vmem:[%s1893_s26 + $0x30] sm:$0xff]  ;;  %v1068_v12 = vld [vmem:[%s1975_s24 + $0x8] sm:$0xff]  ;;  %v545_v21 = vmul.f32 %v1887_v56, %v506_v9  ;;  %v659_v30 = vmul.f32 %v1776_v1, %v620_v41  ;;  %s1572_s20 = scalar_lea.vmem %s2629_s16, 4096 }
  0x32   : > { %v544_v17 = vmul.f32 %v1887_v56, %v505_v10  ;;  %v2027_v18 = vld [vmem:[%s497_s22] ss:$0 sm:$0xff]  ;;  %v622_v27 = vld [vmem:[%s1769_s23 + $0x98] sm:$0xff]  ;;  %v508_v20 = vld [vmem:[%s1893_s26 + $0x48] sm:$0xff]  ;;  %v658_v41 = vmul.f32 %v1776_v1, %v619_v49  ;;  %p1573_p12 = scmp.ne.s32.totalorder %s2629_s16, %s1572_s20  ;;  %s1576_s22 = sshll.u32 %s1655_s21, 4  ;;  %s1577_s22 = int_to_ptr.vmem [resolvable:$false] %s1576_s22 }
  0x33   : > { %728 = vrot.lane.b32.xlu1 %v653_v48, %s1652_s11  ;;  %726 = vrot.lane.b32.xlu0 %v652_v57, %s1652_s11  ;;  %v504_v48 = vld [vmem:[%s1893_s26 + $0x28] sm:$0xff]  ;;  %v503_v57 = vld [vmem:[%s1893_s26 + $0x20] sm:$0xff]  ;;  %v547_v40 = vmul.f32 %v1887_v56, %v508_v20  ;;  %p1579_p1 = scmp.lt.s32.totalorder %s2629_s16, %s1577_s22 }
  0x34   : > { %v543_v55 = vmul.f32 %v1887_v56, %v504_v48  ;;  %v542_v4 = vmul.f32 %v1887_v56, %v503_v57  ;;  %v1067_v24 = vld [vmem:[%s1975_s24] sm:$0xff]  ;;  %v1070_v29 = vld [vmem:[%s1975_s24 + $0x18] sm:$0xff]  ;;  %v621_v36 = vld [vmem:[%s1769_s23 + $0x90] sm:$0xff]  ;;  %578 = vst.msk [vmem:[%s1979_s25 + $0x38] sm:$0xff] %vm570_vm0, %v545_v21  ;;  %p1574_p13 = pnand %p1573_p12, %p1743_p4 }
  0x35   : > { %v507_v28 = vld [vmem:[%s1893_s26 + $0x40] sm:$0xff]  ;;  %577 = vst.msk [vmem:[%s1979_s25 + $0x30] sm:$0xff] %vm570_vm0, %v544_v17  ;;  %v2051_v45 = vmul.f32 %v2027_v18, %v1070_v29  ;;  %v1069_v46 = vld [vmem:[%s1975_s24 + $0x10] sm:$0xff]  ;;  %v510_v47 = vld [vmem:[%s1893_s26 + $0x58] sm:$0xff] }
  0x36   : > { %576 = vst.msk [vmem:[%s1979_s25 + $0x28] sm:$0xff] %vm570_vm0, %v543_v55  ;;  %575 = vst.msk [vmem:[%s1979_s25 + $0x20] sm:$0xff] %vm570_vm0, %v542_v4  ;;  %v546_v42 = vmul.f32 %v1887_v56, %v507_v28  ;;  %v509_v48 = vld [vmem:[%s1893_s26 + $0x50] sm:$0xff]  ;;  %v2058_v55 = vmul.f32 %v2027_v18, %v1069_v46  ;;  %v549_v57 = vmul.f32 %v1887_v56, %v510_v47  ;;  %v1072_v62 = vld [vmem:[%s1975_s24 + $0x28] sm:$0xff]  ;;  %p1575_p0 = pneg %p1574_p13 }
  0x37   : > { %732 = vrot.lane.b32.xlu1 %v655_v11, %s1652_s11  ;;  %730 = vrot.lane.b32.xlu0 %v654_v19, %s1652_s11  ;;  %v2034_v11 = vmul.f32 %v2027_v18, %v1068_v12  ;;  %v2037_v19 = vmul.f32 %v2027_v18, %v1067_v24  ;;  %v548_v61 = vmul.f32 %v1887_v56, %v509_v48  ;;  %v1071_v4 = vld [vmem:[%s1975_s24 + $0x20] sm:$0xff]  ;;  %v512_v9 = vld [vmem:[%s1893_s26 + $0x68] sm:$0xff] }
  0x38   : > { %580 = vst.msk [vmem:[%s1979_s25 + $0x48] sm:$0xff] %vm570_vm0, %v547_v40  ;;  %579 = vst.msk [vmem:[%s1979_s25 + $0x40] sm:$0xff] %vm570_vm0, %v546_v42  ;;  %v2072_v49 = vmul.f32 %v2027_v18, %v1072_v62  ;;  %v2075_v10 = vmul.f32 %v2027_v18, %v1071_v4  ;;  %v551_v12 = vmul.f32 %v1887_v56, %v512_v9  ;;  %v511_v21 = vld [vmem:[%s1893_s26 + $0x60] sm:$0xff]  ;;  %v624_v17 = vld [vmem:[%s1769_s23 + $0xa8] sm:$0xff] }
  0x39   : > { %582 = vst.msk [vmem:[%s1979_s25 + $0x58] sm:$0xff] %vm570_vm0, %v549_v57  ;;  %581 = vst.msk [vmem:[%s1979_s25 + $0x50] sm:$0xff] %vm570_vm0, %v548_v61  ;;  %v1073_v20 = vld [vmem:[%s1975_s24 + $0x30] sm:$0xff]  ;;  %v514_v28 = vld [vmem:[%s1893_s26 + $0x78] sm:$0xff]  ;;  %v661_v40 = vmul.f32 %v1776_v1, %v622_v27  ;;  %v660_v4 = vmul.f32 %v1776_v1, %v621_v36 }
  0x3a   : > { %v513_v29 = vld [vmem:[%s1893_s26 + $0x70] sm:$0xff]  ;;  %v623_v42 = vld [vmem:[%s1769_s23 + $0xa0] sm:$0xff]  ;;  %584 = vst.msk [vmem:[%s1979_s25 + $0x68] sm:$0xff] %vm570_vm0, %v551_v12  ;;  %v2097_v46 = vmul.f32 %v2027_v18, %v1073_v20  ;;  %v553_v47 = vmul.f32 %v1887_v56, %v514_v28  ;;  %v1076_v57 = vld [vmem:[%s1975_s24 + $0x48] sm:$0xff] }
  0x3b   : > { %736 = vrot.lane.b32.xlu1 %v657_v63, %s1652_s11  ;;  %734 = vrot.lane.b32.xlu0 %v656_v16, %s1652_s11  ;;  %v1074_v63 = vld [vmem:[%s1975_s24 + $0x38] sm:$0xff]  ;;  %v550_v16 = vmul.f32 %v1887_v56, %v511_v21  ;;  %v552_v48 = vmul.f32 %v1887_v56, %v513_v29  ;;  %v1075_v61 = vld [vmem:[%s1975_s24 + $0x40] sm:$0xff]  ;;  %v2108_v27 = vmul.f32 %v2027_v18, %v1076_v57 }
  0x3c   : > { %v2087_v24 = vmul.f32 %v2027_v18, %v1074_v63  ;;  %v516_v62 = vld [vmem:[%s1893_s26 + $0x88] sm:$0xff]  ;;  %v2111_v9 = vmul.f32 %v2027_v18, %v1075_v61  ;;  %v515_v21 = vld [vmem:[%s1893_s26 + $0x80] sm:$0xff]  ;;  %v1078_v63 = vld [vmem:[%s1975_s24 + $0x58] sm:$0xff]  ;;  %586 = vst.msk [vmem:[%s1979_s25 + $0x78] sm:$0xff] %vm570_vm0, %v553_v47 }
  0x3d   : > { %583 = vst.msk [vmem:[%s1979_s25 + $0x60] sm:$0xff] %vm570_vm0, %v550_v16  ;;  %v555_v12 = vmul.f32 %v1887_v56, %v516_v62  ;;  %v1077_v20 = vld [vmem:[%s1975_s24 + $0x50] sm:$0xff]  ;;  %585 = vst.msk [vmem:[%s1979_s25 + $0x70] sm:$0xff] %vm570_vm0, %v552_v48  ;;  %v554_v36 = vmul.f32 %v1887_v56, %v515_v21  ;;  %v2125_v16 = vmul.f32 %v2027_v18, %v1078_v63  ;;  %v518_v29 = vld [vmem:[%s1893_s26 + $0x98] sm:$0xff] }
  0x3e   : > { %v2128_v28 = vmul.f32 %v2027_v18, %v1077_v20  ;;  %v557_v47 = vmul.f32 %v1887_v56, %v518_v29  ;;  %v1080_v57 = vld [vmem:[%s1975_s24 + $0x68] sm:$0xff]  ;;  %v1079_v61 = vld [vmem:[%s1975_s24 + $0x60] sm:$0xff]  ;;  %v663_v21 = vmul.f32 %v1776_v1, %v624_v17  ;;  %v625_v63 = vld [vmem:[%s1769_s23 + $0xb0] sm:$0xff]  ;;  %v662_v17 = vmul.f32 %v1776_v1, %v623_v42 }
  0x3f   : > { %740 = vrot.lane.b32.xlu1 %v659_v30, %s1652_s11  ;;  %738 = vrot.lane.b32.xlu0 %v658_v41, %s1652_s11  ;;  %2694 = vst [vmem:[#allocation5_spill] sm:$0xff] %v2125_v16  ;;  %v517_v30 = vld [vmem:[%s1893_s26 + $0x90] sm:$0xff]  ;;  %v626_v41 = vld [vmem:[%s1769_s23 + $0xb8] sm:$0xff]  ;;  %v2145_v20 = vmul.f32 %v2027_v18, %v1080_v57 }
  0x40   : > { %2695 = vst [vmem:[#allocation6_spill] sm:$0xff] %v2128_v28  ;;  %588 = vst.msk [vmem:[%s1979_s25 + $0x88] sm:$0xff] %vm570_vm0, %v555_v12  ;;  %v556_v48 = vmul.f32 %v1887_v56, %v517_v30  ;;  %v520_v62 = vld [vmem:[%s1893_s26 + $0xa8] sm:$0xff]  ;;  %v2148_v12 = vmul.f32 %v2027_v18, %v1079_v61  ;;  %v519_v30 = vld [vmem:[%s1893_s26 + $0xa0] sm:$0xff] }
  0x41   : > { %587 = vst.msk [vmem:[%s1979_s25 + $0x80] sm:$0xff] %vm570_vm0, %v554_v36  ;;  %v559_v29 = vmul.f32 %v1887_v56, %v520_v62  ;;  %v1082_v28 = vld [vmem:[%s1975_s24 + $0x78] sm:$0xff]  ;;  %v1081_v16 = vld [vmem:[%s1975_s24 + $0x70] sm:$0xff]  ;;  %590 = vst.msk [vmem:[%s1979_s25 + $0x98] sm:$0xff] %vm570_vm0, %v557_v47  ;;  %v558_v36 = vmul.f32 %v1887_v56, %v519_v30 }
  0x42   : > { %2696 = vst [vmem:[#allocation7_spill] sm:$0xff] %v2148_v12  ;;  %589 = vst.msk [vmem:[%s1979_s25 + $0x90] sm:$0xff] %vm570_vm0, %v556_v48  ;;  %v2161_v57 = vmul.f32 %v2027_v18, %v1082_v28  ;;  %v2164_v61 = vmul.f32 %v2027_v18, %v1081_v16  ;;  %v522_v62 = vld [vmem:[%s1893_s26 + $0xb8] sm:$0xff]  ;;  %v521_v12 = vld [vmem:[%s1893_s26 + $0xb0] sm:$0xff] }
  0x43   : > { %v1084_v42 = vld [vmem:[%s1975_s24 + $0x88] sm:$0xff]  ;;  %744 = vrot.lane.b32.xlu1 %v661_v40, %s1652_s11  ;;  %742 = vrot.lane.b32.xlu0 %v660_v4, %s1652_s11  ;;  %592 = vst.msk [vmem:[%s1979_s25 + $0xa8] sm:$0xff] %vm570_vm0, %v559_v29  ;;  %v561_v28 = vmul.f32 %v1887_v56, %v522_v62  ;;  %v560_v47 = vmul.f32 %v1887_v56, %v521_v12 }
  0x44   : > { %2697 = vst [vmem:[#allocation8_spill] sm:$0xff] %v2164_v61  ;;  %v2176_v16 = vmul.f32 %v2027_v18, %v1084_v42  ;;  %v1083_v48 = vld [vmem:[%s1975_s24 + $0x80] sm:$0xff]  ;;  %v524_v30 = vld [vmem:[%s1893_s26 + $0xc8] sm:$0xff]  ;;  %591 = vst.msk [vmem:[%s1979_s25 + $0xa0] sm:$0xff] %vm570_vm0, %v558_v36  ;;  %v665_v42 = vmul.f32 %v1776_v1, %v626_v41  ;;  %v664_v41 = vmul.f32 %v1776_v1, %v625_v63 }
  0x45   : > { %v2183_v40 = vmul.f32 %v2027_v18, %v1083_v48  ;;  %v563_v4 = vmul.f32 %v1887_v56, %v524_v30  ;;  %v523_v29 = vld [vmem:[%s1893_s26 + $0xc0] sm:$0xff]  ;;  %v1086_v62 = vld [vmem:[%s1975_s24 + $0x98] sm:$0xff]  ;;  %v1085_v12 = vld [vmem:[%s1975_s24 + $0x90] sm:$0xff]  ;;  %594 = vst.msk [vmem:[%s1979_s25 + $0xb8] sm:$0xff] %vm570_vm0, %v561_v28 }
  0x46   : > { %2698 = vst [vmem:[#allocation9_spill] sm:$0xff] %v2176_v16  ;;  %593 = vst.msk [vmem:[%s1979_s25 + $0xb0] sm:$0xff] %vm570_vm0, %v560_v47  ;;  %v562_v36 = vmul.f32 %v1887_v56, %v523_v29  ;;  %v2196_v48 = vmul.f32 %v2027_v18, %v1086_v62  ;;  %v2199_v30 = vmul.f32 %v2027_v18, %v1085_v12  ;;  %v525_v16 = vld [vmem:[%s1893_s26 + $0xd0] sm:$0xff]  ;;  %v1088_v61 = vld [vmem:[%s1975_s24 + $0xa8] sm:$0xff] }
  0x47   : > { %2699 = vst [vmem:[#allocation10_spill] sm:$0xff] %v2183_v40  ;;  %v526_v40 = vld [vmem:[%s1893_s26 + $0xd8] sm:$0xff]  ;;  %596 = vst.msk [vmem:[%s1979_s25 + $0xc8] sm:$0xff] %vm570_vm0, %v563_v4  ;;  %v564_v47 = vmul.f32 %v1887_v56, %v525_v16  ;;  %v2210_v29 = vmul.f32 %v2027_v18, %v1088_v61  ;;  %v1087_v62 = vld [vmem:[%s1975_s24 + $0xa0] sm:$0xff]  ;;  %748 = vrot.lane.b32.xlu1 %v663_v21, %s1652_s11 }
  0x48   : > { %2700 = vst [vmem:[#allocation11_spill] sm:$0xff] %v2199_v30  ;;  %v565_v28 = vmul.f32 %v1887_v56, %v526_v40  ;;  %v528_v12 = vld [vmem:[%s1893_s26 + $0xe8] sm:$0xff]  ;;  %v527_v30 = vld [vmem:[%s1893_s26 + $0xe0] sm:$0xff]  ;;  %746 = vrot.lane.b32.xlu0 %v662_v17, %s1652_s11  ;;  %595 = vst.msk [vmem:[%s1979_s25 + $0xc0] sm:$0xff] %vm570_vm0, %v562_v36  ;;  %v2221_v16 = vmul.f32 %v2027_v18, %v1087_v62 }
  0x49   : > { %v628_v63 = vld [vmem:[%s1769_s23 + $0xc8] sm:$0xff]  ;;  %v567_v61 = vmul.f32 %v1887_v56, %v528_v12  ;;  %v566_v40 = vmul.f32 %v1887_v56, %v527_v30  ;;  %v627_v4 = vld [vmem:[%s1769_s23 + $0xc0] sm:$0xff]  ;;  %597 = vst.msk [vmem:[%s1979_s25 + $0xd0] sm:$0xff] %vm570_vm0, %v564_v47  ;;  %v1090_v21 = vld [vmem:[%s1975_s24 + $0xb8] sm:$0xff] }
  0x4a   : > { %598 = vst.msk [vmem:[%s1979_s25 + $0xd8] sm:$0xff] %vm570_vm0, %v565_v28  ;;  %v1089_v17 = vld [vmem:[%s1975_s24 + $0xb0] sm:$0xff]  ;;  %v2237_v36 = vmul.f32 %v2027_v18, %v1090_v21  ;;  %v667_v28 = vmul.f32 %v1776_v1, %v628_v63  ;;  %v530_v47 = vld [vmem:[%s1893_s26 + $0xf8] sm:$0xff]  ;;  %v666_v12 = vmul.f32 %v1776_v1, %v627_v4  ;;  %v1091_v63 = vld [vmem:[%s1975_s24 + $0xc0] sm:$0xff] }
  0x4b   : > { %600 = vst.msk [vmem:[%s1979_s25 + $0xe8] sm:$0xff] %vm570_vm0, %v567_v61  ;;  %599 = vst.msk [vmem:[%s1979_s25 + $0xe0] sm:$0xff] %vm570_vm0, %v566_v40  ;;  %v2240_v30 = vmul.f32 %v2027_v18, %v1089_v17  ;;  %v529_v62 = vld [vmem:[%s1893_s26 + $0xf0] sm:$0xff]  ;;  %752 = vrot.lane.b32.xlu1 %v665_v42, %s1652_s11  ;;  %v569_v40 = vmul.f32 %v1887_v56, %v530_v47 }
  0x4c   : > { %750 = vrot.lane.b32.xlu0 %v664_v41, %s1652_s11  ;;  %v630_v61 = vld [vmem:[%s1769_s23 + $0xd8] sm:$0xff]  ;;  %v568_v21 = vmul.f32 %v1887_v56, %v529_v62  ;;  %v629_v17 = vld [vmem:[%s1769_s23 + $0xd0] sm:$0xff]  ;;  %v2262_v41 = vmul.f32 %v2027_v18, %v1091_v63  ;;  %v632_v47 = vld [vmem:[%s1769_s23 + $0xe8] sm:$0xff] }
  0x4d   : > { %2701 = vst [vmem:[#allocation12_spill] sm:$0xff] %v2240_v30  ;;  %v1092_v30 = vld [vmem:[%s1975_s24 + $0xc8] sm:$0xff]  ;;  %602 = vst.msk [vmem:[%s1979_s25 + $0xf8] sm:$0xff] %vm570_vm0, %v569_v40  ;;  %v669_v56 = vmul.f32 %v1776_v1, %v630_v61  ;;  %v668_v4 = vmul.f32 %v1776_v1, %v629_v17  ;;  %v631_v62 = vld [vmem:[%s1769_s23 + $0xe0] sm:$0xff] }
  0x4e   : > { %601 = vst.msk [vmem:[%s1979_s25 + $0xf0] sm:$0xff] %vm570_vm0, %v568_v21  ;;  %v2259_v42 = vmul.f32 %v2027_v18, %v1092_v30  ;;  %2703 = vst [vmem:[#allocation14_spill] sm:$0xff] %v2262_v41  ;;  %v1094_v40 = vld [vmem:[%s1975_s24 + $0xd8] sm:$0xff]  ;;  %v1093_v30 = vld [vmem:[%s1975_s24 + $0xd0] sm:$0xff] }
  0x4f   : > { %756 = vrot.lane.b32.xlu1 %v667_v28, %s1652_s11  ;;  %v2273_v21 = vmul.f32 %v2027_v18, %v1094_v40  ;;  %v2276_v63 = vmul.f32 %v2027_v18, %v1093_v30  ;;  %v671_v28 = vmul.f32 %v1776_v1, %v632_v47  ;;  %v634_v61 = vld [vmem:[%s1769_s23 + $0xf8] sm:$0xff]  ;;  %v633_v17 = vld [vmem:[%s1769_s23 + $0xf0] sm:$0xff]  ;;  %v1096_v41 = vld [vmem:[%s1975_s24 + $0xe8] sm:$0xff]  ;;  %s1654_s23 = smov 22  }
  0x50   : > { %2702 = vst [vmem:[#allocation13_spill] sm:$0xff] %v2259_v42  ;;  %754 = vrot.lane.b32.xlu0 %v666_v12, %s1652_s11  ;;  %v670_v12 = vmul.f32 %v1776_v1, %v631_v62  ;;  %v1095_v42 = vld [vmem:[%s1975_s24 + $0xe0] sm:$0xff]  ;;  %v2287_v40 = vmul.f32 %v2027_v18, %v1096_v41  ;;  %v1098_v47 = vld [vmem:[%s1975_s24 + $0xf8] sm:$0xff]  ;;  %v1097_v62 = vld [vmem:[%s1975_s24 + $0xf0] sm:$0xff] }
  0x51   : > { %2704 = vst [vmem:[#allocation15_spill] sm:$0xff] %v2273_v21  ;;  %2705 = vst [vmem:[#allocation16_spill] sm:$0xff] %v2276_v63  ;;  %v2290_v21 = vmul.f32 %v2027_v18, %v1095_v42  ;;  %v2299_v30 = vmul.f32 %v2027_v18, %v1098_v47  ;;  %v2302_v63 = vmul.f32 %v2027_v18, %v1097_v62 }
  0x53   : > { %760 = vrot.lane.b32.xlu1 %v669_v56, %s1652_s11  ;;  %v673_v56 = vmul.f32 %v1776_v1, %v634_v61 }
  0x54   : > { %758 = vrot.lane.b32.xlu0 %v668_v4, %s1652_s11  ;;  %v672_v4 = vmul.f32 %v1776_v1, %v633_v17 }
  0x57   : > { %764 = vrot.lane.b32.xlu1 %v671_v28, %s1652_s11 }
  0x58   : > { %762 = vrot.lane.b32.xlu0 %v670_v12, %s1652_s11 }
  0x5b   : > { %768 = vrot.lane.b32.xlu1 %v673_v56, %s1652_s11 }
  0x5c   : > { %766 = vrot.lane.b32.xlu0 %v672_v4, %s1652_s11  ;;  %s1511_s11 = sshll.u32 %s1642_s30, 12  ;;  %s2637_s30 = scalar_lea.sflag [#allocation3], %s443_s14 }
  0x5d   : > { %s2627_s24 = scalar_lea.hbm %s2691_s8, %s1511_s11 }
  0x5f   : > { %940 = vrot.lane.b32.xlu1 %v1819_v25, %s1653_s19 }
  0x60   : > { %938 = vrot.lane.b32.xlu0 %v1822_v26, %s1653_s19 }
  0x63   : > { %944 = vrot.lane.b32.xlu1 %v1833_v31, %s1653_s19 }
  0x64   : > { %942 = vrot.lane.b32.xlu0 %v1836_v32, %s1653_s19 }
  0x67   : > { %948 = vrot.lane.b32.xlu1 %v1839_v33, %s1653_s19 }
  0x68   : > { %946 = vrot.lane.b32.xlu0 %v1847_v37, %s1653_s19 }
  0x6b   : > { %952 = vrot.lane.b32.xlu1 %v1850_v38, %s1653_s19 }
  0x6c   : > { %950 = vrot.lane.b32.xlu0 %v1853_v39, %s1653_s19 }
  0x6f   : > { %956 = vrot.lane.b32.xlu1 %v1860_v43, %s1653_s19 }
  0x70   : > { %954 = vrot.lane.b32.xlu0 %v1863_v44, %s1653_s19 }
  0x73   : > { %960 = vrot.lane.b32.xlu1 %v1871_v50, %s1653_s19 }
  0x74   : > { %958 = vrot.lane.b32.xlu0 %v1874_v51, %s1653_s19 }
  0x77   : > { %964 = vrot.lane.b32.xlu1 %v1877_v52, %s1653_s19 }
  0x78   : > { %962 = vrot.lane.b32.xlu0 %v1897_v58, %s1653_s19 }
  0x7b   : > { %968 = vrot.lane.b32.xlu1 %v1900_v59, %s1653_s19 }
  0x7c   : > { %966 = vrot.lane.b32.xlu0 %v1903_v60, %s1653_s19 }
  0x7f   : > { %972 = vrot.lane.b32.xlu1 %v1915_v0, %s1653_s19 }
  0x80   : > { %970 = vrot.lane.b32.xlu0 %v1918_v2, %s1653_s19  ;;  %v2706_v2 = vld [vmem:[#allocation5_spill] sm:$0xff] }
  0x83   : > { %976 = vrot.lane.b32.xlu1 %v1921_v3, %s1653_s19  ;;  %v2707_v3 = vld [vmem:[#allocation6_spill] sm:$0xff] }
  0x84   : > { %974 = vrot.lane.b32.xlu0 %v1926_v6, %s1653_s19 }
  0x87   : > { %980 = vrot.lane.b32.xlu1 %v1929_v7, %s1653_s19 }
  0x88   : > { %978 = vrot.lane.b32.xlu0 %v1937_v13, %s1653_s19  ;;  %v2708_v13 = vld [vmem:[#allocation7_spill] sm:$0xff] }
  0x8b   : > { %984 = vrot.lane.b32.xlu1 %v1940_v14, %s1653_s19 }
  0x8c   : > { %982 = vrot.lane.b32.xlu0 %v1943_v15, %s1653_s19 }
  0x8f   : > { %988 = vrot.lane.b32.xlu1 %v1951_v22, %s1653_s19  ;;  %v2709_v22 = vld [vmem:[#allocation8_spill] sm:$0xff] }
  0x90   : > { %986 = vrot.lane.b32.xlu0 %v1954_v23, %s1653_s19 }
  0x91   : > { %v711_v1 = vpop.permute.xlu1 %710  ;;  %v707_v25 = vpop.permute.xlu0 %706 }
  0x92   : > { %805 = vst.msk [vmem:[%s1979_s25 + $0x10] sm:$0xff] %vm802_vm1, %v711_v1  ;;  %803 = vst.msk [vmem:[%s1979_s25] sm:$0xff] %vm802_vm1, %v707_v25 }
  0x93   : > { %992 = vrot.lane.b32.xlu1 %v1964_v34, %s1653_s19 }
  0x94   : > { %990 = vrot.lane.b32.xlu0 %v1967_v35, %s1653_s19  ;;  %v2710_v35 = vld [vmem:[#allocation9_spill] sm:$0xff] }
  0x95   : > { %v713_v26 = vpop.permute.xlu1 %712  ;;  %v709_v31 = vpop.permute.xlu0 %708 }
  0x96   : > { %806 = vst.msk [vmem:[%s1979_s25 + $0x18] sm:$0xff] %vm802_vm1, %v713_v26  ;;  %804 = vst.msk [vmem:[%s1979_s25 + $0x8] sm:$0xff] %vm802_vm1, %v709_v31 }
  0x97   : > { %996 = vrot.lane.b32.xlu1 %v1996_v53, %s1653_s19  ;;  %v2711_v53 = vld [vmem:[#allocation10_spill] sm:$0xff] }
  0x98   : > { %994 = vrot.lane.b32.xlu0 %v1999_v54, %s1653_s19 }
  0x99   : > { %v717_v32 = vpop.permute.xlu1 %716  ;;  %v715_v33 = vpop.permute.xlu0 %714 }
  0x9a   : > { %808 = vst.msk [vmem:[%s1979_s25 + $0x28] sm:$0xff] %vm802_vm1, %v717_v32  ;;  %807 = vst.msk [vmem:[%s1979_s25 + $0x20] sm:$0xff] %vm802_vm1, %v715_v33 }
  0x9b   : > { %1000 = vrot.lane.b32.xlu1 %v2012_v5, %s1653_s19 }
  0x9c   : > { %998 = vrot.lane.b32.xlu0 %v2015_v8, %s1653_s19  ;;  %v2712_v8 = vld [vmem:[#allocation11_spill] sm:$0xff]  ;;  %s1578_s19 = scalar_lea.vmem %s1577_s22, 8192 }
  0x9d   : > { %v721_v37 = vpop.permute.xlu1 %720  ;;  %v719_v38 = vpop.permute.xlu0 %718  ;;  %p1580_p2 = scmp.lt.s32.totalorder %s1578_s19, %s1572_s20 }
  0x9e   : > { %810 = vst.msk [vmem:[%s1979_s25 + $0x38] sm:$0xff] %vm802_vm1, %v721_v37  ;;  %809 = vst.msk [vmem:[%s1979_s25 + $0x30] sm:$0xff] %vm802_vm1, %v719_v38 }
  0x9f   : > { %1172 = vrot.lane.b32.xlu1 %v2034_v11, %s1654_s23  ;;  %p1581_p3 = por %p1580_p2, %p1579_p1 }
  0xa0   : > { %1170 = vrot.lane.b32.xlu0 %v2037_v19, %s1654_s23 }
  0xa1   : > { %v725_v39 = vpop.permute.xlu1 %724  ;;  %v723_v43 = vpop.permute.xlu0 %722  ;;  %p1582_p5 = pnand %p1581_p3, %p1575_p0 }
  0xa2   : > { %812 = vst.msk [vmem:[%s1979_s25 + $0x48] sm:$0xff] %vm802_vm1, %v725_v39  ;;  %811 = vst.msk [vmem:[%s1979_s25 + $0x40] sm:$0xff] %vm802_vm1, %v723_v43 }
  0xa3   : > { %1176 = vrot.lane.b32.xlu1 %v2051_v45, %s1654_s23 }
  0xa4   : > { %1174 = vrot.lane.b32.xlu0 %v2058_v55, %s1654_s23  ;;  %v2713_v55 = vld [vmem:[#allocation12_spill] sm:$0xff] }
  0xa5   : > { %v729_v44 = vpop.permute.xlu1 %728  ;;  %v727_v50 = vpop.permute.xlu0 %726 }
  0xa6   : > { %814 = vst.msk [vmem:[%s1979_s25 + $0x58] sm:$0xff] %vm802_vm1, %v729_v44  ;;  %813 = vst.msk [vmem:[%s1979_s25 + $0x50] sm:$0xff] %vm802_vm1, %v727_v50 }
  0xa7   : > { %1180 = vrot.lane.b32.xlu1 %v2072_v49, %s1654_s23 }
  0xa8   : > { %1178 = vrot.lane.b32.xlu0 %v2075_v10, %s1654_s23 }
  0xa9   : > { %v733_v51 = vpop.permute.xlu1 %732  ;;  %v731_v52 = vpop.permute.xlu0 %730 }
  0xaa   : > { %816 = vst.msk [vmem:[%s1979_s25 + $0x68] sm:$0xff] %vm802_vm1, %v733_v51  ;;  %815 = vst.msk [vmem:[%s1979_s25 + $0x60] sm:$0xff] %vm802_vm1, %v731_v52 }
  0xab   : > { %1184 = vrot.lane.b32.xlu1 %v2087_v24, %s1654_s23  ;;  %v2714_v24 = vld [vmem:[#allocation13_spill] sm:$0xff] }
  0xac   : > { %1182 = vrot.lane.b32.xlu0 %v2097_v46, %s1654_s23  ;;  %v2715_v46 = vld [vmem:[#allocation14_spill] sm:$0xff] }
  0xad   : > { %v737_v58 = vpop.permute.xlu1 %736  ;;  %v735_v59 = vpop.permute.xlu0 %734 }
  0xae   : > { %818 = vst.msk [vmem:[%s1979_s25 + $0x78] sm:$0xff] %vm802_vm1, %v737_v58  ;;  %817 = vst.msk [vmem:[%s1979_s25 + $0x70] sm:$0xff] %vm802_vm1, %v735_v59 }
  0xaf   : > { %1188 = vrot.lane.b32.xlu1 %v2108_v27, %s1654_s23 }
  0xb0   : > { %1186 = vrot.lane.b32.xlu0 %v2111_v9, %s1654_s23 }
  0xb1   : > { %v741_v60 = vpop.permute.xlu1 %740  ;;  %v739_v0 = vpop.permute.xlu0 %738 }
  0xb2   : > { %820 = vst.msk [vmem:[%s1979_s25 + $0x88] sm:$0xff] %vm802_vm1, %v741_v60  ;;  %819 = vst.msk [vmem:[%s1979_s25 + $0x80] sm:$0xff] %vm802_vm1, %v739_v0 }
  0xb3   : > { %1192 = vrot.lane.b32.xlu1 %v2706_v2, %s1654_s23 }
  0xb4   : > { %1190 = vrot.lane.b32.xlu0 %v2707_v3, %s1654_s23 }
  0xb5   : > { %v745_v6 = vpop.permute.xlu1 %744  ;;  %v743_v7 = vpop.permute.xlu0 %742 }
  0xb6   : > { %822 = vst.msk [vmem:[%s1979_s25 + $0x98] sm:$0xff] %vm802_vm1, %v745_v6  ;;  %821 = vst.msk [vmem:[%s1979_s25 + $0x90] sm:$0xff] %vm802_vm1, %v743_v7 }
  0xb7   : > { %1196 = vrot.lane.b32.xlu1 %v2145_v20, %s1654_s23  ;;  %v2716_v20 = vld [vmem:[#allocation15_spill] sm:$0xff] }
  0xb8   : > { %1194 = vrot.lane.b32.xlu0 %v2708_v13, %s1654_s23 }
  0xb9   : > { %v749_v14 = vpop.permute.xlu1 %748 }
  0xba   : > { %v747_v15 = vpop.permute.xlu0 %746  ;;  %824 = vst.msk [vmem:[%s1979_s25 + $0xa8] sm:$0xff] %vm802_vm1, %v749_v14 }
  0xbb   : > { %823 = vst.msk [vmem:[%s1979_s25 + $0xa0] sm:$0xff] %vm802_vm1, %v747_v15  ;;  %1200 = vrot.lane.b32.xlu1 %v2161_v57, %s1654_s23  ;;  %v2717_v57 = vld [vmem:[#allocation16_spill] sm:$0xff] }
  0xbc   : > { %1198 = vrot.lane.b32.xlu0 %v2709_v22, %s1654_s23 }
  0xbd   : > { %v753_v23 = vpop.permute.xlu1 %752 }
  0xbe   : > { %v751_v34 = vpop.permute.xlu0 %750  ;;  %826 = vst.msk [vmem:[%s1979_s25 + $0xb8] sm:$0xff] %vm802_vm1, %v753_v23 }
  0xbf   : > { %825 = vst.msk [vmem:[%s1979_s25 + $0xb0] sm:$0xff] %vm802_vm1, %v751_v34  ;;  %1204 = vrot.lane.b32.xlu1 %v2710_v35, %s1654_s23 }
  0xc0   : > { %1202 = vrot.lane.b32.xlu0 %v2711_v53, %s1654_s23 }
  0xc1   : > { %v757_v54 = vpop.permute.xlu1 %756 }
  0xc2   : > { %v755_v5 = vpop.permute.xlu0 %754  ;;  %828 = vst.msk [vmem:[%s1979_s25 + $0xc8] sm:$0xff] %vm802_vm1, %v757_v54 }
  0xc3   : > { %827 = vst.msk [vmem:[%s1979_s25 + $0xc0] sm:$0xff] %vm802_vm1, %v755_v5  ;;  %1208 = vrot.lane.b32.xlu1 %v2196_v48, %s1654_s23 }
  0xc4   : > { %1206 = vrot.lane.b32.xlu0 %v2712_v8, %s1654_s23 }
  0xc5   : > { %v761_v18 = vpop.permute.xlu1 %760 }
  0xc6   : > { %v759_v11 = vpop.permute.xlu0 %758  ;;  %830 = vst.msk [vmem:[%s1979_s25 + $0xd8] sm:$0xff] %vm802_vm1, %v761_v18 }
  0xc7   : > { %829 = vst.msk [vmem:[%s1979_s25 + $0xd0] sm:$0xff] %vm802_vm1, %v759_v11  ;;  %1212 = vrot.lane.b32.xlu1 %v2210_v29, %s1654_s23 }
  0xc8   : > { %1210 = vrot.lane.b32.xlu0 %v2221_v16, %s1654_s23 }
  0xc9   : > { %v765_v19 = vpop.permute.xlu1 %764 }
  0xca   : > { %v763_v45 = vpop.permute.xlu0 %762  ;;  %832 = vst.msk [vmem:[%s1979_s25 + $0xe8] sm:$0xff] %vm802_vm1, %v765_v19 }
  0xcb   : > { %831 = vst.msk [vmem:[%s1979_s25 + $0xe0] sm:$0xff] %vm802_vm1, %v763_v45  ;;  %1216 = vrot.lane.b32.xlu1 %v2237_v36, %s1654_s23 }
  0xcc   : > { %1214 = vrot.lane.b32.xlu0 %v2713_v55, %s1654_s23 }
  0xcd   : > { %v769_v49 = vpop.permute.xlu1 %768 }
  0xce   : > { %v767_v10 = vpop.permute.xlu0 %766  ;;  %834 = vst.msk [vmem:[%s1979_s25 + $0xf8] sm:$0xff] %vm802_vm1, %v769_v49 }
  0xcf   : > { %833 = vst.msk [vmem:[%s1979_s25 + $0xf0] sm:$0xff] %vm802_vm1, %v767_v10  ;;  %1220 = vrot.lane.b32.xlu1 %v2714_v24, %s1654_s23 }
  0xd0   : > { %1218 = vrot.lane.b32.xlu0 %v2715_v46, %s1654_s23 }
  0xd1   : > { %v941_v27 = vpop.permute.xlu1 %940 }
  0xd2   : > { %v939_v9 = vpop.permute.xlu0 %938  ;;  %1036 = vst.msk [vmem:[%s1979_s25 + $0x8] sm:$0xff] %vm1034_vm2, %v941_v27 }
  0xd3   : > { %1035 = vst.msk [vmem:[%s1979_s25] sm:$0xff] %vm1034_vm2, %v939_v9  ;;  %1224 = vrot.lane.b32.xlu1 %v2716_v20, %s1654_s23 }
  0xd4   : > { %1222 = vrot.lane.b32.xlu0 %v2717_v57, %s1654_s23 }
  0xd5   : > { %v945_v48 = vpop.permute.xlu1 %944 }
  0xd6   : > { %v943_v29 = vpop.permute.xlu0 %942  ;;  %1038 = vst.msk [vmem:[%s1979_s25 + $0x18] sm:$0xff] %vm1034_vm2, %v945_v48 }
  0xd7   : > { %1037 = vst.msk [vmem:[%s1979_s25 + $0x10] sm:$0xff] %vm1034_vm2, %v943_v29  ;;  %1228 = vrot.lane.b32.xlu1 %v2287_v40, %s1654_s23 }
  0xd8   : > { %1226 = vrot.lane.b32.xlu0 %v2290_v21, %s1654_s23 }
  0xd9   : > { %v949_v16 = vpop.permute.xlu1 %948 }
  0xda   : > { %v947_v36 = vpop.permute.xlu0 %946  ;;  %1040 = vst.msk [vmem:[%s1979_s25 + $0x28] sm:$0xff] %vm1034_vm2, %v949_v16 }
  0xdb   : > { %1039 = vst.msk [vmem:[%s1979_s25 + $0x20] sm:$0xff] %vm1034_vm2, %v947_v36  ;;  %1232 = vrot.lane.b32.xlu1 %v2299_v30, %s1654_s23 }
  0xdc   : > { %1230 = vrot.lane.b32.xlu0 %v2302_v63, %s1654_s23 }
  0xdd   : > { %v953_v42 = vpop.permute.xlu1 %952 }
  0xde   : > { %v951_v41 = vpop.permute.xlu0 %950  ;;  %1042 = vst.msk [vmem:[%s1979_s25 + $0x38] sm:$0xff] %vm1034_vm2, %v953_v42 }
  0xdf   : > { %1041 = vst.msk [vmem:[%s1979_s25 + $0x30] sm:$0xff] %vm1034_vm2, %v951_v41 }
  0xe1   : > { %v957_v21 = vpop.permute.xlu1 %956 }
  0xe2   : > { %v955_v28 = vpop.permute.xlu0 %954  ;;  %1044 = vst.msk [vmem:[%s1979_s25 + $0x48] sm:$0xff] %vm1034_vm2, %v957_v21 }
  0xe3   : > { %1043 = vst.msk [vmem:[%s1979_s25 + $0x40] sm:$0xff] %vm1034_vm2, %v955_v28 }
  0xe5   : > { %v961_v12 = vpop.permute.xlu1 %960 }
  0xe6   : > { %v959_v61 = vpop.permute.xlu0 %958  ;;  %1046 = vst.msk [vmem:[%s1979_s25 + $0x58] sm:$0xff] %vm1034_vm2, %v961_v12 }
  0xe7   : > { %1045 = vst.msk [vmem:[%s1979_s25 + $0x50] sm:$0xff] %vm1034_vm2, %v959_v61 }
  0xe9   : > { %v965_v63 = vpop.permute.xlu1 %964 }
  0xea   : > { %v963_v17 = vpop.permute.xlu0 %962  ;;  %1048 = vst.msk [vmem:[%s1979_s25 + $0x68] sm:$0xff] %vm1034_vm2, %v965_v63 }
  0xeb   : > { %1047 = vst.msk [vmem:[%s1979_s25 + $0x60] sm:$0xff] %vm1034_vm2, %v963_v17 }
  0xed   : > { %v969_v40 = vpop.permute.xlu1 %968 }
  0xee   : > { %v967_v56 = vpop.permute.xlu0 %966  ;;  %1050 = vst.msk [vmem:[%s1979_s25 + $0x78] sm:$0xff] %vm1034_vm2, %v969_v40 }
  0xef   : > { %1049 = vst.msk [vmem:[%s1979_s25 + $0x70] sm:$0xff] %vm1034_vm2, %v967_v56 }
  0xf1   : > { %v973_v4 = vpop.permute.xlu1 %972 }
  0xf2   : > { %v971_v47 = vpop.permute.xlu0 %970  ;;  %1052 = vst.msk [vmem:[%s1979_s25 + $0x88] sm:$0xff] %vm1034_vm2, %v973_v4 }
  0xf3   : > { %1051 = vst.msk [vmem:[%s1979_s25 + $0x80] sm:$0xff] %vm1034_vm2, %v971_v47 }
  0xf5   : > { %v977_v62 = vpop.permute.xlu1 %976 }
  0xf6   : > { %v975_v30 = vpop.permute.xlu0 %974  ;;  %1054 = vst.msk [vmem:[%s1979_s25 + $0x98] sm:$0xff] %vm1034_vm2, %v977_v62 }
  0xf7   : > { %1053 = vst.msk [vmem:[%s1979_s25 + $0x90] sm:$0xff] %vm1034_vm2, %v975_v30 }
  0xf9   : > { %v981_v1 = vpop.permute.xlu1 %980 }
  0xfa   : > { %v979_v25 = vpop.permute.xlu0 %978  ;;  %1056 = vst.msk [vmem:[%s1979_s25 + $0xa8] sm:$0xff] %vm1034_vm2, %v981_v1 }
  0xfb   : > { %1055 = vst.msk [vmem:[%s1979_s25 + $0xa0] sm:$0xff] %vm1034_vm2, %v979_v25 }
  0xfd   : > { %v985_v26 = vpop.permute.xlu1 %984 }
  0xfe   : > { %v983_v31 = vpop.permute.xlu0 %982  ;;  %1058 = vst.msk [vmem:[%s1979_s25 + $0xb8] sm:$0xff] %vm1034_vm2, %v985_v26 }
  0xff   : > { %1057 = vst.msk [vmem:[%s1979_s25 + $0xb0] sm:$0xff] %vm1034_vm2, %v983_v31 }
 0x101   : > { %v989_v32 = vpop.permute.xlu1 %988 }
 0x102   : > { %v987_v33 = vpop.permute.xlu0 %986  ;;  %1060 = vst.msk [vmem:[%s1979_s25 + $0xc8] sm:$0xff] %vm1034_vm2, %v989_v32 }
 0x103   : > { %1059 = vst.msk [vmem:[%s1979_s25 + $0xc0] sm:$0xff] %vm1034_vm2, %v987_v33 }
 0x105   : > { %v993_v37 = vpop.permute.xlu1 %992 }
 0x106   : > { %v991_v38 = vpop.permute.xlu0 %990  ;;  %1062 = vst.msk [vmem:[%s1979_s25 + $0xd8] sm:$0xff] %vm1034_vm2, %v993_v37 }
 0x107   : > { %1061 = vst.msk [vmem:[%s1979_s25 + $0xd0] sm:$0xff] %vm1034_vm2, %v991_v38 }
 0x109   : > { %v997_v39 = vpop.permute.xlu1 %996 }
 0x10a   : > { %v995_v43 = vpop.permute.xlu0 %994  ;;  %1064 = vst.msk [vmem:[%s1979_s25 + $0xe8] sm:$0xff] %vm1034_vm2, %v997_v39 }
 0x10b   : > { %1063 = vst.msk [vmem:[%s1979_s25 + $0xe0] sm:$0xff] %vm1034_vm2, %v995_v43 }
 0x10d   : > { %v1001_v44 = vpop.permute.xlu1 %1000 }
 0x10e   : > { %v999_v50 = vpop.permute.xlu0 %998  ;;  %1066 = vst.msk [vmem:[%s1979_s25 + $0xf8] sm:$0xff] %vm1034_vm2, %v1001_v44 }
 0x10f   : > { %1065 = vst.msk [vmem:[%s1979_s25 + $0xf0] sm:$0xff] %vm1034_vm2, %v999_v50 }
 0x111   : > { %v1173_v51 = vpop.permute.xlu1 %1172 }
 0x112   : > { %v1171_v52 = vpop.permute.xlu0 %1170  ;;  %1268 = vst.msk [vmem:[%s1979_s25 + $0x8] sm:$0xff] %vm1266_vm3, %v1173_v51 }
 0x113   : > { %1267 = vst.msk [vmem:[%s1979_s25] sm:$0xff] %vm1266_vm3, %v1171_v52 }
 0x115   : > { %v1177_v58 = vpop.permute.xlu1 %1176 }
 0x116   : > { %v1175_v59 = vpop.permute.xlu0 %1174  ;;  %1270 = vst.msk [vmem:[%s1979_s25 + $0x18] sm:$0xff] %vm1266_vm3, %v1177_v58 }
 0x117   : > { %1269 = vst.msk [vmem:[%s1979_s25 + $0x10] sm:$0xff] %vm1266_vm3, %v1175_v59 }
 0x119   : > { %v1181_v60 = vpop.permute.xlu1 %1180 }
 0x11a   : > { %v1179_v0 = vpop.permute.xlu0 %1178  ;;  %1272 = vst.msk [vmem:[%s1979_s25 + $0x28] sm:$0xff] %vm1266_vm3, %v1181_v60 }
 0x11b   : > { %1271 = vst.msk [vmem:[%s1979_s25 + $0x20] sm:$0xff] %vm1266_vm3, %v1179_v0 }
 0x11d   : > { %v1185_v2 = vpop.permute.xlu1 %1184 }
 0x11e   : > { %v1183_v3 = vpop.permute.xlu0 %1182  ;;  %1274 = vst.msk [vmem:[%s1979_s25 + $0x38] sm:$0xff] %vm1266_vm3, %v1185_v2 }
 0x11f   : > { %1273 = vst.msk [vmem:[%s1979_s25 + $0x30] sm:$0xff] %vm1266_vm3, %v1183_v3 }
 0x121   : > { %v1189_v6 = vpop.permute.xlu1 %1188 }
 0x122   : > { %v1187_v7 = vpop.permute.xlu0 %1186  ;;  %1276 = vst.msk [vmem:[%s1979_s25 + $0x48] sm:$0xff] %vm1266_vm3, %v1189_v6 }
 0x123   : > { %1275 = vst.msk [vmem:[%s1979_s25 + $0x40] sm:$0xff] %vm1266_vm3, %v1187_v7 }
 0x125   : > { %v1193_v13 = vpop.permute.xlu1 %1192 }
 0x126   : > { %v1191_v14 = vpop.permute.xlu0 %1190  ;;  %1278 = vst.msk [vmem:[%s1979_s25 + $0x58] sm:$0xff] %vm1266_vm3, %v1193_v13 }
 0x127   : > { %1277 = vst.msk [vmem:[%s1979_s25 + $0x50] sm:$0xff] %vm1266_vm3, %v1191_v14 }
 0x129   : > { %v1197_v15 = vpop.permute.xlu1 %1196 }
 0x12a   : > { %v1195_v22 = vpop.permute.xlu0 %1194  ;;  %1280 = vst.msk [vmem:[%s1979_s25 + $0x68] sm:$0xff] %vm1266_vm3, %v1197_v15 }
 0x12b   : > { %1279 = vst.msk [vmem:[%s1979_s25 + $0x60] sm:$0xff] %vm1266_vm3, %v1195_v22 }
 0x12d   : > { %v1201_v23 = vpop.permute.xlu1 %1200 }
 0x12e   : > { %v1199_v34 = vpop.permute.xlu0 %1198  ;;  %1282 = vst.msk [vmem:[%s1979_s25 + $0x78] sm:$0xff] %vm1266_vm3, %v1201_v23 }
 0x12f   : > { %1281 = vst.msk [vmem:[%s1979_s25 + $0x70] sm:$0xff] %vm1266_vm3, %v1199_v34 }
 0x131   : > { %v1205_v35 = vpop.permute.xlu1 %1204 }
 0x132   : > { %v1203_v53 = vpop.permute.xlu0 %1202  ;;  %1284 = vst.msk [vmem:[%s1979_s25 + $0x88] sm:$0xff] %vm1266_vm3, %v1205_v35 }
 0x133   : > { %1283 = vst.msk [vmem:[%s1979_s25 + $0x80] sm:$0xff] %vm1266_vm3, %v1203_v53 }
 0x135   : > { %v1209_v54 = vpop.permute.xlu1 %1208 }
 0x136   : > { %v1207_v5 = vpop.permute.xlu0 %1206  ;;  %1286 = vst.msk [vmem:[%s1979_s25 + $0x98] sm:$0xff] %vm1266_vm3, %v1209_v54 }
 0x137   : > { %1285 = vst.msk [vmem:[%s1979_s25 + $0x90] sm:$0xff] %vm1266_vm3, %v1207_v5 }
 0x139   : > { %v1213_v8 = vpop.permute.xlu1 %1212 }
 0x13a   : > { %v1211_v18 = vpop.permute.xlu0 %1210  ;;  %1288 = vst.msk [vmem:[%s1979_s25 + $0xa8] sm:$0xff] %vm1266_vm3, %v1213_v8 }
 0x13b   : > { %1287 = vst.msk [vmem:[%s1979_s25 + $0xa0] sm:$0xff] %vm1266_vm3, %v1211_v18 }
 0x13d   : > { %v1217_v11 = vpop.permute.xlu1 %1216 }
 0x13e   : > { %v1215_v19 = vpop.permute.xlu0 %1214  ;;  %1290 = vst.msk [vmem:[%s1979_s25 + $0xb8] sm:$0xff] %vm1266_vm3, %v1217_v11 }
 0x13f   : > { %1289 = vst.msk [vmem:[%s1979_s25 + $0xb0] sm:$0xff] %vm1266_vm3, %v1215_v19 }
 0x141   : > { %v1221_v45 = vpop.permute.xlu1 %1220 }
 0x142   : > { %v1219_v55 = vpop.permute.xlu0 %1218  ;;  %1292 = vst.msk [vmem:[%s1979_s25 + $0xc8] sm:$0xff] %vm1266_vm3, %v1221_v45 }
 0x143   : > { %1291 = vst.msk [vmem:[%s1979_s25 + $0xc0] sm:$0xff] %vm1266_vm3, %v1219_v55 }
 0x145   : > { %v1225_v49 = vpop.permute.xlu1 %1224 }
 0x146   : > { %v1223_v10 = vpop.permute.xlu0 %1222  ;;  %1294 = vst.msk [vmem:[%s1979_s25 + $0xd8] sm:$0xff] %vm1266_vm3, %v1225_v49 }
 0x147   : > { %1293 = vst.msk [vmem:[%s1979_s25 + $0xd0] sm:$0xff] %vm1266_vm3, %v1223_v10 }
 0x149   : > { %v1229_v24 = vpop.permute.xlu1 %1228 }
 0x14a   : > { %v1227_v46 = vpop.permute.xlu0 %1226  ;;  %1296 = vst.msk [vmem:[%s1979_s25 + $0xe8] sm:$0xff] %vm1266_vm3, %v1229_v24 }
 0x14b   : > { %1295 = vst.msk [vmem:[%s1979_s25 + $0xe0] sm:$0xff] %vm1266_vm3, %v1227_v46 }
 0x14d   : > { %v1233_v27 = vpop.permute.xlu1 %1232 }
 0x14e   : > { %v1231_v9 = vpop.permute.xlu0 %1230  ;;  %1298 = vst.msk [vmem:[%s1979_s25 + $0xf8] sm:$0xff] %vm1266_vm3, %v1233_v27 }
 0x14f   : > { %1297 = vst.msk [vmem:[%s1979_s25 + $0xf0] sm:$0xff] %vm1266_vm3, %v1231_v9 }
 0x150   : > { %1585 = shalt.err (!%p1582_p5)
}
 0x151   : > { %s1586_s14 = scalar_lea.hbm %s2627_s24, 4096  ;;  %s1590_s11 = scalar_lea.hbm %s2691_s8, 8192 }
 0x152   : > { %p1587_p6 = scmp.ne.s32.totalorder %s2627_s24, %s1586_s14  ;;  %p1591_p10 = scmp.lt.u32.totalorder %s2627_s24, %s2691_s8 }
 0x153   : > { %p1592_p11 = scmp.lt.u32.totalorder %s1590_s11, %s1586_s14  ;;  %p1594_p13 = scmp.lt.u32.totalorder %s1586_s14, %s2627_s24 }
 0x154   : > { %p1588_p7 = pnand %p1587_p6, %p1743_p4 }
 0x155   : > { %p1593_p12 = por %p1592_p11, %p1591_p10 }
 0x156   : > { %p1589_p9 = pneg %p1588_p7 }
 0x157   : > { %p1595_p0 = por %p1594_p13, %p1593_p12 }
 0x159   : > { %p1596_p1 = pnand %p1595_p0, %p1589_p9 }
 0x15b   : > { %1599 = shalt.err (!%p1596_p1)
}
 0x15c   : > { %s1656_s20 = smov 128   ;;  %s1657_s21 = smov 8  }
 0x15d   : > { %1512 = dma.vmem_to_hbm [thread:$0]  (%p1743_p4), %s2629_s16, 4096, %s2627_s24, %s2637_s30, %s1656_s20, %s1656_s20, %s1657_s21  }
 0x15e PF: > { %p1518_p2 = scmp.ge.s32.totalorder %s1650_s10, 2  ;;  %s1330_s22 = sand.u32 1, %s1630_s27  }
 0x15f   : > { %s1331_s19 = scalar_lea.sflag [#allocation3], %s1330_s22 }
 0x160   : > { %p1515_p3 = pnand %p1518_p2, %p1750_p8 }
 0x162   : > { %1625 = dma.done.wait (!%p1515_p3), %s1331_s19, 4096  }
 0x163   : > { %1627 = vsyncadd (!%p1515_p3), %s1331_s19, 4294963200  ;;  %s21_s10 = sadd.s32 1, %s1650_s10   ;;  %s2718_s27 = smov %s1634_s28 }
 0x164   : > { %p18_p5 = scmp.ge.s32.totalorder %s21_s10, 4   ;;  %s2719_s28 = smov %s1638_s29 }
 0x165   : > { %s2720_s29 = smov %s1756_s18  ;;  %s2721_s30 = smov %s1646_s9 }
 0x166   : > { %s2722_s9 = smov %s2724_s13  ;;  %20 = sbr.rel (!%p18_p5) target bundleno = 4 (0x4), region = 108 }
 0x16d   :  { %1336 = vsyncpa [#allocation3], 1 }
 0x16e   :  { %1338 = vsyncpa [#allocation3 + $0x1], 1 }

</bundles_post_ra>
